<compile_context>
chip_gen: v6e
topology: v6e:2x2x1
jax: 0.10.0
libtpu: 0.0.40
codegen_flags: <defaults>
</compile_context>

<pallas_src>
import functools
import math

import jax
import jax.numpy as jnp
from jax.experimental import pallas as pl
from jax.experimental.pallas import tpu as pltpu

NEG = -1e30                      # large negative (f32) used instead of -inf
VMEM_LIMIT = 32 * 1024 * 1024    # safe scoped limit on v5e/v6e/v7x


# ----------------------------- in-kernel math -------------------------------

def _layernorm(x, g, b):
    mu = jnp.mean(x, axis=-1, keepdims=True)
    var = jnp.mean(jnp.square(x - mu), axis=-1, keepdims=True)
    return (x - mu) * jax.lax.rsqrt(var + 1e-5) * g + b


def _mha(q, k, v, kpad, nhead, attn_sc, causal):
    """Multi-head attention on in-register values for one batch row.

    q: (Lq, d), k/v: (Lk, d), kpad: (1, Lk) additive key-padding bias.
    Per-head contexts are written into the (L, d) VMEM scratch `attn_sc` so the
    consumer reads one full-width lane-dense value.
    """
    lq, d = q.shape
    lk = k.shape[0]
    dh = d // nhead
    q = q * (1.0 / math.sqrt(dh))            # fold scale once, not per head
    bias = kpad                               # (1, Lk) broadcasts over queries
    if causal:
        row = jax.lax.broadcasted_iota(jnp.int32, (lq, lk), 0)
        col = jax.lax.broadcasted_iota(jnp.int32, (lq, lk), 1)
        bias = bias + jnp.where(col <= row, 0.0, NEG)
    for h in range(nhead):                    # static unroll over heads
        sl = slice(h * dh, (h + 1) * dh)
        s = jax.lax.dot_general(q[:, sl].astype(jnp.bfloat16),
                                k[:, sl].astype(jnp.bfloat16),
                                (((1,), (1,)), ((), ())),
                                preferred_element_type=jnp.float32)
        s = s + bias                          # masks added in f32
        s = s - jnp.max(s, axis=-1, keepdims=True)
        p = jnp.exp(s)
        p = p * pl.reciprocal(jnp.sum(p, axis=-1, keepdims=True), approx=True)
        attn_sc[0:lq, sl] = jnp.dot(p.astype(jnp.bfloat16),
                                    v[:, sl].astype(jnp.bfloat16),
                                    preferred_element_type=jnp.float32)
    return attn_sc[0:lq, :]


def _self_attn_block(x, p, kpad, nhead, attn_sc, causal):
    d = x.shape[-1]
    xn = _layernorm(x, p["ln_g"][...], p["ln_b"][...])
    qkv = jnp.dot(xn.astype(jnp.bfloat16), p["wqkv"][...],
                  preferred_element_type=jnp.float32) + p["bqkv"][...]
    a = _mha(qkv[:, :d], qkv[:, d:2 * d], qkv[:, 2 * d:], kpad, nhead,
             attn_sc, causal)
    y = jnp.dot(a.astype(jnp.bfloat16), p["wo"][...],
                preferred_element_type=jnp.float32) + p["bo"][...]
    return x + y                               # pre-LN residual


def _cross_attn_block(x, mem, p, kpad, nhead, attn_sc):
    d = x.shape[-1]
    xn = _layernorm(x, p["ln_g"][...], p["ln_b"][...])
    q = jnp.dot(xn.astype(jnp.bfloat16), p["wq"][...],
                preferred_element_type=jnp.float32) + p["bq"][...]
    kv = jnp.dot(mem.astype(jnp.bfloat16), p["wkv"][...],
                 preferred_element_type=jnp.float32) + p["bkv"][...]
    a = _mha(q, kv[:, :d], kv[:, d:], kpad, nhead, attn_sc, causal=False)
    y = jnp.dot(a.astype(jnp.bfloat16), p["wo"][...],
                preferred_element_type=jnp.float32) + p["bo"][...]
    return x + y


def _ffn_block(x, p):
    xn = _layernorm(x, p["ln_g"][...], p["ln_b"][...])
    h = jnp.dot(xn.astype(jnp.bfloat16), p["w1"][...],
                preferred_element_type=jnp.float32) + p["b1"][...]
    h = jnp.maximum(h, 0.0)
    y = jnp.dot(h.astype(jnp.bfloat16), p["w2"][...],
                preferred_element_type=jnp.float32) + p["b2"][...]
    return x + y


# ---------------------------- fused stack kernel ----------------------------

def _stack_kernel(*args, treedef, nleaves, nhead):
    """One grid step == one batch row: encoder stack, decoder stack and the
    generator projection run back-to-back entirely in VMEM."""
    assert len(args) == 4 + nleaves + 2
    src_ref, tgt_ref, spad_ref, tpad_ref = args[:4]
    leaf_refs = list(args[4:4 + nleaves])
    out_ref = args[4 + nleaves]
    attn_sc = args[4 + nleaves + 1]
    w = jax.tree_util.tree_unflatten(treedef, leaf_refs)

    sbias = spad_ref[0]            # (1, Ls) key-padding bias for src keys
    tbias = tpad_ref[0]            # (1, Lt) key-padding bias for tgt keys

    mem = src_ref[...]             # (Ls, emb) f32 encoder residual stream
    for lp in w["enc"]:
        mem = _self_attn_block(mem, lp["attn"], sbias, nhead, attn_sc,
                               causal=False)
        mem = _ffn_block(mem, lp["ffn"])

    x = tgt_ref[...]               # (Lt, emb) decoder residual stream
    for lp in w["dec"]:
        x = _self_attn_block(x, lp["self_attn"], tbias, nhead, attn_sc,
                             causal=True)
        x = _cross_attn_block(x, mem, lp["cross_attn"], sbias, nhead, attn_sc)
        x = _ffn_block(x, lp["ffn"])

    out_ref[...] = jnp.dot(x.astype(jnp.bfloat16), w["gen_w"][...],
                           preferred_element_type=jnp.float32) + w["gen_b"][...]


def fused_transformer(src_emb, tgt_emb, src_kpad, tgt_kpad, params, nhead):
    """src_emb: (B, Ls, E), tgt_emb: (B, Lt, E), kpads: (B, 1, L) f32 bias."""
    b, ls, emb = src_emb.shape
    lt = tgt_emb.shape[1]
    v = params["gen_w"].shape[1]
    weights = {"enc": params["enc"], "dec": params["dec"],
               "gen_w": params["gen_w"], "gen_b": params["gen_b"]}
    leaves, treedef = jax.tree_util.tree_flatten(weights)

    def _resident(a):  # whole array resident in VMEM, constant index map
        return pl.BlockSpec(a.shape, lambda i, _nd=a.ndim: (0,) * _nd)

    in_specs = [
        pl.BlockSpec((ls, emb), lambda i: (i, 0)),       # src embeddings (per b)
        pl.BlockSpec((lt, emb), lambda i: (i, 0)),       # tgt embeddings (per b)
        pl.BlockSpec((1, 1, ls), lambda i: (i, 0, 0)),   # src key-pad bias
        pl.BlockSpec((1, 1, lt), lambda i: (i, 0, 0)),   # tgt key-pad bias
    ] + [_resident(l) for l in leaves]

    out = pl.pallas_call(
        functools.partial(_stack_kernel, treedef=treedef, nleaves=len(leaves),
                          nhead=nhead),
        out_shape=jax.ShapeDtypeStruct((b * lt, v), jnp.float32),
        grid=(b,),
        in_specs=in_specs,
        out_specs=pl.BlockSpec((lt, v), lambda i: (i, 0)),
        scratch_shapes=[pltpu.VMEM((max(ls, lt), emb), jnp.float32)],
        compiler_params=pltpu.CompilerParams(
            dimension_semantics=("parallel",),
            vmem_limit_bytes=VMEM_LIMIT),
    )(src_emb.reshape(b * ls, emb), tgt_emb.reshape(b * lt, emb),
      src_kpad, tgt_kpad, *leaves)
    return out.reshape(b, lt, v)


# ------------------------- parameters & PHM glue ----------------------------

def xavier_uniform(key, shape):
    if len(shape) > 2:
        recept = 1
        for s in shape[2:]:
            recept *= s
        fan_in, fan_out = shape[1] * recept, shape[0] * recept
    else:
        fan_in, fan_out = shape[1], shape[0]
    bound = math.sqrt(6.0 / (fan_in + fan_out))
    return jax.random.uniform(key, shape, jnp.float32, -bound, bound)


def phm_weight(a, s):
    """sum_i kron(A[i], S[i]); A:(n,n,n), S:(n,p,q) -> (n*p, n*q)."""
    n = a.shape[0]
    p, q = s.shape[1], s.shape[2]
    w = jnp.einsum("iab,ipq->apbq", a, s)
    return w.reshape(n * p, n * q)


def init_phm_weight(key, n, in_f, out_f):
    ka, ks = jax.random.split(key)
    a = xavier_uniform(ka, (n, n, n))
    s = xavier_uniform(ks, (n, out_f // n, in_f // n))
    return phm_weight(a, s)                     # (out_f, in_f), f32


def init_params(key, n, nhead, num_enc, num_dec, emb, src_vocab, tgt_vocab, ff):
    keys = iter(jax.random.split(key, 256))
    nk = lambda: next(keys)
    bf, f32 = jnp.bfloat16, jnp.float32

    def zeros2(m):          # kernel-side biases / LN params kept 2-D (1, m)
        return jnp.zeros((1, m), f32)

    def ones2(m):
        return jnp.ones((1, m), f32)

    def attn_self(d):
        wq = init_phm_weight(nk(), n, d, d)
        wk = init_phm_weight(nk(), n, d, d)
        wv = init_phm_weight(nk(), n, d, d)
        wo = init_phm_weight(nk(), n, d, d)
        return {"wqkv": jnp.concatenate([wq.T, wk.T, wv.T], axis=1).astype(bf),
                "bqkv": zeros2(3 * d),
                "wo": wo.T.astype(bf), "bo": zeros2(d),
                "ln_g": ones2(d), "ln_b": zeros2(d)}

    def attn_cross(d):
        wq = init_phm_weight(nk(), n, d, d)
        wk = init_phm_weight(nk(), n, d, d)
        wv = init_phm_weight(nk(), n, d, d)
        wo = init_phm_weight(nk(), n, d, d)
        return {"wq": wq.T.astype(bf), "bq": zeros2(d),
                "wkv": jnp.concatenate([wk.T, wv.T], axis=1).astype(bf),
                "bkv": zeros2(2 * d),
                "wo": wo.T.astype(bf), "bo": zeros2(d),
                "ln_g": ones2(d), "ln_b": zeros2(d)}

    def ffn_p(d, f):
        w1 = init_phm_weight(nk(), n, d, f)     # (f, d)
        w2 = init_phm_weight(nk(), n, f, d)     # (d, f)
        return {"w1": w1.T.astype(bf), "b1": zeros2(f),
                "w2": w2.T.astype(bf), "b2": zeros2(d),
                "ln_g": ones2(d), "ln_b": zeros2(d)}

    def enc_layer():
        return {"attn": attn_self(emb), "ffn": ffn_p(emb, ff)}

    def dec_layer():
        return {"self_attn": attn_self(emb), "cross_attn": attn_cross(emb),
                "ffn": ffn_p(emb, ff)}

    scale = math.sqrt(emb)                      # folded into the table at init
    w_src = init_phm_weight(nk(), n, src_vocab, emb)    # (emb, src_vocab)
    w_tgt = init_phm_weight(nk(), n, tgt_vocab, emb)
    w_gen = init_phm_weight(nk(), n, emb, tgt_vocab)    # (tgt_vocab, emb)
    # generator.bias zeroed per _init_weights; PHM xavier weights kept.
    return {"src_emb_table": (w_src.T * scale).astype(f32),
            "src_emb_bias": jnp.zeros((emb,), f32),
            "tgt_emb_table": (w_tgt.T * scale).astype(f32),
            "tgt_emb_bias": jnp.zeros((emb,), f32),
            "enc": [enc_layer() for _ in range(num_enc)],
            "dec": [dec_layer() for _ in range(num_dec)],
            "gen_w": w_gen.T.astype(bf), "gen_b": zeros2(tgt_vocab)}


# ------------------------------- model glue ---------------------------------

def positional_encoding_table(maxlen, d):
    pos = jnp.arange(maxlen, dtype=jnp.float32)[:, None]
    den = jnp.exp(-jnp.arange(0, d, 2, dtype=jnp.float32) * math.log(10000.0) / d)
    pe = jnp.zeros((maxlen, d), jnp.float32)
    pe = pe.at[:, 0::2].set(jnp.sin(pos * den))
    pe = pe.at[:, 1::2].set(jnp.cos(pos * den))
    return pe


def token_embed(tokens_sb, table, bias, pe):
    # (S, B) int32 -> (B, S, emb): gather from the pre-scaled table + PE add.
    s = tokens_sb.shape[0]
    e = jnp.take(table, tokens_sb.T, axis=0)            # (B, S, emb)
    return e + bias[None, None, :] + pe[None, :s, :]


def pad_bias(tokens_sb, pad_idx):
    # (S, B) -> (B, 1, S) additive f32 key-padding bias (0 keep / NEG masked).
    pad = (tokens_sb.T == pad_idx)
    return jnp.where(pad[:, None, :], NEG, 0.0).astype(jnp.float32)


def transformer_forward(params, src, tgt, pad_idx, *, nhead, emb, maxlen=64):
    ls, b = src.shape
    lt = tgt.shape[0]
    tgt_vocab = params["gen_w"].shape[1]
    pe = positional_encoding_table(maxlen, emb)
    src_kpad = pad_bias(src, pad_idx)
    tgt_kpad = pad_bias(tgt, pad_idx)

    src_emb = token_embed(src, params["src_emb_table"], params["src_emb_bias"], pe)
    tgt_emb = token_embed(tgt, params["tgt_emb_table"], params["tgt_emb_bias"], pe)

    logits = fused_transformer(src_emb, tgt_emb, src_kpad, tgt_kpad, params, nhead)
    return logits.transpose(1, 0, 2)            # (Lt, B, tgt_vocab)


# ---------------------------------- main ------------------------------------

if __name__ == "__main__":
    n = 4
    nhead = 4
    emb = 32
    ff = 64
    num_enc = 2
    num_dec = 2
    src_vocab = 16
    tgt_vocab = 16
    Ls, Lt, B = 8, 8, 2
    pad_idx = 0

    key = jax.random.PRNGKey(0)
    kp, ks, kt = jax.random.split(key, 3)
    params = init_params(kp, n, nhead, num_enc, num_dec, emb, src_vocab,
                         tgt_vocab, ff)

    src = jax.random.randint(ks, (Ls, B), 1, src_vocab).astype(jnp.int32)
    tgt = jax.random.randint(kt, (Lt, B), 1, tgt_vocab).astype(jnp.int32)
    src = src.at[-1, 0].set(pad_idx)   # one padded key position exercises masking

    fwd = jax.jit(functools.partial(transformer_forward, nhead=nhead, emb=emb,
                                    maxlen=64))
    out = fwd(params, src, tgt, pad_idx)
    jax.block_until_ready(out)
    assert out.shape == (Lt, B, tgt_vocab), out.shape
    assert bool(jnp.all(jnp.isfinite(out)))
    print("KERNEL_OK")
</pallas_src>

<mosaic_0001>
module attributes {stable_mosaic.version = 11 : i64} {
  func.func @_stack_kernel(%arg0: i32, %arg1: memref<8x32xf32, #tpu.memory_space<vmem>>, %arg2: memref<8x32xf32, #tpu.memory_space<vmem>>, %arg3: memref<1x1x8xf32, #tpu.memory_space<vmem>>, %arg4: memref<1x1x8xf32, #tpu.memory_space<vmem>>, %arg5: memref<1x64xf32, #tpu.memory_space<vmem>>, %arg6: memref<1x32xf32, #tpu.memory_space<vmem>>, %arg7: memref<1x32xf32, #tpu.memory_space<vmem>>, %arg8: memref<1x32xf32, #tpu.memory_space<vmem>>, %arg9: memref<1x32xf32, #tpu.memory_space<vmem>>, %arg10: memref<32x64xbf16, #tpu.memory_space<vmem>>, %arg11: memref<32x32xbf16, #tpu.memory_space<vmem>>, %arg12: memref<32x32xbf16, #tpu.memory_space<vmem>>, %arg13: memref<1x64xf32, #tpu.memory_space<vmem>>, %arg14: memref<1x32xf32, #tpu.memory_space<vmem>>, %arg15: memref<1x32xf32, #tpu.memory_space<vmem>>, %arg16: memref<1x32xf32, #tpu.memory_space<vmem>>, %arg17: memref<32x64xbf16, #tpu.memory_space<vmem>>, %arg18: memref<64x32xbf16, #tpu.memory_space<vmem>>, %arg19: memref<1x32xf32, #tpu.memory_space<vmem>>, %arg20: memref<1x96xf32, #tpu.memory_space<vmem>>, %arg21: memref<1x32xf32, #tpu.memory_space<vmem>>, %arg22: memref<1x32xf32, #tpu.memory_space<vmem>>, %arg23: memref<32x32xbf16, #tpu.memory_space<vmem>>, %arg24: memref<32x96xbf16, #tpu.memory_space<vmem>>, %arg25: memref<1x64xf32, #tpu.memory_space<vmem>>, %arg26: memref<1x32xf32, #tpu.memory_space<vmem>>, %arg27: memref<1x32xf32, #tpu.memory_space<vmem>>, %arg28: memref<1x32xf32, #tpu.memory_space<vmem>>, %arg29: memref<1x32xf32, #tpu.memory_space<vmem>>, %arg30: memref<32x64xbf16, #tpu.memory_space<vmem>>, %arg31: memref<32x32xbf16, #tpu.memory_space<vmem>>, %arg32: memref<32x32xbf16, #tpu.memory_space<vmem>>, %arg33: memref<1x64xf32, #tpu.memory_space<vmem>>, %arg34: memref<1x32xf32, #tpu.memory_space<vmem>>, %arg35: memref<1x32xf32, #tpu.memory_space<vmem>>, %arg36: memref<1x32xf32, #tpu.memory_space<vmem>>, %arg37: memref<32x64xbf16, #tpu.memory_space<vmem>>, %arg38: memref<64x32xbf16, #tpu.memory_space<vmem>>, %arg39: memref<1x32xf32, #tpu.memory_space<vmem>>, %arg40: memref<1x96xf32, #tpu.memory_space<vmem>>, %arg41: memref<1x32xf32, #tpu.memory_space<vmem>>, %arg42: memref<1x32xf32, #tpu.memory_space<vmem>>, %arg43: memref<32x32xbf16, #tpu.memory_space<vmem>>, %arg44: memref<32x96xbf16, #tpu.memory_space<vmem>>, %arg45: memref<1x32xf32, #tpu.memory_space<vmem>>, %arg46: memref<1x96xf32, #tpu.memory_space<vmem>>, %arg47: memref<1x32xf32, #tpu.memory_space<vmem>>, %arg48: memref<1x32xf32, #tpu.memory_space<vmem>>, %arg49: memref<32x32xbf16, #tpu.memory_space<vmem>>, %arg50: memref<32x96xbf16, #tpu.memory_space<vmem>>, %arg51: memref<1x64xf32, #tpu.memory_space<vmem>>, %arg52: memref<1x32xf32, #tpu.memory_space<vmem>>, %arg53: memref<1x32xf32, #tpu.memory_space<vmem>>, %arg54: memref<1x32xf32, #tpu.memory_space<vmem>>, %arg55: memref<32x64xbf16, #tpu.memory_space<vmem>>, %arg56: memref<64x32xbf16, #tpu.memory_space<vmem>>, %arg57: memref<1x32xf32, #tpu.memory_space<vmem>>, %arg58: memref<1x96xf32, #tpu.memory_space<vmem>>, %arg59: memref<1x32xf32, #tpu.memory_space<vmem>>, %arg60: memref<1x32xf32, #tpu.memory_space<vmem>>, %arg61: memref<32x32xbf16, #tpu.memory_space<vmem>>, %arg62: memref<32x96xbf16, #tpu.memory_space<vmem>>, %arg63: memref<1x64xf32, #tpu.memory_space<vmem>>, %arg64: memref<1x32xf32, #tpu.memory_space<vmem>>, %arg65: memref<1x32xf32, #tpu.memory_space<vmem>>, %arg66: memref<1x32xf32, #tpu.memory_space<vmem>>, %arg67: memref<32x64xbf16, #tpu.memory_space<vmem>>, %arg68: memref<64x32xbf16, #tpu.memory_space<vmem>>, %arg69: memref<1x16xf32, #tpu.memory_space<vmem>>, %arg70: memref<32x16xbf16, #tpu.memory_space<vmem>>, %arg71: memref<8x16xf32, #tpu.memory_space<vmem>>, %arg72: memref<8x32xf32, #tpu.memory_space<vmem>>) attributes {dimension_semantics = [#tpu.dimension_semantics<parallel>], iteration_bounds = array<i64: 2>, scalar_prefetch = 0 : i64, scratch_operands = 1 : i64, tpu.core_type = #tpu.core_type<tc>, window_params = [{transform_indices = @transform_0, window_bounds = array<i64: 8, 32>}, {transform_indices = @transform_1, window_bounds = array<i64: 8, 32>}, {transform_indices = @transform_2, window_bounds = array<i64: 1, 1, 8>}, {transform_indices = @transform_3, window_bounds = array<i64: 1, 1, 8>}, {pipeline_mode = #tpu.pipeline_mode<synchronous>, transform_indices = @transform_4, window_bounds = array<i64: 1, 64>}, {pipeline_mode = #tpu.pipeline_mode<synchronous>, transform_indices = @transform_5, window_bounds = array<i64: 1, 32>}, {pipeline_mode = #tpu.pipeline_mode<synchronous>, transform_indices = @transform_6, window_bounds = array<i64: 1, 32>}, {pipeline_mode = #tpu.pipeline_mode<synchronous>, transform_indices = @transform_7, window_bounds = array<i64: 1, 32>}, {pipeline_mode = #tpu.pipeline_mode<synchronous>, transform_indices = @transform_8, window_bounds = array<i64: 1, 32>}, {pipeline_mode = #tpu.pipeline_mode<synchronous>, transform_indices = @transform_9, window_bounds = array<i64: 32, 64>}, {pipeline_mode = #tpu.pipeline_mode<synchronous>, transform_indices = @transform_10, window_bounds = array<i64: 32, 32>}, {pipeline_mode = #tpu.pipeline_mode<synchronous>, transform_indices = @transform_11, window_bounds = array<i64: 32, 32>}, {pipeline_mode = #tpu.pipeline_mode<synchronous>, transform_indices = @transform_12, window_bounds = array<i64: 1, 64>}, {pipeline_mode = #tpu.pipeline_mode<synchronous>, transform_indices = @transform_13, window_bounds = array<i64: 1, 32>}, {pipeline_mode = #tpu.pipeline_mode<synchronous>, transform_indices = @transform_14, window_bounds = array<i64: 1, 32>}, {pipeline_mode = #tpu.pipeline_mode<synchronous>, transform_indices = @transform_15, window_bounds = array<i64: 1, 32>}, {pipeline_mode = #tpu.pipeline_mode<synchronous>, transform_indices = @transform_16, window_bounds = array<i64: 32, 64>}, {pipeline_mode = #tpu.pipeline_mode<synchronous>, transform_indices = @transform_17, window_bounds = array<i64: 64, 32>}, {pipeline_mode = #tpu.pipeline_mode<synchronous>, transform_indices = @transform_18, window_bounds = array<i64: 1, 32>}, {pipeline_mode = #tpu.pipeline_mode<synchronous>, transform_indices = @transform_19, window_bounds = array<i64: 1, 96>}, {pipeline_mode = #tpu.pipeline_mode<synchronous>, transform_indices = @transform_20, window_bounds = array<i64: 1, 32>}, {pipeline_mode = #tpu.pipeline_mode<synchronous>, transform_indices = @transform_21, window_bounds = array<i64: 1, 32>}, {pipeline_mode = #tpu.pipeline_mode<synchronous>, transform_indices = @transform_22, window_bounds = array<i64: 32, 32>}, {pipeline_mode = #tpu.pipeline_mode<synchronous>, transform_indices = @transform_23, window_bounds = array<i64: 32, 96>}, {pipeline_mode = #tpu.pipeline_mode<synchronous>, transform_indices = @transform_24, window_bounds = array<i64: 1, 64>}, {pipeline_mode = #tpu.pipeline_mode<synchronous>, transform_indices = @transform_25, window_bounds = array<i64: 1, 32>}, {pipeline_mode = #tpu.pipeline_mode<synchronous>, transform_indices = @transform_26, window_bounds = array<i64: 1, 32>}, {pipeline_mode = #tpu.pipeline_mode<synchronous>, transform_indices = @transform_27, window_bounds = array<i64: 1, 32>}, {pipeline_mode = #tpu.pipeline_mode<synchronous>, transform_indices = @transform_28, window_bounds = array<i64: 1, 32>}, {pipeline_mode = #tpu.pipeline_mode<synchronous>, transform_indices = @transform_29, window_bounds = array<i64: 32, 64>}, {pipeline_mode = #tpu.pipeline_mode<synchronous>, transform_indices = @transform_30, window_bounds = array<i64: 32, 32>}, {pipeline_mode = #tpu.pipeline_mode<synchronous>, transform_indices = @transform_31, window_bounds = array<i64: 32, 32>}, {pipeline_mode = #tpu.pipeline_mode<synchronous>, transform_indices = @transform_32, window_bounds = array<i64: 1, 64>}, {pipeline_mode = #tpu.pipeline_mode<synchronous>, transform_indices = @transform_33, window_bounds = array<i64: 1, 32>}, {pipeline_mode = #tpu.pipeline_mode<synchronous>, transform_indices = @transform_34, window_bounds = array<i64: 1, 32>}, {pipeline_mode = #tpu.pipeline_mode<synchronous>, transform_indices = @transform_35, window_bounds = array<i64: 1, 32>}, {pipeline_mode = #tpu.pipeline_mode<synchronous>, transform_indices = @transform_36, window_bounds = array<i64: 32, 64>}, {pipeline_mode = #tpu.pipeline_mode<synchronous>, transform_indices = @transform_37, window_bounds = array<i64: 64, 32>}, {pipeline_mode = #tpu.pipeline_mode<synchronous>, transform_indices = @transform_38, window_bounds = array<i64: 1, 32>}, {pipeline_mode = #tpu.pipeline_mode<synchronous>, transform_indices = @transform_39, window_bounds = array<i64: 1, 96>}, {pipeline_mode = #tpu.pipeline_mode<synchronous>, transform_indices = @transform_40, window_bounds = array<i64: 1, 32>}, {pipeline_mode = #tpu.pipeline_mode<synchronous>, transform_indices = @transform_41, window_bounds = array<i64: 1, 32>}, {pipeline_mode = #tpu.pipeline_mode<synchronous>, transform_indices = @transform_42, window_bounds = array<i64: 32, 32>}, {pipeline_mode = #tpu.pipeline_mode<synchronous>, transform_indices = @transform_43, window_bounds = array<i64: 32, 96>}, {pipeline_mode = #tpu.pipeline_mode<synchronous>, transform_indices = @transform_44, window_bounds = array<i64: 1, 32>}, {pipeline_mode = #tpu.pipeline_mode<synchronous>, transform_indices = @transform_45, window_bounds = array<i64: 1, 96>}, {pipeline_mode = #tpu.pipeline_mode<synchronous>, transform_indices = @transform_46, window_bounds = array<i64: 1, 32>}, {pipeline_mode = #tpu.pipeline_mode<synchronous>, transform_indices = @transform_47, window_bounds = array<i64: 1, 32>}, {pipeline_mode = #tpu.pipeline_mode<synchronous>, transform_indices = @transform_48, window_bounds = array<i64: 32, 32>}, {pipeline_mode = #tpu.pipeline_mode<synchronous>, transform_indices = @transform_49, window_bounds = array<i64: 32, 96>}, {pipeline_mode = #tpu.pipeline_mode<synchronous>, transform_indices = @transform_50, window_bounds = array<i64: 1, 64>}, {pipeline_mode = #tpu.pipeline_mode<synchronous>, transform_indices = @transform_51, window_bounds = array<i64: 1, 32>}, {pipeline_mode = #tpu.pipeline_mode<synchronous>, transform_indices = @transform_52, window_bounds = array<i64: 1, 32>}, {pipeline_mode = #tpu.pipeline_mode<synchronous>, transform_indices = @transform_53, window_bounds = array<i64: 1, 32>}, {pipeline_mode = #tpu.pipeline_mode<synchronous>, transform_indices = @transform_54, window_bounds = array<i64: 32, 64>}, {pipeline_mode = #tpu.pipeline_mode<synchronous>, transform_indices = @transform_55, window_bounds = array<i64: 64, 32>}, {pipeline_mode = #tpu.pipeline_mode<synchronous>, transform_indices = @transform_56, window_bounds = array<i64: 1, 32>}, {pipeline_mode = #tpu.pipeline_mode<synchronous>, transform_indices = @transform_57, window_bounds = array<i64: 1, 96>}, {pipeline_mode = #tpu.pipeline_mode<synchronous>, transform_indices = @transform_58, window_bounds = array<i64: 1, 32>}, {pipeline_mode = #tpu.pipeline_mode<synchronous>, transform_indices = @transform_59, window_bounds = array<i64: 1, 32>}, {pipeline_mode = #tpu.pipeline_mode<synchronous>, transform_indices = @transform_60, window_bounds = array<i64: 32, 32>}, {pipeline_mode = #tpu.pipeline_mode<synchronous>, transform_indices = @transform_61, window_bounds = array<i64: 32, 96>}, {pipeline_mode = #tpu.pipeline_mode<synchronous>, transform_indices = @transform_62, window_bounds = array<i64: 1, 64>}, {pipeline_mode = #tpu.pipeline_mode<synchronous>, transform_indices = @transform_63, window_bounds = array<i64: 1, 32>}, {pipeline_mode = #tpu.pipeline_mode<synchronous>, transform_indices = @transform_64, window_bounds = array<i64: 1, 32>}, {pipeline_mode = #tpu.pipeline_mode<synchronous>, transform_indices = @transform_65, window_bounds = array<i64: 1, 32>}, {pipeline_mode = #tpu.pipeline_mode<synchronous>, transform_indices = @transform_66, window_bounds = array<i64: 32, 64>}, {pipeline_mode = #tpu.pipeline_mode<synchronous>, transform_indices = @transform_67, window_bounds = array<i64: 64, 32>}, {pipeline_mode = #tpu.pipeline_mode<synchronous>, transform_indices = @transform_68, window_bounds = array<i64: 1, 16>}, {pipeline_mode = #tpu.pipeline_mode<synchronous>, transform_indices = @transform_69, window_bounds = array<i64: 32, 16>}, {transform_indices = @transform_70, window_bounds = array<i64: 8, 16>}]} {
    %c0 = arith.constant 0 : index
    %c0_0 = arith.constant 0 : index
    %c0_1 = arith.constant 0 : index
    %0 = vector.load %arg3[%c0, %c0_0, %c0_1] : memref<1x1x8xf32, #tpu.memory_space<vmem>>, vector<1x1x8xf32>
    %1 = vector.shape_cast %0 : vector<1x1x8xf32> to vector<1x8xf32>
    %c0_2 = arith.constant 0 : index
    %c0_3 = arith.constant 0 : index
    %c0_4 = arith.constant 0 : index
    %2 = vector.load %arg4[%c0_2, %c0_3, %c0_4] : memref<1x1x8xf32, #tpu.memory_space<vmem>>, vector<1x1x8xf32>
    %3 = vector.shape_cast %2 : vector<1x1x8xf32> to vector<1x8xf32>
    %c0_5 = arith.constant 0 : index
    %c0_6 = arith.constant 0 : index
    %4 = vector.load %arg1[%c0_5, %c0_6] : memref<8x32xf32, #tpu.memory_space<vmem>>, vector<8x32xf32>
    %c0_7 = arith.constant 0 : index
    %c0_8 = arith.constant 0 : index
    %5 = vector.load %arg48[%c0_7, %c0_8] : memref<1x32xf32, #tpu.memory_space<vmem>>, vector<1x32xf32>
    %c0_9 = arith.constant 0 : index
    %c0_10 = arith.constant 0 : index
    %6 = vector.load %arg47[%c0_9, %c0_10] : memref<1x32xf32, #tpu.memory_space<vmem>>, vector<1x32xf32>
    %cst = arith.constant dense<0.000000e+00> : vector<8xf32>
    %7 = vector.multi_reduction <add>, %4, %cst [1] : vector<8x32xf32> to vector<8xf32>
    %8 = vector.shape_cast %7 : vector<8xf32> to vector<8x1xf32>
    %cst_11 = arith.constant 3.200000e+01 : f32
    %9 = vector.broadcast %cst_11 : f32 to vector<8x1xf32>
    %10 = arith.divf %8, %9 : vector<8x1xf32>
    %11 = vector.broadcast %10 : vector<8x1xf32> to vector<8x32xf32>
    %12 = arith.subf %4, %11 : vector<8x32xf32>
    %13 = arith.mulf %12, %12 : vector<8x32xf32>
    %cst_12 = arith.constant dense<0.000000e+00> : vector<8xf32>
    %14 = vector.multi_reduction <add>, %13, %cst_12 [1] : vector<8x32xf32> to vector<8xf32>
    %15 = vector.shape_cast %14 : vector<8xf32> to vector<8x1xf32>
    %cst_13 = arith.constant 3.200000e+01 : f32
    %16 = vector.broadcast %cst_13 : f32 to vector<8x1xf32>
    %17 = arith.divf %15, %16 : vector<8x1xf32>
    %18 = vector.broadcast %10 : vector<8x1xf32> to vector<8x32xf32>
    %19 = arith.subf %4, %18 : vector<8x32xf32>
    %cst_14 = arith.constant 9.99999974E-6 : f32
    %20 = vector.broadcast %cst_14 : f32 to vector<8x1xf32>
    %21 = arith.addf %17, %20 : vector<8x1xf32>
    %22 = math.rsqrt %21 : vector<8x1xf32>
    %23 = vector.broadcast %22 : vector<8x1xf32> to vector<8x32xf32>
    %24 = arith.mulf %19, %23 : vector<8x32xf32>
    %25 = vector.broadcast %5 : vector<1x32xf32> to vector<8x32xf32>
    %26 = arith.mulf %24, %25 : vector<8x32xf32>
    %27 = vector.broadcast %6 : vector<1x32xf32> to vector<8x32xf32>
    %28 = arith.addf %26, %27 : vector<8x32xf32>
    %29 = arith.truncf %28 : vector<8x32xf32> to vector<8x32xbf16>
    %c0_15 = arith.constant 0 : index
    %c0_16 = arith.constant 0 : index
    %30 = vector.load %arg50[%c0_15, %c0_16] : memref<32x96xbf16, #tpu.memory_space<vmem>>, vector<32x96xbf16>
    %cst_17 = arith.constant dense<0.000000e+00> : vector<8x96xf32>
    %31 = tpu.matmul %29, %30, %cst_17 {dimension_numbers = #tpu.dot_dimension_numbers<[1], [0], [0], [1], [0, 0, 1, 1], [], []>} : vector<8x32xbf16>, vector<32x96xbf16>, vector<8x96xf32> -> vector<8x96xf32>
    %c0_18 = arith.constant 0 : index
    %c0_19 = arith.constant 0 : index
    %32 = vector.load %arg46[%c0_18, %c0_19] : memref<1x96xf32, #tpu.memory_space<vmem>>, vector<1x96xf32>
    %33 = vector.broadcast %32 : vector<1x96xf32> to vector<8x96xf32>
    %34 = arith.addf %31, %33 : vector<8x96xf32>
    %35 = vector.extract_strided_slice %34 {offsets = [0, 0], sizes = [8, 32], strides = [1, 1]} : vector<8x96xf32> to vector<8x32xf32>
    %36 = vector.extract_strided_slice %34 {offsets = [0, 32], sizes = [8, 32], strides = [1, 1]} : vector<8x96xf32> to vector<8x32xf32>
    %37 = vector.extract_strided_slice %34 {offsets = [0, 64], sizes = [8, 32], strides = [1, 1]} : vector<8x96xf32> to vector<8x32xf32>
    %cst_20 = arith.constant 0.353553385 : f32
    %38 = vector.broadcast %cst_20 : f32 to vector<8x32xf32>
    %39 = arith.mulf %35, %38 : vector<8x32xf32>
    %40 = vector.extract_strided_slice %39 {offsets = [0, 0], sizes = [8, 8], strides = [1, 1]} : vector<8x32xf32> to vector<8x8xf32>
    %41 = arith.truncf %40 : vector<8x8xf32> to vector<8x8xbf16>
    %42 = vector.extract_strided_slice %36 {offsets = [0, 0], sizes = [8, 8], strides = [1, 1]} : vector<8x32xf32> to vector<8x8xf32>
    %43 = arith.truncf %42 : vector<8x8xf32> to vector<8x8xbf16>
    %cst_21 = arith.constant dense<0.000000e+00> : vector<8x8xf32>
    %44 = tpu.matmul %41, %43, %cst_21 {dimension_numbers = #tpu.dot_dimension_numbers<[1], [1], [0], [0], [0, 0, 1, 0], [], []>} : vector<8x8xbf16>, vector<8x8xbf16>, vector<8x8xf32> -> vector<8x8xf32>
    %45 = vector.broadcast %1 : vector<1x8xf32> to vector<8x8xf32>
    %46 = arith.addf %44, %45 : vector<8x8xf32>
    %cst_22 = arith.constant dense<0xFF800000> : vector<8xf32>
    %47 = vector.multi_reduction <maximumf>, %46, %cst_22 [1] : vector<8x8xf32> to vector<8xf32>
    %48 = vector.shape_cast %47 : vector<8xf32> to vector<8x1xf32>
    %49 = vector.broadcast %48 : vector<8x1xf32> to vector<8x8xf32>
    %50 = arith.subf %46, %49 : vector<8x8xf32>
    %51 = math.exp %50 : vector<8x8xf32>
    %cst_23 = arith.constant dense<0.000000e+00> : vector<8xf32>
    %52 = vector.multi_reduction <add>, %51, %cst_23 [1] : vector<8x8xf32> to vector<8xf32>
    %53 = vector.shape_cast %52 : vector<8xf32> to vector<8x1xf32>
    %54 = tpu.reciprocal %53 {approx = true} : vector<8x1xf32> -> vector<8x1xf32>
    %55 = vector.broadcast %54 : vector<8x1xf32> to vector<8x8xf32>
    %56 = arith.mulf %51, %55 : vector<8x8xf32>
    %57 = arith.truncf %56 : vector<8x8xf32> to vector<8x8xbf16>
    %58 = vector.extract_strided_slice %37 {offsets = [0, 0], sizes = [8, 8], strides = [1, 1]} : vector<8x32xf32> to vector<8x8xf32>
    %59 = arith.truncf %58 : vector<8x8xf32> to vector<8x8xbf16>
    %cst_24 = arith.constant dense<0.000000e+00> : vector<8x8xf32>
    %60 = tpu.matmul %57, %59, %cst_24 {dimension_numbers = #tpu.dot_dimension_numbers<[1], [0], [0], [1], [0, 0, 1, 1], [], []>} : vector<8x8xbf16>, vector<8x8xbf16>, vector<8x8xf32> -> vector<8x8xf32>
    %c0_25 = arith.constant 0 : index
    %c0_26 = arith.constant 0 : index
    %61 = vector.load %arg72[%c0_25, %c0_26] : memref<8x32xf32, #tpu.memory_space<vmem>>, vector<8x8xf32>
    tpu.vector_store %arg72[%c0_25, %c0_26], %60 {strides = array<i32>} : memref<8x32xf32, #tpu.memory_space<vmem>>, vector<8x8xf32>,
    %62 = vector.extract_strided_slice %39 {offsets = [0, 8], sizes = [8, 8], strides = [1, 1]} : vector<8x32xf32> to vector<8x8xf32>
    %63 = arith.truncf %62 : vector<8x8xf32> to vector<8x8xbf16>
    %64 = vector.extract_strided_slice %36 {offsets = [0, 8], sizes = [8, 8], strides = [1, 1]} : vector<8x32xf32> to vector<8x8xf32>
    %65 = arith.truncf %64 : vector<8x8xf32> to vector<8x8xbf16>
    %cst_27 = arith.constant dense<0.000000e+00> : vector<8x8xf32>
    %66 = tpu.matmul %63, %65, %cst_27 {dimension_numbers = #tpu.dot_dimension_numbers<[1], [1], [0], [0], [0, 0, 1, 0], [], []>} : vector<8x8xbf16>, vector<8x8xbf16>, vector<8x8xf32> -> vector<8x8xf32>
    %67 = vector.broadcast %1 : vector<1x8xf32> to vector<8x8xf32>
    %68 = arith.addf %66, %67 : vector<8x8xf32>
    %cst_28 = arith.constant dense<0xFF800000> : vector<8xf32>
    %69 = vector.multi_reduction <maximumf>, %68, %cst_28 [1] : vector<8x8xf32> to vector<8xf32>
    %70 = vector.shape_cast %69 : vector<8xf32> to vector<8x1xf32>
    %71 = vector.broadcast %70 : vector<8x1xf32> to vector<8x8xf32>
    %72 = arith.subf %68, %71 : vector<8x8xf32>
    %73 = math.exp %72 : vector<8x8xf32>
    %cst_29 = arith.constant dense<0.000000e+00> : vector<8xf32>
    %74 = vector.multi_reduction <add>, %73, %cst_29 [1] : vector<8x8xf32> to vector<8xf32>
    %75 = vector.shape_cast %74 : vector<8xf32> to vector<8x1xf32>
    %76 = tpu.reciprocal %75 {approx = true} : vector<8x1xf32> -> vector<8x1xf32>
    %77 = vector.broadcast %76 : vector<8x1xf32> to vector<8x8xf32>
    %78 = arith.mulf %73, %77 : vector<8x8xf32>
    %79 = arith.truncf %78 : vector<8x8xf32> to vector<8x8xbf16>
    %80 = vector.extract_strided_slice %37 {offsets = [0, 8], sizes = [8, 8], strides = [1, 1]} : vector<8x32xf32> to vector<8x8xf32>
    %81 = arith.truncf %80 : vector<8x8xf32> to vector<8x8xbf16>
    %cst_30 = arith.constant dense<0.000000e+00> : vector<8x8xf32>
    %82 = tpu.matmul %79, %81, %cst_30 {dimension_numbers = #tpu.dot_dimension_numbers<[1], [0], [0], [1], [0, 0, 1, 1], [], []>} : vector<8x8xbf16>, vector<8x8xbf16>, vector<8x8xf32> -> vector<8x8xf32>
    %c0_31 = arith.constant 0 : index
    %c8 = arith.constant 8 : index
    %83 = vector.load %arg72[%c0_31, %c8] : memref<8x32xf32, #tpu.memory_space<vmem>>, vector<8x8xf32>
    tpu.vector_store %arg72[%c0_31, %c8], %82 {strides = array<i32>} : memref<8x32xf32, #tpu.memory_space<vmem>>, vector<8x8xf32>,
    %84 = vector.extract_strided_slice %39 {offsets = [0, 16], sizes = [8, 8], strides = [1, 1]} : vector<8x32xf32> to vector<8x8xf32>
    %85 = arith.truncf %84 : vector<8x8xf32> to vector<8x8xbf16>
    %86 = vector.extract_strided_slice %36 {offsets = [0, 16], sizes = [8, 8], strides = [1, 1]} : vector<8x32xf32> to vector<8x8xf32>
    %87 = arith.truncf %86 : vector<8x8xf32> to vector<8x8xbf16>
    %cst_32 = arith.constant dense<0.000000e+00> : vector<8x8xf32>
    %88 = tpu.matmul %85, %87, %cst_32 {dimension_numbers = #tpu.dot_dimension_numbers<[1], [1], [0], [0], [0, 0, 1, 0], [], []>} : vector<8x8xbf16>, vector<8x8xbf16>, vector<8x8xf32> -> vector<8x8xf32>
    %89 = vector.broadcast %1 : vector<1x8xf32> to vector<8x8xf32>
    %90 = arith.addf %88, %89 : vector<8x8xf32>
    %cst_33 = arith.constant dense<0xFF800000> : vector<8xf32>
    %91 = vector.multi_reduction <maximumf>, %90, %cst_33 [1] : vector<8x8xf32> to vector<8xf32>
    %92 = vector.shape_cast %91 : vector<8xf32> to vector<8x1xf32>
    %93 = vector.broadcast %92 : vector<8x1xf32> to vector<8x8xf32>
    %94 = arith.subf %90, %93 : vector<8x8xf32>
    %95 = math.exp %94 : vector<8x8xf32>
    %cst_34 = arith.constant dense<0.000000e+00> : vector<8xf32>
    %96 = vector.multi_reduction <add>, %95, %cst_34 [1] : vector<8x8xf32> to vector<8xf32>
    %97 = vector.shape_cast %96 : vector<8xf32> to vector<8x1xf32>
    %98 = tpu.reciprocal %97 {approx = true} : vector<8x1xf32> -> vector<8x1xf32>
    %99 = vector.broadcast %98 : vector<8x1xf32> to vector<8x8xf32>
    %100 = arith.mulf %95, %99 : vector<8x8xf32>
    %101 = arith.truncf %100 : vector<8x8xf32> to vector<8x8xbf16>
    %102 = vector.extract_strided_slice %37 {offsets = [0, 16], sizes = [8, 8], strides = [1, 1]} : vector<8x32xf32> to vector<8x8xf32>
    %103 = arith.truncf %102 : vector<8x8xf32> to vector<8x8xbf16>
    %cst_35 = arith.constant dense<0.000000e+00> : vector<8x8xf32>
    %104 = tpu.matmul %101, %103, %cst_35 {dimension_numbers = #tpu.dot_dimension_numbers<[1], [0], [0], [1], [0, 0, 1, 1], [], []>} : vector<8x8xbf16>, vector<8x8xbf16>, vector<8x8xf32> -> vector<8x8xf32>
    %c0_36 = arith.constant 0 : index
    %c16 = arith.constant 16 : index
    %105 = vector.load %arg72[%c0_36, %c16] : memref<8x32xf32, #tpu.memory_space<vmem>>, vector<8x8xf32>
    tpu.vector_store %arg72[%c0_36, %c16], %104 {strides = array<i32>} : memref<8x32xf32, #tpu.memory_space<vmem>>, vector<8x8xf32>,
    %106 = vector.extract_strided_slice %39 {offsets = [0, 24], sizes = [8, 8], strides = [1, 1]} : vector<8x32xf32> to vector<8x8xf32>
    %107 = arith.truncf %106 : vector<8x8xf32> to vector<8x8xbf16>
    %108 = vector.extract_strided_slice %36 {offsets = [0, 24], sizes = [8, 8], strides = [1, 1]} : vector<8x32xf32> to vector<8x8xf32>
    %109 = arith.truncf %108 : vector<8x8xf32> to vector<8x8xbf16>
    %cst_37 = arith.constant dense<0.000000e+00> : vector<8x8xf32>
    %110 = tpu.matmul %107, %109, %cst_37 {dimension_numbers = #tpu.dot_dimension_numbers<[1], [1], [0], [0], [0, 0, 1, 0], [], []>} : vector<8x8xbf16>, vector<8x8xbf16>, vector<8x8xf32> -> vector<8x8xf32>
    %111 = vector.broadcast %1 : vector<1x8xf32> to vector<8x8xf32>
    %112 = arith.addf %110, %111 : vector<8x8xf32>
    %cst_38 = arith.constant dense<0xFF800000> : vector<8xf32>
    %113 = vector.multi_reduction <maximumf>, %112, %cst_38 [1] : vector<8x8xf32> to vector<8xf32>
    %114 = vector.shape_cast %113 : vector<8xf32> to vector<8x1xf32>
    %115 = vector.broadcast %114 : vector<8x1xf32> to vector<8x8xf32>
    %116 = arith.subf %112, %115 : vector<8x8xf32>
    %117 = math.exp %116 : vector<8x8xf32>
    %cst_39 = arith.constant dense<0.000000e+00> : vector<8xf32>
    %118 = vector.multi_reduction <add>, %117, %cst_39 [1] : vector<8x8xf32> to vector<8xf32>
    %119 = vector.shape_cast %118 : vector<8xf32> to vector<8x1xf32>
    %120 = tpu.reciprocal %119 {approx = true} : vector<8x1xf32> -> vector<8x1xf32>
    %121 = vector.broadcast %120 : vector<8x1xf32> to vector<8x8xf32>
    %122 = arith.mulf %117, %121 : vector<8x8xf32>
    %123 = arith.truncf %122 : vector<8x8xf32> to vector<8x8xbf16>
    %124 = vector.extract_strided_slice %37 {offsets = [0, 24], sizes = [8, 8], strides = [1, 1]} : vector<8x32xf32> to vector<8x8xf32>
    %125 = arith.truncf %124 : vector<8x8xf32> to vector<8x8xbf16>
    %cst_40 = arith.constant dense<0.000000e+00> : vector<8x8xf32>
    %126 = tpu.matmul %123, %125, %cst_40 {dimension_numbers = #tpu.dot_dimension_numbers<[1], [0], [0], [1], [0, 0, 1, 1], [], []>} : vector<8x8xbf16>, vector<8x8xbf16>, vector<8x8xf32> -> vector<8x8xf32>
    %c0_41 = arith.constant 0 : index
    %c24 = arith.constant 24 : index
    %127 = vector.load %arg72[%c0_41, %c24] : memref<8x32xf32, #tpu.memory_space<vmem>>, vector<8x8xf32>
    tpu.vector_store %arg72[%c0_41, %c24], %126 {strides = array<i32>} : memref<8x32xf32, #tpu.memory_space<vmem>>, vector<8x8xf32>,
    %c0_42 = arith.constant 0 : index
    %c0_43 = arith.constant 0 : index
    %128 = vector.load %arg72[%c0_42, %c0_43] : memref<8x32xf32, #tpu.memory_space<vmem>>, vector<8x32xf32>
    %129 = arith.truncf %128 : vector<8x32xf32> to vector<8x32xbf16>
    %c0_44 = arith.constant 0 : index
    %c0_45 = arith.constant 0 : index
    %130 = vector.load %arg49[%c0_44, %c0_45] : memref<32x32xbf16, #tpu.memory_space<vmem>>, vector<32x32xbf16>
    %cst_46 = arith.constant dense<0.000000e+00> : vector<8x32xf32>
    %131 = tpu.matmul %129, %130, %cst_46 {dimension_numbers = #tpu.dot_dimension_numbers<[1], [0], [0], [1], [0, 0, 1, 1], [], []>} : vector<8x32xbf16>, vector<32x32xbf16>, vector<8x32xf32> -> vector<8x32xf32>
    %c0_47 = arith.constant 0 : index
    %c0_48 = arith.constant 0 : index
    %132 = vector.load %arg45[%c0_47, %c0_48] : memref<1x32xf32, #tpu.memory_space<vmem>>, vector<1x32xf32>
    %133 = vector.broadcast %132 : vector<1x32xf32> to vector<8x32xf32>
    %134 = arith.addf %131, %133 : vector<8x32xf32>
    %135 = arith.addf %4, %134 : vector<8x32xf32>
    %c0_49 = arith.constant 0 : index
    %c0_50 = arith.constant 0 : index
    %136 = vector.load %arg54[%c0_49, %c0_50] : memref<1x32xf32, #tpu.memory_space<vmem>>, vector<1x32xf32>
    %c0_51 = arith.constant 0 : index
    %c0_52 = arith.constant 0 : index
    %137 = vector.load %arg53[%c0_51, %c0_52] : memref<1x32xf32, #tpu.memory_space<vmem>>, vector<1x32xf32>
    %cst_53 = arith.constant dense<0.000000e+00> : vector<8xf32>
    %138 = vector.multi_reduction <add>, %135, %cst_53 [1] : vector<8x32xf32> to vector<8xf32>
    %139 = vector.shape_cast %138 : vector<8xf32> to vector<8x1xf32>
    %cst_54 = arith.constant 3.200000e+01 : f32
    %140 = vector.broadcast %cst_54 : f32 to vector<8x1xf32>
    %141 = arith.divf %139, %140 : vector<8x1xf32>
    %142 = vector.broadcast %141 : vector<8x1xf32> to vector<8x32xf32>
    %143 = arith.subf %135, %142 : vector<8x32xf32>
    %144 = arith.mulf %143, %143 : vector<8x32xf32>
    %cst_55 = arith.constant dense<0.000000e+00> : vector<8xf32>
    %145 = vector.multi_reduction <add>, %144, %cst_55 [1] : vector<8x32xf32> to vector<8xf32>
    %146 = vector.shape_cast %145 : vector<8xf32> to vector<8x1xf32>
    %cst_56 = arith.constant 3.200000e+01 : f32
    %147 = vector.broadcast %cst_56 : f32 to vector<8x1xf32>
    %148 = arith.divf %146, %147 : vector<8x1xf32>
    %149 = vector.broadcast %141 : vector<8x1xf32> to vector<8x32xf32>
    %150 = arith.subf %135, %149 : vector<8x32xf32>
    %cst_57 = arith.constant 9.99999974E-6 : f32
    %151 = vector.broadcast %cst_57 : f32 to vector<8x1xf32>
    %152 = arith.addf %148, %151 : vector<8x1xf32>
    %153 = math.rsqrt %152 : vector<8x1xf32>
    %154 = vector.broadcast %153 : vector<8x1xf32> to vector<8x32xf32>
    %155 = arith.mulf %150, %154 : vector<8x32xf32>
    %156 = vector.broadcast %136 : vector<1x32xf32> to vector<8x32xf32>
    %157 = arith.mulf %155, %156 : vector<8x32xf32>
    %158 = vector.broadcast %137 : vector<1x32xf32> to vector<8x32xf32>
    %159 = arith.addf %157, %158 : vector<8x32xf32>
    %160 = arith.truncf %159 : vector<8x32xf32> to vector<8x32xbf16>
    %c0_58 = arith.constant 0 : index
    %c0_59 = arith.constant 0 : index
    %161 = vector.load %arg55[%c0_58, %c0_59] : memref<32x64xbf16, #tpu.memory_space<vmem>>, vector<32x64xbf16>
    %cst_60 = arith.constant dense<0.000000e+00> : vector<8x64xf32>
    %162 = tpu.matmul %160, %161, %cst_60 {dimension_numbers = #tpu.dot_dimension_numbers<[1], [0], [0], [1], [0, 0, 1, 1], [], []>} : vector<8x32xbf16>, vector<32x64xbf16>, vector<8x64xf32> -> vector<8x64xf32>
    %c0_61 = arith.constant 0 : index
    %c0_62 = arith.constant 0 : index
    %163 = vector.load %arg51[%c0_61, %c0_62] : memref<1x64xf32, #tpu.memory_space<vmem>>, vector<1x64xf32>
    %164 = vector.broadcast %163 : vector<1x64xf32> to vector<8x64xf32>
    %165 = arith.addf %162, %164 : vector<8x64xf32>
    %cst_63 = arith.constant 0.000000e+00 : f32
    %166 = vector.broadcast %cst_63 : f32 to vector<8x64xf32>
    %167 = arith.maximumf %165, %166 : vector<8x64xf32>
    %168 = arith.truncf %167 : vector<8x64xf32> to vector<8x64xbf16>
    %c0_64 = arith.constant 0 : index
    %c0_65 = arith.constant 0 : index
    %169 = vector.load %arg56[%c0_64, %c0_65] : memref<64x32xbf16, #tpu.memory_space<vmem>>, vector<64x32xbf16>
    %cst_66 = arith.constant dense<0.000000e+00> : vector<8x32xf32>
    %170 = tpu.matmul %168, %169, %cst_66 {dimension_numbers = #tpu.dot_dimension_numbers<[1], [0], [0], [1], [0, 0, 1, 1], [], []>} : vector<8x64xbf16>, vector<64x32xbf16>, vector<8x32xf32> -> vector<8x32xf32>
    %c0_67 = arith.constant 0 : index
    %c0_68 = arith.constant 0 : index
    %171 = vector.load %arg52[%c0_67, %c0_68] : memref<1x32xf32, #tpu.memory_space<vmem>>, vector<1x32xf32>
    %172 = vector.broadcast %171 : vector<1x32xf32> to vector<8x32xf32>
    %173 = arith.addf %170, %172 : vector<8x32xf32>
    %174 = arith.addf %135, %173 : vector<8x32xf32>
    %c0_69 = arith.constant 0 : index
    %c0_70 = arith.constant 0 : index
    %175 = vector.load %arg60[%c0_69, %c0_70] : memref<1x32xf32, #tpu.memory_space<vmem>>, vector<1x32xf32>
    %c0_71 = arith.constant 0 : index
    %c0_72 = arith.constant 0 : index
    %176 = vector.load %arg59[%c0_71, %c0_72] : memref<1x32xf32, #tpu.memory_space<vmem>>, vector<1x32xf32>
    %cst_73 = arith.constant dense<0.000000e+00> : vector<8xf32>
    %177 = vector.multi_reduction <add>, %174, %cst_73 [1] : vector<8x32xf32> to vector<8xf32>
    %178 = vector.shape_cast %177 : vector<8xf32> to vector<8x1xf32>
    %cst_74 = arith.constant 3.200000e+01 : f32
    %179 = vector.broadcast %cst_74 : f32 to vector<8x1xf32>
    %180 = arith.divf %178, %179 : vector<8x1xf32>
    %181 = vector.broadcast %180 : vector<8x1xf32> to vector<8x32xf32>
    %182 = arith.subf %174, %181 : vector<8x32xf32>
    %183 = arith.mulf %182, %182 : vector<8x32xf32>
    %cst_75 = arith.constant dense<0.000000e+00> : vector<8xf32>
    %184 = vector.multi_reduction <add>, %183, %cst_75 [1] : vector<8x32xf32> to vector<8xf32>
    %185 = vector.shape_cast %184 : vector<8xf32> to vector<8x1xf32>
    %cst_76 = arith.constant 3.200000e+01 : f32
    %186 = vector.broadcast %cst_76 : f32 to vector<8x1xf32>
    %187 = arith.divf %185, %186 : vector<8x1xf32>
    %188 = vector.broadcast %180 : vector<8x1xf32> to vector<8x32xf32>
    %189 = arith.subf %174, %188 : vector<8x32xf32>
    %cst_77 = arith.constant 9.99999974E-6 : f32
    %190 = vector.broadcast %cst_77 : f32 to vector<8x1xf32>
    %191 = arith.addf %187, %190 : vector<8x1xf32>
    %192 = math.rsqrt %191 : vector<8x1xf32>
    %193 = vector.broadcast %192 : vector<8x1xf32> to vector<8x32xf32>
    %194 = arith.mulf %189, %193 : vector<8x32xf32>
    %195 = vector.broadcast %175 : vector<1x32xf32> to vector<8x32xf32>
    %196 = arith.mulf %194, %195 : vector<8x32xf32>
    %197 = vector.broadcast %176 : vector<1x32xf32> to vector<8x32xf32>
    %198 = arith.addf %196, %197 : vector<8x32xf32>
    %199 = arith.truncf %198 : vector<8x32xf32> to vector<8x32xbf16>
    %c0_78 = arith.constant 0 : index
    %c0_79 = arith.constant 0 : index
    %200 = vector.load %arg62[%c0_78, %c0_79] : memref<32x96xbf16, #tpu.memory_space<vmem>>, vector<32x96xbf16>
    %cst_80 = arith.constant dense<0.000000e+00> : vector<8x96xf32>
    %201 = tpu.matmul %199, %200, %cst_80 {dimension_numbers = #tpu.dot_dimension_numbers<[1], [0], [0], [1], [0, 0, 1, 1], [], []>} : vector<8x32xbf16>, vector<32x96xbf16>, vector<8x96xf32> -> vector<8x96xf32>
    %c0_81 = arith.constant 0 : index
    %c0_82 = arith.constant 0 : index
    %202 = vector.load %arg58[%c0_81, %c0_82] : memref<1x96xf32, #tpu.memory_space<vmem>>, vector<1x96xf32>
    %203 = vector.broadcast %202 : vector<1x96xf32> to vector<8x96xf32>
    %204 = arith.addf %201, %203 : vector<8x96xf32>
    %205 = vector.extract_strided_slice %204 {offsets = [0, 0], sizes = [8, 32], strides = [1, 1]} : vector<8x96xf32> to vector<8x32xf32>
    %206 = vector.extract_strided_slice %204 {offsets = [0, 32], sizes = [8, 32], strides = [1, 1]} : vector<8x96xf32> to vector<8x32xf32>
    %207 = vector.extract_strided_slice %204 {offsets = [0, 64], sizes = [8, 32], strides = [1, 1]} : vector<8x96xf32> to vector<8x32xf32>
    %cst_83 = arith.constant 0.353553385 : f32
    %208 = vector.broadcast %cst_83 : f32 to vector<8x32xf32>
    %209 = arith.mulf %205, %208 : vector<8x32xf32>
    %210 = vector.extract_strided_slice %209 {offsets = [0, 0], sizes = [8, 8], strides = [1, 1]} : vector<8x32xf32> to vector<8x8xf32>
    %211 = arith.truncf %210 : vector<8x8xf32> to vector<8x8xbf16>
    %212 = vector.extract_strided_slice %206 {offsets = [0, 0], sizes = [8, 8], strides = [1, 1]} : vector<8x32xf32> to vector<8x8xf32>
    %213 = arith.truncf %212 : vector<8x8xf32> to vector<8x8xbf16>
    %cst_84 = arith.constant dense<0.000000e+00> : vector<8x8xf32>
    %214 = tpu.matmul %211, %213, %cst_84 {dimension_numbers = #tpu.dot_dimension_numbers<[1], [1], [0], [0], [0, 0, 1, 0], [], []>} : vector<8x8xbf16>, vector<8x8xbf16>, vector<8x8xf32> -> vector<8x8xf32>
    %215 = vector.broadcast %1 : vector<1x8xf32> to vector<8x8xf32>
    %216 = arith.addf %214, %215 : vector<8x8xf32>
    %cst_85 = arith.constant dense<0xFF800000> : vector<8xf32>
    %217 = vector.multi_reduction <maximumf>, %216, %cst_85 [1] : vector<8x8xf32> to vector<8xf32>
    %218 = vector.shape_cast %217 : vector<8xf32> to vector<8x1xf32>
    %219 = vector.broadcast %218 : vector<8x1xf32> to vector<8x8xf32>
    %220 = arith.subf %216, %219 : vector<8x8xf32>
    %221 = math.exp %220 : vector<8x8xf32>
    %cst_86 = arith.constant dense<0.000000e+00> : vector<8xf32>
    %222 = vector.multi_reduction <add>, %221, %cst_86 [1] : vector<8x8xf32> to vector<8xf32>
    %223 = vector.shape_cast %222 : vector<8xf32> to vector<8x1xf32>
    %224 = tpu.reciprocal %223 {approx = true} : vector<8x1xf32> -> vector<8x1xf32>
    %225 = vector.broadcast %224 : vector<8x1xf32> to vector<8x8xf32>
    %226 = arith.mulf %221, %225 : vector<8x8xf32>
    %227 = arith.truncf %226 : vector<8x8xf32> to vector<8x8xbf16>
    %228 = vector.extract_strided_slice %207 {offsets = [0, 0], sizes = [8, 8], strides = [1, 1]} : vector<8x32xf32> to vector<8x8xf32>
    %229 = arith.truncf %228 : vector<8x8xf32> to vector<8x8xbf16>
    %cst_87 = arith.constant dense<0.000000e+00> : vector<8x8xf32>
    %230 = tpu.matmul %227, %229, %cst_87 {dimension_numbers = #tpu.dot_dimension_numbers<[1], [0], [0], [1], [0, 0, 1, 1], [], []>} : vector<8x8xbf16>, vector<8x8xbf16>, vector<8x8xf32> -> vector<8x8xf32>
    %c0_88 = arith.constant 0 : index
    %c0_89 = arith.constant 0 : index
    %231 = vector.load %arg72[%c0_88, %c0_89] : memref<8x32xf32, #tpu.memory_space<vmem>>, vector<8x8xf32>
    tpu.vector_store %arg72[%c0_88, %c0_89], %230 {strides = array<i32>} : memref<8x32xf32, #tpu.memory_space<vmem>>, vector<8x8xf32>,
    %232 = vector.extract_strided_slice %209 {offsets = [0, 8], sizes = [8, 8], strides = [1, 1]} : vector<8x32xf32> to vector<8x8xf32>
    %233 = arith.truncf %232 : vector<8x8xf32> to vector<8x8xbf16>
    %234 = vector.extract_strided_slice %206 {offsets = [0, 8], sizes = [8, 8], strides = [1, 1]} : vector<8x32xf32> to vector<8x8xf32>
    %235 = arith.truncf %234 : vector<8x8xf32> to vector<8x8xbf16>
    %cst_90 = arith.constant dense<0.000000e+00> : vector<8x8xf32>
    %236 = tpu.matmul %233, %235, %cst_90 {dimension_numbers = #tpu.dot_dimension_numbers<[1], [1], [0], [0], [0, 0, 1, 0], [], []>} : vector<8x8xbf16>, vector<8x8xbf16>, vector<8x8xf32> -> vector<8x8xf32>
    %237 = vector.broadcast %1 : vector<1x8xf32> to vector<8x8xf32>
    %238 = arith.addf %236, %237 : vector<8x8xf32>
    %cst_91 = arith.constant dense<0xFF800000> : vector<8xf32>
    %239 = vector.multi_reduction <maximumf>, %238, %cst_91 [1] : vector<8x8xf32> to vector<8xf32>
    %240 = vector.shape_cast %239 : vector<8xf32> to vector<8x1xf32>
    %241 = vector.broadcast %240 : vector<8x1xf32> to vector<8x8xf32>
    %242 = arith.subf %238, %241 : vector<8x8xf32>
    %243 = math.exp %242 : vector<8x8xf32>
    %cst_92 = arith.constant dense<0.000000e+00> : vector<8xf32>
    %244 = vector.multi_reduction <add>, %243, %cst_92 [1] : vector<8x8xf32> to vector<8xf32>
    %245 = vector.shape_cast %244 : vector<8xf32> to vector<8x1xf32>
    %246 = tpu.reciprocal %245 {approx = true} : vector<8x1xf32> -> vector<8x1xf32>
    %247 = vector.broadcast %246 : vector<8x1xf32> to vector<8x8xf32>
    %248 = arith.mulf %243, %247 : vector<8x8xf32>
    %249 = arith.truncf %248 : vector<8x8xf32> to vector<8x8xbf16>
    %250 = vector.extract_strided_slice %207 {offsets = [0, 8], sizes = [8, 8], strides = [1, 1]} : vector<8x32xf32> to vector<8x8xf32>
    %251 = arith.truncf %250 : vector<8x8xf32> to vector<8x8xbf16>
    %cst_93 = arith.constant dense<0.000000e+00> : vector<8x8xf32>
    %252 = tpu.matmul %249, %251, %cst_93 {dimension_numbers = #tpu.dot_dimension_numbers<[1], [0], [0], [1], [0, 0, 1, 1], [], []>} : vector<8x8xbf16>, vector<8x8xbf16>, vector<8x8xf32> -> vector<8x8xf32>
    %c0_94 = arith.constant 0 : index
    %c8_95 = arith.constant 8 : index
    %253 = vector.load %arg72[%c0_94, %c8_95] : memref<8x32xf32, #tpu.memory_space<vmem>>, vector<8x8xf32>
    tpu.vector_store %arg72[%c0_94, %c8_95], %252 {strides = array<i32>} : memref<8x32xf32, #tpu.memory_space<vmem>>, vector<8x8xf32>,
    %254 = vector.extract_strided_slice %209 {offsets = [0, 16], sizes = [8, 8], strides = [1, 1]} : vector<8x32xf32> to vector<8x8xf32>
    %255 = arith.truncf %254 : vector<8x8xf32> to vector<8x8xbf16>
    %256 = vector.extract_strided_slice %206 {offsets = [0, 16], sizes = [8, 8], strides = [1, 1]} : vector<8x32xf32> to vector<8x8xf32>
    %257 = arith.truncf %256 : vector<8x8xf32> to vector<8x8xbf16>
    %cst_96 = arith.constant dense<0.000000e+00> : vector<8x8xf32>
    %258 = tpu.matmul %255, %257, %cst_96 {dimension_numbers = #tpu.dot_dimension_numbers<[1], [1], [0], [0], [0, 0, 1, 0], [], []>} : vector<8x8xbf16>, vector<8x8xbf16>, vector<8x8xf32> -> vector<8x8xf32>
    %259 = vector.broadcast %1 : vector<1x8xf32> to vector<8x8xf32>
    %260 = arith.addf %258, %259 : vector<8x8xf32>
    %cst_97 = arith.constant dense<0xFF800000> : vector<8xf32>
    %261 = vector.multi_reduction <maximumf>, %260, %cst_97 [1] : vector<8x8xf32> to vector<8xf32>
    %262 = vector.shape_cast %261 : vector<8xf32> to vector<8x1xf32>
    %263 = vector.broadcast %262 : vector<8x1xf32> to vector<8x8xf32>
    %264 = arith.subf %260, %263 : vector<8x8xf32>
    %265 = math.exp %264 : vector<8x8xf32>
    %cst_98 = arith.constant dense<0.000000e+00> : vector<8xf32>
    %266 = vector.multi_reduction <add>, %265, %cst_98 [1] : vector<8x8xf32> to vector<8xf32>
    %267 = vector.shape_cast %266 : vector<8xf32> to vector<8x1xf32>
    %268 = tpu.reciprocal %267 {approx = true} : vector<8x1xf32> -> vector<8x1xf32>
    %269 = vector.broadcast %268 : vector<8x1xf32> to vector<8x8xf32>
    %270 = arith.mulf %265, %269 : vector<8x8xf32>
    %271 = arith.truncf %270 : vector<8x8xf32> to vector<8x8xbf16>
    %272 = vector.extract_strided_slice %207 {offsets = [0, 16], sizes = [8, 8], strides = [1, 1]} : vector<8x32xf32> to vector<8x8xf32>
    %273 = arith.truncf %272 : vector<8x8xf32> to vector<8x8xbf16>
    %cst_99 = arith.constant dense<0.000000e+00> : vector<8x8xf32>
    %274 = tpu.matmul %271, %273, %cst_99 {dimension_numbers = #tpu.dot_dimension_numbers<[1], [0], [0], [1], [0, 0, 1, 1], [], []>} : vector<8x8xbf16>, vector<8x8xbf16>, vector<8x8xf32> -> vector<8x8xf32>
    %c0_100 = arith.constant 0 : index
    %c16_101 = arith.constant 16 : index
    %275 = vector.load %arg72[%c0_100, %c16_101] : memref<8x32xf32, #tpu.memory_space<vmem>>, vector<8x8xf32>
    tpu.vector_store %arg72[%c0_100, %c16_101], %274 {strides = array<i32>} : memref<8x32xf32, #tpu.memory_space<vmem>>, vector<8x8xf32>,
    %276 = vector.extract_strided_slice %209 {offsets = [0, 24], sizes = [8, 8], strides = [1, 1]} : vector<8x32xf32> to vector<8x8xf32>
    %277 = arith.truncf %276 : vector<8x8xf32> to vector<8x8xbf16>
    %278 = vector.extract_strided_slice %206 {offsets = [0, 24], sizes = [8, 8], strides = [1, 1]} : vector<8x32xf32> to vector<8x8xf32>
    %279 = arith.truncf %278 : vector<8x8xf32> to vector<8x8xbf16>
    %cst_102 = arith.constant dense<0.000000e+00> : vector<8x8xf32>
    %280 = tpu.matmul %277, %279, %cst_102 {dimension_numbers = #tpu.dot_dimension_numbers<[1], [1], [0], [0], [0, 0, 1, 0], [], []>} : vector<8x8xbf16>, vector<8x8xbf16>, vector<8x8xf32> -> vector<8x8xf32>
    %281 = vector.broadcast %1 : vector<1x8xf32> to vector<8x8xf32>
    %282 = arith.addf %280, %281 : vector<8x8xf32>
    %cst_103 = arith.constant dense<0xFF800000> : vector<8xf32>
    %283 = vector.multi_reduction <maximumf>, %282, %cst_103 [1] : vector<8x8xf32> to vector<8xf32>
    %284 = vector.shape_cast %283 : vector<8xf32> to vector<8x1xf32>
    %285 = vector.broadcast %284 : vector<8x1xf32> to vector<8x8xf32>
    %286 = arith.subf %282, %285 : vector<8x8xf32>
    %287 = math.exp %286 : vector<8x8xf32>
    %cst_104 = arith.constant dense<0.000000e+00> : vector<8xf32>
    %288 = vector.multi_reduction <add>, %287, %cst_104 [1] : vector<8x8xf32> to vector<8xf32>
    %289 = vector.shape_cast %288 : vector<8xf32> to vector<8x1xf32>
    %290 = tpu.reciprocal %289 {approx = true} : vector<8x1xf32> -> vector<8x1xf32>
    %291 = vector.broadcast %290 : vector<8x1xf32> to vector<8x8xf32>
    %292 = arith.mulf %287, %291 : vector<8x8xf32>
    %293 = arith.truncf %292 : vector<8x8xf32> to vector<8x8xbf16>
    %294 = vector.extract_strided_slice %207 {offsets = [0, 24], sizes = [8, 8], strides = [1, 1]} : vector<8x32xf32> to vector<8x8xf32>
    %295 = arith.truncf %294 : vector<8x8xf32> to vector<8x8xbf16>
    %cst_105 = arith.constant dense<0.000000e+00> : vector<8x8xf32>
    %296 = tpu.matmul %293, %295, %cst_105 {dimension_numbers = #tpu.dot_dimension_numbers<[1], [0], [0], [1], [0, 0, 1, 1], [], []>} : vector<8x8xbf16>, vector<8x8xbf16>, vector<8x8xf32> -> vector<8x8xf32>
    %c0_106 = arith.constant 0 : index
    %c24_107 = arith.constant 24 : index
    %297 = vector.load %arg72[%c0_106, %c24_107] : memref<8x32xf32, #tpu.memory_space<vmem>>, vector<8x8xf32>
    tpu.vector_store %arg72[%c0_106, %c24_107], %296 {strides = array<i32>} : memref<8x32xf32, #tpu.memory_space<vmem>>, vector<8x8xf32>,
    %c0_108 = arith.constant 0 : index
    %c0_109 = arith.constant 0 : index
    %298 = vector.load %arg72[%c0_108, %c0_109] : memref<8x32xf32, #tpu.memory_space<vmem>>, vector<8x32xf32>
    %299 = arith.truncf %298 : vector<8x32xf32> to vector<8x32xbf16>
    %c0_110 = arith.constant 0 : index
    %c0_111 = arith.constant 0 : index
    %300 = vector.load %arg61[%c0_110, %c0_111] : memref<32x32xbf16, #tpu.memory_space<vmem>>, vector<32x32xbf16>
    %cst_112 = arith.constant dense<0.000000e+00> : vector<8x32xf32>
    %301 = tpu.matmul %299, %300, %cst_112 {dimension_numbers = #tpu.dot_dimension_numbers<[1], [0], [0], [1], [0, 0, 1, 1], [], []>} : vector<8x32xbf16>, vector<32x32xbf16>, vector<8x32xf32> -> vector<8x32xf32>
    %c0_113 = arith.constant 0 : index
    %c0_114 = arith.constant 0 : index
    %302 = vector.load %arg57[%c0_113, %c0_114] : memref<1x32xf32, #tpu.memory_space<vmem>>, vector<1x32xf32>
    %303 = vector.broadcast %302 : vector<1x32xf32> to vector<8x32xf32>
    %304 = arith.addf %301, %303 : vector<8x32xf32>
    %305 = arith.addf %174, %304 : vector<8x32xf32>
    %c0_115 = arith.constant 0 : index
    %c0_116 = arith.constant 0 : index
    %306 = vector.load %arg66[%c0_115, %c0_116] : memref<1x32xf32, #tpu.memory_space<vmem>>, vector<1x32xf32>
    %c0_117 = arith.constant 0 : index
    %c0_118 = arith.constant 0 : index
    %307 = vector.load %arg65[%c0_117, %c0_118] : memref<1x32xf32, #tpu.memory_space<vmem>>, vector<1x32xf32>
    %cst_119 = arith.constant dense<0.000000e+00> : vector<8xf32>
    %308 = vector.multi_reduction <add>, %305, %cst_119 [1] : vector<8x32xf32> to vector<8xf32>
    %309 = vector.shape_cast %308 : vector<8xf32> to vector<8x1xf32>
    %cst_120 = arith.constant 3.200000e+01 : f32
    %310 = vector.broadcast %cst_120 : f32 to vector<8x1xf32>
    %311 = arith.divf %309, %310 : vector<8x1xf32>
    %312 = vector.broadcast %311 : vector<8x1xf32> to vector<8x32xf32>
    %313 = arith.subf %305, %312 : vector<8x32xf32>
    %314 = arith.mulf %313, %313 : vector<8x32xf32>
    %cst_121 = arith.constant dense<0.000000e+00> : vector<8xf32>
    %315 = vector.multi_reduction <add>, %314, %cst_121 [1] : vector<8x32xf32> to vector<8xf32>
    %316 = vector.shape_cast %315 : vector<8xf32> to vector<8x1xf32>
    %cst_122 = arith.constant 3.200000e+01 : f32
    %317 = vector.broadcast %cst_122 : f32 to vector<8x1xf32>
    %318 = arith.divf %316, %317 : vector<8x1xf32>
    %319 = vector.broadcast %311 : vector<8x1xf32> to vector<8x32xf32>
    %320 = arith.subf %305, %319 : vector<8x32xf32>
    %cst_123 = arith.constant 9.99999974E-6 : f32
    %321 = vector.broadcast %cst_123 : f32 to vector<8x1xf32>
    %322 = arith.addf %318, %321 : vector<8x1xf32>
    %323 = math.rsqrt %322 : vector<8x1xf32>
    %324 = vector.broadcast %323 : vector<8x1xf32> to vector<8x32xf32>
    %325 = arith.mulf %320, %324 : vector<8x32xf32>
    %326 = vector.broadcast %306 : vector<1x32xf32> to vector<8x32xf32>
    %327 = arith.mulf %325, %326 : vector<8x32xf32>
    %328 = vector.broadcast %307 : vector<1x32xf32> to vector<8x32xf32>
    %329 = arith.addf %327, %328 : vector<8x32xf32>
    %330 = arith.truncf %329 : vector<8x32xf32> to vector<8x32xbf16>
    %c0_124 = arith.constant 0 : index
    %c0_125 = arith.constant 0 : index
    %331 = vector.load %arg67[%c0_124, %c0_125] : memref<32x64xbf16, #tpu.memory_space<vmem>>, vector<32x64xbf16>
    %cst_126 = arith.constant dense<0.000000e+00> : vector<8x64xf32>
    %332 = tpu.matmul %330, %331, %cst_126 {dimension_numbers = #tpu.dot_dimension_numbers<[1], [0], [0], [1], [0, 0, 1, 1], [], []>} : vector<8x32xbf16>, vector<32x64xbf16>, vector<8x64xf32> -> vector<8x64xf32>
    %c0_127 = arith.constant 0 : index
    %c0_128 = arith.constant 0 : index
    %333 = vector.load %arg63[%c0_127, %c0_128] : memref<1x64xf32, #tpu.memory_space<vmem>>, vector<1x64xf32>
    %334 = vector.broadcast %333 : vector<1x64xf32> to vector<8x64xf32>
    %335 = arith.addf %332, %334 : vector<8x64xf32>
    %cst_129 = arith.constant 0.000000e+00 : f32
    %336 = vector.broadcast %cst_129 : f32 to vector<8x64xf32>
    %337 = arith.maximumf %335, %336 : vector<8x64xf32>
    %338 = arith.truncf %337 : vector<8x64xf32> to vector<8x64xbf16>
    %c0_130 = arith.constant 0 : index
    %c0_131 = arith.constant 0 : index
    %339 = vector.load %arg68[%c0_130, %c0_131] : memref<64x32xbf16, #tpu.memory_space<vmem>>, vector<64x32xbf16>
    %cst_132 = arith.constant dense<0.000000e+00> : vector<8x32xf32>
    %340 = tpu.matmul %338, %339, %cst_132 {dimension_numbers = #tpu.dot_dimension_numbers<[1], [0], [0], [1], [0, 0, 1, 1], [], []>} : vector<8x64xbf16>, vector<64x32xbf16>, vector<8x32xf32> -> vector<8x32xf32>
    %c0_133 = arith.constant 0 : index
    %c0_134 = arith.constant 0 : index
    %341 = vector.load %arg64[%c0_133, %c0_134] : memref<1x32xf32, #tpu.memory_space<vmem>>, vector<1x32xf32>
    %342 = vector.broadcast %341 : vector<1x32xf32> to vector<8x32xf32>
    %343 = arith.addf %340, %342 : vector<8x32xf32>
    %344 = arith.addf %305, %343 : vector<8x32xf32>
    %c0_135 = arith.constant 0 : index
    %c0_136 = arith.constant 0 : index
    %345 = vector.load %arg2[%c0_135, %c0_136] : memref<8x32xf32, #tpu.memory_space<vmem>>, vector<8x32xf32>
    %c0_137 = arith.constant 0 : index
    %c0_138 = arith.constant 0 : index
    %346 = vector.load %arg22[%c0_137, %c0_138] : memref<1x32xf32, #tpu.memory_space<vmem>>, vector<1x32xf32>
    %c0_139 = arith.constant 0 : index
    %c0_140 = arith.constant 0 : index
    %347 = vector.load %arg21[%c0_139, %c0_140] : memref<1x32xf32, #tpu.memory_space<vmem>>, vector<1x32xf32>
    %cst_141 = arith.constant dense<0.000000e+00> : vector<8xf32>
    %348 = vector.multi_reduction <add>, %345, %cst_141 [1] : vector<8x32xf32> to vector<8xf32>
    %349 = vector.shape_cast %348 : vector<8xf32> to vector<8x1xf32>
    %cst_142 = arith.constant 3.200000e+01 : f32
    %350 = vector.broadcast %cst_142 : f32 to vector<8x1xf32>
    %351 = arith.divf %349, %350 : vector<8x1xf32>
    %352 = vector.broadcast %351 : vector<8x1xf32> to vector<8x32xf32>
    %353 = arith.subf %345, %352 : vector<8x32xf32>
    %354 = arith.mulf %353, %353 : vector<8x32xf32>
    %cst_143 = arith.constant dense<0.000000e+00> : vector<8xf32>
    %355 = vector.multi_reduction <add>, %354, %cst_143 [1] : vector<8x32xf32> to vector<8xf32>
    %356 = vector.shape_cast %355 : vector<8xf32> to vector<8x1xf32>
    %cst_144 = arith.constant 3.200000e+01 : f32
    %357 = vector.broadcast %cst_144 : f32 to vector<8x1xf32>
    %358 = arith.divf %356, %357 : vector<8x1xf32>
    %359 = vector.broadcast %351 : vector<8x1xf32> to vector<8x32xf32>
    %360 = arith.subf %345, %359 : vector<8x32xf32>
    %cst_145 = arith.constant 9.99999974E-6 : f32
    %361 = vector.broadcast %cst_145 : f32 to vector<8x1xf32>
    %362 = arith.addf %358, %361 : vector<8x1xf32>
    %363 = math.rsqrt %362 : vector<8x1xf32>
    %364 = vector.broadcast %363 : vector<8x1xf32> to vector<8x32xf32>
    %365 = arith.mulf %360, %364 : vector<8x32xf32>
    %366 = vector.broadcast %346 : vector<1x32xf32> to vector<8x32xf32>
    %367 = arith.mulf %365, %366 : vector<8x32xf32>
    %368 = vector.broadcast %347 : vector<1x32xf32> to vector<8x32xf32>
    %369 = arith.addf %367, %368 : vector<8x32xf32>
    %370 = arith.truncf %369 : vector<8x32xf32> to vector<8x32xbf16>
    %c0_146 = arith.constant 0 : index
    %c0_147 = arith.constant 0 : index
    %371 = vector.load %arg24[%c0_146, %c0_147] : memref<32x96xbf16, #tpu.memory_space<vmem>>, vector<32x96xbf16>
    %cst_148 = arith.constant dense<0.000000e+00> : vector<8x96xf32>
    %372 = tpu.matmul %370, %371, %cst_148 {dimension_numbers = #tpu.dot_dimension_numbers<[1], [0], [0], [1], [0, 0, 1, 1], [], []>} : vector<8x32xbf16>, vector<32x96xbf16>, vector<8x96xf32> -> vector<8x96xf32>
    %c0_149 = arith.constant 0 : index
    %c0_150 = arith.constant 0 : index
    %373 = vector.load %arg20[%c0_149, %c0_150] : memref<1x96xf32, #tpu.memory_space<vmem>>, vector<1x96xf32>
    %374 = vector.broadcast %373 : vector<1x96xf32> to vector<8x96xf32>
    %375 = arith.addf %372, %374 : vector<8x96xf32>
    %376 = vector.extract_strided_slice %375 {offsets = [0, 0], sizes = [8, 32], strides = [1, 1]} : vector<8x96xf32> to vector<8x32xf32>
    %377 = vector.extract_strided_slice %375 {offsets = [0, 32], sizes = [8, 32], strides = [1, 1]} : vector<8x96xf32> to vector<8x32xf32>
    %378 = vector.extract_strided_slice %375 {offsets = [0, 64], sizes = [8, 32], strides = [1, 1]} : vector<8x96xf32> to vector<8x32xf32>
    %cst_151 = arith.constant 0.353553385 : f32
    %379 = vector.broadcast %cst_151 : f32 to vector<8x32xf32>
    %380 = arith.mulf %376, %379 : vector<8x32xf32>
    %381 = tpu.iota {dimensions = array<i32: 0>} : vector<8x8xi32>
    %382 = tpu.iota {dimensions = array<i32: 1>} : vector<8x8xi32>
    %383 = arith.cmpi sle, %382, %381 : vector<8x8xi32>
    %cst_152 = arith.constant 0.000000e+00 : f32
    %cst_153 = arith.constant -1.000000e+30 : f32
    %384 = vector.broadcast %cst_152 : f32 to vector<8x8xf32>
    %385 = vector.broadcast %cst_153 : f32 to vector<8x8xf32>
    %386 = arith.select %383, %384, %385 : vector<8x8xi1>, vector<8x8xf32>
    %387 = vector.broadcast %3 : vector<1x8xf32> to vector<8x8xf32>
    %388 = arith.addf %387, %386 : vector<8x8xf32>
    %389 = vector.extract_strided_slice %380 {offsets = [0, 0], sizes = [8, 8], strides = [1, 1]} : vector<8x32xf32> to vector<8x8xf32>
    %390 = arith.truncf %389 : vector<8x8xf32> to vector<8x8xbf16>
    %391 = vector.extract_strided_slice %377 {offsets = [0, 0], sizes = [8, 8], strides = [1, 1]} : vector<8x32xf32> to vector<8x8xf32>
    %392 = arith.truncf %391 : vector<8x8xf32> to vector<8x8xbf16>
    %cst_154 = arith.constant dense<0.000000e+00> : vector<8x8xf32>
    %393 = tpu.matmul %390, %392, %cst_154 {dimension_numbers = #tpu.dot_dimension_numbers<[1], [1], [0], [0], [0, 0, 1, 0], [], []>} : vector<8x8xbf16>, vector<8x8xbf16>, vector<8x8xf32> -> vector<8x8xf32>
    %394 = arith.addf %393, %388 : vector<8x8xf32>
    %cst_155 = arith.constant dense<0xFF800000> : vector<8xf32>
    %395 = vector.multi_reduction <maximumf>, %394, %cst_155 [1] : vector<8x8xf32> to vector<8xf32>
    %396 = vector.shape_cast %395 : vector<8xf32> to vector<8x1xf32>
    %397 = vector.broadcast %396 : vector<8x1xf32> to vector<8x8xf32>
    %398 = arith.subf %394, %397 : vector<8x8xf32>
    %399 = math.exp %398 : vector<8x8xf32>
    %cst_156 = arith.constant dense<0.000000e+00> : vector<8xf32>
    %400 = vector.multi_reduction <add>, %399, %cst_156 [1] : vector<8x8xf32> to vector<8xf32>
    %401 = vector.shape_cast %400 : vector<8xf32> to vector<8x1xf32>
    %402 = tpu.reciprocal %401 {approx = true} : vector<8x1xf32> -> vector<8x1xf32>
    %403 = vector.broadcast %402 : vector<8x1xf32> to vector<8x8xf32>
    %404 = arith.mulf %399, %403 : vector<8x8xf32>
    %405 = arith.truncf %404 : vector<8x8xf32> to vector<8x8xbf16>
    %406 = vector.extract_strided_slice %378 {offsets = [0, 0], sizes = [8, 8], strides = [1, 1]} : vector<8x32xf32> to vector<8x8xf32>
    %407 = arith.truncf %406 : vector<8x8xf32> to vector<8x8xbf16>
    %cst_157 = arith.constant dense<0.000000e+00> : vector<8x8xf32>
    %408 = tpu.matmul %405, %407, %cst_157 {dimension_numbers = #tpu.dot_dimension_numbers<[1], [0], [0], [1], [0, 0, 1, 1], [], []>} : vector<8x8xbf16>, vector<8x8xbf16>, vector<8x8xf32> -> vector<8x8xf32>
    %c0_158 = arith.constant 0 : index
    %c0_159 = arith.constant 0 : index
    %409 = vector.load %arg72[%c0_158, %c0_159] : memref<8x32xf32, #tpu.memory_space<vmem>>, vector<8x8xf32>
    tpu.vector_store %arg72[%c0_158, %c0_159], %408 {strides = array<i32>} : memref<8x32xf32, #tpu.memory_space<vmem>>, vector<8x8xf32>,
    %410 = vector.extract_strided_slice %380 {offsets = [0, 8], sizes = [8, 8], strides = [1, 1]} : vector<8x32xf32> to vector<8x8xf32>
    %411 = arith.truncf %410 : vector<8x8xf32> to vector<8x8xbf16>
    %412 = vector.extract_strided_slice %377 {offsets = [0, 8], sizes = [8, 8], strides = [1, 1]} : vector<8x32xf32> to vector<8x8xf32>
    %413 = arith.truncf %412 : vector<8x8xf32> to vector<8x8xbf16>
    %cst_160 = arith.constant dense<0.000000e+00> : vector<8x8xf32>
    %414 = tpu.matmul %411, %413, %cst_160 {dimension_numbers = #tpu.dot_dimension_numbers<[1], [1], [0], [0], [0, 0, 1, 0], [], []>} : vector<8x8xbf16>, vector<8x8xbf16>, vector<8x8xf32> -> vector<8x8xf32>
    %415 = arith.addf %414, %388 : vector<8x8xf32>
    %cst_161 = arith.constant dense<0xFF800000> : vector<8xf32>
    %416 = vector.multi_reduction <maximumf>, %415, %cst_161 [1] : vector<8x8xf32> to vector<8xf32>
    %417 = vector.shape_cast %416 : vector<8xf32> to vector<8x1xf32>
    %418 = vector.broadcast %417 : vector<8x1xf32> to vector<8x8xf32>
    %419 = arith.subf %415, %418 : vector<8x8xf32>
    %420 = math.exp %419 : vector<8x8xf32>
    %cst_162 = arith.constant dense<0.000000e+00> : vector<8xf32>
    %421 = vector.multi_reduction <add>, %420, %cst_162 [1] : vector<8x8xf32> to vector<8xf32>
    %422 = vector.shape_cast %421 : vector<8xf32> to vector<8x1xf32>
    %423 = tpu.reciprocal %422 {approx = true} : vector<8x1xf32> -> vector<8x1xf32>
    %424 = vector.broadcast %423 : vector<8x1xf32> to vector<8x8xf32>
    %425 = arith.mulf %420, %424 : vector<8x8xf32>
    %426 = arith.truncf %425 : vector<8x8xf32> to vector<8x8xbf16>
    %427 = vector.extract_strided_slice %378 {offsets = [0, 8], sizes = [8, 8], strides = [1, 1]} : vector<8x32xf32> to vector<8x8xf32>
    %428 = arith.truncf %427 : vector<8x8xf32> to vector<8x8xbf16>
    %cst_163 = arith.constant dense<0.000000e+00> : vector<8x8xf32>
    %429 = tpu.matmul %426, %428, %cst_163 {dimension_numbers = #tpu.dot_dimension_numbers<[1], [0], [0], [1], [0, 0, 1, 1], [], []>} : vector<8x8xbf16>, vector<8x8xbf16>, vector<8x8xf32> -> vector<8x8xf32>
    %c0_164 = arith.constant 0 : index
    %c8_165 = arith.constant 8 : index
    %430 = vector.load %arg72[%c0_164, %c8_165] : memref<8x32xf32, #tpu.memory_space<vmem>>, vector<8x8xf32>
    tpu.vector_store %arg72[%c0_164, %c8_165], %429 {strides = array<i32>} : memref<8x32xf32, #tpu.memory_space<vmem>>, vector<8x8xf32>,
    %431 = vector.extract_strided_slice %380 {offsets = [0, 16], sizes = [8, 8], strides = [1, 1]} : vector<8x32xf32> to vector<8x8xf32>
    %432 = arith.truncf %431 : vector<8x8xf32> to vector<8x8xbf16>
    %433 = vector.extract_strided_slice %377 {offsets = [0, 16], sizes = [8, 8], strides = [1, 1]} : vector<8x32xf32> to vector<8x8xf32>
    %434 = arith.truncf %433 : vector<8x8xf32> to vector<8x8xbf16>
    %cst_166 = arith.constant dense<0.000000e+00> : vector<8x8xf32>
    %435 = tpu.matmul %432, %434, %cst_166 {dimension_numbers = #tpu.dot_dimension_numbers<[1], [1], [0], [0], [0, 0, 1, 0], [], []>} : vector<8x8xbf16>, vector<8x8xbf16>, vector<8x8xf32> -> vector<8x8xf32>
    %436 = arith.addf %435, %388 : vector<8x8xf32>
    %cst_167 = arith.constant dense<0xFF800000> : vector<8xf32>
    %437 = vector.multi_reduction <maximumf>, %436, %cst_167 [1] : vector<8x8xf32> to vector<8xf32>
    %438 = vector.shape_cast %437 : vector<8xf32> to vector<8x1xf32>
    %439 = vector.broadcast %438 : vector<8x1xf32> to vector<8x8xf32>
    %440 = arith.subf %436, %439 : vector<8x8xf32>
    %441 = math.exp %440 : vector<8x8xf32>
    %cst_168 = arith.constant dense<0.000000e+00> : vector<8xf32>
    %442 = vector.multi_reduction <add>, %441, %cst_168 [1] : vector<8x8xf32> to vector<8xf32>
    %443 = vector.shape_cast %442 : vector<8xf32> to vector<8x1xf32>
    %444 = tpu.reciprocal %443 {approx = true} : vector<8x1xf32> -> vector<8x1xf32>
    %445 = vector.broadcast %444 : vector<8x1xf32> to vector<8x8xf32>
    %446 = arith.mulf %441, %445 : vector<8x8xf32>
    %447 = arith.truncf %446 : vector<8x8xf32> to vector<8x8xbf16>
    %448 = vector.extract_strided_slice %378 {offsets = [0, 16], sizes = [8, 8], strides = [1, 1]} : vector<8x32xf32> to vector<8x8xf32>
    %449 = arith.truncf %448 : vector<8x8xf32> to vector<8x8xbf16>
    %cst_169 = arith.constant dense<0.000000e+00> : vector<8x8xf32>
    %450 = tpu.matmul %447, %449, %cst_169 {dimension_numbers = #tpu.dot_dimension_numbers<[1], [0], [0], [1], [0, 0, 1, 1], [], []>} : vector<8x8xbf16>, vector<8x8xbf16>, vector<8x8xf32> -> vector<8x8xf32>
    %c0_170 = arith.constant 0 : index
    %c16_171 = arith.constant 16 : index
    %451 = vector.load %arg72[%c0_170, %c16_171] : memref<8x32xf32, #tpu.memory_space<vmem>>, vector<8x8xf32>
    tpu.vector_store %arg72[%c0_170, %c16_171], %450 {strides = array<i32>} : memref<8x32xf32, #tpu.memory_space<vmem>>, vector<8x8xf32>,
    %452 = vector.extract_strided_slice %380 {offsets = [0, 24], sizes = [8, 8], strides = [1, 1]} : vector<8x32xf32> to vector<8x8xf32>
    %453 = arith.truncf %452 : vector<8x8xf32> to vector<8x8xbf16>
    %454 = vector.extract_strided_slice %377 {offsets = [0, 24], sizes = [8, 8], strides = [1, 1]} : vector<8x32xf32> to vector<8x8xf32>
    %455 = arith.truncf %454 : vector<8x8xf32> to vector<8x8xbf16>
    %cst_172 = arith.constant dense<0.000000e+00> : vector<8x8xf32>
    %456 = tpu.matmul %453, %455, %cst_172 {dimension_numbers = #tpu.dot_dimension_numbers<[1], [1], [0], [0], [0, 0, 1, 0], [], []>} : vector<8x8xbf16>, vector<8x8xbf16>, vector<8x8xf32> -> vector<8x8xf32>
    %457 = arith.addf %456, %388 : vector<8x8xf32>
    %cst_173 = arith.constant dense<0xFF800000> : vector<8xf32>
    %458 = vector.multi_reduction <maximumf>, %457, %cst_173 [1] : vector<8x8xf32> to vector<8xf32>
    %459 = vector.shape_cast %458 : vector<8xf32> to vector<8x1xf32>
    %460 = vector.broadcast %459 : vector<8x1xf32> to vector<8x8xf32>
    %461 = arith.subf %457, %460 : vector<8x8xf32>
    %462 = math.exp %461 : vector<8x8xf32>
    %cst_174 = arith.constant dense<0.000000e+00> : vector<8xf32>
    %463 = vector.multi_reduction <add>, %462, %cst_174 [1] : vector<8x8xf32> to vector<8xf32>
    %464 = vector.shape_cast %463 : vector<8xf32> to vector<8x1xf32>
    %465 = tpu.reciprocal %464 {approx = true} : vector<8x1xf32> -> vector<8x1xf32>
    %466 = vector.broadcast %465 : vector<8x1xf32> to vector<8x8xf32>
    %467 = arith.mulf %462, %466 : vector<8x8xf32>
    %468 = arith.truncf %467 : vector<8x8xf32> to vector<8x8xbf16>
    %469 = vector.extract_strided_slice %378 {offsets = [0, 24], sizes = [8, 8], strides = [1, 1]} : vector<8x32xf32> to vector<8x8xf32>
    %470 = arith.truncf %469 : vector<8x8xf32> to vector<8x8xbf16>
    %cst_175 = arith.constant dense<0.000000e+00> : vector<8x8xf32>
    %471 = tpu.matmul %468, %470, %cst_175 {dimension_numbers = #tpu.dot_dimension_numbers<[1], [0], [0], [1], [0, 0, 1, 1], [], []>} : vector<8x8xbf16>, vector<8x8xbf16>, vector<8x8xf32> -> vector<8x8xf32>
    %c0_176 = arith.constant 0 : index
    %c24_177 = arith.constant 24 : index
    %472 = vector.load %arg72[%c0_176, %c24_177] : memref<8x32xf32, #tpu.memory_space<vmem>>, vector<8x8xf32>
    tpu.vector_store %arg72[%c0_176, %c24_177], %471 {strides = array<i32>} : memref<8x32xf32, #tpu.memory_space<vmem>>, vector<8x8xf32>,
    %c0_178 = arith.constant 0 : index
    %c0_179 = arith.constant 0 : index
    %473 = vector.load %arg72[%c0_178, %c0_179] : memref<8x32xf32, #tpu.memory_space<vmem>>, vector<8x32xf32>
    %474 = arith.truncf %473 : vector<8x32xf32> to vector<8x32xbf16>
    %c0_180 = arith.constant 0 : index
    %c0_181 = arith.constant 0 : index
    %475 = vector.load %arg23[%c0_180, %c0_181] : memref<32x32xbf16, #tpu.memory_space<vmem>>, vector<32x32xbf16>
    %cst_182 = arith.constant dense<0.000000e+00> : vector<8x32xf32>
    %476 = tpu.matmul %474, %475, %cst_182 {dimension_numbers = #tpu.dot_dimension_numbers<[1], [0], [0], [1], [0, 0, 1, 1], [], []>} : vector<8x32xbf16>, vector<32x32xbf16>, vector<8x32xf32> -> vector<8x32xf32>
    %c0_183 = arith.constant 0 : index
    %c0_184 = arith.constant 0 : index
    %477 = vector.load %arg19[%c0_183, %c0_184] : memref<1x32xf32, #tpu.memory_space<vmem>>, vector<1x32xf32>
    %478 = vector.broadcast %477 : vector<1x32xf32> to vector<8x32xf32>
    %479 = arith.addf %476, %478 : vector<8x32xf32>
    %480 = arith.addf %345, %479 : vector<8x32xf32>
    %c0_185 = arith.constant 0 : index
    %c0_186 = arith.constant 0 : index
    %481 = vector.load %arg9[%c0_185, %c0_186] : memref<1x32xf32, #tpu.memory_space<vmem>>, vector<1x32xf32>
    %c0_187 = arith.constant 0 : index
    %c0_188 = arith.constant 0 : index
    %482 = vector.load %arg8[%c0_187, %c0_188] : memref<1x32xf32, #tpu.memory_space<vmem>>, vector<1x32xf32>
    %cst_189 = arith.constant dense<0.000000e+00> : vector<8xf32>
    %483 = vector.multi_reduction <add>, %480, %cst_189 [1] : vector<8x32xf32> to vector<8xf32>
    %484 = vector.shape_cast %483 : vector<8xf32> to vector<8x1xf32>
    %cst_190 = arith.constant 3.200000e+01 : f32
    %485 = vector.broadcast %cst_190 : f32 to vector<8x1xf32>
    %486 = arith.divf %484, %485 : vector<8x1xf32>
    %487 = vector.broadcast %486 : vector<8x1xf32> to vector<8x32xf32>
    %488 = arith.subf %480, %487 : vector<8x32xf32>
    %489 = arith.mulf %488, %488 : vector<8x32xf32>
    %cst_191 = arith.constant dense<0.000000e+00> : vector<8xf32>
    %490 = vector.multi_reduction <add>, %489, %cst_191 [1] : vector<8x32xf32> to vector<8xf32>
    %491 = vector.shape_cast %490 : vector<8xf32> to vector<8x1xf32>
    %cst_192 = arith.constant 3.200000e+01 : f32
    %492 = vector.broadcast %cst_192 : f32 to vector<8x1xf32>
    %493 = arith.divf %491, %492 : vector<8x1xf32>
    %494 = vector.broadcast %486 : vector<8x1xf32> to vector<8x32xf32>
    %495 = arith.subf %480, %494 : vector<8x32xf32>
    %cst_193 = arith.constant 9.99999974E-6 : f32
    %496 = vector.broadcast %cst_193 : f32 to vector<8x1xf32>
    %497 = arith.addf %493, %496 : vector<8x1xf32>
    %498 = math.rsqrt %497 : vector<8x1xf32>
    %499 = vector.broadcast %498 : vector<8x1xf32> to vector<8x32xf32>
    %500 = arith.mulf %495, %499 : vector<8x32xf32>
    %501 = vector.broadcast %481 : vector<1x32xf32> to vector<8x32xf32>
    %502 = arith.mulf %500, %501 : vector<8x32xf32>
    %503 = vector.broadcast %482 : vector<1x32xf32> to vector<8x32xf32>
    %504 = arith.addf %502, %503 : vector<8x32xf32>
    %505 = arith.truncf %504 : vector<8x32xf32> to vector<8x32xbf16>
    %c0_194 = arith.constant 0 : index
    %c0_195 = arith.constant 0 : index
    %506 = vector.load %arg12[%c0_194, %c0_195] : memref<32x32xbf16, #tpu.memory_space<vmem>>, vector<32x32xbf16>
    %cst_196 = arith.constant dense<0.000000e+00> : vector<8x32xf32>
    %507 = tpu.matmul %505, %506, %cst_196 {dimension_numbers = #tpu.dot_dimension_numbers<[1], [0], [0], [1], [0, 0, 1, 1], [], []>} : vector<8x32xbf16>, vector<32x32xbf16>, vector<8x32xf32> -> vector<8x32xf32>
    %c0_197 = arith.constant 0 : index
    %c0_198 = arith.constant 0 : index
    %508 = vector.load %arg7[%c0_197, %c0_198] : memref<1x32xf32, #tpu.memory_space<vmem>>, vector<1x32xf32>
    %509 = vector.broadcast %508 : vector<1x32xf32> to vector<8x32xf32>
    %510 = arith.addf %507, %509 : vector<8x32xf32>
    %511 = arith.truncf %344 : vector<8x32xf32> to vector<8x32xbf16>
    %c0_199 = arith.constant 0 : index
    %c0_200 = arith.constant 0 : index
    %512 = vector.load %arg10[%c0_199, %c0_200] : memref<32x64xbf16, #tpu.memory_space<vmem>>, vector<32x64xbf16>
    %cst_201 = arith.constant dense<0.000000e+00> : vector<8x64xf32>
    %513 = tpu.matmul %511, %512, %cst_201 {dimension_numbers = #tpu.dot_dimension_numbers<[1], [0], [0], [1], [0, 0, 1, 1], [], []>} : vector<8x32xbf16>, vector<32x64xbf16>, vector<8x64xf32> -> vector<8x64xf32>
    %c0_202 = arith.constant 0 : index
    %c0_203 = arith.constant 0 : index
    %514 = vector.load %arg5[%c0_202, %c0_203] : memref<1x64xf32, #tpu.memory_space<vmem>>, vector<1x64xf32>
    %515 = vector.broadcast %514 : vector<1x64xf32> to vector<8x64xf32>
    %516 = arith.addf %513, %515 : vector<8x64xf32>
    %517 = vector.extract_strided_slice %516 {offsets = [0, 0], sizes = [8, 32], strides = [1, 1]} : vector<8x64xf32> to vector<8x32xf32>
    %518 = vector.extract_strided_slice %516 {offsets = [0, 32], sizes = [8, 32], strides = [1, 1]} : vector<8x64xf32> to vector<8x32xf32>
    %cst_204 = arith.constant 0.353553385 : f32
    %519 = vector.broadcast %cst_204 : f32 to vector<8x32xf32>
    %520 = arith.mulf %510, %519 : vector<8x32xf32>
    %521 = vector.extract_strided_slice %520 {offsets = [0, 0], sizes = [8, 8], strides = [1, 1]} : vector<8x32xf32> to vector<8x8xf32>
    %522 = arith.truncf %521 : vector<8x8xf32> to vector<8x8xbf16>
    %523 = vector.extract_strided_slice %517 {offsets = [0, 0], sizes = [8, 8], strides = [1, 1]} : vector<8x32xf32> to vector<8x8xf32>
    %524 = arith.truncf %523 : vector<8x8xf32> to vector<8x8xbf16>
    %cst_205 = arith.constant dense<0.000000e+00> : vector<8x8xf32>
    %525 = tpu.matmul %522, %524, %cst_205 {dimension_numbers = #tpu.dot_dimension_numbers<[1], [1], [0], [0], [0, 0, 1, 0], [], []>} : vector<8x8xbf16>, vector<8x8xbf16>, vector<8x8xf32> -> vector<8x8xf32>
    %526 = vector.broadcast %1 : vector<1x8xf32> to vector<8x8xf32>
    %527 = arith.addf %525, %526 : vector<8x8xf32>
    %cst_206 = arith.constant dense<0xFF800000> : vector<8xf32>
    %528 = vector.multi_reduction <maximumf>, %527, %cst_206 [1] : vector<8x8xf32> to vector<8xf32>
    %529 = vector.shape_cast %528 : vector<8xf32> to vector<8x1xf32>
    %530 = vector.broadcast %529 : vector<8x1xf32> to vector<8x8xf32>
    %531 = arith.subf %527, %530 : vector<8x8xf32>
    %532 = math.exp %531 : vector<8x8xf32>
    %cst_207 = arith.constant dense<0.000000e+00> : vector<8xf32>
    %533 = vector.multi_reduction <add>, %532, %cst_207 [1] : vector<8x8xf32> to vector<8xf32>
    %534 = vector.shape_cast %533 : vector<8xf32> to vector<8x1xf32>
    %535 = tpu.reciprocal %534 {approx = true} : vector<8x1xf32> -> vector<8x1xf32>
    %536 = vector.broadcast %535 : vector<8x1xf32> to vector<8x8xf32>
    %537 = arith.mulf %532, %536 : vector<8x8xf32>
    %538 = arith.truncf %537 : vector<8x8xf32> to vector<8x8xbf16>
    %539 = vector.extract_strided_slice %518 {offsets = [0, 0], sizes = [8, 8], strides = [1, 1]} : vector<8x32xf32> to vector<8x8xf32>
    %540 = arith.truncf %539 : vector<8x8xf32> to vector<8x8xbf16>
    %cst_208 = arith.constant dense<0.000000e+00> : vector<8x8xf32>
    %541 = tpu.matmul %538, %540, %cst_208 {dimension_numbers = #tpu.dot_dimension_numbers<[1], [0], [0], [1], [0, 0, 1, 1], [], []>} : vector<8x8xbf16>, vector<8x8xbf16>, vector<8x8xf32> -> vector<8x8xf32>
    %c0_209 = arith.constant 0 : index
    %c0_210 = arith.constant 0 : index
    %542 = vector.load %arg72[%c0_209, %c0_210] : memref<8x32xf32, #tpu.memory_space<vmem>>, vector<8x8xf32>
    tpu.vector_store %arg72[%c0_209, %c0_210], %541 {strides = array<i32>} : memref<8x32xf32, #tpu.memory_space<vmem>>, vector<8x8xf32>,
    %543 = vector.extract_strided_slice %520 {offsets = [0, 8], sizes = [8, 8], strides = [1, 1]} : vector<8x32xf32> to vector<8x8xf32>
    %544 = arith.truncf %543 : vector<8x8xf32> to vector<8x8xbf16>
    %545 = vector.extract_strided_slice %517 {offsets = [0, 8], sizes = [8, 8], strides = [1, 1]} : vector<8x32xf32> to vector<8x8xf32>
    %546 = arith.truncf %545 : vector<8x8xf32> to vector<8x8xbf16>
    %cst_211 = arith.constant dense<0.000000e+00> : vector<8x8xf32>
    %547 = tpu.matmul %544, %546, %cst_211 {dimension_numbers = #tpu.dot_dimension_numbers<[1], [1], [0], [0], [0, 0, 1, 0], [], []>} : vector<8x8xbf16>, vector<8x8xbf16>, vector<8x8xf32> -> vector<8x8xf32>
    %548 = vector.broadcast %1 : vector<1x8xf32> to vector<8x8xf32>
    %549 = arith.addf %547, %548 : vector<8x8xf32>
    %cst_212 = arith.constant dense<0xFF800000> : vector<8xf32>
    %550 = vector.multi_reduction <maximumf>, %549, %cst_212 [1] : vector<8x8xf32> to vector<8xf32>
    %551 = vector.shape_cast %550 : vector<8xf32> to vector<8x1xf32>
    %552 = vector.broadcast %551 : vector<8x1xf32> to vector<8x8xf32>
    %553 = arith.subf %549, %552 : vector<8x8xf32>
    %554 = math.exp %553 : vector<8x8xf32>
    %cst_213 = arith.constant dense<0.000000e+00> : vector<8xf32>
    %555 = vector.multi_reduction <add>, %554, %cst_213 [1] : vector<8x8xf32> to vector<8xf32>
    %556 = vector.shape_cast %555 : vector<8xf32> to vector<8x1xf32>
    %557 = tpu.reciprocal %556 {approx = true} : vector<8x1xf32> -> vector<8x1xf32>
    %558 = vector.broadcast %557 : vector<8x1xf32> to vector<8x8xf32>
    %559 = arith.mulf %554, %558 : vector<8x8xf32>
    %560 = arith.truncf %559 : vector<8x8xf32> to vector<8x8xbf16>
    %561 = vector.extract_strided_slice %518 {offsets = [0, 8], sizes = [8, 8], strides = [1, 1]} : vector<8x32xf32> to vector<8x8xf32>
    %562 = arith.truncf %561 : vector<8x8xf32> to vector<8x8xbf16>
    %cst_214 = arith.constant dense<0.000000e+00> : vector<8x8xf32>
    %563 = tpu.matmul %560, %562, %cst_214 {dimension_numbers = #tpu.dot_dimension_numbers<[1], [0], [0], [1], [0, 0, 1, 1], [], []>} : vector<8x8xbf16>, vector<8x8xbf16>, vector<8x8xf32> -> vector<8x8xf32>
    %c0_215 = arith.constant 0 : index
    %c8_216 = arith.constant 8 : index
    %564 = vector.load %arg72[%c0_215, %c8_216] : memref<8x32xf32, #tpu.memory_space<vmem>>, vector<8x8xf32>
    tpu.vector_store %arg72[%c0_215, %c8_216], %563 {strides = array<i32>} : memref<8x32xf32, #tpu.memory_space<vmem>>, vector<8x8xf32>,
    %565 = vector.extract_strided_slice %520 {offsets = [0, 16], sizes = [8, 8], strides = [1, 1]} : vector<8x32xf32> to vector<8x8xf32>
    %566 = arith.truncf %565 : vector<8x8xf32> to vector<8x8xbf16>
    %567 = vector.extract_strided_slice %517 {offsets = [0, 16], sizes = [8, 8], strides = [1, 1]} : vector<8x32xf32> to vector<8x8xf32>
    %568 = arith.truncf %567 : vector<8x8xf32> to vector<8x8xbf16>
    %cst_217 = arith.constant dense<0.000000e+00> : vector<8x8xf32>
    %569 = tpu.matmul %566, %568, %cst_217 {dimension_numbers = #tpu.dot_dimension_numbers<[1], [1], [0], [0], [0, 0, 1, 0], [], []>} : vector<8x8xbf16>, vector<8x8xbf16>, vector<8x8xf32> -> vector<8x8xf32>
    %570 = vector.broadcast %1 : vector<1x8xf32> to vector<8x8xf32>
    %571 = arith.addf %569, %570 : vector<8x8xf32>
    %cst_218 = arith.constant dense<0xFF800000> : vector<8xf32>
    %572 = vector.multi_reduction <maximumf>, %571, %cst_218 [1] : vector<8x8xf32> to vector<8xf32>
    %573 = vector.shape_cast %572 : vector<8xf32> to vector<8x1xf32>
    %574 = vector.broadcast %573 : vector<8x1xf32> to vector<8x8xf32>
    %575 = arith.subf %571, %574 : vector<8x8xf32>
    %576 = math.exp %575 : vector<8x8xf32>
    %cst_219 = arith.constant dense<0.000000e+00> : vector<8xf32>
    %577 = vector.multi_reduction <add>, %576, %cst_219 [1] : vector<8x8xf32> to vector<8xf32>
    %578 = vector.shape_cast %577 : vector<8xf32> to vector<8x1xf32>
    %579 = tpu.reciprocal %578 {approx = true} : vector<8x1xf32> -> vector<8x1xf32>
    %580 = vector.broadcast %579 : vector<8x1xf32> to vector<8x8xf32>
    %581 = arith.mulf %576, %580 : vector<8x8xf32>
    %582 = arith.truncf %581 : vector<8x8xf32> to vector<8x8xbf16>
    %583 = vector.extract_strided_slice %518 {offsets = [0, 16], sizes = [8, 8], strides = [1, 1]} : vector<8x32xf32> to vector<8x8xf32>
    %584 = arith.truncf %583 : vector<8x8xf32> to vector<8x8xbf16>
    %cst_220 = arith.constant dense<0.000000e+00> : vector<8x8xf32>
    %585 = tpu.matmul %582, %584, %cst_220 {dimension_numbers = #tpu.dot_dimension_numbers<[1], [0], [0], [1], [0, 0, 1, 1], [], []>} : vector<8x8xbf16>, vector<8x8xbf16>, vector<8x8xf32> -> vector<8x8xf32>
    %c0_221 = arith.constant 0 : index
    %c16_222 = arith.constant 16 : index
    %586 = vector.load %arg72[%c0_221, %c16_222] : memref<8x32xf32, #tpu.memory_space<vmem>>, vector<8x8xf32>
    tpu.vector_store %arg72[%c0_221, %c16_222], %585 {strides = array<i32>} : memref<8x32xf32, #tpu.memory_space<vmem>>, vector<8x8xf32>,
    %587 = vector.extract_strided_slice %520 {offsets = [0, 24], sizes = [8, 8], strides = [1, 1]} : vector<8x32xf32> to vector<8x8xf32>
    %588 = arith.truncf %587 : vector<8x8xf32> to vector<8x8xbf16>
    %589 = vector.extract_strided_slice %517 {offsets = [0, 24], sizes = [8, 8], strides = [1, 1]} : vector<8x32xf32> to vector<8x8xf32>
    %590 = arith.truncf %589 : vector<8x8xf32> to vector<8x8xbf16>
    %cst_223 = arith.constant dense<0.000000e+00> : vector<8x8xf32>
    %591 = tpu.matmul %588, %590, %cst_223 {dimension_numbers = #tpu.dot_dimension_numbers<[1], [1], [0], [0], [0, 0, 1, 0], [], []>} : vector<8x8xbf16>, vector<8x8xbf16>, vector<8x8xf32> -> vector<8x8xf32>
    %592 = vector.broadcast %1 : vector<1x8xf32> to vector<8x8xf32>
    %593 = arith.addf %591, %592 : vector<8x8xf32>
    %cst_224 = arith.constant dense<0xFF800000> : vector<8xf32>
    %594 = vector.multi_reduction <maximumf>, %593, %cst_224 [1] : vector<8x8xf32> to vector<8xf32>
    %595 = vector.shape_cast %594 : vector<8xf32> to vector<8x1xf32>
    %596 = vector.broadcast %595 : vector<8x1xf32> to vector<8x8xf32>
    %597 = arith.subf %593, %596 : vector<8x8xf32>
    %598 = math.exp %597 : vector<8x8xf32>
    %cst_225 = arith.constant dense<0.000000e+00> : vector<8xf32>
    %599 = vector.multi_reduction <add>, %598, %cst_225 [1] : vector<8x8xf32> to vector<8xf32>
    %600 = vector.shape_cast %599 : vector<8xf32> to vector<8x1xf32>
    %601 = tpu.reciprocal %600 {approx = true} : vector<8x1xf32> -> vector<8x1xf32>
    %602 = vector.broadcast %601 : vector<8x1xf32> to vector<8x8xf32>
    %603 = arith.mulf %598, %602 : vector<8x8xf32>
    %604 = arith.truncf %603 : vector<8x8xf32> to vector<8x8xbf16>
    %605 = vector.extract_strided_slice %518 {offsets = [0, 24], sizes = [8, 8], strides = [1, 1]} : vector<8x32xf32> to vector<8x8xf32>
    %606 = arith.truncf %605 : vector<8x8xf32> to vector<8x8xbf16>
    %cst_226 = arith.constant dense<0.000000e+00> : vector<8x8xf32>
    %607 = tpu.matmul %604, %606, %cst_226 {dimension_numbers = #tpu.dot_dimension_numbers<[1], [0], [0], [1], [0, 0, 1, 1], [], []>} : vector<8x8xbf16>, vector<8x8xbf16>, vector<8x8xf32> -> vector<8x8xf32>
    %c0_227 = arith.constant 0 : index
    %c24_228 = arith.constant 24 : index
    %608 = vector.load %arg72[%c0_227, %c24_228] : memref<8x32xf32, #tpu.memory_space<vmem>>, vector<8x8xf32>
    tpu.vector_store %arg72[%c0_227, %c24_228], %607 {strides = array<i32>} : memref<8x32xf32, #tpu.memory_space<vmem>>, vector<8x8xf32>,
    %c0_229 = arith.constant 0 : index
    %c0_230 = arith.constant 0 : index
    %609 = vector.load %arg72[%c0_229, %c0_230] : memref<8x32xf32, #tpu.memory_space<vmem>>, vector<8x32xf32>
    %610 = arith.truncf %609 : vector<8x32xf32> to vector<8x32xbf16>
    %c0_231 = arith.constant 0 : index
    %c0_232 = arith.constant 0 : index
    %611 = vector.load %arg11[%c0_231, %c0_232] : memref<32x32xbf16, #tpu.memory_space<vmem>>, vector<32x32xbf16>
    %cst_233 = arith.constant dense<0.000000e+00> : vector<8x32xf32>
    %612 = tpu.matmul %610, %611, %cst_233 {dimension_numbers = #tpu.dot_dimension_numbers<[1], [0], [0], [1], [0, 0, 1, 1], [], []>} : vector<8x32xbf16>, vector<32x32xbf16>, vector<8x32xf32> -> vector<8x32xf32>
    %c0_234 = arith.constant 0 : index
    %c0_235 = arith.constant 0 : index
    %613 = vector.load %arg6[%c0_234, %c0_235] : memref<1x32xf32, #tpu.memory_space<vmem>>, vector<1x32xf32>
    %614 = vector.broadcast %613 : vector<1x32xf32> to vector<8x32xf32>
    %615 = arith.addf %612, %614 : vector<8x32xf32>
    %616 = arith.addf %480, %615 : vector<8x32xf32>
    %c0_236 = arith.constant 0 : index
    %c0_237 = arith.constant 0 : index
    %617 = vector.load %arg16[%c0_236, %c0_237] : memref<1x32xf32, #tpu.memory_space<vmem>>, vector<1x32xf32>
    %c0_238 = arith.constant 0 : index
    %c0_239 = arith.constant 0 : index
    %618 = vector.load %arg15[%c0_238, %c0_239] : memref<1x32xf32, #tpu.memory_space<vmem>>, vector<1x32xf32>
    %cst_240 = arith.constant dense<0.000000e+00> : vector<8xf32>
    %619 = vector.multi_reduction <add>, %616, %cst_240 [1] : vector<8x32xf32> to vector<8xf32>
    %620 = vector.shape_cast %619 : vector<8xf32> to vector<8x1xf32>
    %cst_241 = arith.constant 3.200000e+01 : f32
    %621 = vector.broadcast %cst_241 : f32 to vector<8x1xf32>
    %622 = arith.divf %620, %621 : vector<8x1xf32>
    %623 = vector.broadcast %622 : vector<8x1xf32> to vector<8x32xf32>
    %624 = arith.subf %616, %623 : vector<8x32xf32>
    %625 = arith.mulf %624, %624 : vector<8x32xf32>
    %cst_242 = arith.constant dense<0.000000e+00> : vector<8xf32>
    %626 = vector.multi_reduction <add>, %625, %cst_242 [1] : vector<8x32xf32> to vector<8xf32>
    %627 = vector.shape_cast %626 : vector<8xf32> to vector<8x1xf32>
    %cst_243 = arith.constant 3.200000e+01 : f32
    %628 = vector.broadcast %cst_243 : f32 to vector<8x1xf32>
    %629 = arith.divf %627, %628 : vector<8x1xf32>
    %630 = vector.broadcast %622 : vector<8x1xf32> to vector<8x32xf32>
    %631 = arith.subf %616, %630 : vector<8x32xf32>
    %cst_244 = arith.constant 9.99999974E-6 : f32
    %632 = vector.broadcast %cst_244 : f32 to vector<8x1xf32>
    %633 = arith.addf %629, %632 : vector<8x1xf32>
    %634 = math.rsqrt %633 : vector<8x1xf32>
    %635 = vector.broadcast %634 : vector<8x1xf32> to vector<8x32xf32>
    %636 = arith.mulf %631, %635 : vector<8x32xf32>
    %637 = vector.broadcast %617 : vector<1x32xf32> to vector<8x32xf32>
    %638 = arith.mulf %636, %637 : vector<8x32xf32>
    %639 = vector.broadcast %618 : vector<1x32xf32> to vector<8x32xf32>
    %640 = arith.addf %638, %639 : vector<8x32xf32>
    %641 = arith.truncf %640 : vector<8x32xf32> to vector<8x32xbf16>
    %c0_245 = arith.constant 0 : index
    %c0_246 = arith.constant 0 : index
    %642 = vector.load %arg17[%c0_245, %c0_246] : memref<32x64xbf16, #tpu.memory_space<vmem>>, vector<32x64xbf16>
    %cst_247 = arith.constant dense<0.000000e+00> : vector<8x64xf32>
    %643 = tpu.matmul %641, %642, %cst_247 {dimension_numbers = #tpu.dot_dimension_numbers<[1], [0], [0], [1], [0, 0, 1, 1], [], []>} : vector<8x32xbf16>, vector<32x64xbf16>, vector<8x64xf32> -> vector<8x64xf32>
    %c0_248 = arith.constant 0 : index
    %c0_249 = arith.constant 0 : index
    %644 = vector.load %arg13[%c0_248, %c0_249] : memref<1x64xf32, #tpu.memory_space<vmem>>, vector<1x64xf32>
    %645 = vector.broadcast %644 : vector<1x64xf32> to vector<8x64xf32>
    %646 = arith.addf %643, %645 : vector<8x64xf32>
    %cst_250 = arith.constant 0.000000e+00 : f32
    %647 = vector.broadcast %cst_250 : f32 to vector<8x64xf32>
    %648 = arith.maximumf %646, %647 : vector<8x64xf32>
    %649 = arith.truncf %648 : vector<8x64xf32> to vector<8x64xbf16>
    %c0_251 = arith.constant 0 : index
    %c0_252 = arith.constant 0 : index
    %650 = vector.load %arg18[%c0_251, %c0_252] : memref<64x32xbf16, #tpu.memory_space<vmem>>, vector<64x32xbf16>
    %cst_253 = arith.constant dense<0.000000e+00> : vector<8x32xf32>
    %651 = tpu.matmul %649, %650, %cst_253 {dimension_numbers = #tpu.dot_dimension_numbers<[1], [0], [0], [1], [0, 0, 1, 1], [], []>} : vector<8x64xbf16>, vector<64x32xbf16>, vector<8x32xf32> -> vector<8x32xf32>
    %c0_254 = arith.constant 0 : index
    %c0_255 = arith.constant 0 : index
    %652 = vector.load %arg14[%c0_254, %c0_255] : memref<1x32xf32, #tpu.memory_space<vmem>>, vector<1x32xf32>
    %653 = vector.broadcast %652 : vector<1x32xf32> to vector<8x32xf32>
    %654 = arith.addf %651, %653 : vector<8x32xf32>
    %655 = arith.addf %616, %654 : vector<8x32xf32>
    %c0_256 = arith.constant 0 : index
    %c0_257 = arith.constant 0 : index
    %656 = vector.load %arg42[%c0_256, %c0_257] : memref<1x32xf32, #tpu.memory_space<vmem>>, vector<1x32xf32>
    %c0_258 = arith.constant 0 : index
    %c0_259 = arith.constant 0 : index
    %657 = vector.load %arg41[%c0_258, %c0_259] : memref<1x32xf32, #tpu.memory_space<vmem>>, vector<1x32xf32>
    %cst_260 = arith.constant dense<0.000000e+00> : vector<8xf32>
    %658 = vector.multi_reduction <add>, %655, %cst_260 [1] : vector<8x32xf32> to vector<8xf32>
    %659 = vector.shape_cast %658 : vector<8xf32> to vector<8x1xf32>
    %cst_261 = arith.constant 3.200000e+01 : f32
    %660 = vector.broadcast %cst_261 : f32 to vector<8x1xf32>
    %661 = arith.divf %659, %660 : vector<8x1xf32>
    %662 = vector.broadcast %661 : vector<8x1xf32> to vector<8x32xf32>
    %663 = arith.subf %655, %662 : vector<8x32xf32>
    %664 = arith.mulf %663, %663 : vector<8x32xf32>
    %cst_262 = arith.constant dense<0.000000e+00> : vector<8xf32>
    %665 = vector.multi_reduction <add>, %664, %cst_262 [1] : vector<8x32xf32> to vector<8xf32>
    %666 = vector.shape_cast %665 : vector<8xf32> to vector<8x1xf32>
    %cst_263 = arith.constant 3.200000e+01 : f32
    %667 = vector.broadcast %cst_263 : f32 to vector<8x1xf32>
    %668 = arith.divf %666, %667 : vector<8x1xf32>
    %669 = vector.broadcast %661 : vector<8x1xf32> to vector<8x32xf32>
    %670 = arith.subf %655, %669 : vector<8x32xf32>
    %cst_264 = arith.constant 9.99999974E-6 : f32
    %671 = vector.broadcast %cst_264 : f32 to vector<8x1xf32>
    %672 = arith.addf %668, %671 : vector<8x1xf32>
    %673 = math.rsqrt %672 : vector<8x1xf32>
    %674 = vector.broadcast %673 : vector<8x1xf32> to vector<8x32xf32>
    %675 = arith.mulf %670, %674 : vector<8x32xf32>
    %676 = vector.broadcast %656 : vector<1x32xf32> to vector<8x32xf32>
    %677 = arith.mulf %675, %676 : vector<8x32xf32>
    %678 = vector.broadcast %657 : vector<1x32xf32> to vector<8x32xf32>
    %679 = arith.addf %677, %678 : vector<8x32xf32>
    %680 = arith.truncf %679 : vector<8x32xf32> to vector<8x32xbf16>
    %c0_265 = arith.constant 0 : index
    %c0_266 = arith.constant 0 : index
    %681 = vector.load %arg44[%c0_265, %c0_266] : memref<32x96xbf16, #tpu.memory_space<vmem>>, vector<32x96xbf16>
    %cst_267 = arith.constant dense<0.000000e+00> : vector<8x96xf32>
    %682 = tpu.matmul %680, %681, %cst_267 {dimension_numbers = #tpu.dot_dimension_numbers<[1], [0], [0], [1], [0, 0, 1, 1], [], []>} : vector<8x32xbf16>, vector<32x96xbf16>, vector<8x96xf32> -> vector<8x96xf32>
    %c0_268 = arith.constant 0 : index
    %c0_269 = arith.constant 0 : index
    %683 = vector.load %arg40[%c0_268, %c0_269] : memref<1x96xf32, #tpu.memory_space<vmem>>, vector<1x96xf32>
    %684 = vector.broadcast %683 : vector<1x96xf32> to vector<8x96xf32>
    %685 = arith.addf %682, %684 : vector<8x96xf32>
    %686 = vector.extract_strided_slice %685 {offsets = [0, 0], sizes = [8, 32], strides = [1, 1]} : vector<8x96xf32> to vector<8x32xf32>
    %687 = vector.extract_strided_slice %685 {offsets = [0, 32], sizes = [8, 32], strides = [1, 1]} : vector<8x96xf32> to vector<8x32xf32>
    %688 = vector.extract_strided_slice %685 {offsets = [0, 64], sizes = [8, 32], strides = [1, 1]} : vector<8x96xf32> to vector<8x32xf32>
    %cst_270 = arith.constant 0.353553385 : f32
    %689 = vector.broadcast %cst_270 : f32 to vector<8x32xf32>
    %690 = arith.mulf %686, %689 : vector<8x32xf32>
    %691 = tpu.iota {dimensions = array<i32: 0>} : vector<8x8xi32>
    %692 = tpu.iota {dimensions = array<i32: 1>} : vector<8x8xi32>
    %693 = arith.cmpi sle, %692, %691 : vector<8x8xi32>
    %cst_271 = arith.constant 0.000000e+00 : f32
    %cst_272 = arith.constant -1.000000e+30 : f32
    %694 = vector.broadcast %cst_271 : f32 to vector<8x8xf32>
    %695 = vector.broadcast %cst_272 : f32 to vector<8x8xf32>
    %696 = arith.select %693, %694, %695 : vector<8x8xi1>, vector<8x8xf32>
    %697 = vector.broadcast %3 : vector<1x8xf32> to vector<8x8xf32>
    %698 = arith.addf %697, %696 : vector<8x8xf32>
    %699 = vector.extract_strided_slice %690 {offsets = [0, 0], sizes = [8, 8], strides = [1, 1]} : vector<8x32xf32> to vector<8x8xf32>
    %700 = arith.truncf %699 : vector<8x8xf32> to vector<8x8xbf16>
    %701 = vector.extract_strided_slice %687 {offsets = [0, 0], sizes = [8, 8], strides = [1, 1]} : vector<8x32xf32> to vector<8x8xf32>
    %702 = arith.truncf %701 : vector<8x8xf32> to vector<8x8xbf16>
    %cst_273 = arith.constant dense<0.000000e+00> : vector<8x8xf32>
    %703 = tpu.matmul %700, %702, %cst_273 {dimension_numbers = #tpu.dot_dimension_numbers<[1], [1], [0], [0], [0, 0, 1, 0], [], []>} : vector<8x8xbf16>, vector<8x8xbf16>, vector<8x8xf32> -> vector<8x8xf32>
    %704 = arith.addf %703, %698 : vector<8x8xf32>
    %cst_274 = arith.constant dense<0xFF800000> : vector<8xf32>
    %705 = vector.multi_reduction <maximumf>, %704, %cst_274 [1] : vector<8x8xf32> to vector<8xf32>
    %706 = vector.shape_cast %705 : vector<8xf32> to vector<8x1xf32>
    %707 = vector.broadcast %706 : vector<8x1xf32> to vector<8x8xf32>
    %708 = arith.subf %704, %707 : vector<8x8xf32>
    %709 = math.exp %708 : vector<8x8xf32>
    %cst_275 = arith.constant dense<0.000000e+00> : vector<8xf32>
    %710 = vector.multi_reduction <add>, %709, %cst_275 [1] : vector<8x8xf32> to vector<8xf32>
    %711 = vector.shape_cast %710 : vector<8xf32> to vector<8x1xf32>
    %712 = tpu.reciprocal %711 {approx = true} : vector<8x1xf32> -> vector<8x1xf32>
    %713 = vector.broadcast %712 : vector<8x1xf32> to vector<8x8xf32>
    %714 = arith.mulf %709, %713 : vector<8x8xf32>
    %715 = arith.truncf %714 : vector<8x8xf32> to vector<8x8xbf16>
    %716 = vector.extract_strided_slice %688 {offsets = [0, 0], sizes = [8, 8], strides = [1, 1]} : vector<8x32xf32> to vector<8x8xf32>
    %717 = arith.truncf %716 : vector<8x8xf32> to vector<8x8xbf16>
    %cst_276 = arith.constant dense<0.000000e+00> : vector<8x8xf32>
    %718 = tpu.matmul %715, %717, %cst_276 {dimension_numbers = #tpu.dot_dimension_numbers<[1], [0], [0], [1], [0, 0, 1, 1], [], []>} : vector<8x8xbf16>, vector<8x8xbf16>, vector<8x8xf32> -> vector<8x8xf32>
    %c0_277 = arith.constant 0 : index
    %c0_278 = arith.constant 0 : index
    %719 = vector.load %arg72[%c0_277, %c0_278] : memref<8x32xf32, #tpu.memory_space<vmem>>, vector<8x8xf32>
    tpu.vector_store %arg72[%c0_277, %c0_278], %718 {strides = array<i32>} : memref<8x32xf32, #tpu.memory_space<vmem>>, vector<8x8xf32>,
    %720 = vector.extract_strided_slice %690 {offsets = [0, 8], sizes = [8, 8], strides = [1, 1]} : vector<8x32xf32> to vector<8x8xf32>
    %721 = arith.truncf %720 : vector<8x8xf32> to vector<8x8xbf16>
    %722 = vector.extract_strided_slice %687 {offsets = [0, 8], sizes = [8, 8], strides = [1, 1]} : vector<8x32xf32> to vector<8x8xf32>
    %723 = arith.truncf %722 : vector<8x8xf32> to vector<8x8xbf16>
    %cst_279 = arith.constant dense<0.000000e+00> : vector<8x8xf32>
    %724 = tpu.matmul %721, %723, %cst_279 {dimension_numbers = #tpu.dot_dimension_numbers<[1], [1], [0], [0], [0, 0, 1, 0], [], []>} : vector<8x8xbf16>, vector<8x8xbf16>, vector<8x8xf32> -> vector<8x8xf32>
    %725 = arith.addf %724, %698 : vector<8x8xf32>
    %cst_280 = arith.constant dense<0xFF800000> : vector<8xf32>
    %726 = vector.multi_reduction <maximumf>, %725, %cst_280 [1] : vector<8x8xf32> to vector<8xf32>
    %727 = vector.shape_cast %726 : vector<8xf32> to vector<8x1xf32>
    %728 = vector.broadcast %727 : vector<8x1xf32> to vector<8x8xf32>
    %729 = arith.subf %725, %728 : vector<8x8xf32>
    %730 = math.exp %729 : vector<8x8xf32>
    %cst_281 = arith.constant dense<0.000000e+00> : vector<8xf32>
    %731 = vector.multi_reduction <add>, %730, %cst_281 [1] : vector<8x8xf32> to vector<8xf32>
    %732 = vector.shape_cast %731 : vector<8xf32> to vector<8x1xf32>
    %733 = tpu.reciprocal %732 {approx = true} : vector<8x1xf32> -> vector<8x1xf32>
    %734 = vector.broadcast %733 : vector<8x1xf32> to vector<8x8xf32>
    %735 = arith.mulf %730, %734 : vector<8x8xf32>
    %736 = arith.truncf %735 : vector<8x8xf32> to vector<8x8xbf16>
    %737 = vector.extract_strided_slice %688 {offsets = [0, 8], sizes = [8, 8], strides = [1, 1]} : vector<8x32xf32> to vector<8x8xf32>
    %738 = arith.truncf %737 : vector<8x8xf32> to vector<8x8xbf16>
    %cst_282 = arith.constant dense<0.000000e+00> : vector<8x8xf32>
    %739 = tpu.matmul %736, %738, %cst_282 {dimension_numbers = #tpu.dot_dimension_numbers<[1], [0], [0], [1], [0, 0, 1, 1], [], []>} : vector<8x8xbf16>, vector<8x8xbf16>, vector<8x8xf32> -> vector<8x8xf32>
    %c0_283 = arith.constant 0 : index
    %c8_284 = arith.constant 8 : index
    %740 = vector.load %arg72[%c0_283, %c8_284] : memref<8x32xf32, #tpu.memory_space<vmem>>, vector<8x8xf32>
    tpu.vector_store %arg72[%c0_283, %c8_284], %739 {strides = array<i32>} : memref<8x32xf32, #tpu.memory_space<vmem>>, vector<8x8xf32>,
    %741 = vector.extract_strided_slice %690 {offsets = [0, 16], sizes = [8, 8], strides = [1, 1]} : vector<8x32xf32> to vector<8x8xf32>
    %742 = arith.truncf %741 : vector<8x8xf32> to vector<8x8xbf16>
    %743 = vector.extract_strided_slice %687 {offsets = [0, 16], sizes = [8, 8], strides = [1, 1]} : vector<8x32xf32> to vector<8x8xf32>
    %744 = arith.truncf %743 : vector<8x8xf32> to vector<8x8xbf16>
    %cst_285 = arith.constant dense<0.000000e+00> : vector<8x8xf32>
    %745 = tpu.matmul %742, %744, %cst_285 {dimension_numbers = #tpu.dot_dimension_numbers<[1], [1], [0], [0], [0, 0, 1, 0], [], []>} : vector<8x8xbf16>, vector<8x8xbf16>, vector<8x8xf32> -> vector<8x8xf32>
    %746 = arith.addf %745, %698 : vector<8x8xf32>
    %cst_286 = arith.constant dense<0xFF800000> : vector<8xf32>
    %747 = vector.multi_reduction <maximumf>, %746, %cst_286 [1] : vector<8x8xf32> to vector<8xf32>
    %748 = vector.shape_cast %747 : vector<8xf32> to vector<8x1xf32>
    %749 = vector.broadcast %748 : vector<8x1xf32> to vector<8x8xf32>
    %750 = arith.subf %746, %749 : vector<8x8xf32>
    %751 = math.exp %750 : vector<8x8xf32>
    %cst_287 = arith.constant dense<0.000000e+00> : vector<8xf32>
    %752 = vector.multi_reduction <add>, %751, %cst_287 [1] : vector<8x8xf32> to vector<8xf32>
    %753 = vector.shape_cast %752 : vector<8xf32> to vector<8x1xf32>
    %754 = tpu.reciprocal %753 {approx = true} : vector<8x1xf32> -> vector<8x1xf32>
    %755 = vector.broadcast %754 : vector<8x1xf32> to vector<8x8xf32>
    %756 = arith.mulf %751, %755 : vector<8x8xf32>
    %757 = arith.truncf %756 : vector<8x8xf32> to vector<8x8xbf16>
    %758 = vector.extract_strided_slice %688 {offsets = [0, 16], sizes = [8, 8], strides = [1, 1]} : vector<8x32xf32> to vector<8x8xf32>
    %759 = arith.truncf %758 : vector<8x8xf32> to vector<8x8xbf16>
    %cst_288 = arith.constant dense<0.000000e+00> : vector<8x8xf32>
    %760 = tpu.matmul %757, %759, %cst_288 {dimension_numbers = #tpu.dot_dimension_numbers<[1], [0], [0], [1], [0, 0, 1, 1], [], []>} : vector<8x8xbf16>, vector<8x8xbf16>, vector<8x8xf32> -> vector<8x8xf32>
    %c0_289 = arith.constant 0 : index
    %c16_290 = arith.constant 16 : index
    %761 = vector.load %arg72[%c0_289, %c16_290] : memref<8x32xf32, #tpu.memory_space<vmem>>, vector<8x8xf32>
    tpu.vector_store %arg72[%c0_289, %c16_290], %760 {strides = array<i32>} : memref<8x32xf32, #tpu.memory_space<vmem>>, vector<8x8xf32>,
    %762 = vector.extract_strided_slice %690 {offsets = [0, 24], sizes = [8, 8], strides = [1, 1]} : vector<8x32xf32> to vector<8x8xf32>
    %763 = arith.truncf %762 : vector<8x8xf32> to vector<8x8xbf16>
    %764 = vector.extract_strided_slice %687 {offsets = [0, 24], sizes = [8, 8], strides = [1, 1]} : vector<8x32xf32> to vector<8x8xf32>
    %765 = arith.truncf %764 : vector<8x8xf32> to vector<8x8xbf16>
    %cst_291 = arith.constant dense<0.000000e+00> : vector<8x8xf32>
    %766 = tpu.matmul %763, %765, %cst_291 {dimension_numbers = #tpu.dot_dimension_numbers<[1], [1], [0], [0], [0, 0, 1, 0], [], []>} : vector<8x8xbf16>, vector<8x8xbf16>, vector<8x8xf32> -> vector<8x8xf32>
    %767 = arith.addf %766, %698 : vector<8x8xf32>
    %cst_292 = arith.constant dense<0xFF800000> : vector<8xf32>
    %768 = vector.multi_reduction <maximumf>, %767, %cst_292 [1] : vector<8x8xf32> to vector<8xf32>
    %769 = vector.shape_cast %768 : vector<8xf32> to vector<8x1xf32>
    %770 = vector.broadcast %769 : vector<8x1xf32> to vector<8x8xf32>
    %771 = arith.subf %767, %770 : vector<8x8xf32>
    %772 = math.exp %771 : vector<8x8xf32>
    %cst_293 = arith.constant dense<0.000000e+00> : vector<8xf32>
    %773 = vector.multi_reduction <add>, %772, %cst_293 [1] : vector<8x8xf32> to vector<8xf32>
    %774 = vector.shape_cast %773 : vector<8xf32> to vector<8x1xf32>
    %775 = tpu.reciprocal %774 {approx = true} : vector<8x1xf32> -> vector<8x1xf32>
    %776 = vector.broadcast %775 : vector<8x1xf32> to vector<8x8xf32>
    %777 = arith.mulf %772, %776 : vector<8x8xf32>
    %778 = arith.truncf %777 : vector<8x8xf32> to vector<8x8xbf16>
    %779 = vector.extract_strided_slice %688 {offsets = [0, 24], sizes = [8, 8], strides = [1, 1]} : vector<8x32xf32> to vector<8x8xf32>
    %780 = arith.truncf %779 : vector<8x8xf32> to vector<8x8xbf16>
    %cst_294 = arith.constant dense<0.000000e+00> : vector<8x8xf32>
    %781 = tpu.matmul %778, %780, %cst_294 {dimension_numbers = #tpu.dot_dimension_numbers<[1], [0], [0], [1], [0, 0, 1, 1], [], []>} : vector<8x8xbf16>, vector<8x8xbf16>, vector<8x8xf32> -> vector<8x8xf32>
    %c0_295 = arith.constant 0 : index
    %c24_296 = arith.constant 24 : index
    %782 = vector.load %arg72[%c0_295, %c24_296] : memref<8x32xf32, #tpu.memory_space<vmem>>, vector<8x8xf32>
    tpu.vector_store %arg72[%c0_295, %c24_296], %781 {strides = array<i32>} : memref<8x32xf32, #tpu.memory_space<vmem>>, vector<8x8xf32>,
    %c0_297 = arith.constant 0 : index
    %c0_298 = arith.constant 0 : index
    %783 = vector.load %arg72[%c0_297, %c0_298] : memref<8x32xf32, #tpu.memory_space<vmem>>, vector<8x32xf32>
    %784 = arith.truncf %783 : vector<8x32xf32> to vector<8x32xbf16>
    %c0_299 = arith.constant 0 : index
    %c0_300 = arith.constant 0 : index
    %785 = vector.load %arg43[%c0_299, %c0_300] : memref<32x32xbf16, #tpu.memory_space<vmem>>, vector<32x32xbf16>
    %cst_301 = arith.constant dense<0.000000e+00> : vector<8x32xf32>
    %786 = tpu.matmul %784, %785, %cst_301 {dimension_numbers = #tpu.dot_dimension_numbers<[1], [0], [0], [1], [0, 0, 1, 1], [], []>} : vector<8x32xbf16>, vector<32x32xbf16>, vector<8x32xf32> -> vector<8x32xf32>
    %c0_302 = arith.constant 0 : index
    %c0_303 = arith.constant 0 : index
    %787 = vector.load %arg39[%c0_302, %c0_303] : memref<1x32xf32, #tpu.memory_space<vmem>>, vector<1x32xf32>
    %788 = vector.broadcast %787 : vector<1x32xf32> to vector<8x32xf32>
    %789 = arith.addf %786, %788 : vector<8x32xf32>
    %790 = arith.addf %655, %789 : vector<8x32xf32>
    %c0_304 = arith.constant 0 : index
    %c0_305 = arith.constant 0 : index
    %791 = vector.load %arg29[%c0_304, %c0_305] : memref<1x32xf32, #tpu.memory_space<vmem>>, vector<1x32xf32>
    %c0_306 = arith.constant 0 : index
    %c0_307 = arith.constant 0 : index
    %792 = vector.load %arg28[%c0_306, %c0_307] : memref<1x32xf32, #tpu.memory_space<vmem>>, vector<1x32xf32>
    %cst_308 = arith.constant dense<0.000000e+00> : vector<8xf32>
    %793 = vector.multi_reduction <add>, %790, %cst_308 [1] : vector<8x32xf32> to vector<8xf32>
    %794 = vector.shape_cast %793 : vector<8xf32> to vector<8x1xf32>
    %cst_309 = arith.constant 3.200000e+01 : f32
    %795 = vector.broadcast %cst_309 : f32 to vector<8x1xf32>
    %796 = arith.divf %794, %795 : vector<8x1xf32>
    %797 = vector.broadcast %796 : vector<8x1xf32> to vector<8x32xf32>
    %798 = arith.subf %790, %797 : vector<8x32xf32>
    %799 = arith.mulf %798, %798 : vector<8x32xf32>
    %cst_310 = arith.constant dense<0.000000e+00> : vector<8xf32>
    %800 = vector.multi_reduction <add>, %799, %cst_310 [1] : vector<8x32xf32> to vector<8xf32>
    %801 = vector.shape_cast %800 : vector<8xf32> to vector<8x1xf32>
    %cst_311 = arith.constant 3.200000e+01 : f32
    %802 = vector.broadcast %cst_311 : f32 to vector<8x1xf32>
    %803 = arith.divf %801, %802 : vector<8x1xf32>
    %804 = vector.broadcast %796 : vector<8x1xf32> to vector<8x32xf32>
    %805 = arith.subf %790, %804 : vector<8x32xf32>
    %cst_312 = arith.constant 9.99999974E-6 : f32
    %806 = vector.broadcast %cst_312 : f32 to vector<8x1xf32>
    %807 = arith.addf %803, %806 : vector<8x1xf32>
    %808 = math.rsqrt %807 : vector<8x1xf32>
    %809 = vector.broadcast %808 : vector<8x1xf32> to vector<8x32xf32>
    %810 = arith.mulf %805, %809 : vector<8x32xf32>
    %811 = vector.broadcast %791 : vector<1x32xf32> to vector<8x32xf32>
    %812 = arith.mulf %810, %811 : vector<8x32xf32>
    %813 = vector.broadcast %792 : vector<1x32xf32> to vector<8x32xf32>
    %814 = arith.addf %812, %813 : vector<8x32xf32>
    %815 = arith.truncf %814 : vector<8x32xf32> to vector<8x32xbf16>
    %c0_313 = arith.constant 0 : index
    %c0_314 = arith.constant 0 : index
    %816 = vector.load %arg32[%c0_313, %c0_314] : memref<32x32xbf16, #tpu.memory_space<vmem>>, vector<32x32xbf16>
    %cst_315 = arith.constant dense<0.000000e+00> : vector<8x32xf32>
    %817 = tpu.matmul %815, %816, %cst_315 {dimension_numbers = #tpu.dot_dimension_numbers<[1], [0], [0], [1], [0, 0, 1, 1], [], []>} : vector<8x32xbf16>, vector<32x32xbf16>, vector<8x32xf32> -> vector<8x32xf32>
    %c0_316 = arith.constant 0 : index
    %c0_317 = arith.constant 0 : index
    %818 = vector.load %arg27[%c0_316, %c0_317] : memref<1x32xf32, #tpu.memory_space<vmem>>, vector<1x32xf32>
    %819 = vector.broadcast %818 : vector<1x32xf32> to vector<8x32xf32>
    %820 = arith.addf %817, %819 : vector<8x32xf32>
    %821 = arith.truncf %344 : vector<8x32xf32> to vector<8x32xbf16>
    %c0_318 = arith.constant 0 : index
    %c0_319 = arith.constant 0 : index
    %822 = vector.load %arg30[%c0_318, %c0_319] : memref<32x64xbf16, #tpu.memory_space<vmem>>, vector<32x64xbf16>
    %cst_320 = arith.constant dense<0.000000e+00> : vector<8x64xf32>
    %823 = tpu.matmul %821, %822, %cst_320 {dimension_numbers = #tpu.dot_dimension_numbers<[1], [0], [0], [1], [0, 0, 1, 1], [], []>} : vector<8x32xbf16>, vector<32x64xbf16>, vector<8x64xf32> -> vector<8x64xf32>
    %c0_321 = arith.constant 0 : index
    %c0_322 = arith.constant 0 : index
    %824 = vector.load %arg25[%c0_321, %c0_322] : memref<1x64xf32, #tpu.memory_space<vmem>>, vector<1x64xf32>
    %825 = vector.broadcast %824 : vector<1x64xf32> to vector<8x64xf32>
    %826 = arith.addf %823, %825 : vector<8x64xf32>
    %827 = vector.extract_strided_slice %826 {offsets = [0, 0], sizes = [8, 32], strides = [1, 1]} : vector<8x64xf32> to vector<8x32xf32>
    %828 = vector.extract_strided_slice %826 {offsets = [0, 32], sizes = [8, 32], strides = [1, 1]} : vector<8x64xf32> to vector<8x32xf32>
    %cst_323 = arith.constant 0.353553385 : f32
    %829 = vector.broadcast %cst_323 : f32 to vector<8x32xf32>
    %830 = arith.mulf %820, %829 : vector<8x32xf32>
    %831 = vector.extract_strided_slice %830 {offsets = [0, 0], sizes = [8, 8], strides = [1, 1]} : vector<8x32xf32> to vector<8x8xf32>
    %832 = arith.truncf %831 : vector<8x8xf32> to vector<8x8xbf16>
    %833 = vector.extract_strided_slice %827 {offsets = [0, 0], sizes = [8, 8], strides = [1, 1]} : vector<8x32xf32> to vector<8x8xf32>
    %834 = arith.truncf %833 : vector<8x8xf32> to vector<8x8xbf16>
    %cst_324 = arith.constant dense<0.000000e+00> : vector<8x8xf32>
    %835 = tpu.matmul %832, %834, %cst_324 {dimension_numbers = #tpu.dot_dimension_numbers<[1], [1], [0], [0], [0, 0, 1, 0], [], []>} : vector<8x8xbf16>, vector<8x8xbf16>, vector<8x8xf32> -> vector<8x8xf32>
    %836 = vector.broadcast %1 : vector<1x8xf32> to vector<8x8xf32>
    %837 = arith.addf %835, %836 : vector<8x8xf32>
    %cst_325 = arith.constant dense<0xFF800000> : vector<8xf32>
    %838 = vector.multi_reduction <maximumf>, %837, %cst_325 [1] : vector<8x8xf32> to vector<8xf32>
    %839 = vector.shape_cast %838 : vector<8xf32> to vector<8x1xf32>
    %840 = vector.broadcast %839 : vector<8x1xf32> to vector<8x8xf32>
    %841 = arith.subf %837, %840 : vector<8x8xf32>
    %842 = math.exp %841 : vector<8x8xf32>
    %cst_326 = arith.constant dense<0.000000e+00> : vector<8xf32>
    %843 = vector.multi_reduction <add>, %842, %cst_326 [1] : vector<8x8xf32> to vector<8xf32>
    %844 = vector.shape_cast %843 : vector<8xf32> to vector<8x1xf32>
    %845 = tpu.reciprocal %844 {approx = true} : vector<8x1xf32> -> vector<8x1xf32>
    %846 = vector.broadcast %845 : vector<8x1xf32> to vector<8x8xf32>
    %847 = arith.mulf %842, %846 : vector<8x8xf32>
    %848 = arith.truncf %847 : vector<8x8xf32> to vector<8x8xbf16>
    %849 = vector.extract_strided_slice %828 {offsets = [0, 0], sizes = [8, 8], strides = [1, 1]} : vector<8x32xf32> to vector<8x8xf32>
    %850 = arith.truncf %849 : vector<8x8xf32> to vector<8x8xbf16>
    %cst_327 = arith.constant dense<0.000000e+00> : vector<8x8xf32>
    %851 = tpu.matmul %848, %850, %cst_327 {dimension_numbers = #tpu.dot_dimension_numbers<[1], [0], [0], [1], [0, 0, 1, 1], [], []>} : vector<8x8xbf16>, vector<8x8xbf16>, vector<8x8xf32> -> vector<8x8xf32>
    %c0_328 = arith.constant 0 : index
    %c0_329 = arith.constant 0 : index
    %852 = vector.load %arg72[%c0_328, %c0_329] : memref<8x32xf32, #tpu.memory_space<vmem>>, vector<8x8xf32>
    tpu.vector_store %arg72[%c0_328, %c0_329], %851 {strides = array<i32>} : memref<8x32xf32, #tpu.memory_space<vmem>>, vector<8x8xf32>,
    %853 = vector.extract_strided_slice %830 {offsets = [0, 8], sizes = [8, 8], strides = [1, 1]} : vector<8x32xf32> to vector<8x8xf32>
    %854 = arith.truncf %853 : vector<8x8xf32> to vector<8x8xbf16>
    %855 = vector.extract_strided_slice %827 {offsets = [0, 8], sizes = [8, 8], strides = [1, 1]} : vector<8x32xf32> to vector<8x8xf32>
    %856 = arith.truncf %855 : vector<8x8xf32> to vector<8x8xbf16>
    %cst_330 = arith.constant dense<0.000000e+00> : vector<8x8xf32>
    %857 = tpu.matmul %854, %856, %cst_330 {dimension_numbers = #tpu.dot_dimension_numbers<[1], [1], [0], [0], [0, 0, 1, 0], [], []>} : vector<8x8xbf16>, vector<8x8xbf16>, vector<8x8xf32> -> vector<8x8xf32>
    %858 = vector.broadcast %1 : vector<1x8xf32> to vector<8x8xf32>
    %859 = arith.addf %857, %858 : vector<8x8xf32>
    %cst_331 = arith.constant dense<0xFF800000> : vector<8xf32>
    %860 = vector.multi_reduction <maximumf>, %859, %cst_331 [1] : vector<8x8xf32> to vector<8xf32>
    %861 = vector.shape_cast %860 : vector<8xf32> to vector<8x1xf32>
    %862 = vector.broadcast %861 : vector<8x1xf32> to vector<8x8xf32>
    %863 = arith.subf %859, %862 : vector<8x8xf32>
    %864 = math.exp %863 : vector<8x8xf32>
    %cst_332 = arith.constant dense<0.000000e+00> : vector<8xf32>
    %865 = vector.multi_reduction <add>, %864, %cst_332 [1] : vector<8x8xf32> to vector<8xf32>
    %866 = vector.shape_cast %865 : vector<8xf32> to vector<8x1xf32>
    %867 = tpu.reciprocal %866 {approx = true} : vector<8x1xf32> -> vector<8x1xf32>
    %868 = vector.broadcast %867 : vector<8x1xf32> to vector<8x8xf32>
    %869 = arith.mulf %864, %868 : vector<8x8xf32>
    %870 = arith.truncf %869 : vector<8x8xf32> to vector<8x8xbf16>
    %871 = vector.extract_strided_slice %828 {offsets = [0, 8], sizes = [8, 8], strides = [1, 1]} : vector<8x32xf32> to vector<8x8xf32>
    %872 = arith.truncf %871 : vector<8x8xf32> to vector<8x8xbf16>
    %cst_333 = arith.constant dense<0.000000e+00> : vector<8x8xf32>
    %873 = tpu.matmul %870, %872, %cst_333 {dimension_numbers = #tpu.dot_dimension_numbers<[1], [0], [0], [1], [0, 0, 1, 1], [], []>} : vector<8x8xbf16>, vector<8x8xbf16>, vector<8x8xf32> -> vector<8x8xf32>
    %c0_334 = arith.constant 0 : index
    %c8_335 = arith.constant 8 : index
    %874 = vector.load %arg72[%c0_334, %c8_335] : memref<8x32xf32, #tpu.memory_space<vmem>>, vector<8x8xf32>
    tpu.vector_store %arg72[%c0_334, %c8_335], %873 {strides = array<i32>} : memref<8x32xf32, #tpu.memory_space<vmem>>, vector<8x8xf32>,
    %875 = vector.extract_strided_slice %830 {offsets = [0, 16], sizes = [8, 8], strides = [1, 1]} : vector<8x32xf32> to vector<8x8xf32>
    %876 = arith.truncf %875 : vector<8x8xf32> to vector<8x8xbf16>
    %877 = vector.extract_strided_slice %827 {offsets = [0, 16], sizes = [8, 8], strides = [1, 1]} : vector<8x32xf32> to vector<8x8xf32>
    %878 = arith.truncf %877 : vector<8x8xf32> to vector<8x8xbf16>
    %cst_336 = arith.constant dense<0.000000e+00> : vector<8x8xf32>
    %879 = tpu.matmul %876, %878, %cst_336 {dimension_numbers = #tpu.dot_dimension_numbers<[1], [1], [0], [0], [0, 0, 1, 0], [], []>} : vector<8x8xbf16>, vector<8x8xbf16>, vector<8x8xf32> -> vector<8x8xf32>
    %880 = vector.broadcast %1 : vector<1x8xf32> to vector<8x8xf32>
    %881 = arith.addf %879, %880 : vector<8x8xf32>
    %cst_337 = arith.constant dense<0xFF800000> : vector<8xf32>
    %882 = vector.multi_reduction <maximumf>, %881, %cst_337 [1] : vector<8x8xf32> to vector<8xf32>
    %883 = vector.shape_cast %882 : vector<8xf32> to vector<8x1xf32>
    %884 = vector.broadcast %883 : vector<8x1xf32> to vector<8x8xf32>
    %885 = arith.subf %881, %884 : vector<8x8xf32>
    %886 = math.exp %885 : vector<8x8xf32>
    %cst_338 = arith.constant dense<0.000000e+00> : vector<8xf32>
    %887 = vector.multi_reduction <add>, %886, %cst_338 [1] : vector<8x8xf32> to vector<8xf32>
    %888 = vector.shape_cast %887 : vector<8xf32> to vector<8x1xf32>
    %889 = tpu.reciprocal %888 {approx = true} : vector<8x1xf32> -> vector<8x1xf32>
    %890 = vector.broadcast %889 : vector<8x1xf32> to vector<8x8xf32>
    %891 = arith.mulf %886, %890 : vector<8x8xf32>
    %892 = arith.truncf %891 : vector<8x8xf32> to vector<8x8xbf16>
    %893 = vector.extract_strided_slice %828 {offsets = [0, 16], sizes = [8, 8], strides = [1, 1]} : vector<8x32xf32> to vector<8x8xf32>
    %894 = arith.truncf %893 : vector<8x8xf32> to vector<8x8xbf16>
    %cst_339 = arith.constant dense<0.000000e+00> : vector<8x8xf32>
    %895 = tpu.matmul %892, %894, %cst_339 {dimension_numbers = #tpu.dot_dimension_numbers<[1], [0], [0], [1], [0, 0, 1, 1], [], []>} : vector<8x8xbf16>, vector<8x8xbf16>, vector<8x8xf32> -> vector<8x8xf32>
    %c0_340 = arith.constant 0 : index
    %c16_341 = arith.constant 16 : index
    %896 = vector.load %arg72[%c0_340, %c16_341] : memref<8x32xf32, #tpu.memory_space<vmem>>, vector<8x8xf32>
    tpu.vector_store %arg72[%c0_340, %c16_341], %895 {strides = array<i32>} : memref<8x32xf32, #tpu.memory_space<vmem>>, vector<8x8xf32>,
    %897 = vector.extract_strided_slice %830 {offsets = [0, 24], sizes = [8, 8], strides = [1, 1]} : vector<8x32xf32> to vector<8x8xf32>
    %898 = arith.truncf %897 : vector<8x8xf32> to vector<8x8xbf16>
    %899 = vector.extract_strided_slice %827 {offsets = [0, 24], sizes = [8, 8], strides = [1, 1]} : vector<8x32xf32> to vector<8x8xf32>
    %900 = arith.truncf %899 : vector<8x8xf32> to vector<8x8xbf16>
    %cst_342 = arith.constant dense<0.000000e+00> : vector<8x8xf32>
    %901 = tpu.matmul %898, %900, %cst_342 {dimension_numbers = #tpu.dot_dimension_numbers<[1], [1], [0], [0], [0, 0, 1, 0], [], []>} : vector<8x8xbf16>, vector<8x8xbf16>, vector<8x8xf32> -> vector<8x8xf32>
    %902 = vector.broadcast %1 : vector<1x8xf32> to vector<8x8xf32>
    %903 = arith.addf %901, %902 : vector<8x8xf32>
    %cst_343 = arith.constant dense<0xFF800000> : vector<8xf32>
    %904 = vector.multi_reduction <maximumf>, %903, %cst_343 [1] : vector<8x8xf32> to vector<8xf32>
    %905 = vector.shape_cast %904 : vector<8xf32> to vector<8x1xf32>
    %906 = vector.broadcast %905 : vector<8x1xf32> to vector<8x8xf32>
    %907 = arith.subf %903, %906 : vector<8x8xf32>
    %908 = math.exp %907 : vector<8x8xf32>
    %cst_344 = arith.constant dense<0.000000e+00> : vector<8xf32>
    %909 = vector.multi_reduction <add>, %908, %cst_344 [1] : vector<8x8xf32> to vector<8xf32>
    %910 = vector.shape_cast %909 : vector<8xf32> to vector<8x1xf32>
    %911 = tpu.reciprocal %910 {approx = true} : vector<8x1xf32> -> vector<8x1xf32>
    %912 = vector.broadcast %911 : vector<8x1xf32> to vector<8x8xf32>
    %913 = arith.mulf %908, %912 : vector<8x8xf32>
    %914 = arith.truncf %913 : vector<8x8xf32> to vector<8x8xbf16>
    %915 = vector.extract_strided_slice %828 {offsets = [0, 24], sizes = [8, 8], strides = [1, 1]} : vector<8x32xf32> to vector<8x8xf32>
    %916 = arith.truncf %915 : vector<8x8xf32> to vector<8x8xbf16>
    %cst_345 = arith.constant dense<0.000000e+00> : vector<8x8xf32>
    %917 = tpu.matmul %914, %916, %cst_345 {dimension_numbers = #tpu.dot_dimension_numbers<[1], [0], [0], [1], [0, 0, 1, 1], [], []>} : vector<8x8xbf16>, vector<8x8xbf16>, vector<8x8xf32> -> vector<8x8xf32>
    %c0_346 = arith.constant 0 : index
    %c24_347 = arith.constant 24 : index
    %918 = vector.load %arg72[%c0_346, %c24_347] : memref<8x32xf32, #tpu.memory_space<vmem>>, vector<8x8xf32>
    tpu.vector_store %arg72[%c0_346, %c24_347], %917 {strides = array<i32>} : memref<8x32xf32, #tpu.memory_space<vmem>>, vector<8x8xf32>,
    %c0_348 = arith.constant 0 : index
    %c0_349 = arith.constant 0 : index
    %919 = vector.load %arg72[%c0_348, %c0_349] : memref<8x32xf32, #tpu.memory_space<vmem>>, vector<8x32xf32>
    %920 = arith.truncf %919 : vector<8x32xf32> to vector<8x32xbf16>
    %c0_350 = arith.constant 0 : index
    %c0_351 = arith.constant 0 : index
    %921 = vector.load %arg31[%c0_350, %c0_351] : memref<32x32xbf16, #tpu.memory_space<vmem>>, vector<32x32xbf16>
    %cst_352 = arith.constant dense<0.000000e+00> : vector<8x32xf32>
    %922 = tpu.matmul %920, %921, %cst_352 {dimension_numbers = #tpu.dot_dimension_numbers<[1], [0], [0], [1], [0, 0, 1, 1], [], []>} : vector<8x32xbf16>, vector<32x32xbf16>, vector<8x32xf32> -> vector<8x32xf32>
    %c0_353 = arith.constant 0 : index
    %c0_354 = arith.constant 0 : index
    %923 = vector.load %arg26[%c0_353, %c0_354] : memref<1x32xf32, #tpu.memory_space<vmem>>, vector<1x32xf32>
    %924 = vector.broadcast %923 : vector<1x32xf32> to vector<8x32xf32>
    %925 = arith.addf %922, %924 : vector<8x32xf32>
    %926 = arith.addf %790, %925 : vector<8x32xf32>
    %c0_355 = arith.constant 0 : index
    %c0_356 = arith.constant 0 : index
    %927 = vector.load %arg36[%c0_355, %c0_356] : memref<1x32xf32, #tpu.memory_space<vmem>>, vector<1x32xf32>
    %c0_357 = arith.constant 0 : index
    %c0_358 = arith.constant 0 : index
    %928 = vector.load %arg35[%c0_357, %c0_358] : memref<1x32xf32, #tpu.memory_space<vmem>>, vector<1x32xf32>
    %cst_359 = arith.constant dense<0.000000e+00> : vector<8xf32>
    %929 = vector.multi_reduction <add>, %926, %cst_359 [1] : vector<8x32xf32> to vector<8xf32>
    %930 = vector.shape_cast %929 : vector<8xf32> to vector<8x1xf32>
    %cst_360 = arith.constant 3.200000e+01 : f32
    %931 = vector.broadcast %cst_360 : f32 to vector<8x1xf32>
    %932 = arith.divf %930, %931 : vector<8x1xf32>
    %933 = vector.broadcast %932 : vector<8x1xf32> to vector<8x32xf32>
    %934 = arith.subf %926, %933 : vector<8x32xf32>
    %935 = arith.mulf %934, %934 : vector<8x32xf32>
    %cst_361 = arith.constant dense<0.000000e+00> : vector<8xf32>
    %936 = vector.multi_reduction <add>, %935, %cst_361 [1] : vector<8x32xf32> to vector<8xf32>
    %937 = vector.shape_cast %936 : vector<8xf32> to vector<8x1xf32>
    %cst_362 = arith.constant 3.200000e+01 : f32
    %938 = vector.broadcast %cst_362 : f32 to vector<8x1xf32>
    %939 = arith.divf %937, %938 : vector<8x1xf32>
    %940 = vector.broadcast %932 : vector<8x1xf32> to vector<8x32xf32>
    %941 = arith.subf %926, %940 : vector<8x32xf32>
    %cst_363 = arith.constant 9.99999974E-6 : f32
    %942 = vector.broadcast %cst_363 : f32 to vector<8x1xf32>
    %943 = arith.addf %939, %942 : vector<8x1xf32>
    %944 = math.rsqrt %943 : vector<8x1xf32>
    %945 = vector.broadcast %944 : vector<8x1xf32> to vector<8x32xf32>
    %946 = arith.mulf %941, %945 : vector<8x32xf32>
    %947 = vector.broadcast %927 : vector<1x32xf32> to vector<8x32xf32>
    %948 = arith.mulf %946, %947 : vector<8x32xf32>
    %949 = vector.broadcast %928 : vector<1x32xf32> to vector<8x32xf32>
    %950 = arith.addf %948, %949 : vector<8x32xf32>
    %951 = arith.truncf %950 : vector<8x32xf32> to vector<8x32xbf16>
    %c0_364 = arith.constant 0 : index
    %c0_365 = arith.constant 0 : index
    %952 = vector.load %arg37[%c0_364, %c0_365] : memref<32x64xbf16, #tpu.memory_space<vmem>>, vector<32x64xbf16>
    %cst_366 = arith.constant dense<0.000000e+00> : vector<8x64xf32>
    %953 = tpu.matmul %951, %952, %cst_366 {dimension_numbers = #tpu.dot_dimension_numbers<[1], [0], [0], [1], [0, 0, 1, 1], [], []>} : vector<8x32xbf16>, vector<32x64xbf16>, vector<8x64xf32> -> vector<8x64xf32>
    %c0_367 = arith.constant 0 : index
    %c0_368 = arith.constant 0 : index
    %954 = vector.load %arg33[%c0_367, %c0_368] : memref<1x64xf32, #tpu.memory_space<vmem>>, vector<1x64xf32>
    %955 = vector.broadcast %954 : vector<1x64xf32> to vector<8x64xf32>
    %956 = arith.addf %953, %955 : vector<8x64xf32>
    %cst_369 = arith.constant 0.000000e+00 : f32
    %957 = vector.broadcast %cst_369 : f32 to vector<8x64xf32>
    %958 = arith.maximumf %956, %957 : vector<8x64xf32>
    %959 = arith.truncf %958 : vector<8x64xf32> to vector<8x64xbf16>
    %c0_370 = arith.constant 0 : index
    %c0_371 = arith.constant 0 : index
    %960 = vector.load %arg38[%c0_370, %c0_371] : memref<64x32xbf16, #tpu.memory_space<vmem>>, vector<64x32xbf16>
    %cst_372 = arith.constant dense<0.000000e+00> : vector<8x32xf32>
    %961 = tpu.matmul %959, %960, %cst_372 {dimension_numbers = #tpu.dot_dimension_numbers<[1], [0], [0], [1], [0, 0, 1, 1], [], []>} : vector<8x64xbf16>, vector<64x32xbf16>, vector<8x32xf32> -> vector<8x32xf32>
    %c0_373 = arith.constant 0 : index
    %c0_374 = arith.constant 0 : index
    %962 = vector.load %arg34[%c0_373, %c0_374] : memref<1x32xf32, #tpu.memory_space<vmem>>, vector<1x32xf32>
    %963 = vector.broadcast %962 : vector<1x32xf32> to vector<8x32xf32>
    %964 = arith.addf %961, %963 : vector<8x32xf32>
    %965 = arith.addf %926, %964 : vector<8x32xf32>
    %966 = arith.truncf %965 : vector<8x32xf32> to vector<8x32xbf16>
    %c0_375 = arith.constant 0 : index
    %c0_376 = arith.constant 0 : index
    %967 = vector.load %arg70[%c0_375, %c0_376] : memref<32x16xbf16, #tpu.memory_space<vmem>>, vector<32x16xbf16>
    %cst_377 = arith.constant dense<0.000000e+00> : vector<8x16xf32>
    %968 = tpu.matmul %966, %967, %cst_377 {dimension_numbers = #tpu.dot_dimension_numbers<[1], [0], [0], [1], [0, 0, 1, 1], [], []>} : vector<8x32xbf16>, vector<32x16xbf16>, vector<8x16xf32> -> vector<8x16xf32>
    %c0_378 = arith.constant 0 : index
    %c0_379 = arith.constant 0 : index
    %969 = vector.load %arg69[%c0_378, %c0_379] : memref<1x16xf32, #tpu.memory_space<vmem>>, vector<1x16xf32>
    %970 = vector.broadcast %969 : vector<1x16xf32> to vector<8x16xf32>
    %971 = arith.addf %968, %970 : vector<8x16xf32>
    %c0_380 = arith.constant 0 : index
    %c0_381 = arith.constant 0 : index
    %972 = vector.load %arg71[%c0_380, %c0_381] : memref<8x16xf32, #tpu.memory_space<vmem>>, vector<8x16xf32>
    tpu.vector_store %arg71[%c0_380, %c0_381], %971 {strides = array<i32>} : memref<8x16xf32, #tpu.memory_space<vmem>>, vector<8x16xf32>,
    return
  }
  func.func @transform_0(%arg0: i32) -> (i32, i32) {
    %c0_i32 = arith.constant 0 : i32
    %c0_i32_0 = arith.constant 0 : i32
    return %arg0, %c0_i32 : i32, i32
  }
  func.func @transform_1(%arg0: i32) -> (i32, i32) {
    %c0_i32 = arith.constant 0 : i32
    %c0_i32_0 = arith.constant 0 : i32
    return %arg0, %c0_i32 : i32, i32
  }
  func.func @transform_2(%arg0: i32) -> (i32, i32, i32) {
    %c0_i32 = arith.constant 0 : i32
    %c0_i32_0 = arith.constant 0 : i32
    %c0_i32_1 = arith.constant 0 : i32
    return %arg0, %c0_i32, %c0_i32_0 : i32, i32, i32
  }
  func.func @transform_3(%arg0: i32) -> (i32, i32, i32) {
    %c0_i32 = arith.constant 0 : i32
    %c0_i32_0 = arith.constant 0 : i32
    %c0_i32_1 = arith.constant 0 : i32
    return %arg0, %c0_i32, %c0_i32_0 : i32, i32, i32
  }
  func.func @transform_4(%arg0: i32) -> (i32, i32) {
    %c0_i32 = arith.constant 0 : i32
    %c0_i32_0 = arith.constant 0 : i32
    %c0_i32_1 = arith.constant 0 : i32
    return %c0_i32, %c0_i32_0 : i32, i32
  }
  func.func @transform_5(%arg0: i32) -> (i32, i32) {
    %c0_i32 = arith.constant 0 : i32
    %c0_i32_0 = arith.constant 0 : i32
    %c0_i32_1 = arith.constant 0 : i32
    return %c0_i32, %c0_i32_0 : i32, i32
  }
  func.func @transform_6(%arg0: i32) -> (i32, i32) {
    %c0_i32 = arith.constant 0 : i32
    %c0_i32_0 = arith.constant 0 : i32
    %c0_i32_1 = arith.constant 0 : i32
    return %c0_i32, %c0_i32_0 : i32, i32
  }
  func.func @transform_7(%arg0: i32) -> (i32, i32) {
    %c0_i32 = arith.constant 0 : i32
    %c0_i32_0 = arith.constant 0 : i32
    %c0_i32_1 = arith.constant 0 : i32
    return %c0_i32, %c0_i32_0 : i32, i32
  }
  func.func @transform_8(%arg0: i32) -> (i32, i32) {
    %c0_i32 = arith.constant 0 : i32
    %c0_i32_0 = arith.constant 0 : i32
    %c0_i32_1 = arith.constant 0 : i32
    return %c0_i32, %c0_i32_0 : i32, i32
  }
  func.func @transform_9(%arg0: i32) -> (i32, i32) {
    %c0_i32 = arith.constant 0 : i32
    %c0_i32_0 = arith.constant 0 : i32
    %c0_i32_1 = arith.constant 0 : i32
    return %c0_i32, %c0_i32_0 : i32, i32
  }
  func.func @transform_10(%arg0: i32) -> (i32, i32) {
    %c0_i32 = arith.constant 0 : i32
    %c0_i32_0 = arith.constant 0 : i32
    %c0_i32_1 = arith.constant 0 : i32
    return %c0_i32, %c0_i32_0 : i32, i32
  }
  func.func @transform_11(%arg0: i32) -> (i32, i32) {
    %c0_i32 = arith.constant 0 : i32
    %c0_i32_0 = arith.constant 0 : i32
    %c0_i32_1 = arith.constant 0 : i32
    return %c0_i32, %c0_i32_0 : i32, i32
  }
  func.func @transform_12(%arg0: i32) -> (i32, i32) {
    %c0_i32 = arith.constant 0 : i32
    %c0_i32_0 = arith.constant 0 : i32
    %c0_i32_1 = arith.constant 0 : i32
    return %c0_i32, %c0_i32_0 : i32, i32
  }
  func.func @transform_13(%arg0: i32) -> (i32, i32) {
    %c0_i32 = arith.constant 0 : i32
    %c0_i32_0 = arith.constant 0 : i32
    %c0_i32_1 = arith.constant 0 : i32
    return %c0_i32, %c0_i32_0 : i32, i32
  }
  func.func @transform_14(%arg0: i32) -> (i32, i32) {
    %c0_i32 = arith.constant 0 : i32
    %c0_i32_0 = arith.constant 0 : i32
    %c0_i32_1 = arith.constant 0 : i32
    return %c0_i32, %c0_i32_0 : i32, i32
  }
  func.func @transform_15(%arg0: i32) -> (i32, i32) {
    %c0_i32 = arith.constant 0 : i32
    %c0_i32_0 = arith.constant 0 : i32
    %c0_i32_1 = arith.constant 0 : i32
    return %c0_i32, %c0_i32_0 : i32, i32
  }
  func.func @transform_16(%arg0: i32) -> (i32, i32) {
    %c0_i32 = arith.constant 0 : i32
    %c0_i32_0 = arith.constant 0 : i32
    %c0_i32_1 = arith.constant 0 : i32
    return %c0_i32, %c0_i32_0 : i32, i32
  }
  func.func @transform_17(%arg0: i32) -> (i32, i32) {
    %c0_i32 = arith.constant 0 : i32
    %c0_i32_0 = arith.constant 0 : i32
    %c0_i32_1 = arith.constant 0 : i32
    return %c0_i32, %c0_i32_0 : i32, i32
  }
  func.func @transform_18(%arg0: i32) -> (i32, i32) {
    %c0_i32 = arith.constant 0 : i32
    %c0_i32_0 = arith.constant 0 : i32
    %c0_i32_1 = arith.constant 0 : i32
    return %c0_i32, %c0_i32_0 : i32, i32
  }
  func.func @transform_19(%arg0: i32) -> (i32, i32) {
    %c0_i32 = arith.constant 0 : i32
    %c0_i32_0 = arith.constant 0 : i32
    %c0_i32_1 = arith.constant 0 : i32
    return %c0_i32, %c0_i32_0 : i32, i32
  }
  func.func @transform_20(%arg0: i32) -> (i32, i32) {
    %c0_i32 = arith.constant 0 : i32
    %c0_i32_0 = arith.constant 0 : i32
    %c0_i32_1 = arith.constant 0 : i32
    return %c0_i32, %c0_i32_0 : i32, i32
  }
  func.func @transform_21(%arg0: i32) -> (i32, i32) {
    %c0_i32 = arith.constant 0 : i32
    %c0_i32_0 = arith.constant 0 : i32
    %c0_i32_1 = arith.constant 0 : i32
    return %c0_i32, %c0_i32_0 : i32, i32
  }
  func.func @transform_22(%arg0: i32) -> (i32, i32) {
    %c0_i32 = arith.constant 0 : i32
    %c0_i32_0 = arith.constant 0 : i32
    %c0_i32_1 = arith.constant 0 : i32
    return %c0_i32, %c0_i32_0 : i32, i32
  }
  func.func @transform_23(%arg0: i32) -> (i32, i32) {
    %c0_i32 = arith.constant 0 : i32
    %c0_i32_0 = arith.constant 0 : i32
    %c0_i32_1 = arith.constant 0 : i32
    return %c0_i32, %c0_i32_0 : i32, i32
  }
  func.func @transform_24(%arg0: i32) -> (i32, i32) {
    %c0_i32 = arith.constant 0 : i32
    %c0_i32_0 = arith.constant 0 : i32
    %c0_i32_1 = arith.constant 0 : i32
    return %c0_i32, %c0_i32_0 : i32, i32
  }
  func.func @transform_25(%arg0: i32) -> (i32, i32) {
    %c0_i32 = arith.constant 0 : i32
    %c0_i32_0 = arith.constant 0 : i32
    %c0_i32_1 = arith.constant 0 : i32
    return %c0_i32, %c0_i32_0 : i32, i32
  }
  func.func @transform_26(%arg0: i32) -> (i32, i32) {
    %c0_i32 = arith.constant 0 : i32
    %c0_i32_0 = arith.constant 0 : i32
    %c0_i32_1 = arith.constant 0 : i32
    return %c0_i32, %c0_i32_0 : i32, i32
  }
  func.func @transform_27(%arg0: i32) -> (i32, i32) {
    %c0_i32 = arith.constant 0 : i32
    %c0_i32_0 = arith.constant 0 : i32
    %c0_i32_1 = arith.constant 0 : i32
    return %c0_i32, %c0_i32_0 : i32, i32
  }
  func.func @transform_28(%arg0: i32) -> (i32, i32) {
    %c0_i32 = arith.constant 0 : i32
    %c0_i32_0 = arith.constant 0 : i32
    %c0_i32_1 = arith.constant 0 : i32
    return %c0_i32, %c0_i32_0 : i32, i32
  }
  func.func @transform_29(%arg0: i32) -> (i32, i32) {
    %c0_i32 = arith.constant 0 : i32
    %c0_i32_0 = arith.constant 0 : i32
    %c0_i32_1 = arith.constant 0 : i32
    return %c0_i32, %c0_i32_0 : i32, i32
  }
  func.func @transform_30(%arg0: i32) -> (i32, i32) {
    %c0_i32 = arith.constant 0 : i32
    %c0_i32_0 = arith.constant 0 : i32
    %c0_i32_1 = arith.constant 0 : i32
    return %c0_i32, %c0_i32_0 : i32, i32
  }
  func.func @transform_31(%arg0: i32) -> (i32, i32) {
    %c0_i32 = arith.constant 0 : i32
    %c0_i32_0 = arith.constant 0 : i32
    %c0_i32_1 = arith.constant 0 : i32
    return %c0_i32, %c0_i32_0 : i32, i32
  }
  func.func @transform_32(%arg0: i32) -> (i32, i32) {
    %c0_i32 = arith.constant 0 : i32
    %c0_i32_0 = arith.constant 0 : i32
    %c0_i32_1 = arith.constant 0 : i32
    return %c0_i32, %c0_i32_0 : i32, i32
  }
  func.func @transform_33(%arg0: i32) -> (i32, i32) {
    %c0_i32 = arith.constant 0 : i32
    %c0_i32_0 = arith.constant 0 : i32
    %c0_i32_1 = arith.constant 0 : i32
    return %c0_i32, %c0_i32_0 : i32, i32
  }
  func.func @transform_34(%arg0: i32) -> (i32, i32) {
    %c0_i32 = arith.constant 0 : i32
    %c0_i32_0 = arith.constant 0 : i32
    %c0_i32_1 = arith.constant 0 : i32
    return %c0_i32, %c0_i32_0 : i32, i32
  }
  func.func @transform_35(%arg0: i32) -> (i32, i32) {
    %c0_i32 = arith.constant 0 : i32
    %c0_i32_0 = arith.constant 0 : i32
    %c0_i32_1 = arith.constant 0 : i32
    return %c0_i32, %c0_i32_0 : i32, i32
  }
  func.func @transform_36(%arg0: i32) -> (i32, i32) {
    %c0_i32 = arith.constant 0 : i32
    %c0_i32_0 = arith.constant 0 : i32
    %c0_i32_1 = arith.constant 0 : i32
    return %c0_i32, %c0_i32_0 : i32, i32
  }
  func.func @transform_37(%arg0: i32) -> (i32, i32) {
    %c0_i32 = arith.constant 0 : i32
    %c0_i32_0 = arith.constant 0 : i32
    %c0_i32_1 = arith.constant 0 : i32
    return %c0_i32, %c0_i32_0 : i32, i32
  }
  func.func @transform_38(%arg0: i32) -> (i32, i32) {
    %c0_i32 = arith.constant 0 : i32
    %c0_i32_0 = arith.constant 0 : i32
    %c0_i32_1 = arith.constant 0 : i32
    return %c0_i32, %c0_i32_0 : i32, i32
  }
  func.func @transform_39(%arg0: i32) -> (i32, i32) {
    %c0_i32 = arith.constant 0 : i32
    %c0_i32_0 = arith.constant 0 : i32
    %c0_i32_1 = arith.constant 0 : i32
    return %c0_i32, %c0_i32_0 : i32, i32
  }
  func.func @transform_40(%arg0: i32) -> (i32, i32) {
    %c0_i32 = arith.constant 0 : i32
    %c0_i32_0 = arith.constant 0 : i32
    %c0_i32_1 = arith.constant 0 : i32
    return %c0_i32, %c0_i32_0 : i32, i32
  }
  func.func @transform_41(%arg0: i32) -> (i32, i32) {
    %c0_i32 = arith.constant 0 : i32
    %c0_i32_0 = arith.constant 0 : i32
    %c0_i32_1 = arith.constant 0 : i32
    return %c0_i32, %c0_i32_0 : i32, i32
  }
  func.func @transform_42(%arg0: i32) -> (i32, i32) {
    %c0_i32 = arith.constant 0 : i32
    %c0_i32_0 = arith.constant 0 : i32
    %c0_i32_1 = arith.constant 0 : i32
    return %c0_i32, %c0_i32_0 : i32, i32
  }
  func.func @transform_43(%arg0: i32) -> (i32, i32) {
    %c0_i32 = arith.constant 0 : i32
    %c0_i32_0 = arith.constant 0 : i32
    %c0_i32_1 = arith.constant 0 : i32
    return %c0_i32, %c0_i32_0 : i32, i32
  }
  func.func @transform_44(%arg0: i32) -> (i32, i32) {
    %c0_i32 = arith.constant 0 : i32
    %c0_i32_0 = arith.constant 0 : i32
    %c0_i32_1 = arith.constant 0 : i32
    return %c0_i32, %c0_i32_0 : i32, i32
  }
  func.func @transform_45(%arg0: i32) -> (i32, i32) {
    %c0_i32 = arith.constant 0 : i32
    %c0_i32_0 = arith.constant 0 : i32
    %c0_i32_1 = arith.constant 0 : i32
    return %c0_i32, %c0_i32_0 : i32, i32
  }
  func.func @transform_46(%arg0: i32) -> (i32, i32) {
    %c0_i32 = arith.constant 0 : i32
    %c0_i32_0 = arith.constant 0 : i32
    %c0_i32_1 = arith.constant 0 : i32
    return %c0_i32, %c0_i32_0 : i32, i32
  }
  func.func @transform_47(%arg0: i32) -> (i32, i32) {
    %c0_i32 = arith.constant 0 : i32
    %c0_i32_0 = arith.constant 0 : i32
    %c0_i32_1 = arith.constant 0 : i32
    return %c0_i32, %c0_i32_0 : i32, i32
  }
  func.func @transform_48(%arg0: i32) -> (i32, i32) {
    %c0_i32 = arith.constant 0 : i32
    %c0_i32_0 = arith.constant 0 : i32
    %c0_i32_1 = arith.constant 0 : i32
    return %c0_i32, %c0_i32_0 : i32, i32
  }
  func.func @transform_49(%arg0: i32) -> (i32, i32) {
    %c0_i32 = arith.constant 0 : i32
    %c0_i32_0 = arith.constant 0 : i32
    %c0_i32_1 = arith.constant 0 : i32
    return %c0_i32, %c0_i32_0 : i32, i32
  }
  func.func @transform_50(%arg0: i32) -> (i32, i32) {
    %c0_i32 = arith.constant 0 : i32
    %c0_i32_0 = arith.constant 0 : i32
    %c0_i32_1 = arith.constant 0 : i32
    return %c0_i32, %c0_i32_0 : i32, i32
  }
  func.func @transform_51(%arg0: i32) -> (i32, i32) {
    %c0_i32 = arith.constant 0 : i32
    %c0_i32_0 = arith.constant 0 : i32
    %c0_i32_1 = arith.constant 0 : i32
    return %c0_i32, %c0_i32_0 : i32, i32
  }
  func.func @transform_52(%arg0: i32) -> (i32, i32) {
    %c0_i32 = arith.constant 0 : i32
    %c0_i32_0 = arith.constant 0 : i32
    %c0_i32_1 = arith.constant 0 : i32
    return %c0_i32, %c0_i32_0 : i32, i32
  }
  func.func @transform_53(%arg0: i32) -> (i32, i32) {
    %c0_i32 = arith.constant 0 : i32
    %c0_i32_0 = arith.constant 0 : i32
    %c0_i32_1 = arith.constant 0 : i32
    return %c0_i32, %c0_i32_0 : i32, i32
  }
  func.func @transform_54(%arg0: i32) -> (i32, i32) {
    %c0_i32 = arith.constant 0 : i32
    %c0_i32_0 = arith.constant 0 : i32
    %c0_i32_1 = arith.constant 0 : i32
    return %c0_i32, %c0_i32_0 : i32, i32
  }
  func.func @transform_55(%arg0: i32) -> (i32, i32) {
    %c0_i32 = arith.constant 0 : i32
    %c0_i32_0 = arith.constant 0 : i32
    %c0_i32_1 = arith.constant 0 : i32
    return %c0_i32, %c0_i32_0 : i32, i32
  }
  func.func @transform_56(%arg0: i32) -> (i32, i32) {
    %c0_i32 = arith.constant 0 : i32
    %c0_i32_0 = arith.constant 0 : i32
    %c0_i32_1 = arith.constant 0 : i32
    return %c0_i32, %c0_i32_0 : i32, i32
  }
  func.func @transform_57(%arg0: i32) -> (i32, i32) {
    %c0_i32 = arith.constant 0 : i32
    %c0_i32_0 = arith.constant 0 : i32
    %c0_i32_1 = arith.constant 0 : i32
    return %c0_i32, %c0_i32_0 : i32, i32
  }
  func.func @transform_58(%arg0: i32) -> (i32, i32) {
    %c0_i32 = arith.constant 0 : i32
    %c0_i32_0 = arith.constant 0 : i32
    %c0_i32_1 = arith.constant 0 : i32
    return %c0_i32, %c0_i32_0 : i32, i32
  }
  func.func @transform_59(%arg0: i32) -> (i32, i32) {
    %c0_i32 = arith.constant 0 : i32
    %c0_i32_0 = arith.constant 0 : i32
    %c0_i32_1 = arith.constant 0 : i32
    return %c0_i32, %c0_i32_0 : i32, i32
  }
  func.func @transform_60(%arg0: i32) -> (i32, i32) {
    %c0_i32 = arith.constant 0 : i32
    %c0_i32_0 = arith.constant 0 : i32
    %c0_i32_1 = arith.constant 0 : i32
    return %c0_i32, %c0_i32_0 : i32, i32
  }
  func.func @transform_61(%arg0: i32) -> (i32, i32) {
    %c0_i32 = arith.constant 0 : i32
    %c0_i32_0 = arith.constant 0 : i32
    %c0_i32_1 = arith.constant 0 : i32
    return %c0_i32, %c0_i32_0 : i32, i32
  }
  func.func @transform_62(%arg0: i32) -> (i32, i32) {
    %c0_i32 = arith.constant 0 : i32
    %c0_i32_0 = arith.constant 0 : i32
    %c0_i32_1 = arith.constant 0 : i32
    return %c0_i32, %c0_i32_0 : i32, i32
  }
  func.func @transform_63(%arg0: i32) -> (i32, i32) {
    %c0_i32 = arith.constant 0 : i32
    %c0_i32_0 = arith.constant 0 : i32
    %c0_i32_1 = arith.constant 0 : i32
    return %c0_i32, %c0_i32_0 : i32, i32
  }
  func.func @transform_64(%arg0: i32) -> (i32, i32) {
    %c0_i32 = arith.constant 0 : i32
    %c0_i32_0 = arith.constant 0 : i32
    %c0_i32_1 = arith.constant 0 : i32
    return %c0_i32, %c0_i32_0 : i32, i32
  }
  func.func @transform_65(%arg0: i32) -> (i32, i32) {
    %c0_i32 = arith.constant 0 : i32
    %c0_i32_0 = arith.constant 0 : i32
    %c0_i32_1 = arith.constant 0 : i32
    return %c0_i32, %c0_i32_0 : i32, i32
  }
  func.func @transform_66(%arg0: i32) -> (i32, i32) {
    %c0_i32 = arith.constant 0 : i32
    %c0_i32_0 = arith.constant 0 : i32
    %c0_i32_1 = arith.constant 0 : i32
    return %c0_i32, %c0_i32_0 : i32, i32
  }
  func.func @transform_67(%arg0: i32) -> (i32, i32) {
    %c0_i32 = arith.constant 0 : i32
    %c0_i32_0 = arith.constant 0 : i32
    %c0_i32_1 = arith.constant 0 : i32
    return %c0_i32, %c0_i32_0 : i32, i32
  }
  func.func @transform_68(%arg0: i32) -> (i32, i32) {
    %c0_i32 = arith.constant 0 : i32
    %c0_i32_0 = arith.constant 0 : i32
    %c0_i32_1 = arith.constant 0 : i32
    return %c0_i32, %c0_i32_0 : i32, i32
  }
  func.func @transform_69(%arg0: i32) -> (i32, i32) {
    %c0_i32 = arith.constant 0 : i32
    %c0_i32_0 = arith.constant 0 : i32
    %c0_i32_1 = arith.constant 0 : i32
    return %c0_i32, %c0_i32_0 : i32, i32
  }
  func.func @transform_70(%arg0: i32) -> (i32, i32) {
    %c0_i32 = arith.constant 0 : i32
    %c0_i32_0 = arith.constant 0 : i32
    return %arg0, %c0_i32 : i32, i32
  }
}

</mosaic_0001>

<bundles_post_ra>
// kernel: transformer_forward.1
= control target key start
LH: loop header
LB: loop body
LE: loop exit
PB: predicated region body
PF: predicated region fallthrough
CT: control target
= control target key end

     0   :  { %s9676_s6 = smov 1   ;;  %s9677_s10 = smov 2   ;;  %s11153_s0 = inlined_call_operand.smem [shape: u32[71], index: -1, kind: input, shape index: {}] }
   0x1   :  { %s9797_s5 = sld [smem:[%s11153_s0]]   ;;  %s9678_s14 = smov 3  }
   0x2   :  { %s9802_s9 = sld [smem:[%s11153_s0 + %s9676_s6]]   ;;  %s9679_s18 = smov 4  }
   0x3   :  { %s9807_s13 = sld [smem:[%s11153_s0 + %s9677_s10]]   ;;  %s9680_s22 = smov 5  }
   0x4   :  { %s9812_s17 = sld [smem:[%s11153_s0 + %s9678_s14]]   ;;  %s9681_s26 = smov 6  }
   0x5   :  { %s9817_s21 = sld [smem:[%s11153_s0 + %s9679_s18]]   ;;  %s9682_s30 = smov 7  }
   0x6   :  { %s9822_s25 = sld [smem:[%s11153_s0 + %s9680_s22]]   ;;  %s9683_s4 = smov 8  }
   0x7   :  { %11217 = sst [smem:[#allocation57_spill]] %s9797_s5  ;;  %s9684_s10 = smov 9  }
   0x8   :  { %11218 = sst [smem:[#allocation58_spill]] %s9802_s9  ;;  %s9685_s15 = smov 10  }
   0x9   :  { %11219 = sst [smem:[#allocation59_spill]] %s9807_s13  ;;  %s9686_s20 = smov 11  }
   0xa   :  { %11220 = sst [smem:[#allocation60_spill]] %s9812_s17  ;;  %s9688_s1 = smov 13  }
   0xb   :  { %11221 = sst [smem:[#allocation61_spill]] %s9817_s21  ;;  %s9689_s7 = smov 14  }
   0xc   :  { %11222 = sst [smem:[#allocation62_spill]] %s9822_s25  ;;  %s9691_s22 = smov 16  }
   0xd   :  { %s9827_s29 = sld [smem:[%s11153_s0 + %s9681_s26]]   ;;  %s9687_s26 = smov 12  }
   0xe   :  { %s9832_s3 = sld [smem:[%s11153_s0 + %s9682_s30]]   ;;  %s9692_s28 = smov 17  }
   0xf   :  { %s9837_s8 = sld [smem:[%s11153_s0 + %s9683_s4]]  }
  0x10   :  { %s9842_s14 = sld [smem:[%s11153_s0 + %s9684_s10]]  }
  0x11   :  { %s9847_s19 = sld [smem:[%s11153_s0 + %s9685_s15]]   ;;  %s9690_s15 = smov 15  }
  0x12   :  { %s9852_s24 = sld [smem:[%s11153_s0 + %s9686_s20]]  }
  0x13   :  { %11223 = sst [smem:[#allocation63_spill]] %s9827_s29 }
  0x14   :  { %11224 = sst [smem:[#allocation64_spill]] %s9832_s3 }
  0x15   :  { %11225 = sst [smem:[#allocation65_spill]] %s9837_s8 }
  0x16   :  { %11226 = sst [smem:[#allocation66_spill]] %s9842_s14 }
  0x17   :  { %11227 = sst [smem:[#allocation67_spill]] %s9847_s19 }
  0x18   :  { %11228 = sst [smem:[#allocation68_spill]] %s9852_s24 }
  0x19   :  { %s9857_s30 = sld [smem:[%s11153_s0 + %s9687_s26]]  }
  0x1a   :  { %s9862_s6 = sld [smem:[%s11153_s0 + %s9688_s1]]  }
  0x1b   :  { %s9867_s12 = sld [smem:[%s11153_s0 + %s9689_s7]]   ;;  %s9693_s7 = smov 18  }
  0x1c   :  { %s9872_s20 = sld [smem:[%s11153_s0 + %s9690_s15]]   ;;  %s9694_s15 = smov 19  }
  0x1d   :  { %s9877_s27 = sld [smem:[%s11153_s0 + %s9691_s22]]   ;;  %s9695_s22 = smov 20  }
  0x1e   :  { %s9882_s4 = sld [smem:[%s11153_s0 + %s9692_s28]]   ;;  %s9696_s28 = smov 21  }
  0x1f   :  { %11229 = sst [smem:[#allocation69_spill]] %s9857_s30 }
  0x20   :  { %11230 = sst [smem:[#allocation70_spill]] %s9862_s6 }
  0x21   :  { %11231 = sst [smem:[#allocation71_spill]] %s9867_s12 }
  0x22   :  { %11232 = sst [smem:[#allocation72_spill]] %s9872_s20 }
  0x23   :  { %11233 = sst [smem:[#allocation73_spill]] %s9877_s27 }
  0x24   :  { %11234 = sst [smem:[#allocation74_spill]] %s9882_s4 }
  0x25   :  { %s9887_s6 = sld [smem:[%s11153_s0 + %s9693_s7]]   ;;  %s9697_s7 = smov 22  }
  0x26   :  { %s9892_s30 = sld [smem:[%s11153_s0 + %s9694_s15]]   ;;  %s9698_s15 = smov 23  }
  0x27   :  { %s9897_s12 = sld [smem:[%s11153_s0 + %s9695_s22]]   ;;  %s9699_s22 = smov 24  }
  0x28   :  { %s9902_s20 = sld [smem:[%s11153_s0 + %s9696_s28]]   ;;  %s9700_s28 = smov 25  }
  0x29   :  { %s9907_s4 = sld [smem:[%s11153_s0 + %s9697_s7]]   ;;  %s9701_s7 = smov 26  }
  0x2a   :  { %s9912_s27 = sld [smem:[%s11153_s0 + %s9698_s15]]   ;;  %s9702_s15 = smov 27  }
  0x2b   :  { %11235 = sst [smem:[#allocation75_spill]] %s9887_s6 }
  0x2c   :  { %11236 = sst [smem:[#allocation76_spill]] %s9892_s30 }
  0x2d   :  { %11237 = sst [smem:[#allocation77_spill]] %s9897_s12 }
  0x2e   :  { %11238 = sst [smem:[#allocation78_spill]] %s9902_s20 }
  0x2f   :  { %11239 = sst [smem:[#allocation79_spill]] %s9907_s4 }
  0x30   :  { %11240 = sst [smem:[#allocation80_spill]] %s9912_s27 }
  0x31   :  { %s9917_s25 = sld [smem:[%s11153_s0 + %s9699_s22]]   ;;  %s9703_s22 = smov 28  }
  0x32   :  { %s9922_s19 = sld [smem:[%s11153_s0 + %s9700_s28]]   ;;  %s9704_s28 = smov 29  }
  0x33   :  { %s9927_s29 = sld [smem:[%s11153_s0 + %s9701_s7]]   ;;  %s9705_s7 = smov 30  }
  0x34   :  { %s9932_s3 = sld [smem:[%s11153_s0 + %s9702_s15]]   ;;  %s9706_s15 = smov 31  }
  0x37   :  { %11241 = sst [smem:[#allocation81_spill]] %s9917_s25 }
  0x38   :  { %11242 = sst [smem:[#allocation82_spill]] %s9922_s19 }
  0x39   :  { %11243 = sst [smem:[#allocation83_spill]] %s9927_s29 }
  0x3a   :  { %11244 = sst [smem:[#allocation84_spill]] %s9932_s3 }
  0x3b   :  { %s9937_s25 = sld [smem:[%s11153_s0 + %s9703_s22]]   ;;  %s9707_s22 = smov 32  }
  0x3c   :  { %s9942_s19 = sld [smem:[%s11153_s0 + %s9704_s28]]   ;;  %s9708_s28 = smov 33  }
  0x3d   :  { %s9947_s29 = sld [smem:[%s11153_s0 + %s9705_s7]]   ;;  %s9709_s7 = smov 34  }
  0x3e   :  { %s9952_s3 = sld [smem:[%s11153_s0 + %s9706_s15]]   ;;  %s9710_s15 = smov 35  }
  0x3f   :  { %s9957_s8 = sld [smem:[%s11153_s0 + %s9707_s22]]   ;;  %s9711_s22 = smov 36  }
  0x40   :  { %s9977_s24 = sld [smem:[%s11153_s0 + %s9711_s22]]   ;;  %s9715_s22 = smov 40  }
  0x42   :  { %11245 = sst [smem:[#allocation85_spill]] %s9942_s19 }
  0x43   :  { %11246 = sst [smem:[#allocation86_spill]] %s9947_s29 }
  0x44   :  { %11247 = sst [smem:[#allocation87_spill]] %s9952_s3 }
  0x45   :  { %11248 = sst [smem:[#allocation88_spill]] %s9957_s8 }
  0x46   :  { %s9962_s19 = sld [smem:[%s11153_s0 + %s9708_s28]]   ;;  %s9712_s28 = smov 37  }
  0x47   :  { %s9967_s29 = sld [smem:[%s11153_s0 + %s9709_s7]]   ;;  %s9713_s7 = smov 38  }
  0x48   :  { %s9972_s3 = sld [smem:[%s11153_s0 + %s9710_s15]]   ;;  %s9714_s15 = smov 39  }
  0x49   :  { %11251 = sst [smem:[#allocation91_spill]] %s9977_s24 }
  0x4a   :  { %s9982_s21 = sld [smem:[%s11153_s0 + %s9712_s28]]   ;;  %s9716_s28 = smov 41  }
  0x4b   :  { %s9987_s6 = sld [smem:[%s11153_s0 + %s9713_s7]]   ;;  %s9717_s7 = smov 42  }
  0x4c   :  { %11249 = sst [smem:[#allocation89_spill]] %s9962_s19 }
  0x4d   :  { %s9992_s14 = sld [smem:[%s11153_s0 + %s9714_s15]]   ;;  %s9718_s15 = smov 43  }
  0x4e   :  { %11250 = sst [smem:[#allocation90_spill]] %s9972_s3 }
  0x4f   :  { %s9997_s24 = sld [smem:[%s11153_s0 + %s9715_s22]]   ;;  %s9719_s22 = smov 44  }
  0x50   :  { %11252 = sst [smem:[#allocation92_spill]] %s9982_s21 }
  0x51   :  { %11253 = sst [smem:[#allocation93_spill]] %s9987_s6 }
  0x52   :  { %s10002_s21 = sld [smem:[%s11153_s0 + %s9716_s28]]   ;;  %s9720_s28 = smov 45  }
  0x53   :  { %11254 = sst [smem:[#allocation94_spill]] %s9992_s14 }
  0x54   :  { %s10007_s4 = sld [smem:[%s11153_s0 + %s9717_s7]]   ;;  %s9721_s7 = smov 46  }
  0x55   :  { %s10012_s17 = sld [smem:[%s11153_s0 + %s9718_s15]]   ;;  %s9722_s15 = smov 47  }
  0x56   :  { %s10017_s30 = sld [smem:[%s11153_s0 + %s9719_s22]]   ;;  %s9723_s22 = smov 48  }
  0x57   :  { %s10022_s12 = sld [smem:[%s11153_s0 + %s9720_s28]]   ;;  %s9724_s28 = smov 49  }
  0x58   :  { %11255 = sst [smem:[#allocation95_spill]] %s10002_s21 }
  0x59   :  { %s10037_s27 = sld [smem:[%s11153_s0 + %s9723_s22]]   ;;  %s9727_s22 = smov 52  }
  0x5a   :  { %11256 = sst [smem:[#allocation96_spill]] %s10007_s4 }
  0x5b   :  { %11257 = sst [smem:[#allocation97_spill]] %s10012_s17 }
  0x5c   :  { %s10027_s4 = sld [smem:[%s11153_s0 + %s9721_s7]]   ;;  %s9725_s7 = smov 50  }
  0x5d   :  { %11258 = sst [smem:[#allocation98_spill]] %s10022_s12 }
  0x5e   :  { %s10032_s17 = sld [smem:[%s11153_s0 + %s9722_s15]]   ;;  %s9726_s15 = smov 51  }
  0x5f   :  { %11261 = sst [smem:[#allocation101_spill]] %s10037_s27 }
  0x60   :  { %s10042_s20 = sld [smem:[%s11153_s0 + %s9724_s28]]   ;;  %s9728_s28 = smov 53  }
  0x61   :  { %s10047_s9 = sld [smem:[%s11153_s0 + %s9725_s7]]   ;;  %s9729_s7 = smov 54  }
  0x62   :  { %11259 = sst [smem:[#allocation99_spill]] %s10027_s4 }
  0x63   :  { %s10052_s13 = sld [smem:[%s11153_s0 + %s9726_s15]]   ;;  %s9730_s15 = smov 55  }
  0x64   :  { %11260 = sst [smem:[#allocation100_spill]] %s10032_s17 }
  0x65   :  { %s10057_s27 = sld [smem:[%s11153_s0 + %s9727_s22]]   ;;  %s9731_s22 = smov 56  }
  0x66   :  { %11262 = sst [smem:[#allocation102_spill]] %s10042_s20 }
  0x67   :  { %11263 = sst [smem:[#allocation103_spill]] %s10047_s9 }
  0x68   :  { %s10062_s20 = sld [smem:[%s11153_s0 + %s9728_s28]]   ;;  %s9732_s28 = smov 57  }
  0x69   :  { %11264 = sst [smem:[#allocation104_spill]] %s10052_s13 }
  0x6a   :  { %s10067_s5 = sld [smem:[%s11153_s0 + %s9729_s7]]   ;;  %s9733_s7 = smov 58  }
  0x6b   :  { %s10072_s13 = sld [smem:[%s11153_s0 + %s9730_s15]]   ;;  %s9734_s15 = smov 59  }
  0x6c   :  { %s10077_s17 = sld [smem:[%s11153_s0 + %s9731_s22]]   ;;  %s9735_s22 = smov 60  }
  0x6d   :  { %s10097_s12 = sld [smem:[%s11153_s0 + %s9735_s22]]   ;;  %s9739_s22 = smov 64  }
  0x6e   :  { %11265 = sst [smem:[#allocation105_spill]] %s10062_s20 }
  0x6f   :  { %s10082_s20 = sld [smem:[%s11153_s0 + %s9732_s28]]   ;;  %s9736_s28 = smov 61  }
  0x70   :  { %11266 = sst [smem:[#allocation106_spill]] %s10067_s5 }
  0x71   :  { %11267 = sst [smem:[#allocation107_spill]] %s10072_s13 }
  0x72   :  { %11268 = sst [smem:[#allocation108_spill]] %s10077_s17 }
  0x73   :  { %s10087_s5 = sld [smem:[%s11153_s0 + %s9733_s7]]   ;;  %s9737_s7 = smov 62  }
  0x74   :  { %s10092_s13 = sld [smem:[%s11153_s0 + %s9734_s15]]   ;;  %s9738_s15 = smov 63  }
  0x75   :  { %11269 = sst [smem:[#allocation109_spill]] %s10082_s20 }
  0x76   :  { %11272 = sst [smem:[#allocation112_spill]] %s10097_s12 }
  0x77   :  { %s10102_s20 = sld [smem:[%s11153_s0 + %s9736_s28]]   ;;  %s9740_s28 = smov 65  }
  0x78   :  { %s10107_s21 = sld [smem:[%s11153_s0 + %s9737_s7]]   ;;  %s9741_s7 = smov 66  }
  0x79   :  { %11270 = sst [smem:[#allocation110_spill]] %s10087_s5 }
  0x7a   :  { %11271 = sst [smem:[#allocation111_spill]] %s10092_s13 }
  0x7b   :  { %s10112_s13 = sld [smem:[%s11153_s0 + %s9738_s15]]   ;;  %s9742_s15 = smov 67  }
  0x7c   :  { %s10117_s12 = sld [smem:[%s11153_s0 + %s9739_s22]]   ;;  %s9743_s22 = smov 68  }
  0x7d   :  { %11273 = sst [smem:[#allocation113_spill]] %s10102_s20 }
  0x7e   :  { %11274 = sst [smem:[#allocation114_spill]] %s10107_s21 }
  0x7f   :  { %s10122_s20 = sld [smem:[%s11153_s0 + %s9740_s28]]   ;;  %s9744_s28 = smov 69  }
  0x80   :  { %s10127_s14 = sld [smem:[%s11153_s0 + %s9741_s7]]   ;;  %s9745_s7 = smov 70  }
  0x81   :  { %11275 = sst [smem:[#allocation115_spill]] %s10112_s13 }
  0x82   :  { %11276 = sst [smem:[#allocation116_spill]] %s10117_s12 }
  0x83   :  { %s10132_s13 = sld [smem:[%s11153_s0 + %s9742_s15]]  }
  0x84   :  { %s10137_s3 = sld [smem:[%s11153_s0 + %s9743_s22]]  }
  0x85   :  { %11277 = sst [smem:[#allocation117_spill]] %s10122_s20 }
  0x86   :  { %11278 = sst [smem:[#allocation118_spill]] %s10127_s14 }
  0x87   :  { %s10142_s20 = sld [smem:[%s11153_s0 + %s9744_s28]]  }
  0x88   :  { %s10147_s14 = sld [smem:[%s11153_s0 + %s9745_s7]]  }
  0x89   :  { %11279 = sst [smem:[#allocation119_spill]] %s10132_s13 }
  0x8a   :  { %11280 = sst [smem:[#allocation120_spill]] %s10137_s3 }
  0x8b   :  { %146 = vsyncpa [#allocation4], 0 }
  0x8c   :  { %147 = vsyncpa [#allocation6], 0 }
  0x8d   :  { %148 = vsyncpa [#allocation9], 0 }
  0x8e   :  { %149 = vsyncpa [#allocation12], 0 }
  0x8f   :  { %150 = vsyncpa [#allocation15], 0 }
  0x90   :  { %151 = vsyncpa [#allocation18], 0 }
  0x91   :  { %152 = vsyncpa [#allocation21], 0 }
  0x92   :  { %153 = vsyncpa [#allocation24], 0 }
  0x93   :  { %154 = vsyncpa [#allocation27], 0 }
  0x94   :  { %155 = vsyncpa [#allocation30], 0 }
  0x95   :  { %156 = vsyncpa [#allocation33], 0 }
  0x96   :  { %157 = vsyncpa [#allocation36], 0 }
  0x97   :  { %158 = vsyncpa [#allocation39], 0 }
  0x98   :  { %159 = vsyncpa [#allocation42], 0  ;;  %s10149_s15 = smov 0  }
  0x99 LB: > { %s11281_s13 = sld [smem:[#allocation119_spill]]  ;;  %s9746_s0 = smov [#allocation5]   ;;  %s9674_s15 = sphi %s10149_s15, %s165_s15  }
  0x9a   : > { %s1791_s16 = sshll.u32 %s9746_s0, 4  ;;  %s10155_s18 = sadd.s32 4294967295, %s9674_s15   ;;  %s1792_s16 = int_to_ptr.vmem [resolvable:$true] %s1791_s16 }
  0x9b   : > { %p7517_p0 = scmp.ge.s32.totalorder %s9674_s15, 1  ;;  %p1686_p1 = scmp.lt.s32.totalorder %s9674_s15, 3 }
  0x9c   : > { %p11175_p2 = scmp.eq.s32.totalorder %s10155_s18, 0  ;;  %s9747_s23 = smov [#allocation8]  }
  0x9d   : > { %p10160_p3 = pnand %p7517_p0, %p1686_p1  ;;  %s1813_s26 = sshll.u32 %s9747_s23, 4  ;;  %s10166_s26 = int_to_ptr.vmem [resolvable:$true] %s1813_s26 }
  0x9e   : > { %s9748_s28 = smov [#allocation11]   ;;  %s9749_s7 = smov [#allocation14]  }
  0x9f   : > { %s11282_s22 = scalar_select %p10160_p3, 1, 0 }
  0xa0   : > { %p8512_p4 = pneg %p10160_p3  ;;  %s1841_s1 = sshll.u32 %s9748_s28, 4  ;;  %s10174_s1 = int_to_ptr.vmem [resolvable:$true] %s1841_s1 }
  0xa1   : > { %s1863_s10 = sshll.u32 %s9749_s7, 4  ;;  %s8947_s0 = scalar_lea.vmem %s1792_s16, 16  ;;  %s10176_s10 = int_to_ptr.vmem [resolvable:$true] %s1863_s10 }
  0xa2   : > { %p10170_p5 = pnand %p11175_p2, %p8512_p4  ;;  %p8948_p7 = scmp.ne.s32.totalorder %s1792_s16, %s8947_s0 }
  0xa3   : > { %s8954_s23 = scalar_lea.vmem %s1792_s16, 32  ;;  %p8955_p10 = scmp.lt.s32.totalorder %s1792_s16, %s1792_s16 }
  0xa4   : > { %p10180_p6 = pneg %p10170_p5  ;;  %p8956_p11 = scmp.lt.s32.totalorder %s8954_s23, %s8947_s0 }
  0xa6   : > { %p8950_p8 = pnand %p8948_p7, %p10180_p6  ;;  %p8957_p12 = por %p8956_p11, %p8955_p10 }
  0xa8   : > { %p8951_p9 = pneg %p8950_p8 }
  0xaa   : > { %p8958_p13 = pnand %p8957_p12, %p8951_p9 }
  0xac   : > { %8961 = shalt.err (!%p8958_p13)
}
  0xad   : > { %s11285_s8 = sld [smem:[#allocation88_spill]]  ;;  %s8973_s28 = scalar_lea.vmem %s10166_s26, 16 }
  0xae   : > { %p8974_p0 = scmp.ne.s32.totalorder %s10166_s26, %s8973_s28  ;;  %s8980_s7 = scalar_lea.vmem %s10166_s26, 32 }
  0xaf   : > { %p8981_p7 = scmp.lt.s32.totalorder %s10166_s26, %s10166_s26  ;;  %p8982_p8 = scmp.lt.s32.totalorder %s8980_s7, %s8973_s28 }
  0xb0   : > { %p8976_p1 = pnand %p8974_p0, %p10180_p6 }
  0xb1   : > { %p8983_p9 = por %p8982_p8, %p8981_p7 }
  0xb2   : > { %p8977_p4 = pneg %p8976_p1 }
  0xb3   : > { %8518 = dma.hbm_to_vmem [thread:$0]  (!%p10170_p5), %s11285_s8, 16, %s1792_s16, [#allocation6]  }
  0xb4   : > { %p8984_p10 = pnand %p8983_p9, %p8977_p4 }
  0xb6   : > { %8987 = shalt.err (!%p8984_p10)
}
  0xb7   : > { %8524 = dma.hbm_to_vmem [thread:$0]  (!%p10170_p5), %s9967_s29, 16, %s10166_s26, [#allocation9]  }
  0xb8   : > { %s8999_s16 = scalar_lea.vmem %s10174_s1, 16  ;;  %s9006_s0 = scalar_lea.vmem %s10174_s1, 32 }
  0xb9   : > { %p9000_p11 = scmp.ne.s32.totalorder %s10174_s1, %s8999_s16  ;;  %p9007_p0 = scmp.lt.s32.totalorder %s10174_s1, %s10174_s1 }
  0xba   : > { %p9008_p1 = scmp.lt.s32.totalorder %s9006_s0, %s8999_s16 }
  0xbb   : > { %p9002_p12 = pnand %p9000_p11, %p10180_p6 }
  0xbc   : > { %p9009_p4 = por %p9008_p1, %p9007_p0 }
  0xbd   : > { %p9003_p13 = pneg %p9002_p12 }
  0xbf   : > { %p9010_p7 = pnand %p9009_p4, %p9003_p13 }
  0xc1   : > { %9013 = shalt.err (!%p9010_p7)
}
  0xc2   : > { %s11286_s6 = sld [smem:[#allocation93_spill]]  ;;  %s9025_s26 = scalar_lea.vmem %s10176_s10, 16 }
  0xc3   : > { %p9026_p8 = scmp.ne.s32.totalorder %s10176_s10, %s9025_s26  ;;  %s9032_s23 = scalar_lea.vmem %s10176_s10, 32 }
  0xc4   : > { %p9033_p11 = scmp.lt.s32.totalorder %s10176_s10, %s10176_s10  ;;  %p9034_p12 = scmp.lt.s32.totalorder %s9032_s23, %s9025_s26 }
  0xc5   : > { %p9028_p9 = pnand %p9026_p8, %p10180_p6 }
  0xc6   : > { %p9035_p13 = por %p9034_p12, %p9033_p11 }
  0xc7   : > { %p9029_p10 = pneg %p9028_p9 }
  0xc8   : > { %8530 = dma.hbm_to_vmem [thread:$0]  (!%p10170_p5), %s11286_s6, 16, %s10174_s1, [#allocation12]  }
  0xc9   : > { %p9036_p0 = pnand %p9035_p13, %p9029_p10 }
  0xcb   : > { %9039 = shalt.err (!%p9036_p0)
}
  0xcc   : > { %8536 = dma.hbm_to_vmem [thread:$0]  (!%p10170_p5), %s9997_s24, 16, %s10176_s10, [#allocation15]  }
  0xcd   : > { %s9750_s28 = smov [#allocation17]   ;;  %s9751_s7 = smov [#allocation20]  }
  0xce   : > { %s1891_s1 = sshll.u32 %s9750_s28, 4  ;;  %s1913_s16 = sshll.u32 %s9751_s7, 4  ;;  %s1892_s1 = int_to_ptr.vmem [resolvable:$true] %s1891_s1  ;;  %s1914_s16 = int_to_ptr.vmem [resolvable:$true] %s1913_s16 }
  0xcf   : > { %s9051_s0 = scalar_lea.vmem %s1892_s1, 16  ;;  %s9058_s26 = scalar_lea.vmem %s1892_s1, 32 }
  0xd0   : > { %p9052_p1 = scmp.ne.s32.totalorder %s1892_s1, %s9051_s0  ;;  %p9059_p8 = scmp.lt.s32.totalorder %s1892_s1, %s1892_s1 }
  0xd1   : > { %p9060_p9 = scmp.lt.s32.totalorder %s9058_s26, %s9051_s0 }
  0xd2   : > { %p9054_p4 = pnand %p9052_p1, %p10180_p6 }
  0xd3   : > { %p9061_p10 = por %p9060_p9, %p9059_p8 }
  0xd4   : > { %p9055_p7 = pneg %p9054_p4 }
  0xd6   : > { %p9062_p11 = pnand %p9061_p10, %p9055_p7 }
  0xd8   : > { %9065 = shalt.err (!%p9062_p11)
}
  0xd9   : > { %8542 = dma.hbm_to_vmem [thread:$0]  (!%p10170_p5), %s10017_s30, 16, %s1892_s1, [#allocation18]  }
  0xda   : > { %s9077_s10 = scalar_lea.vmem %s1914_s16, 16  ;;  %s9084_s23 = scalar_lea.vmem %s1914_s16, 32 }
  0xdb   : > { %p9078_p12 = scmp.ne.s32.totalorder %s1914_s16, %s9077_s10  ;;  %p9085_p1 = scmp.lt.s32.totalorder %s1914_s16, %s1914_s16 }
  0xdc   : > { %p9086_p4 = scmp.lt.s32.totalorder %s9084_s23, %s9077_s10 }
  0xdd   : > { %p9080_p13 = pnand %p9078_p12, %p10180_p6 }
  0xde   : > { %p9087_p2 = por %p9086_p4, %p9085_p1 }
  0xdf   : > { %p9081_p0 = pneg %p9080_p13 }
  0xe1   : > { %p9088_p3 = pnand %p9087_p2, %p9081_p0 }
  0xe3   : > { %9091 = shalt.err (!%p9088_p3)
}
  0xe4   : > { %s11287_s4 = sld [smem:[#allocation99_spill]]  ;;  %s9752_s28 = smov [#allocation23]  }
  0xe5   : > { %s1941_s7 = sshll.u32 %s9752_s28, 4  ;;  %s9753_s1 = smov [#allocation26]   ;;  %s1942_s7 = int_to_ptr.vmem [resolvable:$true] %s1941_s7 }
  0xe6   : > { %s1963_s0 = sshll.u32 %s9753_s1, 4  ;;  %s9103_s26 = scalar_lea.vmem %s1942_s7, 16  ;;  %s1964_s0 = int_to_ptr.vmem [resolvable:$true] %s1963_s0 }
  0xe7   : > { %p9104_p7 = scmp.ne.s32.totalorder %s1942_s7, %s9103_s26  ;;  %s9110_s6 = scalar_lea.vmem %s1942_s7, 32 }
  0xe8   : > { %p9111_p10 = scmp.lt.s32.totalorder %s1942_s7, %s1942_s7  ;;  %p9112_p11 = scmp.lt.s32.totalorder %s9110_s6, %s9103_s26 }
  0xe9   : > { %p9106_p8 = pnand %p9104_p7, %p10180_p6 }
  0xea   : > { %8548 = dma.hbm_to_vmem [thread:$0]  (!%p10170_p5), %s11287_s4, 16, %s1914_s16, [#allocation21]  }
  0xeb   : > { %p9107_p9 = pneg %p9106_p8  ;;  %p9113_p2 = por %p9112_p11, %p9111_p10 }
  0xed   : > { %p9114_p3 = pnand %p9113_p2, %p9107_p9 }
  0xef   : > { %9117 = shalt.err (!%p9114_p3)
}
  0xf0   : > { %s11288_s9 = sld [smem:[#allocation103_spill]]  ;;  %s9129_s16 = scalar_lea.vmem %s1964_s0, 16 }
  0xf1   : > { %p9130_p12 = scmp.ne.s32.totalorder %s1964_s0, %s9129_s16  ;;  %s9136_s10 = scalar_lea.vmem %s1964_s0, 32 }
  0xf2   : > { %p9137_p1 = scmp.lt.s32.totalorder %s1964_s0, %s1964_s0  ;;  %p9138_p4 = scmp.lt.s32.totalorder %s9136_s10, %s9129_s16 }
  0xf3   : > { %p9132_p13 = pnand %p9130_p12, %p10180_p6 }
  0xf4   : > { %p9139_p7 = por %p9138_p4, %p9137_p1 }
  0xf5   : > { %p9133_p0 = pneg %p9132_p13 }
  0xf6   : > { %8554 = dma.hbm_to_vmem [thread:$0]  (!%p10170_p5), %s11288_s9, 16, %s1942_s7, [#allocation24]  }
  0xf7   : > { %p9140_p8 = pnand %p9139_p7, %p9133_p0 }
  0xf9   : > { %9143 = shalt.err (!%p9140_p8)
}
  0xfa   : > { %8560 = dma.hbm_to_vmem [thread:$0]  (!%p10170_p5), %s10057_s27, 16, %s1964_s0, [#allocation27]  }
  0xfb   : > { %s9754_s6 = smov [#allocation29]   ;;  %s9755_s28 = smov [#allocation32]  }
  0xfc   : > { %s1991_s23 = sshll.u32 %s9754_s6, 4  ;;  %s2013_s7 = sshll.u32 %s9755_s28, 4  ;;  %s1992_s23 = int_to_ptr.vmem [resolvable:$true] %s1991_s23  ;;  %s2014_s7 = int_to_ptr.vmem [resolvable:$true] %s2013_s7 }
  0xfd   : > { %s9155_s1 = scalar_lea.vmem %s1992_s23, 16  ;;  %s9162_s26 = scalar_lea.vmem %s1992_s23, 32 }
  0xfe   : > { %p9156_p9 = scmp.ne.s32.totalorder %s1992_s23, %s9155_s1  ;;  %p9163_p2 = scmp.lt.s32.totalorder %s1992_s23, %s1992_s23 }
  0xff   : > { %p9164_p3 = scmp.lt.s32.totalorder %s9162_s26, %s9155_s1 }
 0x100   : > { %p9158_p10 = pnand %p9156_p9, %p10180_p6 }
 0x101   : > { %p9165_p12 = por %p9164_p3, %p9163_p2 }
 0x102   : > { %p9159_p11 = pneg %p9158_p10 }
 0x104   : > { %p9166_p13 = pnand %p9165_p12, %p9159_p11 }
 0x106   : > { %9169 = shalt.err (!%p9166_p13)
}
 0x107   : > { %s11289_s17 = sld [smem:[#allocation108_spill]]  ;;  %s9181_s0 = scalar_lea.vmem %s2014_s7, 16 }
 0x108   : > { %p9182_p0 = scmp.ne.s32.totalorder %s2014_s7, %s9181_s0  ;;  %s9188_s16 = scalar_lea.vmem %s2014_s7, 32 }
 0x109   : > { %p9189_p7 = scmp.lt.s32.totalorder %s2014_s7, %s2014_s7  ;;  %p9190_p8 = scmp.lt.s32.totalorder %s9188_s16, %s9181_s0 }
 0x10a   : > { %p9184_p1 = pnand %p9182_p0, %p10180_p6 }
 0x10b   : > { %p9191_p9 = por %p9190_p8, %p9189_p7 }
 0x10c   : > { %p9185_p4 = pneg %p9184_p1 }
 0x10d   : > { %8566 = dma.hbm_to_vmem [thread:$0]  (!%p10170_p5), %s11289_s17, 16, %s1992_s23, [#allocation30]  }
 0x10e   : > { %p9192_p10 = pnand %p9191_p9, %p9185_p4 }
 0x110   : > { %9195 = shalt.err (!%p9192_p10)
}
 0x111   : > { %s11290_s5 = sld [smem:[#allocation110_spill]]  ;;  %s9756_s10 = smov [#allocation35]  }
 0x112   : > { %s2041_s6 = sshll.u32 %s9756_s10, 4  ;;  %s9757_s23 = smov [#allocation38]   ;;  %s2042_s6 = int_to_ptr.vmem [resolvable:$true] %s2041_s6 }
 0x113   : > { %s2063_s28 = sshll.u32 %s9757_s23, 4  ;;  %s9207_s1 = scalar_lea.vmem %s2042_s6, 16  ;;  %s2064_s28 = int_to_ptr.vmem [resolvable:$true] %s2063_s28 }
 0x114   : > { %p9208_p11 = scmp.ne.s32.totalorder %s2042_s6, %s9207_s1  ;;  %s9214_s26 = scalar_lea.vmem %s2042_s6, 32 }
 0x115   : > { %p9215_p12 = scmp.lt.s32.totalorder %s2042_s6, %s2042_s6  ;;  %p9216_p13 = scmp.lt.s32.totalorder %s9214_s26, %s9207_s1 }
 0x116   : > { %p9210_p2 = pnand %p9208_p11, %p10180_p6 }
 0x117   : > { %8572 = dma.hbm_to_vmem [thread:$0]  (!%p10170_p5), %s11290_s5, 16, %s2014_s7, [#allocation33]  }
 0x118   : > { %p9211_p3 = pneg %p9210_p2  ;;  %p9217_p0 = por %p9216_p13, %p9215_p12 }
 0x11a   : > { %p9218_p1 = pnand %p9217_p0, %p9211_p3 }
 0x11c   : > { %9221 = shalt.err (!%p9218_p1)
}
 0x11d   : > { %s11291_s21 = sld [smem:[#allocation114_spill]]  ;;  %s9233_s7 = scalar_lea.vmem %s2064_s28, 16 }
 0x11e   : > { %p9234_p4 = scmp.ne.s32.totalorder %s2064_s28, %s9233_s7  ;;  %s9240_s0 = scalar_lea.vmem %s2064_s28, 32 }
 0x11f   : > { %p9241_p9 = scmp.lt.s32.totalorder %s2064_s28, %s2064_s28  ;;  %p9242_p10 = scmp.lt.s32.totalorder %s9240_s0, %s9233_s7 }
 0x120   : > { %p9236_p7 = pnand %p9234_p4, %p10180_p6 }
 0x121   : > { %p9243_p11 = por %p9242_p10, %p9241_p9 }
 0x122   : > { %p9237_p8 = pneg %p9236_p7 }
 0x123   : > { %8578 = dma.hbm_to_vmem [thread:$0]  (!%p10170_p5), %s11291_s21, 16, %s2042_s6, [#allocation36]  }
 0x124   : > { %p9244_p2 = pnand %p9243_p11, %p9237_p8 }
 0x126   : > { %9247 = shalt.err (!%p9244_p2)
}
 0x127   : > { %s11292_s12 = sld [smem:[#allocation116_spill]]  ;;  %s9758_s16 = smov [#allocation3]  }
 0x128   : > { %s1771_s10 = sshll.u32 %s9758_s16, 4  ;;  %s9759_s6 = smov [#allocation7]   ;;  %s1772_s10 = int_to_ptr.vmem [resolvable:$true] %s1771_s10 }
 0x129   : > { %s1802_s23 = sshll.u32 %s9759_s6, 4  ;;  %s9259_s1 = scalar_lea.vmem %s1772_s10, 16  ;;  %s1803_s23 = int_to_ptr.vmem [resolvable:$true] %s1802_s23 }
 0x12a   : > { %p9260_p3 = scmp.ne.s32.totalorder %s1772_s10, %s9259_s1  ;;  %s9266_s26 = scalar_lea.vmem %s1772_s10, 32 }
 0x12b   : > { %p9267_p0 = scmp.lt.s32.totalorder %s1772_s10, %s1772_s10  ;;  %p9268_p1 = scmp.lt.s32.totalorder %s9266_s26, %s9259_s1 }
 0x12c   : > { %p9262_p12 = pnand %p9260_p3, %p10180_p6 }
 0x12d   : > { %8584 = dma.hbm_to_vmem [thread:$0]  (!%p10170_p5), %s11292_s12, 16, %s2064_s28, [#allocation39]  }
 0x12e   : > { %p9263_p13 = pneg %p9262_p12  ;;  %p9269_p4 = por %p9268_p1, %p9267_p0 }
 0x130   : > { %p9270_p7 = pnand %p9269_p4, %p9263_p13 }
 0x132   : > { %9273 = shalt.err (!%p9270_p7)
}
 0x133   : > { %8515 = dma.hbm_to_vmem [thread:$0]  (!%p10170_p5), %s9937_s25, 16, %s1772_s10, [#allocation4]  }
 0x134   : > { %s9285_s28 = scalar_lea.vmem %s1803_s23, 16  ;;  %s9292_s7 = scalar_lea.vmem %s1803_s23, 32 }
 0x135   : > { %p9286_p8 = scmp.ne.s32.totalorder %s1803_s23, %s9285_s28  ;;  %p9293_p11 = scmp.lt.s32.totalorder %s1803_s23, %s1803_s23 }
 0x136   : > { %p9294_p2 = scmp.lt.s32.totalorder %s9292_s7, %s9285_s28 }
 0x137   : > { %p9288_p9 = pnand %p9286_p8, %p10180_p6 }
 0x138   : > { %p9295_p3 = por %p9294_p2, %p9293_p11 }
 0x139   : > { %p9289_p10 = pneg %p9288_p9 }
 0x13b   : > { %p9296_p12 = pnand %p9295_p3, %p9289_p10 }
 0x13d   : > { %9299 = shalt.err (!%p9296_p12)
}
 0x13e   : > { %s11293_s19 = sld [smem:[#allocation89_spill]]  ;;  %s9760_s0 = smov [#allocation10]  }
 0x13f   : > { %s1824_s16 = sshll.u32 %s9760_s0, 4  ;;  %s9761_s10 = smov [#allocation13]   ;;  %s1825_s16 = int_to_ptr.vmem [resolvable:$true] %s1824_s16 }
 0x140   : > { %s1852_s6 = sshll.u32 %s9761_s10, 4  ;;  %s9311_s1 = scalar_lea.vmem %s1825_s16, 16  ;;  %s1853_s6 = int_to_ptr.vmem [resolvable:$true] %s1852_s6 }
 0x141   : > { %p9312_p13 = scmp.ne.s32.totalorder %s1825_s16, %s9311_s1  ;;  %s9318_s26 = scalar_lea.vmem %s1825_s16, 32 }
 0x142   : > { %p9319_p4 = scmp.lt.s32.totalorder %s1825_s16, %s1825_s16  ;;  %p9320_p7 = scmp.lt.s32.totalorder %s9318_s26, %s9311_s1 }
 0x143   : > { %p9314_p0 = pnand %p9312_p13, %p10180_p6 }
 0x144   : > { %8521 = dma.hbm_to_vmem [thread:$0]  (!%p10170_p5), %s11293_s19, 16, %s1803_s23, [#allocation6]  }
 0x145   : > { %p9315_p1 = pneg %p9314_p0  ;;  %p9321_p8 = por %p9320_p7, %p9319_p4 }
 0x147   : > { %p9322_p9 = pnand %p9321_p8, %p9315_p1 }
 0x149   : > { %9325 = shalt.err (!%p9322_p9)
}
 0x14a   : > { %s11294_s28 = sld [smem:[#allocation90_spill]]  ;;  %s9337_s23 = scalar_lea.vmem %s1853_s6, 16 }
 0x14b   : > { %p9338_p10 = scmp.ne.s32.totalorder %s1853_s6, %s9337_s23  ;;  %s9344_s7 = scalar_lea.vmem %s1853_s6, 32 }
 0x14c   : > { %p9345_p3 = scmp.lt.s32.totalorder %s1853_s6, %s1853_s6  ;;  %p9346_p12 = scmp.lt.s32.totalorder %s9344_s7, %s9337_s23 }
 0x14d   : > { %p9340_p11 = pnand %p9338_p10, %p10180_p6 }
 0x14e   : > { %p9347_p13 = por %p9346_p12, %p9345_p3 }
 0x14f   : > { %p9341_p2 = pneg %p9340_p11 }
 0x150   : > { %8527 = dma.hbm_to_vmem [thread:$0]  (!%p10170_p5), %s11294_s28, 16, %s1825_s16, [#allocation9]  }
 0x151   : > { %p9348_p0 = pnand %p9347_p13, %p9341_p2 }
 0x153   : > { %9351 = shalt.err (!%p9348_p0)
}
 0x154   : > { %s11295_s0 = sld [smem:[#allocation94_spill]]  ;;  %s9762_s10 = smov [#allocation16]  }
 0x155   : > { %s1874_s1 = sshll.u32 %s9762_s10, 4  ;;  %s9763_s16 = smov [#allocation19]   ;;  %s1875_s1 = int_to_ptr.vmem [resolvable:$true] %s1874_s1 }
 0x156   : > { %s1902_s26 = sshll.u32 %s9763_s16, 4  ;;  %s9363_s28 = scalar_lea.vmem %s1875_s1, 16  ;;  %s1903_s26 = int_to_ptr.vmem [resolvable:$true] %s1902_s26 }
 0x157   : > { %p9364_p1 = scmp.ne.s32.totalorder %s1875_s1, %s9363_s28  ;;  %s9370_s4 = scalar_lea.vmem %s1875_s1, 32 }
 0x158   : > { %p9371_p8 = scmp.lt.s32.totalorder %s1875_s1, %s1875_s1  ;;  %p9372_p9 = scmp.lt.s32.totalorder %s9370_s4, %s9363_s28 }
 0x159   : > { %p9366_p4 = pnand %p9364_p1, %p10180_p6 }
 0x15a   : > { %8533 = dma.hbm_to_vmem [thread:$0]  (!%p10170_p5), %s11295_s0, 16, %s1853_s6, [#allocation12]  }
 0x15b   : > { %p9367_p7 = pneg %p9366_p4  ;;  %p9373_p10 = por %p9372_p9, %p9371_p8 }
 0x15d   : > { %p9374_p11 = pnand %p9373_p10, %p9367_p7 }
 0x15f   : > { %9377 = shalt.err (!%p9374_p11)
}
 0x160   : > { %s11296_s23 = sld [smem:[#allocation95_spill]]  ;;  %s9389_s6 = scalar_lea.vmem %s1903_s26, 16 }
 0x161   : > { %p9390_p2 = scmp.ne.s32.totalorder %s1903_s26, %s9389_s6  ;;  %s9396_s7 = scalar_lea.vmem %s1903_s26, 32 }
 0x162   : > { %p9397_p13 = scmp.lt.s32.totalorder %s1903_s26, %s1903_s26  ;;  %p9398_p0 = scmp.lt.s32.totalorder %s9396_s7, %s9389_s6 }
 0x163   : > { %p9392_p3 = pnand %p9390_p2, %p10180_p6 }
 0x164   : > { %p9399_p1 = por %p9398_p0, %p9397_p13 }
 0x165   : > { %p9393_p12 = pneg %p9392_p3 }
 0x166   : > { %8539 = dma.hbm_to_vmem [thread:$0]  (!%p10170_p5), %s11296_s23, 16, %s1875_s1, [#allocation15]  }
 0x167   : > { %p9400_p4 = pnand %p9399_p1, %p9393_p12 }
 0x169   : > { %9403 = shalt.err (!%p9400_p4)
}
 0x16a   : > { %s11297_s4 = sld [smem:[#allocation98_spill]]  ;;  %s9764_s0 = smov [#allocation22]  }
 0x16b   : > { %s1924_s10 = sshll.u32 %s9764_s0, 4  ;;  %s9765_s1 = smov [#allocation25]   ;;  %s1925_s10 = int_to_ptr.vmem [resolvable:$true] %s1924_s10 }
 0x16c   : > { %s1952_s16 = sshll.u32 %s9765_s1, 4  ;;  %s9415_s28 = scalar_lea.vmem %s1925_s10, 16  ;;  %s1953_s16 = int_to_ptr.vmem [resolvable:$true] %s1952_s16 }
 0x16d   : > { %p9416_p7 = scmp.ne.s32.totalorder %s1925_s10, %s9415_s28  ;;  %s9422_s23 = scalar_lea.vmem %s1925_s10, 32 }
 0x16e   : > { %p9423_p10 = scmp.lt.s32.totalorder %s1925_s10, %s1925_s10  ;;  %p9424_p11 = scmp.lt.s32.totalorder %s9422_s23, %s9415_s28 }
 0x16f   : > { %p9418_p8 = pnand %p9416_p7, %p10180_p6 }
 0x170   : > { %8545 = dma.hbm_to_vmem [thread:$0]  (!%p10170_p5), %s11297_s4, 16, %s1903_s26, [#allocation18]  }
 0x171   : > { %p9419_p9 = pneg %p9418_p8  ;;  %p9425_p2 = por %p9424_p11, %p9423_p10 }
 0x173   : > { %p9426_p3 = pnand %p9425_p2, %p9419_p9 }
 0x175   : > { %9429 = shalt.err (!%p9426_p3)
}
 0x176   : > { %s11298_s6 = sld [smem:[#allocation100_spill]]  ;;  %s9441_s26 = scalar_lea.vmem %s1953_s16, 16 }
 0x177   : > { %p9442_p12 = scmp.ne.s32.totalorder %s1953_s16, %s9441_s26  ;;  %s9448_s7 = scalar_lea.vmem %s1953_s16, 32 }
 0x178   : > { %p9449_p1 = scmp.lt.s32.totalorder %s1953_s16, %s1953_s16  ;;  %p9450_p4 = scmp.lt.s32.totalorder %s9448_s7, %s9441_s26 }
 0x179   : > { %p9444_p13 = pnand %p9442_p12, %p10180_p6 }
 0x17a   : > { %p9451_p7 = por %p9450_p4, %p9449_p1 }
 0x17b   : > { %p9445_p0 = pneg %p9444_p13 }
 0x17c   : > { %8551 = dma.hbm_to_vmem [thread:$0]  (!%p10170_p5), %s11298_s6, 16, %s1925_s10, [#allocation21]  }
 0x17d   : > { %p9452_p8 = pnand %p9451_p7, %p9445_p0 }
 0x17f   : > { %9455 = shalt.err (!%p9452_p8)
}
 0x180   : > { %s11299_s4 = sld [smem:[#allocation104_spill]]  ;;  %s9766_s0 = smov [#allocation28]  }
 0x181   : > { %s1974_s1 = sshll.u32 %s9766_s0, 4  ;;  %s9767_s10 = smov [#allocation31]   ;;  %s1975_s1 = int_to_ptr.vmem [resolvable:$true] %s1974_s1 }
 0x182   : > { %s2002_s28 = sshll.u32 %s9767_s10, 4  ;;  %s9467_s23 = scalar_lea.vmem %s1975_s1, 16  ;;  %s2003_s28 = int_to_ptr.vmem [resolvable:$true] %s2002_s28 }
 0x183   : > { %p9468_p9 = scmp.ne.s32.totalorder %s1975_s1, %s9467_s23  ;;  %s9474_s6 = scalar_lea.vmem %s1975_s1, 32 }
 0x184   : > { %p9475_p2 = scmp.lt.s32.totalorder %s1975_s1, %s1975_s1  ;;  %p9476_p3 = scmp.lt.s32.totalorder %s9474_s6, %s9467_s23 }
 0x185   : > { %p9470_p10 = pnand %p9468_p9, %p10180_p6 }
 0x186   : > { %8557 = dma.hbm_to_vmem [thread:$0]  (!%p10170_p5), %s11299_s4, 16, %s1953_s16, [#allocation24]  }
 0x187   : > { %p9471_p11 = pneg %p9470_p10  ;;  %p9477_p12 = por %p9476_p3, %p9475_p2 }
 0x189   : > { %p9478_p13 = pnand %p9477_p12, %p9471_p11 }
 0x18b   : > { %9481 = shalt.err (!%p9478_p13)
}
 0x18c   : > { %s11300_s26 = sld [smem:[#allocation105_spill]]  ;;  %s9493_s16 = scalar_lea.vmem %s2003_s28, 16 }
 0x18d   : > { %p9494_p0 = scmp.ne.s32.totalorder %s2003_s28, %s9493_s16  ;;  %s9500_s7 = scalar_lea.vmem %s2003_s28, 32 }
 0x18e   : > { %p9501_p7 = scmp.lt.s32.totalorder %s2003_s28, %s2003_s28  ;;  %p9502_p8 = scmp.lt.s32.totalorder %s9500_s7, %s9493_s16 }
 0x18f   : > { %p9496_p1 = pnand %p9494_p0, %p10180_p6 }
 0x190   : > { %p9503_p9 = por %p9502_p8, %p9501_p7 }
 0x191   : > { %p9497_p4 = pneg %p9496_p1 }
 0x192   : > { %8563 = dma.hbm_to_vmem [thread:$0]  (!%p10170_p5), %s11300_s26, 16, %s1975_s1, [#allocation27]  }
 0x193   : > { %p9504_p10 = pnand %p9503_p9, %p9497_p4 }
 0x195   : > { %9507 = shalt.err (!%p9504_p10)
}
 0x196   : > { %s11301_s4 = sld [smem:[#allocation109_spill]]  ;;  %s9768_s0 = smov [#allocation34]  }
 0x197   : > { %s2024_s10 = sshll.u32 %s9768_s0, 4  ;;  %s9769_s1 = smov [#allocation37]   ;;  %s2025_s10 = int_to_ptr.vmem [resolvable:$true] %s2024_s10 }
 0x198   : > { %s2052_s23 = sshll.u32 %s9769_s1, 4  ;;  %s9519_s6 = scalar_lea.vmem %s2025_s10, 16  ;;  %s2053_s23 = int_to_ptr.vmem [resolvable:$true] %s2052_s23 }
 0x199   : > { %p9520_p11 = scmp.ne.s32.totalorder %s2025_s10, %s9519_s6  ;;  %s9526_s26 = scalar_lea.vmem %s2025_s10, 32 }
 0x19a   : > { %p9527_p12 = scmp.lt.s32.totalorder %s2025_s10, %s2025_s10  ;;  %p9528_p13 = scmp.lt.s32.totalorder %s9526_s26, %s9519_s6 }
 0x19b   : > { %p9522_p2 = pnand %p9520_p11, %p10180_p6 }
 0x19c   : > { %8569 = dma.hbm_to_vmem [thread:$0]  (!%p10170_p5), %s11301_s4, 16, %s2003_s28, [#allocation30]  }
 0x19d   : > { %p9523_p3 = pneg %p9522_p2  ;;  %p9529_p0 = por %p9528_p13, %p9527_p12 }
 0x19f   : > { %p9530_p1 = pnand %p9529_p0, %p9523_p3 }
 0x1a1   : > { %9533 = shalt.err (!%p9530_p1)
}
 0x1a2   : > { %s11302_s16 = sld [smem:[#allocation111_spill]]  ;;  %s9545_s28 = scalar_lea.vmem %s2053_s23, 16 }
 0x1a3   : > { %p9546_p4 = scmp.ne.s32.totalorder %s2053_s23, %s9545_s28  ;;  %s9552_s7 = scalar_lea.vmem %s2053_s23, 32 }
 0x1a4   : > { %p9553_p9 = scmp.lt.s32.totalorder %s2053_s23, %s2053_s23  ;;  %p9554_p10 = scmp.lt.s32.totalorder %s9552_s7, %s9545_s28 }
 0x1a5   : > { %p9548_p7 = pnand %p9546_p4, %p10180_p6 }
 0x1a6   : > { %p9555_p11 = por %p9554_p10, %p9553_p9 }
 0x1a7   : > { %p9549_p8 = pneg %p9548_p7 }
 0x1a8   : > { %8575 = dma.hbm_to_vmem [thread:$0]  (!%p10170_p5), %s11302_s16, 16, %s2025_s10, [#allocation33]  }
 0x1a9   : > { %p9556_p2 = pnand %p9555_p11, %p9549_p8 }
 0x1ab   : > { %9559 = shalt.err (!%p9556_p2)
}
 0x1ac   : > { %s11303_s4 = sld [smem:[#allocation115_spill]]  ;;  %s9770_s0 = smov [#allocation40]  }
 0x1ad   : > { %s2074_s1 = sshll.u32 %s9770_s0, 4  ;;  %s9771_s10 = smov [#allocation41]   ;;  %s2075_s1 = int_to_ptr.vmem [resolvable:$true] %s2074_s1 }
 0x1ae   : > { %s2091_s6 = sshll.u32 %s9771_s10, 4  ;;  %s9571_s26 = scalar_lea.vmem %s2075_s1, 16  ;;  %s2092_s6 = int_to_ptr.vmem [resolvable:$true] %s2091_s6 }
 0x1af   : > { %p9572_p3 = scmp.ne.s32.totalorder %s2075_s1, %s9571_s26  ;;  %s9578_s16 = scalar_lea.vmem %s2075_s1, 32 }
 0x1b0   : > { %p9579_p0 = scmp.lt.s32.totalorder %s2075_s1, %s2075_s1  ;;  %p9580_p1 = scmp.lt.s32.totalorder %s9578_s16, %s9571_s26 }
 0x1b1   : > { %p9574_p12 = pnand %p9572_p3, %p10180_p6 }
 0x1b2   : > { %8581 = dma.hbm_to_vmem [thread:$0]  (!%p10170_p5), %s11303_s4, 16, %s2053_s23, [#allocation36]  }
 0x1b3   : > { %p9575_p13 = pneg %p9574_p12  ;;  %p9581_p4 = por %p9580_p1, %p9579_p0 }
 0x1b5   : > { %p9582_p7 = pnand %p9581_p4, %p9575_p13 }
 0x1b7   : > { %9585 = shalt.err (!%p9582_p7)
}
 0x1b8   : > { %s11304_s28 = sld [smem:[#allocation117_spill]]  ;;  %s9597_s23 = scalar_lea.vmem %s2092_s6, 16 }
 0x1b9   : > { %p9598_p8 = scmp.ne.s32.totalorder %s2092_s6, %s9597_s23  ;;  %s9604_s7 = scalar_lea.vmem %s2092_s6, 32 }
 0x1ba   : > { %p9605_p11 = scmp.lt.s32.totalorder %s2092_s6, %s2092_s6  ;;  %p9606_p2 = scmp.lt.s32.totalorder %s9604_s7, %s9597_s23 }
 0x1bb   : > { %p9600_p9 = pnand %p9598_p8, %p10180_p6 }
 0x1bc   : > { %p9607_p3 = por %p9606_p2, %p9605_p11 }
 0x1bd   : > { %p9601_p10 = pneg %p9600_p9 }
 0x1be   : > { %8587 = dma.hbm_to_vmem [thread:$0]  (!%p10170_p5), %s11304_s28, 16, %s2075_s1, [#allocation39]  }
 0x1bf   : > { %p9608_p12 = pnand %p9607_p3, %p9601_p10 }
 0x1c1   : > { %9611 = shalt.err (!%p9608_p12)
}
 0x1c2   : > { %s11305_s3 = sld [smem:[#allocation120_spill]]  ;;  %p11306_p13 = scmp.ne.s32.totalorder %s11282_s22, 0 }
 0x1c3   : > { %p11307_p0 = scmp.eq.s32.totalorder (!%p11306_p13), %s10155_s18, 0 }
 0x1c4   : > { %2133 = sbr.rel (%p11306_p13) target bundleno = 13063 (0x3307), region = 300 }
 0x1c8   : > { %8590 = dma.hbm_to_vmem [thread:$0]  (!%p10170_p5), %s11305_s3, 16, %s2092_s6, [#allocation42]  }
 0x1c9   : > { %9617 = dma.done.wait (%p11307_p0), [#allocation4], 16   ;;  %p11308_p1 = pmov %p11307_p0 }
 0x1ca   : > { %p11309_p6 = pmov %p11307_p0 }
 0x1cb   : > { %9619 = vsyncadd (%p11308_p1), [#allocation4], 4294967280 }
 0x1cc   : > { %9621 = dma.done.wait (%p11309_p6), [#allocation6], 32   ;;  %p11310_p4 = pmov %p11307_p0 }
 0x1cd   : > { %p11311_p7 = pmov %p11307_p0 }
 0x1ce   : > { %9623 = vsyncadd (%p11310_p4), [#allocation6], 4294967264 }
 0x1cf   : > { %9625 = dma.done.wait (%p11311_p7), [#allocation9], 32   ;;  %p11312_p5 = pmov %p11307_p0 }
 0x1d0   : > { %p11313_p8 = pmov %p11307_p0 }
 0x1d1   : > { %9627 = vsyncadd (%p11312_p5), [#allocation9], 4294967264 }
 0x1d2   : > { %9629 = dma.done.wait (%p11313_p8), [#allocation12], 32   ;;  %p11314_p9 = pmov %p11307_p0 }
 0x1d3   : > { %p11315_p10 = pmov %p11307_p0 }
 0x1d4   : > { %9631 = vsyncadd (%p11314_p9), [#allocation12], 4294967264 }
 0x1d5   : > { %9633 = dma.done.wait (%p11315_p10), [#allocation15], 32   ;;  %p11316_p11 = pmov %p11307_p0 }
 0x1d6   : > { %p11317_p2 = pmov %p11307_p0 }
 0x1d7   : > { %9635 = vsyncadd (%p11316_p11), [#allocation15], 4294967264 }
 0x1d8   : > { %9637 = dma.done.wait (%p11317_p2), [#allocation18], 32   ;;  %p11318_p3 = pmov %p11307_p0 }
 0x1d9   : > { %p11319_p12 = pmov %p11307_p0 }
 0x1da   : > { %9639 = vsyncadd (%p11318_p3), [#allocation18], 4294967264 }
 0x1db   : > { %9641 = dma.done.wait (%p11319_p12), [#allocation21], 32   ;;  %p11320_p13 = pmov %p11307_p0 }
 0x1dd   : > { %9643 = vsyncadd (%p11320_p13), [#allocation21], 4294967264 }
 0x1de   : > { %9645 = dma.done.wait (%p11307_p0), [#allocation24], 32   ;;  %p11321_p1 = pmov %p11307_p0 }
 0x1df   : > { %p11322_p6 = pmov %p11307_p0 }
 0x1e0   : > { %9647 = vsyncadd (%p11321_p1), [#allocation24], 4294967264 }
 0x1e1   : > { %9649 = dma.done.wait (%p11322_p6), [#allocation27], 32   ;;  %p11323_p4 = pmov %p11307_p0 }
 0x1e2   : > { %p11324_p7 = pmov %p11307_p0 }
 0x1e3   : > { %9651 = vsyncadd (%p11323_p4), [#allocation27], 4294967264 }
 0x1e4   : > { %9653 = dma.done.wait (%p11324_p7), [#allocation30], 32   ;;  %p11325_p5 = pmov %p11307_p0 }
 0x1e5   : > { %p11326_p8 = pmov %p11307_p0 }
 0x1e6   : > { %9655 = vsyncadd (%p11325_p5), [#allocation30], 4294967264 }
 0x1e7   : > { %9657 = dma.done.wait (%p11326_p8), [#allocation33], 32   ;;  %p11327_p9 = pmov %p11307_p0 }
 0x1e8   : > { %p11328_p10 = pmov %p11307_p0 }
 0x1e9   : > { %9659 = vsyncadd (%p11327_p9), [#allocation33], 4294967264 }
 0x1ea   : > { %9661 = dma.done.wait (%p11328_p10), [#allocation36], 32   ;;  %p11329_p11 = pmov %p11307_p0 }
 0x1eb   : > { %p11330_p2 = pmov %p11307_p0 }
 0x1ec   : > { %9663 = vsyncadd (%p11329_p11), [#allocation36], 4294967264 }
 0x1ed   : > { %9665 = dma.done.wait (%p11330_p2), [#allocation39], 32   ;;  %p11331_p3 = pmov %p11307_p0 }
 0x1ee   : > { %p11332_p12 = pmov %p11307_p0 }
 0x1ef   : > { %9667 = vsyncadd (%p11331_p3), [#allocation39], 4294967264 }
 0x1f0   : > { %9669 = dma.done.wait (%p11332_p12), [#allocation42], 16   ;;  %p11333_p13 = pmov %p11307_p0 }
 0x1f1   : > { %s11334_s22 = sld [smem:[#allocation57_spill]]  ;;  %p2399_p0 = scmp.lt.s32.totalorder %s10155_s18, 1  ;;  %vm2423_vm0 = vcmask 261120   ;;  %v9772_v8 = vmov 0.0   ;;  %vm9773_vm1 = vmmov 0   ;;  %vm2531_vm2 = vcmask 64512  }
 0x1f2   : > { %9671 = vsyncadd (%p11333_p13), [#allocation42], 4294967280  ;;  %s11335_s2 = sld [smem:[#allocation102_spill]]  ;;  %7920 = vmatprep.subr.bf16.mxu0 %v9772_v8  ;;  %7924 = vmatprep.mubr.msk.bf16.mxu0 %vm9773_vm1, %v9772_v8  ;;  %v7575_v14 = vld [vmem:[#allocation22] ss:$0 sm:$0xff]  ;;  %s11202_s0 = smov 96  }
 0x1f3   : > { %s11391_s18 = smov (!%p2399_p0, %s10155_s18), 1  ;;  %7928 = vmatprep.subr.bf16.mxu1 %v9772_v8  ;;  %7930 = vmatprep.mubr.msk.bf16.mxu1 %vm9773_vm1, %v9772_v8  ;;  %v7576_v16 = vld [vmem:[#allocation20] ss:$0 sm:$0xff]  ;;  %v7577_v20 = vld [vmem:[#allocation19] ss:$0 sm:$0xff]  ;;  %s11198_s1 = smov 120  }
 0x1f4   : > { %s10395_s11 = sshll.u32 %s11391_s18, 3  ;;  %s11204_s10 = smov 88   ;;  %vm2595_vm3 = vcmask 1043456   ;;  %vm2755_vm4 = vcmask 130112   ;;  %vm2871_vm5 = vcmask 195712   ;;  %vm2987_vm6 = vcmask 261312  }
 0x1f5   : > { %s11200_s6 = smov 80   ;;  %s11194_s26 = smov 112   ;;  %vm3195_vm7 = vcmask 523264   ;;  %vm7110_vm9 = vcmask 130048  }
 0x1f6   : > { %s11196_s16 = smov 72   ;;  %s11191_s28 = smov 104  }
 0x1f7   : > { %s2402_s4 = scalar_lea.vmem %s11334_s22, %s10395_s11  ;;  %s11336_s23 = sld [smem:[#allocation59_spill]] }
 0x1f8   : > { %v10399_v0 = vld [vmem:[%s2402_s4] sm:$0xff]  ;;  %v8764_v7 = vld [vmem:[%s11335_s2 + $0x8] sm:$0xff]   ;;  %s11177_s22 = smov 64   ;;  %s11183_s4 = smov 56  }
 0x1f9   : > { %v2424_v1 = vsel %vm2423_vm0, %v10399_v0, 0.0  ;;  %7921 = vmatpush3.bf16.msra.mxu0 %v8764_v7  ;;  %v8765_v9 = vld [vmem:[%s11335_s2] sm:$0xff]   ;;  %s11341_s2 = smov 104   ;;  %s11348_s3 = sld [smem:[#allocation58_spill]] }
 0x1fa   : > { %2425 = vadd.xlane.f32.xlu0 %v2424_v1  ;;  %7922 = vmatprep.subr.bf16.mxu0 %v9772_v8  ;;  %s11350_s5 = smov 24   ;;  %s11359_s9 = smov 120  }
 0x1fb   : > { %s11360_s12 = smov 72   ;;  %s11362_s17 = sld [smem:[#allocation60_spill]] }
 0x1fc   : > { %s11369_s21 = sld [smem:[#allocation64_spill]] }
 0x1fd   : > { %7923 = vmatpush3.bf16.msra.mxu0 %v8765_v9  ;;  %s10453_s7 = scalar_lea.vmem %s11336_s23, %s11391_s18  ;;  %s11181_s23 = smov 48  }
 0x1fe   : > { %7934 = vmatprep.subr.bf16.mxu0 %v9772_v8  ;;  %v10456_v40 = vld [vmem:[%s10453_s7] ss:$0 sm:$0xff] }
 0x1ff   : > { %s2406_s8 = scalar_lea.vmem %s11348_s3, %s10395_s11  ;;  %s11351_s3 = sld [smem:[#allocation118_spill]] }
 0x201   : > { %s2412_s19 = scalar_lea.vmem %s11362_s17, %s11391_s18  ;;  %s11363_s17 = sld [smem:[#allocation79_spill]] }
 0x202   : > { %s11365_s18 = sld [smem:[#allocation75_spill]] }
 0x283   : > { %v2426_v2 = vpop.xlane.xlu0 %2425 }
 0x284   : > { %v2428_v3 = vmul.f32 0.03125, %v2426_v2 }
 0x286   : > { %v2429_v4 = vsub.f32 %v10399_v0, %v2428_v3 }
 0x288   : > { %v2430_v5 = vmul.f32 %v2429_v4, %v2429_v4 }
 0x28a   : > { %v2431_v6 = vsel %vm2423_vm0, %v2430_v5, 0.0 }
 0x28b   : > { %2432 = vadd.xlane.f32.xlu0 %v2431_v6 }
 0x314   : > { %v2433_v10 = vpop.xlane.xlu0 %2432 }
 0x315   : > { %v2434_v11 = vmul.f32 0.03125, %v2433_v10 }
 0x317   : > { %v2435_v12 = vadd.f32 1e-05, %v2434_v11 }
 0x319   : > { %8818 = vrsqrt.f32 %v2435_v12 }
 0x326   : > { %v8819_v13 = vpop.eup %8818 }
 0x327   : > { %v2437_v15 = vmul.f32 %v8819_v13, %v2429_v4 }
 0x329   : > { %v2444_v17 = vmul.f32 %v7575_v14, %v2437_v15 }
 0x32b   : > { %v2451_v18 = vadd.f32 %v7576_v16, %v2444_v17 }
 0x32d   : > { %v2452_v19 = vpack.c.bf16 %v2451_v18, %v2451_v18 }
 0x32f   : > { %7925 = vmatmul.mubr.msk.bf16.vlgmr.msra.gmra.mxu0 %vm2423_vm0, %v2452_v19 }
 0x330   : > { %7936 = vmatprep.mubr.msk.bf16.mxu0 %vm9773_vm1, %v9772_v8 }
 0x3ef   : > { %v2513_v21 = vpop.f32.mrf.mxu0 }
 0x3f0   : > { %v2514_v22 = vadd.f32 %v7577_v20, %v2513_v21 }
 0x3f1   : > { %v7926_v23 = vpop.f32.mrf.mxu0 }
 0x3f2   : > { %v2519_v24 = vmul.f32 0.35355338, %v2514_v22  ;;  %v10418_v25 = vpack.c.bf16 %v2514_v22, %v2514_v22 }
 0x3f3   : > { %v2516_v26 = vpop.f32.mrf.mxu0 }
 0x3f4   : > { %v2520_v27 = vpack.c.bf16 %v2519_v24, %v2519_v24  ;;  %2529 = vrot.lane.b32.xlu1 %v10418_v25, %s11202_s0 }
 0x3f5   : > { %v7927_v28 = vpop.f32.mrf.mxu0 }
 0x3f6   : > { %2641 = vrot.lane.b32.xlu0 %v2520_v27, %s11198_s1 }
 0x3f8   : > { %2643 = vrot.lane.b32.xlu1 %v10418_v25, %s11204_s10 }
 0x3fc   : > { %2759 = vrot.lane.b32.xlu1 %v10418_v25, %s11200_s6 }
 0x400   : > { %2757 = vrot.lane.b32.xlu1 %v2520_v27, %s11194_s26 }
 0x404   : > { %2875 = vrot.lane.b32.xlu1 %v10418_v25, %s11196_s16 }
 0x408   : > { %2873 = vrot.lane.b32.xlu1 %v2520_v27, %s11191_s28  ;;  %s11340_s28 = sld [smem:[#allocation113_spill]] }
 0x466   : > { %v2530_v29 = vpop.permute.xlu1 %2529 }
 0x467   : > { %v2536_v30 = vsel %vm2531_vm2, %v2530_v29, 0 }
 0x468   : > { %7929 = vmatpush3.bf16.xpose.msra.mxu1 %v2536_v30  ;;  %v2642_v34 = vpop.permute.xlu0 %2641 }
 0x469   : > { %7940 = vmatprep.subr.bf16.mxu1 %v9772_v8 }
 0x46a   : > { %v2644_v31 = vpop.permute.xlu1 %2643 }
 0x46b   : > { %v2649_v32 = vsel %vm2531_vm2, %v2644_v31, 0 }
 0x46e   : > { %v2760_v33 = vpop.permute.xlu1 %2759 }
 0x46f   : > { %7931 = vmatmul.mubr.msk.bf16.vlgmr.msra.gmra.mxu1 %vm2531_vm2, %v2520_v27  ;;  %v2765_v36 = vsel %vm2531_vm2, %v2760_v33, 0 }
 0x470   : > { %7941 = vmatpush3.bf16.xpose.msra.mxu1 %v2649_v32  ;;  %7942 = vmatprep.mubr.msk.bf16.mxu1 %vm9773_vm1, %v9772_v8 }
 0x471   : > { %7952 = vmatprep.subr.bf16.mxu1 %v9772_v8 }
 0x472   : > { %v2758_v35 = vpop.permute.xlu1 %2757 }
 0x476   : > { %v2876_v37 = vpop.permute.xlu1 %2875 }
 0x477   : > { %7943 = vmatmul.mubr.msk.bf16.vlgmr.msra.gmra.mxu1 %vm2531_vm2, %v2642_v34  ;;  %v2881_v38 = vsel %vm2531_vm2, %v2876_v37, 0 }
 0x478   : > { %7953 = vmatpush3.bf16.xpose.msra.mxu1 %v2765_v36  ;;  %7954 = vmatprep.mubr.msk.bf16.mxu1 %vm9773_vm1, %v9772_v8 }
 0x479   : > { %7964 = vmatprep.subr.bf16.mxu1 %v9772_v8 }
 0x47a   : > { %v2874_v39 = vpop.permute.xlu1 %2873 }
 0x47f   : > { %7955 = vmatmul.mubr.msk.bf16.vlgmr.msra.gmra.mxu1 %vm2531_vm2, %v2758_v35 }
 0x480   : > { %7965 = vmatpush3.bf16.xpose.msra.mxu1 %v2881_v38  ;;  %7966 = vmatprep.mubr.msk.bf16.mxu1 %vm9773_vm1, %v9772_v8 }
 0x481   : > { %7976 = vmatprep.subr.bf16.mxu1 %v9772_v8 }
 0x487   : > { %7967 = vmatmul.mubr.msk.bf16.vlgmr.msra.gmra.mxu1 %vm2531_vm2, %v2874_v39 }
 0x488   : > { %7980 = vmatprep.mubr.msk.bf16.mxu1 %vm9773_vm1, %v9772_v8 }
 0x52f   : > { %v2572_v41 = vpop.f32.mrf.mxu1 }
 0x530   : > { %v2573_v42 = vadd.f32 %v10456_v40, %v2572_v41 }
 0x531   : > { %v7932_v43 = vpop.f32.mrf.mxu1 }
 0x532   : > { %v2578_v44 = vsel %vm2531_vm2, %v2573_v42, -inf }
 0x533   : > { %v2575_v45 = vpop.f32.mrf.mxu1  ;;  %2579 = vmax.xlane.f32.xlu1 %v2578_v44 }
 0x535   : > { %v7933_v46 = vpop.f32.mrf.mxu1 }
 0x537   : > { %v2685_v47 = vpop.f32.mrf.mxu1 }
 0x538   : > { %v2686_v48 = vadd.f32 %v10456_v40, %v2685_v47 }
 0x539   : > { %v7944_v49 = vpop.f32.mrf.mxu1 }
 0x53a   : > { %v2691_v50 = vsel %vm2531_vm2, %v2686_v48, -inf }
 0x53b   : > { %v2688_v51 = vpop.f32.mrf.mxu1  ;;  %2692 = vmax.xlane.f32.xlu0 %v2691_v50 }
 0x53d   : > { %v7945_v52 = vpop.f32.mrf.mxu1 }
 0x53f   : > { %v2801_v53 = vpop.f32.mrf.mxu1 }
 0x540   : > { %v2802_v54 = vadd.f32 %v10456_v40, %v2801_v53 }
 0x541   : > { %v7956_v55 = vpop.f32.mrf.mxu1 }
 0x542   : > { %v2807_v56 = vsel %vm2531_vm2, %v2802_v54, -inf }
 0x543   : > { %v2804_v57 = vpop.f32.mrf.mxu1  ;;  %2808 = vmax.xlane.f32.xlu1 %v2807_v56 }
 0x545   : > { %v7957_v58 = vpop.f32.mrf.mxu1 }
 0x547   : > { %v2917_v59 = vpop.f32.mrf.mxu1 }
 0x548   : > { %v2918_v60 = vadd.f32 %v10456_v40, %v2917_v59 }
 0x549   : > { %v7968_v61 = vpop.f32.mrf.mxu1 }
 0x54a   : > { %v2923_v62 = vsel %vm2531_vm2, %v2918_v60, -inf }
 0x54b   : > { %v2920_v63 = vpop.f32.mrf.mxu1  ;;  %2924 = vmax.xlane.f32.xlu0 %v2923_v62 }
 0x54d   : > { %v7969_v1 = vpop.f32.mrf.mxu1 }
 0x5bc   : > { %v2580_v2 = vpop.xlane.xlu1 %2579 }
 0x5bd   : > { %v2581_v3 = vsub.f32 %v2573_v42, %v2580_v2 }
 0x5bf   : > { %v2582_v4 = vmul.f32 1.442695, %v2581_v3 }
 0x5c1   : > { %8820 = vpow2.f32 %v2582_v4 }
 0x5c4   : > { %v2693_v5 = vpop.xlane.xlu0 %2692 }
 0x5c5   : > { %v2694_v6 = vsub.f32 %v2686_v48, %v2693_v5 }
 0x5c7   : > { %v2695_v7 = vmul.f32 1.442695, %v2694_v6 }
 0x5c9   : > { %8822 = vpow2.f32 %v2695_v7 }
 0x5cc   : > { %v2809_v18 = vpop.xlane.xlu1 %2808 }
 0x5cd   : > { %v2810_v19 = vsub.f32 %v2802_v54, %v2809_v18 }
 0x5ce   : > { %v8821_v9 = vpop.eup %8820 }
 0x5cf   : > { %v2584_v10 = vsel %vm2531_vm2, %v8821_v9, 0.0  ;;  %v2811_v20 = vmul.f32 1.442695, %v2810_v19 }
 0x5d0   : > { %2585 = vadd.xlane.f32.xlu1 %v2584_v10 }
 0x5d4   : > { %v2925_v11 = vpop.xlane.xlu0 %2924 }
 0x5d5   : > { %v2926_v12 = vsub.f32 %v2918_v60, %v2925_v11 }
 0x5d6   : > { %v8823_v13 = vpop.eup %8822 }
 0x5d7   : > { %v2927_v14 = vmul.f32 1.442695, %v2926_v12  ;;  %v2697_v15 = vsel %vm2531_vm2, %v8823_v13, 0.0 }
 0x5d8   : > { %2698 = vadd.xlane.f32.xlu0 %v2697_v15 }
 0x5d9   : > { %8824 = vpow2.f32 %v2927_v14 }
 0x5da   : > { %8826 = vpow2.f32 %v2811_v20 }
 0x5e1   : > { %2590 = vrot.lane.b32.xlu1 %v10418_v25, %s11177_s22  ;;  %s11179_s22 = smov 40  }
 0x5e6   : > { %v8825_v16 = vpop.eup %8824 }
 0x5e7   : > { %v2929_v17 = vsel %vm2531_vm2, %v8825_v16, 0.0  ;;  %v8827_v21 = vpop.eup %8826 }
 0x5e8   : > { %2930 = vadd.xlane.f32.xlu0 %v2929_v17  ;;  %v2813_v22 = vsel %vm2531_vm2, %v8827_v21, 0.0 }
 0x5fe   : > { %2703 = vrot.lane.b32.xlu0 %v10418_v25, %s11183_s4  ;;  %s11189_s4 = smov 16  }
 0x605   : > { %2814 = vadd.xlane.f32.xlu1 %v2813_v22 }
 0x616   : > { %2819 = vrot.lane.b32.xlu1 %v10418_v25, %s11181_s23  ;;  %s11185_s23 = smov 8  }
 0x61a   : > { %2935 = vrot.lane.b32.xlu1 %v10418_v25, %s11179_s22  ;;  %s11337_s22 = sld [smem:[#allocation101_spill]] }
 0x620   : > { %v8766_v56 = vld [vmem:[%s11337_s22 + $0x8] sm:$0xff]   ;;  %v8767_v57 = vld [vmem:[%s11337_s22] sm:$0xff]   ;;  %s11370_s22 = sld [smem:[#allocation63_spill]] }
 0x621   : > { %7977 = vmatpush3.bf16.msra.mxu1 %v8766_v56 }
 0x622   : > { %7978 = vmatprep.subr.bf16.mxu1 %v9772_v8 }
 0x625   : > { %7979 = vmatpush3.bf16.msra.mxu1 %v8767_v57 }
 0x626   : > { %7992 = vmatprep.subr.bf16.mxu1 %v9772_v8 }
 0x659   : > { %v2586_v23 = vpop.xlane.xlu1 %2585 }
 0x65a   : > { %8828 = vrcp.f32 %v2586_v23 }
 0x65d   : > { %v2591_v24 = vpop.permute.xlu1 %2590 }
 0x65e   : > { %v2597_v26 = vsel %vm2595_vm3, %v2591_v24, 0 }
 0x65f   : > { %7935 = vmatpush3.bf16.msra.mxu0 %v2597_v26 }
 0x660   : > { %7946 = vmatprep.subr.bf16.mxu0 %v9772_v8 }
 0x661   : > { %v2699_v27 = vpop.xlane.xlu0 %2698 }
 0x662   : > { %8830 = vrcp.f32 %v2699_v27 }
 0x667   : > { %v8829_v28 = vpop.eup %8828 }
 0x668   : > { %v2588_v29 = vmul.f32 %v8829_v28, %v8821_v9  ;;  %v7590_v9 = vld [vmem:[#allocation17] ss:$0 sm:$0xff] }
 0x66a   : > { %v2589_v30 = vpack.c.bf16 %v2588_v29, %v2588_v29 }
 0x66c   : > { %7937 = vmatmul.mubr.msk.bf16.vlgmr.msra.gmra.mxu0 %vm2531_vm2, %v2589_v30  ;;  %v7594_v30 = vld [vmem:[#allocation28] ss:$0 sm:$0xff] }
 0x66d   : > { %7948 = vmatprep.mubr.msk.bf16.mxu0 %vm9773_vm1, %v9772_v8 }
 0x66f   : > { %v8831_v25 = vpop.eup %8830 }
 0x670   : > { %v2701_v32 = vmul.f32 %v8831_v25, %v8823_v13 }
 0x671   : > { %v2931_v31 = vpop.xlane.xlu0 %2930 }
 0x672   : > { %v2702_v35 = vpack.c.bf16 %v2701_v32, %v2701_v32 }
 0x675   : > { %v2704_v33 = vpop.permute.xlu0 %2703 }
 0x676   : > { %v2709_v34 = vsel %vm2595_vm3, %v2704_v33, 0 }
 0x677   : > { %7947 = vmatpush3.bf16.msra.mxu0 %v2709_v34 }
 0x678   : > { %7958 = vmatprep.subr.bf16.mxu0 %v9772_v8 }
 0x67a   : > { %7949 = vmatmul.mubr.msk.bf16.vlgmr.msra.gmra.mxu0 %vm2531_vm2, %v2702_v35 }
 0x67b   : > { %7960 = vmatprep.mubr.msk.bf16.mxu0 %vm9773_vm1, %v9772_v8 }
 0x68e   : > { %v2815_v36 = vpop.xlane.xlu1 %2814 }
 0x68f   : > { %8832 = vrcp.f32 %v2815_v36 }
 0x690   : > { %8834 = vrcp.f32 %v2931_v31  ;;  %v7595_v31 = vld [vmem:[#allocation26] ss:$0 sm:$0xff] }
 0x692   : > { %v2820_v37 = vpop.permute.xlu1 %2819 }
 0x693   : > { %v2825_v38 = vsel %vm2595_vm3, %v2820_v37, 0  ;;  %v7596_v37 = vld [vmem:[#allocation23] ss:$0 sm:$0xff] }
 0x694   : > { %7959 = vmatpush3.bf16.msra.mxu0 %v2825_v38 }
 0x695   : > { %7970 = vmatprep.subr.bf16.mxu0 %v9772_v8 }
 0x696   : > { %v2936_v42 = vpop.permute.xlu1 %2935 }
 0x697   : > { %v2941_v45 = vsel %vm2595_vm3, %v2936_v42, 0 }
 0x69c   : > { %v8833_v39 = vpop.eup %8832 }
 0x69d   : > { %v2817_v41 = vmul.f32 %v8833_v39, %v8827_v21  ;;  %v8835_v44 = vpop.eup %8834 }
 0x69e   : > { %v2933_v46 = vmul.f32 %v8835_v44, %v8825_v16 }
 0x69f   : > { %v2818_v43 = vpack.c.bf16 %v2817_v41, %v2817_v41 }
 0x6a0   : > { %v2934_v47 = vpack.c.bf16 %v2933_v46, %v2933_v46  ;;  %v7600_v46 = vld [vmem:[#allocation25] ss:$0 sm:$0xff] }
 0x6a1   : > { %7961 = vmatmul.mubr.msk.bf16.vlgmr.msra.gmra.mxu0 %vm2531_vm2, %v2818_v43 }
 0x6a2   : > { %7971 = vmatpush3.bf16.msra.mxu0 %v2941_v45  ;;  %7972 = vmatprep.mubr.msk.bf16.mxu0 %vm9773_vm1, %v9772_v8 }
 0x6a3   : > { %7984 = vmatprep.subr.bf16.mxu0 %v9772_v8 }
 0x6a9   : > { %7973 = vmatmul.mubr.msk.bf16.vlgmr.msra.gmra.mxu0 %vm2531_vm2, %v2934_v47 }
 0x6aa   : > { %7988 = vmatprep.mubr.msk.bf16.mxu0 %vm9773_vm1, %v9772_v8 }
 0x72c   : > { %v2633_v48 = vpop.f32.mrf.mxu0 }
 0x72d   : > { %2639 = vst.msk [vmem:[#allocation2] sm:$0xff] %vm2531_vm2, %v2633_v48 }
 0x72e   : > { %v7938_v49 = vpop.f32.mrf.mxu0 }
 0x730   : > { %v2636_v50 = vpop.f32.mrf.mxu0 }
 0x732   : > { %v7939_v51 = vpop.f32.mrf.mxu0 }
 0x73a   : > { %v2745_v52 = vpop.f32.mrf.mxu0 }
 0x73b   : > { %2752 = vrot.lane.b32.xlu0 %v2745_v52, %s11185_s23  ;;  %s11187_s23 = smov 24  }
 0x73c   : > { %v7950_v53 = vpop.f32.mrf.mxu0 }
 0x73e   : > { %v2748_v54 = vpop.f32.mrf.mxu0 }
 0x740   : > { %v7951_v55 = vpop.f32.mrf.mxu0 }
 0x761   : > { %v2861_v58 = vpop.f32.mrf.mxu0 }
 0x762   : > { %2868 = vrot.lane.b32.xlu1 %v2861_v58, %s11189_s4  ;;  %s11339_s4 = sld [smem:[#allocation107_spill]] }
 0x763   : > { %v7962_v59 = vpop.f32.mrf.mxu0 }
 0x764   : > { %v8774_v59 = vld [vmem:[%s11340_s28 + $0x8] sm:$0xff]  }
 0x765   : > { %v2864_v60 = vpop.f32.mrf.mxu0 }
 0x766   : > { %v8775_v60 = vld [vmem:[%s11340_s28] sm:$0xff]  }
 0x767   : > { %v7963_v61 = vpop.f32.mrf.mxu0 }
 0x768   : > { %v8771_v24 = vld [vmem:[%s11339_s4 + $0x10] sm:$0xff]   ;;  %v8772_v35 = vld [vmem:[%s11339_s4 + $0x8] sm:$0xff]   ;;  %v8773_v36 = vld [vmem:[%s11339_s4] sm:$0xff]  }
 0x769   : > { %v2977_v62 = vpop.f32.mrf.mxu0 }
 0x76a   : > { %2984 = vrot.lane.b32.xlu0 %v2977_v62, %s11187_s23  ;;  %s11338_s23 = sld [smem:[#allocation106_spill]] }
 0x76b   : > { %v7974_v63 = vpop.f32.mrf.mxu0 }
 0x76d   : > { %v2980_v1 = vpop.f32.mrf.mxu0 }
 0x76f   : > { %v7975_v2 = vpop.f32.mrf.mxu0 }
 0x770   : > { %v8768_v22 = vld [vmem:[%s11338_s23 + $0x8] sm:$0xff]   ;;  %v8769_v23 = vld [vmem:[%s11338_s23] sm:$0xff]   ;;  %v7606_v2 = vld [vmem:[#allocation34] ss:$0 sm:$0xff] }
 0x771   : > { %7985 = vmatpush3.bf16.msra.mxu0 %v8768_v22 }
 0x772   : > { %7986 = vmatprep.subr.bf16.mxu0 %v9772_v8 }
 0x775   : > { %7987 = vmatpush3.bf16.msra.mxu0 %v8769_v23 }
 0x776   : > { %8004 = vmatprep.subr.bf16.mxu0 %v9772_v8 }
 0x7ad   : > { %v2753_v3 = vpop.permute.xlu0 %2752 }
 0x7ae   : > { %2756 = vst.msk [vmem:[#allocation2] sm:$0xff] %vm2755_vm4, %v2753_v3 }
 0x7d4   : > { %v2869_v4 = vpop.permute.xlu1 %2868 }
 0x7d5   : > { %2872 = vst.msk [vmem:[#allocation2] sm:$0xff] %vm2871_vm5, %v2869_v4  ;;  %v7607_v4 = vld [vmem:[#allocation32] ss:$0 sm:$0xff] }
 0x7dc   : > { %v2985_v5 = vpop.permute.xlu0 %2984 }
 0x7dd   : > { %2988 = vst.msk [vmem:[#allocation2] sm:$0xff] %vm2987_vm6, %v2985_v5 }
 0x7e4   : > { %v2989_v6 = vld [vmem:[#allocation2] sm:$0xff] }
 0x7e5   : > { %v2990_v7 = vpack.c.bf16 %v2989_v6, %v2989_v6 }
 0x7e7   : > { %7981 = vmatmul.mubr.msk.bf16.vlgmr.msra.gmra.mxu1 %vm2423_vm0, %v2990_v7 }
 0x7e8   : > { %8000 = vmatprep.mubr.msk.bf16.mxu1 %vm9773_vm1, %v9772_v8 }
 0x8a7   : > { %v3051_v10 = vpop.f32.mrf.mxu1 }
 0x8a8   : > { %v3052_v11 = vadd.f32 %v7590_v9, %v3051_v10  ;;  %v7608_v9 = vld [vmem:[#allocation31] ss:$0 sm:$0xff] }
 0x8a9   : > { %v7982_v12 = vpop.f32.mrf.mxu1 }
 0x8aa   : > { %v3057_v13 = vadd.f32 %v3052_v11, %v10399_v0  ;;  %v8770_v0 = vld [vmem:[%s11339_s4 + $0x18] sm:$0xff]   ;;  %s11349_s4 = smov 16  }
 0x8ab   : > { %v3054_v14 = vpop.f32.mrf.mxu1  ;;  %7993 = vmatpush3.bf16.msra.mxu1 %v8770_v0 }
 0x8ac   : > { %v3060_v15 = vsel %vm2423_vm0, %v3057_v13, 0.0  ;;  %7994 = vmatprep.subr.bf16.mxu1 %v9772_v8 }
 0x8ad   : > { %3061 = vadd.xlane.f32.xlu1 %v3060_v15  ;;  %v7983_v16 = vpop.f32.mrf.mxu1 }
 0x8af   : > { %7995 = vmatpush3.bf16.msra.mxu1 %v8771_v24 }
 0x8b0   : > { %7996 = vmatprep.subr.bf16.mxu1 %v9772_v8 }
 0x8b3   : > { %7997 = vmatpush3.bf16.msra.mxu1 %v8772_v35 }
 0x8b4   : > { %7998 = vmatprep.subr.bf16.mxu1 %v9772_v8 }
 0x8b7   : > { %7999 = vmatpush3.bf16.msra.mxu1 %v8773_v36 }
 0x8b8   : > { %8018 = vmatprep.subr.bf16.mxu1 %v9772_v8 }
 0x936   : > { %v3062_v17 = vpop.xlane.xlu1 %3061 }
 0x937   : > { %v3063_v18 = vmul.f32 0.03125, %v3062_v17 }
 0x939   : > { %v3064_v19 = vsub.f32 %v3057_v13, %v3063_v18 }
 0x93b   : > { %v3065_v20 = vmul.f32 %v3064_v19, %v3064_v19 }
 0x93d   : > { %v3066_v21 = vsel %vm2423_vm0, %v3065_v20, 0.0 }
 0x93e   : > { %3067 = vadd.xlane.f32.xlu0 %v3066_v21 }
 0x9c7   : > { %v3068_v26 = vpop.xlane.xlu0 %3067 }
 0x9c8   : > { %v3069_v27 = vmul.f32 0.03125, %v3068_v26 }
 0x9ca   : > { %v3070_v28 = vadd.f32 1e-05, %v3069_v27 }
 0x9cc   : > { %8836 = vrsqrt.f32 %v3070_v28 }
 0x9d9   : > { %v8837_v29 = vpop.eup %8836 }
 0x9da   : > { %v3072_v25 = vmul.f32 %v8837_v29, %v3064_v19 }
 0x9dc   : > { %v3079_v32 = vmul.f32 %v7594_v30, %v3072_v25 }
 0x9de   : > { %v3086_v33 = vadd.f32 %v7595_v31, %v3079_v32 }
 0x9e0   : > { %v3087_v34 = vpack.c.bf16 %v3086_v33, %v3086_v33 }
 0x9e2   : > { %7989 = vmatmul.mubr.msk.bf16.vlgmr.msra.gmra.mxu0 %vm2423_vm0, %v3087_v34 }
 0x9e3   : > { %8008 = vmatprep.mubr.msk.bf16.mxu0 %vm9773_vm1, %v9772_v8  ;;  %8005 = vmatpush3.bf16.msra.mxu0 %v8774_v59 }
 0x9e4   : > { %8006 = vmatprep.subr.bf16.mxu0 %v9772_v8 }
 0x9e7   : > { %8007 = vmatpush3.bf16.msra.mxu0 %v8775_v60 }
 0x9e8   : > { %8012 = vmatprep.subr.bf16.mxu0 %v9772_v8 }
 0xaa2   : > { %v3148_v38 = vpop.f32.mrf.mxu0 }
 0xaa3   : > { %v3149_v39 = vadd.f32 %v7596_v37, %v3148_v38 }
 0xaa4   : > { %v7990_v41 = vpop.f32.mrf.mxu0 }
 0xaa5   : > { %v3154_v42 = vmax.f32 %v3149_v39, 0.0 }
 0xaa6   : > { %v3151_v43 = vpop.f32.mrf.mxu0 }
 0xaa7   : > { %v3155_v44 = vpack.c.bf16 %v3154_v42, %v3154_v42 }
 0xaa8   : > { %v7991_v45 = vpop.f32.mrf.mxu0 }
 0xaa9   : > { %8001 = vmatmul.mubr.msk.bf16.vlgmr.msra.gmra.mxu1 %vm3195_vm7, %v3155_v44 }
 0xaaa   : > { %8020 = vmatprep.mubr.msk.bf16.mxu1 %vm9773_vm1, %v9772_v8 }
 0xb69   : > { %v3233_v47 = vpop.f32.mrf.mxu1 }
 0xb6a   : > { %v3234_v48 = vadd.f32 %v7600_v46, %v3233_v47 }
 0xb6b   : > { %v8002_v49 = vpop.f32.mrf.mxu1 }
 0xb6c   : > { %v10533_v50 = vadd.f32 %v3234_v48, %v3057_v13 }
 0xb6d   : > { %v3236_v51 = vpop.f32.mrf.mxu1 }
 0xb6e   : > { %v3242_v52 = vsel %vm2423_vm0, %v10533_v50, 0.0 }
 0xb6f   : > { %3243 = vadd.xlane.f32.xlu0 %v3242_v52  ;;  %v8003_v53 = vpop.f32.mrf.mxu1 }
 0xbf8   : > { %v3244_v54 = vpop.xlane.xlu0 %3243 }
 0xbf9   : > { %v3245_v55 = vmul.f32 0.03125, %v3244_v54 }
 0xbfb   : > { %v3246_v56 = vsub.f32 %v10533_v50, %v3245_v55 }
 0xbfd   : > { %v3247_v57 = vmul.f32 %v3246_v56, %v3246_v56 }
 0xbff   : > { %v3248_v58 = vsel %vm2423_vm0, %v3247_v57, 0.0 }
 0xc00   : > { %3249 = vadd.xlane.f32.xlu1 %v3248_v58 }
 0xc89   : > { %v3250_v61 = vpop.xlane.xlu1 %3249 }
 0xc8a   : > { %v3251_v62 = vmul.f32 0.03125, %v3250_v61 }
 0xc8c   : > { %v3252_v63 = vadd.f32 1e-05, %v3251_v62 }
 0xc8e   : > { %8838 = vrsqrt.f32 %v3252_v63 }
 0xc9b   : > { %v8839_v1 = vpop.eup %8838 }
 0xc9c   : > { %v3254_v3 = vmul.f32 %v8839_v1, %v3246_v56 }
 0xc9e   : > { %v3261_v5 = vmul.f32 %v7606_v2, %v3254_v3 }
 0xca0   : > { %v3268_v6 = vadd.f32 %v7607_v4, %v3261_v5 }
 0xca2   : > { %v3269_v7 = vpack.c.bf16 %v3268_v6, %v3268_v6 }
 0xca4   : > { %8009 = vmatmul.mubr.msk.bf16.vlgmr.msra.gmra.mxu0 %vm2423_vm0, %v3269_v7 }
 0xca5   : > { %8014 = vmatprep.mubr.msk.bf16.mxu0 %vm9773_vm1, %v9772_v8 }
 0xd64   : > { %v3330_v10 = vpop.f32.mrf.mxu0 }
 0xd65   : > { %v3331_v11 = vadd.f32 %v7608_v9, %v3330_v10 }
 0xd66   : > { %v8010_v12 = vpop.f32.mrf.mxu0 }
 0xd67   : > { %v3336_v13 = vmul.f32 0.35355338, %v3331_v11  ;;  %v10546_v14 = vpack.c.bf16 %v3331_v11, %v3331_v11 }
 0xd68   : > { %v3333_v15 = vpop.f32.mrf.mxu0 }
 0xd69   : > { %3452 = vrot.lane.b32.xlu1 %v10546_v14, %s11204_s10  ;;  %3340 = vrot.lane.b32.xlu0 %v10546_v14, %s11202_s0  ;;  %v3337_v17 = vpack.c.bf16 %v3336_v13, %v3336_v13  ;;  %s11346_s0 = sld [smem:[#allocation112_spill]]  ;;  %s11347_s10 = smov 8  }
 0xd6a   : > { %v8011_v16 = vpop.f32.mrf.mxu0 }
 0xd6d   : > { %3567 = vrot.lane.b32.xlu0 %v10546_v14, %s11200_s6  ;;  %3450 = vrot.lane.b32.xlu1 %v3337_v17, %s11198_s1  ;;  %s11344_s1 = smov 48   ;;  %s11345_s6 = smov 40  }
 0xd71   : > { %3682 = vrot.lane.b32.xlu0 %v10546_v14, %s11196_s16  ;;  %3565 = vrot.lane.b32.xlu1 %v3337_v17, %s11194_s26  ;;  %s11342_s26 = smov 64   ;;  %s11343_s16 = smov 56  }
 0xd75   : > { %3680 = vrot.lane.b32.xlu1 %v3337_v17, %s11341_s2 }
 0xddb   : > { %v3341_v18 = vpop.permute.xlu0 %3340  ;;  %v3453_v20 = vpop.permute.xlu1 %3452 }
 0xddc   : > { %v3346_v19 = vsel %vm2531_vm2, %v3341_v18, 0  ;;  %v3458_v21 = vsel %vm2531_vm2, %v3453_v20, 0 }
 0xddd   : > { %8013 = vmatpush3.bf16.xpose.msra.mxu0 %v3346_v19 }
 0xdde   : > { %8024 = vmatprep.subr.bf16.mxu0 %v9772_v8 }
 0xddf   : > { %v3568_v22 = vpop.permute.xlu0 %3567  ;;  %v3451_v23 = vpop.permute.xlu1 %3450 }
 0xde0   : > { %v3573_v0 = vsel %vm2531_vm2, %v3568_v22, 0 }
 0xde3   : > { %v3683_v24 = vpop.permute.xlu0 %3682  ;;  %v3566_v26 = vpop.permute.xlu1 %3565 }
 0xde4   : > { %8015 = vmatmul.mubr.msk.bf16.vlgmr.msra.gmra.mxu0 %vm2531_vm2, %v3337_v17  ;;  %v3688_v27 = vsel %vm2531_vm2, %v3683_v24, 0 }
 0xde5   : > { %8025 = vmatpush3.bf16.xpose.msra.mxu0 %v3458_v21  ;;  %8026 = vmatprep.mubr.msk.bf16.mxu0 %vm9773_vm1, %v9772_v8 }
 0xde6   : > { %8036 = vmatprep.subr.bf16.mxu0 %v9772_v8 }
 0xde7   : > { %v3681_v28 = vpop.permute.xlu1 %3680 }
 0xdec   : > { %8027 = vmatmul.mubr.msk.bf16.vlgmr.msra.gmra.mxu0 %vm2531_vm2, %v3451_v23 }
 0xded   : > { %8037 = vmatpush3.bf16.xpose.msra.mxu0 %v3573_v0  ;;  %8038 = vmatprep.mubr.msk.bf16.mxu0 %vm9773_vm1, %v9772_v8 }
 0xdee   : > { %8048 = vmatprep.subr.bf16.mxu0 %v9772_v8 }
 0xdf4   : > { %8039 = vmatmul.mubr.msk.bf16.vlgmr.msra.gmra.mxu0 %vm2531_vm2, %v3566_v26 }
 0xdf5   : > { %8049 = vmatpush3.bf16.xpose.msra.mxu0 %v3688_v27  ;;  %8050 = vmatprep.mubr.msk.bf16.mxu0 %vm9773_vm1, %v9772_v8 }
 0xdf6   : > { %8060 = vmatprep.subr.bf16.mxu0 %v9772_v8 }
 0xdfc   : > { %8051 = vmatmul.mubr.msk.bf16.vlgmr.msra.gmra.mxu0 %vm2531_vm2, %v3681_v28 }
 0xdfd   : > { %8064 = vmatprep.mubr.msk.bf16.mxu0 %vm9773_vm1, %v9772_v8 }
 0xea4   : > { %v3382_v29 = vpop.f32.mrf.mxu0 }
 0xea5   : > { %v3383_v30 = vadd.f32 %v10456_v40, %v3382_v29 }
 0xea6   : > { %v8016_v25 = vpop.f32.mrf.mxu0 }
 0xea7   : > { %v3388_v31 = vsel %vm2531_vm2, %v3383_v30, -inf }
 0xea8   : > { %3389 = vmax.xlane.f32.xlu0 %v3388_v31  ;;  %v3385_v32 = vpop.f32.mrf.mxu0 }
 0xeaa   : > { %v8017_v33 = vpop.f32.mrf.mxu0 }
 0xeac   : > { %v3494_v34 = vpop.f32.mrf.mxu0 }
 0xead   : > { %v3495_v35 = vadd.f32 %v10456_v40, %v3494_v34 }
 0xeae   : > { %v8028_v36 = vpop.f32.mrf.mxu0 }
 0xeaf   : > { %v3500_v37 = vsel %vm2531_vm2, %v3495_v35, -inf }
 0xeb0   : > { %3501 = vmax.xlane.f32.xlu1 %v3500_v37  ;;  %v3497_v38 = vpop.f32.mrf.mxu0 }
 0xeb2   : > { %v8029_v39 = vpop.f32.mrf.mxu0 }
 0xeb4   : > { %v3609_v41 = vpop.f32.mrf.mxu0 }
 0xeb5   : > { %v3610_v42 = vadd.f32 %v10456_v40, %v3609_v41 }
 0xeb6   : > { %v8040_v43 = vpop.f32.mrf.mxu0 }
 0xeb7   : > { %v3615_v44 = vsel %vm2531_vm2, %v3610_v42, -inf  ;;  %v8776_v43 = vld [vmem:[%s11346_s0 + $0x8] sm:$0xff]  }
 0xeb8   : > { %3616 = vmax.xlane.f32.xlu0 %v3615_v44  ;;  %v3612_v45 = vpop.f32.mrf.mxu0  ;;  %8061 = vmatpush3.bf16.msra.mxu0 %v8776_v43  ;;  %v8777_v44 = vld [vmem:[%s11346_s0] sm:$0xff]   ;;  %s11353_s0 = sld [smem:[#allocation80_spill]]  ;;  %v7626_v43 = vld [vmem:[#allocation35] ss:$0 sm:$0xff] }
 0xeb9   : > { %8062 = vmatprep.subr.bf16.mxu0 %v9772_v8 }
 0xeba   : > { %v8041_v46 = vpop.f32.mrf.mxu0 }
 0xebc   : > { %v3724_v47 = vpop.f32.mrf.mxu0  ;;  %8063 = vmatpush3.bf16.msra.mxu0 %v8777_v44 }
 0xebd   : > { %v3725_v48 = vadd.f32 %v10456_v40, %v3724_v47  ;;  %8076 = vmatprep.subr.bf16.mxu0 %v9772_v8 }
 0xebe   : > { %v8052_v49 = vpop.f32.mrf.mxu0 }
 0xebf   : > { %v3730_v51 = vsel %vm2531_vm2, %v3725_v48, -inf }
 0xec0   : > { %3731 = vmax.xlane.f32.xlu0 %v3730_v51  ;;  %v3727_v52 = vpop.f32.mrf.mxu0 }
 0xec2   : > { %v8053_v53 = vpop.f32.mrf.mxu0 }
 0xf31   : > { %v3390_v54 = vpop.xlane.xlu0 %3389 }
 0xf32   : > { %v3391_v55 = vsub.f32 %v3383_v30, %v3390_v54  ;;  %v10629_v54 = vld [vmem:[%s2406_s8] sm:$0xff]  ;;  %s11352_s8 = sld [smem:[#allocation78_spill]] }
 0xf34   : > { %v3392_v56 = vmul.f32 1.442695, %v3391_v55  ;;  %v4048_v55 = vsel %vm2423_vm0, %v10629_v54, 0.0 }
 0xf36   : > { %8840 = vpow2.f32 %v3392_v56 }
 0xf39   : > { %v3502_v57 = vpop.xlane.xlu1 %3501 }
 0xf3a   : > { %v3503_v58 = vsub.f32 %v3495_v35, %v3502_v57 }
 0xf3c   : > { %v3504_v59 = vmul.f32 1.442695, %v3503_v58 }
 0xf3e   : > { %8842 = vpow2.f32 %v3504_v59 }
 0xf41   : > { %v3617_v62 = vpop.xlane.xlu0 %3616 }
 0xf42   : > { %v3618_v6 = vsub.f32 %v3610_v42, %v3617_v62 }
 0xf43   : > { %v8841_v60 = vpop.eup %8840 }
 0xf44   : > { %v3394_v61 = vsel %vm2531_vm2, %v8841_v60, 0.0  ;;  %v3619_v7 = vmul.f32 1.442695, %v3618_v6 }
 0xf45   : > { %3395 = vadd.xlane.f32.xlu1 %v3394_v61 }
 0xf49   : > { %v3732_v40 = vpop.xlane.xlu0 %3731 }
 0xf4a   : > { %v3733_v63 = vsub.f32 %v3725_v48, %v3732_v40  ;;  %v7620_v40 = vld [vmem:[#allocation29] ss:$0 sm:$0xff] }
 0xf4b   : > { %v8843_v1 = vpop.eup %8842 }
 0xf4c   : > { %v3734_v2 = vmul.f32 1.442695, %v3733_v63  ;;  %v3506_v3 = vsel %vm2531_vm2, %v8843_v1, 0.0 }
 0xf4d   : > { %3507 = vadd.xlane.f32.xlu0 %v3506_v3 }
 0xf4e   : > { %8844 = vpow2.f32 %v3734_v2 }
 0xf4f   : > { %8846 = vpow2.f32 %v3619_v7 }
 0xf56   : > { %3400 = vrot.lane.b32.xlu1 %v10546_v14, %s11342_s26 }
 0xf5b   : > { %v8845_v4 = vpop.eup %8844 }
 0xf5c   : > { %v3736_v5 = vsel %vm2531_vm2, %v8845_v4, 0.0  ;;  %v8847_v9 = vpop.eup %8846 }
 0xf5d   : > { %3737 = vadd.xlane.f32.xlu0 %v3736_v5  ;;  %v3621_v10 = vsel %vm2531_vm2, %v8847_v9, 0.0 }
 0xf73   : > { %3512 = vrot.lane.b32.xlu0 %v10546_v14, %s11343_s16 }
 0xf7a   : > { %3622 = vadd.xlane.f32.xlu1 %v3621_v10 }
 0xf8b   : > { %3627 = vrot.lane.b32.xlu1 %v10546_v14, %s11344_s1 }
 0xf8f   : > { %3742 = vrot.lane.b32.xlu1 %v10546_v14, %s11345_s6 }
 0xfce   : > { %v3396_v11 = vpop.xlane.xlu1 %3395 }
 0xfcf   : > { %8848 = vrcp.f32 %v3396_v11 }
 0xfd2   : > { %v3401_v12 = vpop.permute.xlu1 %3400 }
 0xfd3   : > { %v3406_v13 = vsel %vm2595_vm3, %v3401_v12, 0 }
 0xfd4   : > { %8019 = vmatpush3.bf16.msra.mxu1 %v3406_v13 }
 0xfd5   : > { %8030 = vmatprep.subr.bf16.mxu1 %v9772_v8 }
 0xfd6   : > { %v3508_v15 = vpop.xlane.xlu0 %3507 }
 0xfd7   : > { %8850 = vrcp.f32 %v3508_v15 }
 0xfdc   : > { %v8849_v16 = vpop.eup %8848 }
 0xfdd   : > { %v3398_v17 = vmul.f32 %v8849_v16, %v8841_v60  ;;  %v8778_v16 = vld [vmem:[%s11351_s3 + $0x8] sm:$0xff]  }
 0xfdf   : > { %v3399_v18 = vpack.c.bf16 %v3398_v17, %v3398_v17  ;;  %v8779_v17 = vld [vmem:[%s11351_s3] sm:$0xff]   ;;  %s11354_s3 = sld [smem:[#allocation77_spill]] }
 0xfe1   : > { %8021 = vmatmul.mubr.msk.bf16.vlgmr.msra.gmra.mxu1 %vm2531_vm2, %v3399_v18  ;;  %v8782_v18 = vld [vmem:[%s11281_s13 + $0x18] sm:$0xff]  }
 0xfe2   : > { %8032 = vmatprep.mubr.msk.bf16.mxu1 %vm9773_vm1, %v9772_v8 }
 0xfe4   : > { %v8851_v19 = vpop.eup %8850 }
 0xfe5   : > { %v3510_v20 = vmul.f32 %v8851_v19, %v8843_v1  ;;  %v8783_v19 = vld [vmem:[%s11281_s13 + $0x10] sm:$0xff]  }
 0xfe6   : > { %v3738_v14 = vpop.xlane.xlu0 %3737 }
 0xfe7   : > { %v3511_v23 = vpack.c.bf16 %v3510_v20, %v3510_v20 }
 0xfea   : > { %v3513_v21 = vpop.permute.xlu0 %3512 }
 0xfeb   : > { %v3518_v22 = vsel %vm2595_vm3, %v3513_v21, 0 }
 0xfec   : > { %8031 = vmatpush3.bf16.msra.mxu1 %v3518_v22 }
 0xfed   : > { %8042 = vmatprep.subr.bf16.mxu1 %v9772_v8 }
 0xfef   : > { %8033 = vmatmul.mubr.msk.bf16.vlgmr.msra.gmra.mxu1 %vm2531_vm2, %v3511_v23 }
 0xff0   : > { %8044 = vmatprep.mubr.msk.bf16.mxu1 %vm9773_vm1, %v9772_v8 }
0x1003   : > { %v3623_v0 = vpop.xlane.xlu1 %3622 }
0x1004   : > { %8852 = vrcp.f32 %v3623_v0 }
0x1005   : > { %8854 = vrcp.f32 %v3738_v14 }
0x1007   : > { %v3628_v24 = vpop.permute.xlu1 %3627 }
0x1008   : > { %v3633_v26 = vsel %vm2595_vm3, %v3628_v24, 0 }
0x1009   : > { %8043 = vmatpush3.bf16.msra.mxu1 %v3633_v26 }
0x100a   : > { %8054 = vmatprep.subr.bf16.mxu1 %v9772_v8 }
0x100b   : > { %v3743_v29 = vpop.permute.xlu1 %3742 }
0x100c   : > { %v3748_v31 = vsel %vm2595_vm3, %v3743_v29, 0  ;;  %v7625_v29 = vld [vmem:[#allocation38] ss:$0 sm:$0xff] }
0x1011   : > { %v8853_v27 = vpop.eup %8852 }
0x1012   : > { %v3625_v28 = vmul.f32 %v8853_v27, %v8847_v9  ;;  %v8855_v25 = vpop.eup %8854  ;;  %v7624_v27 = vld [vmem:[#allocation40] ss:$0 sm:$0xff] }
0x1013   : > { %v3740_v32 = vmul.f32 %v8855_v25, %v8845_v4 }
0x1014   : > { %v3626_v30 = vpack.c.bf16 %v3625_v28, %v3625_v28 }
0x1015   : > { %v3741_v33 = vpack.c.bf16 %v3740_v32, %v3740_v32 }
0x1016   : > { %8045 = vmatmul.mubr.msk.bf16.vlgmr.msra.gmra.mxu1 %vm2531_vm2, %v3626_v30 }
0x1017   : > { %8055 = vmatpush3.bf16.msra.mxu1 %v3748_v31  ;;  %8056 = vmatprep.mubr.msk.bf16.mxu1 %vm9773_vm1, %v9772_v8  ;;  %v7636_v31 = vld [vmem:[%s11352_s8] ss:$0 sm:$0xff]  ;;  %s11355_s8 = sld [smem:[#allocation76_spill]] }
0x1018   : > { %8068 = vmatprep.subr.bf16.mxu1 %v9772_v8 }
0x101e   : > { %8057 = vmatmul.mubr.msk.bf16.vlgmr.msra.gmra.mxu1 %vm2531_vm2, %v3741_v33  ;;  %v8780_v33 = vld [vmem:[%s11353_s0 + $0x8] sm:$0xff]  }
0x101f   : > { %8072 = vmatprep.mubr.msk.bf16.mxu1 %vm9773_vm1, %v9772_v8  ;;  %8069 = vmatpush3.bf16.msra.mxu1 %v8778_v16 }
0x1020   : > { %8070 = vmatprep.subr.bf16.mxu1 %v9772_v8 }
0x1023   : > { %8071 = vmatpush3.bf16.msra.mxu1 %v8779_v17 }
0x1024   : > { %8088 = vmatprep.subr.bf16.mxu1 %v9772_v8 }
0x10a1   : > { %v3442_v34 = vpop.f32.mrf.mxu1 }
0x10a2   : > { %3448 = vst.msk [vmem:[#allocation2] sm:$0xff] %vm2531_vm2, %v3442_v34 }
0x10a3   : > { %v8022_v35 = vpop.f32.mrf.mxu1 }
0x10a5   : > { %v3445_v36 = vpop.f32.mrf.mxu1 }
0x10a6   : > { %v7637_v36 = vld [vmem:[%s11354_s3] ss:$0 sm:$0xff]  ;;  %s11356_s3 = smov 88  }
0x10a7   : > { %v8023_v37 = vpop.f32.mrf.mxu1 }
0x10a8   : > { %v8781_v37 = vld [vmem:[%s11353_s0] sm:$0xff]   ;;  %s11357_s0 = smov 96  }
0x10af   : > { %v3554_v38 = vpop.f32.mrf.mxu1 }
0x10b0   : > { %3561 = vrot.lane.b32.xlu0 %v3554_v38, %s11347_s10 }
0x10b1   : > { %v8034_v39 = vpop.f32.mrf.mxu1 }
0x10b3   : > { %v3557_v41 = vpop.f32.mrf.mxu1 }
0x10b4   : > { %v8784_v41 = vld [vmem:[%s11281_s13 + $0x8] sm:$0xff]  }
0x10b5   : > { %v8035_v42 = vpop.f32.mrf.mxu1 }
0x10b6   : > { %v8785_v42 = vld [vmem:[%s11281_s13] sm:$0xff]   ;;  %s11361_s13 = smov 112  }
0x10d6   : > { %v3669_v45 = vpop.f32.mrf.mxu1 }
0x10d7   : > { %3676 = vrot.lane.b32.xlu1 %v3669_v45, %s11349_s4 }
0x10d8   : > { %v8046_v46 = vpop.f32.mrf.mxu1 }
0x10da   : > { %v3672_v47 = vpop.f32.mrf.mxu1 }
0x10dc   : > { %v8047_v48 = vpop.f32.mrf.mxu1 }
0x10de   : > { %v3784_v49 = vpop.f32.mrf.mxu1 }
0x10df   : > { %3791 = vrot.lane.b32.xlu0 %v3784_v49, %s11350_s5 }
0x10e0   : > { %v8058_v51 = vpop.f32.mrf.mxu1 }
0x10e2   : > { %v3787_v52 = vpop.f32.mrf.mxu1 }
0x10e3   : > { %v7638_v52 = vld [vmem:[%s11355_s8] ss:$0 sm:$0xff]  ;;  %s11358_s8 = smov 80  }
0x10e4   : > { %v8059_v53 = vpop.f32.mrf.mxu1 }
0x10fe   : > { %4049 = vadd.xlane.f32.xlu0 %v4048_v55 }
0x1122   : > { %v3562_v56 = vpop.permute.xlu0 %3561 }
0x1123   : > { %3564 = vst.msk [vmem:[#allocation2] sm:$0xff] %vm2755_vm4, %v3562_v56 }
0x1149   : > { %v3677_v57 = vpop.permute.xlu1 %3676 }
0x114a   : > { %3679 = vst.msk [vmem:[#allocation2] sm:$0xff] %vm2871_vm5, %v3677_v57 }
0x1151   : > { %v3792_v58 = vpop.permute.xlu0 %3791 }
0x1152   : > { %3794 = vst.msk [vmem:[#allocation2] sm:$0xff] %vm2987_vm6, %v3792_v58 }
0x1159   : > { %v3795_v59 = vld [vmem:[#allocation2] sm:$0xff] }
0x115a   : > { %v3796_v60 = vpack.c.bf16 %v3795_v59, %v3795_v59 }
0x115c   : > { %8065 = vmatmul.mubr.msk.bf16.vlgmr.msra.gmra.mxu0 %vm2423_vm0, %v3796_v60 }
0x115d   : > { %8084 = vmatprep.mubr.msk.bf16.mxu0 %vm9773_vm1, %v9772_v8  ;;  %8077 = vmatpush3.bf16.msra.mxu0 %v8782_v18  ;;  %v9788_v18 = vmov -1e+30  }
0x115e   : > { %8078 = vmatprep.subr.bf16.mxu0 %v9772_v8 }
0x1161   : > { %8079 = vmatpush3.bf16.msra.mxu0 %v8783_v19 }
0x1162   : > { %8080 = vmatprep.subr.bf16.mxu0 %v9772_v8 }
0x1165   : > { %8081 = vmatpush3.bf16.msra.mxu0 %v8784_v41 }
0x1166   : > { %8082 = vmatprep.subr.bf16.mxu0 %v9772_v8 }
0x1169   : > { %8083 = vmatpush3.bf16.msra.mxu0 %v8785_v42 }
0x116a   : > { %8102 = vmatprep.subr.bf16.mxu0 %v9772_v8 }
0x1187   : > { %v4050_v61 = vpop.xlane.xlu0 %4049 }
0x1188   : > { %v4051_v62 = vmul.f32 0.03125, %v4050_v61 }
0x118a   : > { %v4052_v63 = vsub.f32 %v10629_v54, %v4051_v62 }
0x118c   : > { %v4053_v5 = vmul.f32 %v4052_v63, %v4052_v63 }
0x118e   : > { %v4054_v10 = vsel %vm2423_vm0, %v4053_v5, 0.0 }
0x121c   : > { %v3857_v1 = vpop.f32.mrf.mxu0 }
0x121d   : > { %v3858_v2 = vadd.f32 %v7620_v40, %v3857_v1 }
0x121e   : > { %v8066_v3 = vpop.f32.mrf.mxu0 }
0x121f   : > { %v10641_v4 = vadd.f32 %v3858_v2, %v10533_v50 }
0x1220   : > { %v3860_v6 = vpop.f32.mrf.mxu0 }
0x1221   : > { %v3866_v7 = vsel %vm2423_vm0, %v10641_v4, 0.0 }
0x1222   : > { %3867 = vadd.xlane.f32.xlu1 %v3866_v7  ;;  %v8067_v9 = vpop.f32.mrf.mxu0 }
0x1226   : > { %4055 = vadd.xlane.f32.xlu1 %v4054_v10 }
0x12ab   : > { %v3868_v11 = vpop.xlane.xlu1 %3867 }
0x12ac   : > { %v3869_v12 = vmul.f32 0.03125, %v3868_v11 }
0x12ae   : > { %v3870_v13 = vsub.f32 %v10641_v4, %v3869_v12 }
0x12af   : > { %v4056_v14 = vpop.xlane.xlu1 %4055 }
0x12b0   : > { %v3871_v15 = vmul.f32 %v3870_v13, %v3870_v13  ;;  %v4057_v20 = vmul.f32 0.03125, %v4056_v14  ;;  %v7642_v14 = vld [vmem:[%s2412_s19] ss:$0 sm:$0xff]  ;;  %s11364_s19 = sld [smem:[#allocation66_spill]] }
0x12b2   : > { %v3872_v50 = vsel %vm2423_vm0, %v3871_v15, 0.0  ;;  %v4058_v21 = vadd.f32 1e-05, %v4057_v20 }
0x12b3   : > { %3873 = vadd.xlane.f32.xlu0 %v3872_v50  ;;  %v4143_v50 = vlaneseq }
0x12b4   : > { %8856 = vrsqrt.f32 %v4058_v21 }
0x12b5   : > { %v4144_v16 = vshrl.u32 %v4143_v50, 7  ;;  %v4146_v17 = vand.u32 127, %v4143_v50 }
0x12b7   : > { %vm4147_vm8 = vcmp.le.s32.totalorder %v4146_v17, %v4144_v16 }
0x12b8   : > { %v4148_v19 = vsel %vm4147_vm8, 0.0, %v9788_v18 }
0x12b9   : > { %v10713_v20 = vadd.f32 %v7642_v14, %v4148_v19 }
0x12c1   : > { %v8857_v24 = vpop.eup %8856 }
0x12c2   : > { %v4060_v30 = vmul.f32 %v8857_v24, %v4052_v63 }
0x12c4   : > { %v4067_v35 = vmul.f32 %v7636_v31, %v4060_v30 }
0x12c6   : > { %v4074_v38 = vadd.f32 %v7637_v36, %v4067_v35 }
0x12c8   : > { %v4075_v39 = vpack.c.bf16 %v4074_v38, %v4074_v38 }
0x133c   : > { %v3874_v22 = vpop.xlane.xlu0 %3873 }
0x133d   : > { %v3875_v23 = vmul.f32 0.03125, %v3874_v22 }
0x133f   : > { %v3876_v0 = vadd.f32 1e-05, %v3875_v23 }
0x1341   : > { %8858 = vrsqrt.f32 %v3876_v0 }
0x134e   : > { %v8859_v26 = vpop.eup %8858 }
0x134f   : > { %v3878_v28 = vmul.f32 %v8859_v26, %v3870_v13 }
0x1351   : > { %v3885_v25 = vmul.f32 %v7624_v27, %v3878_v28 }
0x1353   : > { %v3892_v32 = vadd.f32 %v7625_v29, %v3885_v25 }
0x1355   : > { %v3893_v34 = vpack.c.bf16 %v3892_v32, %v3892_v32 }
0x1357   : > { %8073 = vmatmul.mubr.msk.bf16.vlgmr.msra.gmra.mxu1 %vm2423_vm0, %v3893_v34 }
0x1358   : > { %8089 = vmatpush3.bf16.msra.mxu1 %v8780_v33  ;;  %8092 = vmatprep.mubr.msk.bf16.mxu1 %vm9773_vm1, %v9772_v8 }
0x1359   : > { %8090 = vmatprep.subr.bf16.mxu1 %v9772_v8 }
0x135c   : > { %8091 = vmatpush3.bf16.msra.mxu1 %v8781_v37 }
0x135d   : > { %8096 = vmatprep.subr.bf16.mxu1 %v9772_v8 }
0x135f   : > { %8093 = vmatmul.mubr.msk.bf16.vlgmr.msra.gmra.mxu1 %vm2423_vm0, %v4075_v39 }
0x1360   : > { %8098 = vmatprep.mubr.msk.bf16.mxu1 %vm9773_vm1, %v9772_v8 }
0x1417   : > { %v3954_v44 = vpop.f32.mrf.mxu1 }
0x1418   : > { %v3955_v45 = vadd.f32 %v7626_v43, %v3954_v44 }
0x1419   : > { %v8074_v46 = vpop.f32.mrf.mxu1 }
0x141a   : > { %v3960_v47 = vmax.f32 %v3955_v45, 0.0 }
0x141b   : > { %v3957_v48 = vpop.f32.mrf.mxu1 }
0x141c   : > { %v3961_v49 = vpack.c.bf16 %v3960_v47, %v3960_v47 }
0x141d   : > { %v8075_v51 = vpop.f32.mrf.mxu1 }
0x141e   : > { %8085 = vmatmul.mubr.msk.bf16.vlgmr.msra.gmra.mxu0 %vm3195_vm7, %v3961_v49 }
0x141f   : > { %v4136_v53 = vpop.f32.mrf.mxu1  ;;  %8104 = vmatprep.mubr.msk.bf16.mxu0 %vm9773_vm1, %v9772_v8 }
0x1420   : > { %v4137_v55 = vadd.f32 %v7638_v52, %v4136_v53 }
0x1421   : > { %v8094_v56 = vpop.f32.mrf.mxu1 }
0x1422   : > { %v4142_v57 = vmul.f32 0.35355338, %v4137_v55  ;;  %v10676_v58 = vpack.c.bf16 %v4137_v55, %v4137_v55 }
0x1423   : > { %v4139_v59 = vpop.f32.mrf.mxu1 }
0x1424   : > { %4271 = vrot.lane.b32.xlu1 %v10676_v58, %s11356_s3  ;;  %4159 = vrot.lane.b32.xlu0 %v10676_v58, %s11357_s0  ;;  %v4156_v61 = vpack.c.bf16 %v4142_v57, %v4142_v57 }
0x1425   : > { %v8095_v60 = vpop.f32.mrf.mxu1 }
0x1428   : > { %4386 = vrot.lane.b32.xlu0 %v10676_v58, %s11358_s8  ;;  %4269 = vrot.lane.b32.xlu1 %v4156_v61, %s11359_s9 }
0x142c   : > { %4501 = vrot.lane.b32.xlu0 %v10676_v58, %s11360_s12  ;;  %4384 = vrot.lane.b32.xlu1 %v4156_v61, %s11361_s13 }
0x1430   : > { %4499 = vrot.lane.b32.xlu1 %v4156_v61, %s11341_s2 }
0x1496   : > { %v4160_v62 = vpop.permute.xlu0 %4159  ;;  %v4272_v63 = vpop.permute.xlu1 %4271 }
0x1497   : > { %v4165_v40 = vsel %vm2531_vm2, %v4160_v62, 0  ;;  %v4277_v1 = vsel %vm2531_vm2, %v4272_v63, 0 }
0x1498   : > { %8097 = vmatpush3.bf16.xpose.msra.mxu1 %v4165_v40 }
0x1499   : > { %8108 = vmatprep.subr.bf16.mxu1 %v9772_v8 }
0x149a   : > { %v4387_v2 = vpop.permute.xlu0 %4386  ;;  %v4270_v3 = vpop.permute.xlu1 %4269 }
0x149b   : > { %v4392_v5 = vsel %vm2531_vm2, %v4387_v2, 0 }
0x149e   : > { %v4502_v6 = vpop.permute.xlu0 %4501  ;;  %v4385_v7 = vpop.permute.xlu1 %4384 }
0x149f   : > { %8099 = vmatmul.mubr.msk.bf16.vlgmr.msra.gmra.mxu1 %vm2531_vm2, %v4156_v61  ;;  %v4507_v9 = vsel %vm2531_vm2, %v4502_v6, 0 }
0x14a0   : > { %8109 = vmatpush3.bf16.xpose.msra.mxu1 %v4277_v1  ;;  %8110 = vmatprep.mubr.msk.bf16.mxu1 %vm9773_vm1, %v9772_v8 }
0x14a1   : > { %8120 = vmatprep.subr.bf16.mxu1 %v9772_v8 }
0x14a2   : > { %v4500_v10 = vpop.permute.xlu1 %4499 }
0x14a7   : > { %8111 = vmatmul.mubr.msk.bf16.vlgmr.msra.gmra.mxu1 %vm2531_vm2, %v4270_v3 }
0x14a8   : > { %8121 = vmatpush3.bf16.xpose.msra.mxu1 %v4392_v5  ;;  %8122 = vmatprep.mubr.msk.bf16.mxu1 %vm9773_vm1, %v9772_v8 }
0x14a9   : > { %8132 = vmatprep.subr.bf16.mxu1 %v9772_v8 }
0x14af   : > { %8123 = vmatmul.mubr.msk.bf16.vlgmr.msra.gmra.mxu1 %vm2531_vm2, %v4385_v7 }
0x14b0   : > { %8133 = vmatpush3.bf16.xpose.msra.mxu1 %v4507_v9  ;;  %8134 = vmatprep.mubr.msk.bf16.mxu1 %vm9773_vm1, %v9772_v8 }
0x14b1   : > { %8144 = vmatprep.subr.bf16.mxu1 %v9772_v8 }
0x14b7   : > { %8135 = vmatmul.mubr.msk.bf16.vlgmr.msra.gmra.mxu1 %vm2531_vm2, %v4500_v10 }
0x14b8   : > { %8148 = vmatprep.mubr.msk.bf16.mxu1 %vm9773_vm1, %v9772_v8 }
0x14de   : > { %v10709_v11 = vpop.f32.mrf.mxu0 }
0x14e0   : > { %v8086_v12 = vpop.f32.mrf.mxu0 }
0x14e2   : > { %v4041_v13 = vpop.f32.mrf.mxu0 }
0x14e4   : > { %v8087_v15 = vpop.f32.mrf.mxu0 }
0x155f   : > { %v4201_v21 = vpop.f32.mrf.mxu1 }
0x1560   : > { %v4202_v22 = vadd.f32 %v4201_v21, %v10713_v20 }
0x1561   : > { %v8100_v23 = vpop.f32.mrf.mxu1 }
0x1562   : > { %v4207_v0 = vsel %vm2531_vm2, %v4202_v22, -inf }
0x1563   : > { %4208 = vmax.xlane.f32.xlu0 %v4207_v0  ;;  %v4204_v24 = vpop.f32.mrf.mxu1 }
0x1565   : > { %v8101_v26 = vpop.f32.mrf.mxu1 }
0x1567   : > { %v4313_v27 = vpop.f32.mrf.mxu1 }
0x1568   : > { %v4314_v28 = vadd.f32 %v4313_v27, %v10713_v20 }
0x1569   : > { %v8112_v29 = vpop.f32.mrf.mxu1 }
0x156a   : > { %v4319_v30 = vsel %vm2531_vm2, %v4314_v28, -inf }
0x156b   : > { %4320 = vmax.xlane.f32.xlu1 %v4319_v30  ;;  %v4316_v25 = vpop.f32.mrf.mxu1 }
0x156d   : > { %v8113_v31 = vpop.f32.mrf.mxu1 }
0x156f   : > { %v4428_v32 = vpop.f32.mrf.mxu1 }
0x1570   : > { %v4429_v33 = vadd.f32 %v4428_v32, %v10713_v20 }
0x1571   : > { %v8124_v34 = vpop.f32.mrf.mxu1 }
0x1572   : > { %v4434_v35 = vsel %vm2531_vm2, %v4429_v33, -inf }
0x1573   : > { %4435 = vmax.xlane.f32.xlu0 %v4434_v35  ;;  %v4431_v36 = vpop.f32.mrf.mxu1 }
0x1575   : > { %v8125_v37 = vpop.f32.mrf.mxu1 }
0x1576   : > { %v8786_v37 = vld [vmem:[%s11363_s17 + $0x8] sm:$0xff]  }
0x1577   : > { %v4543_v38 = vpop.f32.mrf.mxu1  ;;  %8145 = vmatpush3.bf16.msra.mxu1 %v8786_v37 }
0x1578   : > { %v4544_v39 = vadd.f32 %v4543_v38, %v10713_v20  ;;  %v8787_v38 = vld [vmem:[%s11363_s17] sm:$0xff]   ;;  %8146 = vmatprep.subr.bf16.mxu1 %v9772_v8  ;;  %s11366_s17 = sld [smem:[#allocation61_spill]] }
0x1579   : > { %v8136_v41 = vpop.f32.mrf.mxu1 }
0x157a   : > { %v4549_v42 = vsel %vm2531_vm2, %v4544_v39, -inf }
0x157b   : > { %4550 = vmax.xlane.f32.xlu0 %v4549_v42  ;;  %v4546_v43 = vpop.f32.mrf.mxu1  ;;  %8147 = vmatpush3.bf16.msra.mxu1 %v8787_v38 }
0x157c   : > { %8160 = vmatprep.subr.bf16.mxu1 %v9772_v8 }
0x157d   : > { %v8137_v44 = vpop.f32.mrf.mxu1 }
0x15ec   : > { %v4209_v45 = vpop.xlane.xlu0 %4208 }
0x15ed   : > { %v4210_v46 = vsub.f32 %v4202_v22, %v4209_v45 }
0x15ef   : > { %v4211_v47 = vmul.f32 1.442695, %v4210_v46 }
0x15f1   : > { %8860 = vpow2.f32 %v4211_v47 }
0x15f4   : > { %v4321_v48 = vpop.xlane.xlu1 %4320 }
0x15f5   : > { %v4322_v49 = vsub.f32 %v4314_v28, %v4321_v48 }
0x15f7   : > { %v4323_v51 = vmul.f32 1.442695, %v4322_v49 }
0x15f9   : > { %8862 = vpow2.f32 %v4323_v51 }
0x15fc   : > { %v4436_v55 = vpop.xlane.xlu0 %4435 }
0x15fd   : > { %v4437_v63 = vsub.f32 %v4429_v33, %v4436_v55  ;;  %v8788_v55 = vld [vmem:[%s11364_s19 + $0x8] sm:$0xff]  }
0x15fe   : > { %v8861_v52 = vpop.eup %8860 }
0x15ff   : > { %v4213_v53 = vsel %vm2531_vm2, %v8861_v52, 0.0  ;;  %v4438_v1 = vmul.f32 1.442695, %v4437_v63 }
0x1600   : > { %4214 = vadd.xlane.f32.xlu1 %v4213_v53 }
0x1604   : > { %v4551_v56 = vpop.xlane.xlu0 %4550 }
0x1605   : > { %v4552_v57 = vsub.f32 %v4544_v39, %v4551_v56 }
0x1606   : > { %v8863_v59 = vpop.eup %8862 }
0x1607   : > { %v4553_v60 = vmul.f32 1.442695, %v4552_v57  ;;  %v4325_v61 = vsel %vm2531_vm2, %v8863_v59, 0.0 }
0x1608   : > { %4326 = vadd.xlane.f32.xlu0 %v4325_v61 }
0x1609   : > { %8864 = vpow2.f32 %v4553_v60 }
0x160a   : > { %8866 = vpow2.f32 %v4438_v1 }
0x1611   : > { %4219 = vrot.lane.b32.xlu1 %v10676_v58, %s11342_s26 }
0x1616   : > { %v8865_v62 = vpop.eup %8864 }
0x1617   : > { %v4555_v40 = vsel %vm2531_vm2, %v8865_v62, 0.0  ;;  %v8867_v2 = vpop.eup %8866 }
0x1618   : > { %4556 = vadd.xlane.f32.xlu0 %v4555_v40  ;;  %v4440_v3 = vsel %vm2531_vm2, %v8867_v2, 0.0 }
0x162e   : > { %4331 = vrot.lane.b32.xlu0 %v10676_v58, %s11343_s16 }
0x1635   : > { %4441 = vadd.xlane.f32.xlu1 %v4440_v3 }
0x1646   : > { %4446 = vrot.lane.b32.xlu1 %v10676_v58, %s11344_s1 }
0x164a   : > { %4561 = vrot.lane.b32.xlu1 %v10676_v58, %s11345_s6 }
0x1689   : > { %v4215_v5 = vpop.xlane.xlu1 %4214 }
0x168a   : > { %8868 = vrcp.f32 %v4215_v5 }
0x168d   : > { %v4220_v6 = vpop.permute.xlu1 %4219 }
0x168e   : > { %v4225_v7 = vsel %vm2595_vm3, %v4220_v6, 0 }
0x168f   : > { %8103 = vmatpush3.bf16.msra.mxu0 %v4225_v7 }
0x1690   : > { %8114 = vmatprep.subr.bf16.mxu0 %v9772_v8 }
0x1691   : > { %v4327_v9 = vpop.xlane.xlu0 %4326 }
0x1692   : > { %8870 = vrcp.f32 %v4327_v9 }
0x1697   : > { %v8869_v10 = vpop.eup %8868 }
0x1698   : > { %v4217_v12 = vmul.f32 %v8869_v10, %v8861_v52  ;;  %v7630_v52 = vld [vmem:[#allocation37] ss:$0 sm:$0xff] }
0x1699   : > { %v4039_v56 = vadd.f32 %v7630_v52, %v10709_v11  ;;  %v7651_v11 = vld [vmem:[%s11365_s18] ss:$0 sm:$0xff]  ;;  %s11368_s18 = sld [smem:[#allocation65_spill]] }
0x169a   : > { %v4218_v13 = vpack.c.bf16 %v4217_v12, %v4217_v12 }
0x169b   : > { %v4044_v60 = vadd.f32 %v4039_v56, %v10641_v4 }
0x169c   : > { %8105 = vmatmul.mubr.msk.bf16.vlgmr.msra.gmra.mxu0 %vm2531_vm2, %v4218_v13 }
0x169d   : > { %8116 = vmatprep.mubr.msk.bf16.mxu0 %vm9773_vm1, %v9772_v8  ;;  %v10774_v61 = vpack.c.bf16 %v4044_v60, %v4044_v60 }
0x169f   : > { %v8871_v15 = vpop.eup %8870 }
0x16a0   : > { %v4329_v50 = vmul.f32 %v8871_v15, %v8863_v59  ;;  %v8789_v59 = vld [vmem:[%s11364_s19] sm:$0xff]   ;;  %s11367_s19 = sld [smem:[#allocation68_spill]] }
0x16a1   : > { %v4557_v58 = vpop.xlane.xlu0 %4556 }
0x16a2   : > { %v4330_v18 = vpack.c.bf16 %v4329_v50, %v4329_v50 }
0x16a5   : > { %v4332_v16 = vpop.permute.xlu0 %4331 }
0x16a6   : > { %v4337_v17 = vsel %vm2595_vm3, %v4332_v16, 0 }
0x16a7   : > { %8115 = vmatpush3.bf16.msra.mxu0 %v4337_v17  ;;  %v8790_v17 = vld [vmem:[%s11367_s19 + $0x8] sm:$0xff]  }
0x16a8   : > { %8126 = vmatprep.subr.bf16.mxu0 %v9772_v8 }
0x16aa   : > { %8117 = vmatmul.mubr.msk.bf16.vlgmr.msra.gmra.mxu0 %vm2531_vm2, %v4330_v18  ;;  %v8791_v18 = vld [vmem:[%s11367_s19] sm:$0xff]   ;;  %s11376_s19 = sld [smem:[#allocation71_spill]] }
0x16ab   : > { %8128 = vmatprep.mubr.msk.bf16.mxu0 %vm9773_vm1, %v9772_v8 }
0x16be   : > { %v4442_v19 = vpop.xlane.xlu1 %4441 }
0x16bf   : > { %8872 = vrcp.f32 %v4442_v19 }
0x16c0   : > { %8874 = vrcp.f32 %v4557_v58  ;;  %v7661_v58 = vld [vmem:[%s11366_s17] ss:$0 sm:$0xff]  ;;  %s11373_s17 = sld [smem:[#allocation73_spill]] }
0x16c2   : > { %v4447_v14 = vpop.permute.xlu1 %4446 }
0x16c3   : > { %v4452_v21 = vsel %vm2595_vm3, %v4447_v14, 0 }
0x16c4   : > { %8127 = vmatpush3.bf16.msra.mxu0 %v4452_v21 }
0x16c5   : > { %8138 = vmatprep.subr.bf16.mxu0 %v9772_v8 }
0x16c6   : > { %v4562_v0 = vpop.permute.xlu1 %4561 }
0x16c7   : > { %v4567_v27 = vsel %vm2595_vm3, %v4562_v0, 0 }
0x16cc   : > { %v8873_v22 = vpop.eup %8872 }
0x16cd   : > { %v4444_v23 = vmul.f32 %v8873_v22, %v8867_v2  ;;  %v8875_v26 = vpop.eup %8874 }
0x16ce   : > { %v4559_v28 = vmul.f32 %v8875_v26, %v8865_v62 }
0x16cf   : > { %v4445_v24 = vpack.c.bf16 %v4444_v23, %v4444_v23  ;;  %v7655_v23 = vld [vmem:[%s11368_s18] ss:$0 sm:$0xff]  ;;  %s11374_s18 = sld [smem:[#allocation74_spill]] }
0x16d0   : > { %v4560_v29 = vpack.c.bf16 %v4559_v28, %v4559_v28 }
0x16d1   : > { %8129 = vmatmul.mubr.msk.bf16.vlgmr.msra.gmra.mxu0 %vm2531_vm2, %v4445_v24  ;;  %v7656_v24 = vld [vmem:[%s11369_s21] ss:$0 sm:$0xff]  ;;  %s11371_s21 = sld [smem:[#allocation67_spill]] }
0x16d2   : > { %8139 = vmatpush3.bf16.msra.mxu0 %v4567_v27  ;;  %8140 = vmatprep.mubr.msk.bf16.mxu0 %vm9773_vm1, %v9772_v8 }
0x16d3   : > { %8152 = vmatprep.subr.bf16.mxu0 %v9772_v8 }
0x16d9   : > { %8141 = vmatmul.mubr.msk.bf16.vlgmr.msra.gmra.mxu0 %vm2531_vm2, %v4560_v29 }
0x16da   : > { %8156 = vmatprep.mubr.msk.bf16.mxu0 %vm9773_vm1, %v9772_v8  ;;  %8153 = vmatpush3.bf16.msra.mxu0 %v8790_v17 }
0x16db   : > { %8154 = vmatprep.subr.bf16.mxu0 %v9772_v8 }
0x16de   : > { %8155 = vmatpush3.bf16.msra.mxu0 %v8791_v18 }
0x16df   : > { %8168 = vmatprep.subr.bf16.mxu0 %v9772_v8 }
0x175c   : > { %v4261_v30 = vpop.f32.mrf.mxu0 }
0x175d   : > { %4267 = vst.msk [vmem:[#allocation2] sm:$0xff] %vm2531_vm2, %v4261_v30  ;;  %v7657_v30 = vld [vmem:[%s11370_s22] ss:$0 sm:$0xff]  ;;  %s11372_s22 = sld [smem:[#allocation62_spill]] }
0x175e   : > { %v8106_v25 = vpop.f32.mrf.mxu0 }
0x1760   : > { %v4264_v31 = vpop.f32.mrf.mxu0 }
0x1762   : > { %v8107_v32 = vpop.f32.mrf.mxu0 }
0x176a   : > { %v4373_v33 = vpop.f32.mrf.mxu0 }
0x176b   : > { %4380 = vrot.lane.b32.xlu0 %v4373_v33, %s11347_s10 }
0x176c   : > { %v8118_v34 = vpop.f32.mrf.mxu0 }
0x176e   : > { %v4376_v35 = vpop.f32.mrf.mxu0 }
0x1770   : > { %v8119_v36 = vpop.f32.mrf.mxu0 }
0x1791   : > { %v4488_v39 = vpop.f32.mrf.mxu0 }
0x1792   : > { %4495 = vrot.lane.b32.xlu1 %v4488_v39, %s11349_s4 }
0x1793   : > { %v8130_v41 = vpop.f32.mrf.mxu0 }
0x1795   : > { %v4491_v42 = vpop.f32.mrf.mxu0 }
0x1797   : > { %v8131_v43 = vpop.f32.mrf.mxu0 }
0x1799   : > { %v4603_v44 = vpop.f32.mrf.mxu0 }
0x179a   : > { %4610 = vrot.lane.b32.xlu0 %v4603_v44, %s11350_s5 }
0x179b   : > { %v8142_v45 = vpop.f32.mrf.mxu0 }
0x179d   : > { %v4606_v46 = vpop.f32.mrf.mxu0 }
0x179f   : > { %v8143_v47 = vpop.f32.mrf.mxu0 }
0x17dd   : > { %v4381_v48 = vpop.permute.xlu0 %4380 }
0x17de   : > { %4383 = vst.msk [vmem:[#allocation2] sm:$0xff] %vm2755_vm4, %v4381_v48  ;;  %v10833_v48 = vld [vmem:[%s10453_s7] ss:$0 sm:$0xff] }
0x1804   : > { %v4496_v49 = vpop.permute.xlu1 %4495 }
0x1805   : > { %4498 = vst.msk [vmem:[#allocation2] sm:$0xff] %vm2871_vm5, %v4496_v49 }
0x180c   : > { %v4611_v51 = vpop.permute.xlu0 %4610 }
0x180d   : > { %4613 = vst.msk [vmem:[#allocation2] sm:$0xff] %vm2987_vm6, %v4611_v51 }
0x1814   : > { %v4614_v53 = vld [vmem:[#allocation2] sm:$0xff] }
0x1815   : > { %v4615_v57 = vpack.c.bf16 %v4614_v53, %v4614_v53 }
0x1817   : > { %8149 = vmatmul.mubr.msk.bf16.vlgmr.msra.gmra.mxu1 %vm2423_vm0, %v4615_v57 }
0x1818   : > { %8161 = vmatpush3.bf16.msra.mxu1 %v8788_v55  ;;  %8164 = vmatprep.mubr.msk.bf16.mxu1 %vm9773_vm1, %v9772_v8 }
0x1819   : > { %8162 = vmatprep.subr.bf16.mxu1 %v9772_v8 }
0x181c   : > { %8163 = vmatpush3.bf16.msra.mxu1 %v8789_v59 }
0x181d   : > { %8174 = vmatprep.subr.bf16.mxu1 %v9772_v8 }
0x181f   : > { %8165 = vmatmul.mubr.msk.bf16.vlgmr.msra.gmra.mxu1 %vm2423_vm0, %v10774_v61 }
0x1820   : > { %8176 = vmatprep.mubr.msk.bf16.mxu1 %vm9773_vm1, %v9772_v8 }
0x18d7   : > { %v4676_v62 = vpop.f32.mrf.mxu1 }
0x18d8   : > { %v4677_v40 = vadd.f32 %v7651_v11, %v4676_v62 }
0x18d9   : > { %v8150_v63 = vpop.f32.mrf.mxu1 }
0x18da   : > { %v10783_v4 = vadd.f32 %v4677_v40, %v10629_v54 }
0x18db   : > { %v4679_v1 = vpop.f32.mrf.mxu1 }
0x18dc   : > { %v4685_v2 = vsel %vm2423_vm0, %v10783_v4, 0.0 }
0x18dd   : > { %4686 = vadd.xlane.f32.xlu1 %v4685_v2  ;;  %v8151_v3 = vpop.f32.mrf.mxu1 }
0x18df   : > { %v4840_v5 = vpop.f32.mrf.mxu1 }
0x18e0   : > { %v4841_v50 = vadd.f32 %v7661_v58, %v4840_v5 }
0x18e1   : > { %v8166_v6 = vpop.f32.mrf.mxu1 }
0x18e2   : > { %v10790_v16 = vpack.c.bf16 %v4841_v50, %v4841_v50 }
0x18e3   : > { %v4843_v7 = vpop.f32.mrf.mxu1 }
0x18e4   : > { %v4853_v29 = vsel %vm2531_vm2, %v10790_v16, 0 }
0x18e5   : > { %v8167_v9 = vpop.f32.mrf.mxu1 }
0x1966   : > { %v4687_v10 = vpop.xlane.xlu1 %4686 }
0x1967   : > { %v4688_v12 = vmul.f32 0.03125, %v4687_v10 }
0x1969   : > { %v4689_v13 = vsub.f32 %v10783_v4, %v4688_v12 }
0x196b   : > { %v4690_v15 = vmul.f32 %v4689_v13, %v4689_v13 }
0x196d   : > { %v4691_v54 = vsel %vm2423_vm0, %v4690_v15, 0.0 }
0x196e   : > { %4692 = vadd.xlane.f32.xlu0 %v4691_v54 }
0x1984   : > { %4960 = vrot.lane.b32.xlu0 %v10790_v16, %s11359_s9 }
0x19f7   : > { %v4693_v19 = vpop.xlane.xlu0 %4692 }
0x19f8   : > { %v4694_v14 = vmul.f32 0.03125, %v4693_v19 }
0x19fa   : > { %v4695_v21 = vadd.f32 1e-05, %v4694_v14 }
0x19fb   : > { %v4961_v35 = vpop.permute.xlu0 %4960 }
0x19fc   : > { %8876 = vrsqrt.f32 %v4695_v21  ;;  %v4966_v38 = vsel %vm2531_vm2, %v4961_v35, 0 }
0x1a09   : > { %v8877_v22 = vpop.eup %8876 }
0x1a0a   : > { %v4697_v0 = vmul.f32 %v8877_v22, %v4689_v13 }
0x1a0c   : > { %v4704_v26 = vmul.f32 %v7655_v23, %v4697_v0 }
0x1a0e   : > { %v4711_v27 = vadd.f32 %v7656_v24, %v4704_v26 }
0x1a10   : > { %v4712_v28 = vpack.c.bf16 %v4711_v27, %v4711_v27 }
0x1a12   : > { %8157 = vmatmul.mubr.msk.bf16.vlgmr.msra.gmra.mxu0 %vm2423_vm0, %v4712_v28 }
0x1a13   : > { %8169 = vmatpush3.bf16.xpose.msra.mxu0 %v4853_v29  ;;  %8170 = vmatprep.mubr.msk.bf16.mxu0 %vm9773_vm1, %v9772_v8 }
0x1a14   : > { %8180 = vmatprep.subr.bf16.mxu0 %v9772_v8 }
0x1ad2   : > { %v4773_v25 = vpop.f32.mrf.mxu0 }
0x1ad3   : > { %v4774_v31 = vadd.f32 %v7657_v30, %v4773_v25 }
0x1ad4   : > { %v8158_v32 = vpop.f32.mrf.mxu0 }
0x1ad5   : > { %v4846_v33 = vmul.f32 0.35355338, %v4774_v31 }
0x1ad6   : > { %v4776_v34 = vpop.f32.mrf.mxu0 }
0x1ad7   : > { %v4847_v36 = vpack.c.bf16 %v4846_v33, %v4846_v33 }
0x1ad8   : > { %v8159_v37 = vpop.f32.mrf.mxu0 }
0x1ad9   : > { %4958 = vrot.lane.b32.xlu1 %v4847_v36, %s11359_s9  ;;  %5073 = vrot.lane.b32.xlu0 %v4847_v36, %s11361_s13 }
0x1ada   : > { %8171 = vmatmul.mubr.msk.bf16.vlgmr.msra.gmra.mxu0 %vm2531_vm2, %v4847_v36 }
0x1adb   : > { %8181 = vmatpush3.bf16.xpose.msra.mxu0 %v4966_v38  ;;  %8182 = vmatprep.mubr.msk.bf16.mxu0 %vm9773_vm1, %v9772_v8 }
0x1adc   : > { %8192 = vmatprep.subr.bf16.mxu0 %v9772_v8 }
0x1add   : > { %5075 = vrot.lane.b32.xlu1 %v10790_v16, %s11361_s13  ;;  %5188 = vrot.lane.b32.xlu0 %v4847_v36, %s11341_s2 }
0x1ae1   : > { %5190 = vrot.lane.b32.xlu1 %v10790_v16, %s11341_s2 }
0x1b4b   : > { %v4959_v39 = vpop.permute.xlu1 %4958  ;;  %v5074_v44 = vpop.permute.xlu0 %5073 }
0x1b4c   : > { %8183 = vmatmul.mubr.msk.bf16.vlgmr.msra.gmra.mxu0 %vm2531_vm2, %v4959_v39 }
0x1b4d   : > { %8194 = vmatprep.mubr.msk.bf16.mxu0 %vm9773_vm1, %v9772_v8 }
0x1b4f   : > { %v5076_v41 = vpop.permute.xlu1 %5075  ;;  %v5189_v46 = vpop.permute.xlu0 %5188 }
0x1b50   : > { %v5081_v42 = vsel %vm2531_vm2, %v5076_v41, 0 }
0x1b51   : > { %8193 = vmatpush3.bf16.xpose.msra.mxu0 %v5081_v42 }
0x1b52   : > { %8204 = vmatprep.subr.bf16.mxu0 %v9772_v8 }
0x1b53   : > { %v5191_v43 = vpop.permute.xlu1 %5190 }
0x1b54   : > { %v5196_v45 = vsel %vm2531_vm2, %v5191_v43, 0 }
0x1b58   : > { %8195 = vmatmul.mubr.msk.bf16.vlgmr.msra.gmra.mxu0 %vm2531_vm2, %v5074_v44 }
0x1b59   : > { %8205 = vmatpush3.bf16.xpose.msra.mxu0 %v5196_v45  ;;  %8206 = vmatprep.mubr.msk.bf16.mxu0 %vm9773_vm1, %v9772_v8 }
0x1b5a   : > { %8216 = vmatprep.subr.bf16.mxu0 %v9772_v8 }
0x1b60   : > { %8207 = vmatmul.mubr.msk.bf16.vlgmr.msra.gmra.mxu0 %vm2531_vm2, %v5189_v46 }
0x1b61   : > { %8220 = vmatprep.mubr.msk.bf16.mxu0 %vm9773_vm1, %v9772_v8 }
0x1b9a   : > { %v4889_v47 = vpop.f32.mrf.mxu0 }
0x1b9b   : > { %v4890_v49 = vadd.f32 %v10833_v48, %v4889_v47 }
0x1b9c   : > { %v8172_v51 = vpop.f32.mrf.mxu0 }
0x1b9d   : > { %v4895_v52 = vsel %vm2531_vm2, %v4890_v49, -inf }
0x1b9e   : > { %4896 = vmax.xlane.f32.xlu1 %v4895_v52  ;;  %v4892_v53 = vpop.f32.mrf.mxu0 }
0x1ba0   : > { %v8173_v55 = vpop.f32.mrf.mxu0 }
0x1c0c   : > { %v5002_v56 = vpop.f32.mrf.mxu0 }
0x1c0d   : > { %v5003_v57 = vadd.f32 %v10833_v48, %v5002_v56 }
0x1c0e   : > { %v8184_v59 = vpop.f32.mrf.mxu0 }
0x1c0f   : > { %v5008_v60 = vsel %vm2531_vm2, %v5003_v57, -inf }
0x1c10   : > { %5009 = vmax.xlane.f32.xlu0 %v5008_v60  ;;  %v5005_v11 = vpop.f32.mrf.mxu0 }
0x1c12   : > { %v8185_v62 = vpop.f32.mrf.mxu0 }
0x1c18   : > { %v5117_v40 = vpop.f32.mrf.mxu0 }
0x1c19   : > { %v5118_v63 = vadd.f32 %v10833_v48, %v5117_v40 }
0x1c1a   : > { %v8196_v1 = vpop.f32.mrf.mxu0 }
0x1c1b   : > { %v5123_v2 = vsel %vm2531_vm2, %v5118_v63, -inf }
0x1c1c   : > { %5124 = vmax.xlane.f32.xlu0 %v5123_v2  ;;  %v5120_v3 = vpop.f32.mrf.mxu0 }
0x1c1e   : > { %v8197_v5 = vpop.f32.mrf.mxu0 }
0x1c1f   : > { %v8792_v5 = vld [vmem:[%s11371_s21 + $0x8] sm:$0xff]  }
0x1c20   : > { %v5232_v6 = vpop.f32.mrf.mxu0  ;;  %8217 = vmatpush3.bf16.msra.mxu0 %v8792_v5 }
0x1c21   : > { %v5233_v7 = vadd.f32 %v10833_v48, %v5232_v6  ;;  %8218 = vmatprep.subr.bf16.mxu0 %v9772_v8 }
0x1c22   : > { %v8208_v9 = vpop.f32.mrf.mxu0 }
0x1c23   : > { %v5238_v10 = vsel %vm2531_vm2, %v5233_v7, -inf }
0x1c24   : > { %5239 = vmax.xlane.f32.xlu1 %v5238_v10  ;;  %v5235_v12 = vpop.f32.mrf.mxu0 }
0x1c26   : > { %v8209_v13 = vpop.f32.mrf.mxu0 }
0x1c27   : > { %v4897_v15 = vpop.xlane.xlu1 %4896 }
0x1c28   : > { %v4898_v54 = vsub.f32 %v4890_v49, %v4897_v15 }
0x1c2a   : > { %v4899_v58 = vmul.f32 1.442695, %v4898_v54 }
0x1c2c   : > { %8878 = vpow2.f32 %v4899_v58 }
0x1c39   : > { %v8879_v50 = vpop.eup %8878 }
0x1c3a   : > { %v4901_v17 = vsel %vm2531_vm2, %v8879_v50, 0.0 }
0x1c3b   : > { %4902 = vadd.xlane.f32.xlu0 %v4901_v17 }
0x1c99   : > { %v5010_v18 = vpop.xlane.xlu0 %5009 }
0x1c9a   : > { %v5011_v19 = vsub.f32 %v5003_v57, %v5010_v18 }
0x1c9c   : > { %v5012_v14 = vmul.f32 1.442695, %v5011_v19 }
0x1c9e   : > { %8880 = vpow2.f32 %v5012_v14 }
0x1ca5   : > { %v5125_v21 = vpop.xlane.xlu0 %5124 }
0x1ca6   : > { %v5126_v22 = vsub.f32 %v5118_v63, %v5125_v21  ;;  %v7673_v21 = vld [vmem:[%s11372_s22] ss:$0 sm:$0xff]  ;;  %s11375_s22 = sld [smem:[#allocation72_spill]] }
0x1ca8   : > { %v5127_v23 = vmul.f32 1.442695, %v5126_v22 }
0x1caa   : > { %8882 = vpow2.f32 %v5127_v23 }
0x1cab   : > { %v8881_v0 = vpop.eup %8880 }
0x1cac   : > { %v5014_v24 = vsel %vm2531_vm2, %v8881_v0, 0.0 }
0x1cad   : > { %5015 = vadd.xlane.f32.xlu1 %v5014_v24  ;;  %v5240_v28 = vpop.xlane.xlu1 %5239 }
0x1cae   : > { %v5241_v29 = vsub.f32 %v5233_v7, %v5240_v28  ;;  %v8793_v7 = vld [vmem:[%s11371_s21] sm:$0xff]   ;;  %s11378_s21 = sld [smem:[#allocation70_spill]] }
0x1caf   : > { %8219 = vmatpush3.bf16.msra.mxu0 %v8793_v7 }
0x1cb0   : > { %v5242_v30 = vmul.f32 1.442695, %v5241_v29  ;;  %8232 = vmatprep.subr.bf16.mxu0 %v9772_v8 }
0x1cb2   : > { %8884 = vpow2.f32 %v5242_v30 }
0x1cb7   : > { %v8883_v26 = vpop.eup %8882 }
0x1cb8   : > { %v5129_v27 = vsel %vm2531_vm2, %v8883_v26, 0.0 }
0x1cb9   : > { %5130 = vadd.xlane.f32.xlu0 %v5129_v27 }
0x1cbe   : > { %5020 = vrot.lane.b32.xlu1 %v10790_v16, %s11356_s3 }
0x1cbf   : > { %v8885_v25 = vpop.eup %8884 }
0x1cc0   : > { %v5244_v31 = vsel %vm2531_vm2, %v8885_v25, 0.0 }
0x1cc4   : > { %v4903_v32 = vpop.xlane.xlu0 %4902 }
0x1cc5   : > { %8886 = vrcp.f32 %v4903_v32 }
0x1ccf   : > { %4908 = vrot.lane.b32.xlu0 %v10790_v16, %s11357_s0 }
0x1cd2   : > { %v8887_v34 = vpop.eup %8886 }
0x1cd3   : > { %5250 = vrot.lane.b32.xlu0 %v10790_v16, %s11360_s12  ;;  %v4905_v36 = vmul.f32 %v8887_v34, %v8879_v50  ;;  %v8795_v34 = vld [vmem:[%s11373_s17] sm:$0xff]  }
0x1cd5   : > { %v4906_v41 = vpack.c.bf16 %v4905_v36, %v4905_v36 }
0x1ce2   : > { %5245 = vadd.xlane.f32.xlu1 %v5244_v31 }
0x1cf3   : > { %5135 = vrot.lane.b32.xlu1 %v10790_v16, %s11358_s8 }
0x1d36   : > { %v5016_v33 = vpop.xlane.xlu1 %5015 }
0x1d37   : > { %8888 = vrcp.f32 %v5016_v33  ;;  %v8794_v33 = vld [vmem:[%s11373_s17 + $0x8] sm:$0xff]   ;;  %s11377_s17 = sld [smem:[#allocation69_spill]] }
0x1d3a   : > { %v5021_v39 = vpop.permute.xlu1 %5020 }
0x1d3b   : > { %v5026_v43 = vsel %vm2595_vm3, %v5021_v39, 0 }
0x1d42   : > { %v5131_v35 = vpop.xlane.xlu0 %5130 }
0x1d43   : > { %8890 = vrcp.f32 %v5131_v35  ;;  %v8797_v35 = vld [vmem:[%s11374_s18 + $0x10] sm:$0xff]  }
0x1d44   : > { %v8889_v42 = vpop.eup %8888 }
0x1d45   : > { %v5018_v16 = vmul.f32 %v8889_v42, %v8881_v0 }
0x1d46   : > { %v4909_v37 = vpop.permute.xlu0 %4908 }
0x1d47   : > { %v4914_v38 = vsel %vm2595_vm3, %v4909_v37, 0  ;;  %v5019_v44 = vpack.c.bf16 %v5018_v16, %v5018_v16 }
0x1d48   : > { %8175 = vmatpush3.bf16.msra.mxu1 %v4914_v38 }
0x1d49   : > { %8186 = vmatprep.subr.bf16.mxu1 %v9772_v8 }
0x1d4a   : > { %v5251_v52 = vpop.permute.xlu0 %5250 }
0x1d4b   : > { %8177 = vmatmul.mubr.msk.bf16.vlgmr.msra.gmra.mxu1 %vm2531_vm2, %v4906_v41  ;;  %v5256_v55 = vsel %vm2595_vm3, %v5251_v52, 0  ;;  %v7677_v41 = vld [vmem:[%s11375_s22] ss:$0 sm:$0xff] }
0x1d4c   : > { %8187 = vmatpush3.bf16.msra.mxu1 %v5026_v43  ;;  %8188 = vmatprep.mubr.msk.bf16.mxu1 %vm9773_vm1, %v9772_v8  ;;  %v7678_v43 = vld [vmem:[%s11376_s19] ss:$0 sm:$0xff]  ;;  %s11379_s19 = sld [smem:[#allocation97_spill]] }
0x1d4d   : > { %8198 = vmatprep.subr.bf16.mxu1 %v9772_v8 }
0x1d50   : > { %v8891_v45 = vpop.eup %8890 }
0x1d51   : > { %v5133_v47 = vmul.f32 %v8891_v45, %v8883_v26 }
0x1d53   : > { %8189 = vmatmul.mubr.msk.bf16.vlgmr.msra.gmra.mxu1 %vm2531_vm2, %v5019_v44  ;;  %v5134_v53 = vpack.c.bf16 %v5133_v47, %v5133_v47  ;;  %v8799_v47 = vld [vmem:[%s11374_s18] sm:$0xff]  }
0x1d54   : > { %8200 = vmatprep.mubr.msk.bf16.mxu1 %vm9773_vm1, %v9772_v8 }
0x1d6b   : > { %v5246_v46 = vpop.xlane.xlu1 %5245 }
0x1d6c   : > { %8892 = vrcp.f32 %v5246_v46  ;;  %v8798_v46 = vld [vmem:[%s11374_s18 + $0x8] sm:$0xff]  }
0x1d6f   : > { %v5136_v49 = vpop.permute.xlu1 %5135 }
0x1d70   : > { %v5141_v51 = vsel %vm2595_vm3, %v5136_v49, 0  ;;  %v7679_v49 = vld [vmem:[%s11377_s17] ss:$0 sm:$0xff]  ;;  %s11385_s17 = sld [smem:[#allocation83_spill]] }
0x1d71   : > { %8199 = vmatpush3.bf16.msra.mxu1 %v5141_v51 }
0x1d72   : > { %8210 = vmatprep.subr.bf16.mxu1 %v9772_v8 }
0x1d74   : > { %8201 = vmatmul.mubr.msk.bf16.vlgmr.msra.gmra.mxu1 %vm2531_vm2, %v5134_v53 }
0x1d75   : > { %8211 = vmatpush3.bf16.msra.mxu1 %v5256_v55  ;;  %8212 = vmatprep.mubr.msk.bf16.mxu1 %vm9773_vm1, %v9772_v8 }
0x1d76   : > { %8224 = vmatprep.subr.bf16.mxu1 %v9772_v8 }
0x1d79   : > { %v8893_v56 = vpop.eup %8892 }
0x1d7a   : > { %v5248_v57 = vmul.f32 %v8893_v56, %v8885_v25 }
0x1d7c   : > { %v5249_v59 = vpack.c.bf16 %v5248_v57, %v5248_v57 }
0x1d7e   : > { %8213 = vmatmul.mubr.msk.bf16.vlgmr.msra.gmra.mxu1 %vm2531_vm2, %v5249_v59 }
0x1d7f   : > { %8228 = vmatprep.mubr.msk.bf16.mxu1 %vm9773_vm1, %v9772_v8  ;;  %8225 = vmatpush3.bf16.msra.mxu1 %v8794_v33 }
0x1d80   : > { %8226 = vmatprep.subr.bf16.mxu1 %v9772_v8 }
0x1d83   : > { %8227 = vmatpush3.bf16.msra.mxu1 %v8795_v34 }
0x1d84   : > { %8244 = vmatprep.subr.bf16.mxu1 %v9772_v8 }
0x1e0b   : > { %v4950_v60 = vpop.f32.mrf.mxu1 }
0x1e0c   : > { %4956 = vst.msk [vmem:[#allocation2] sm:$0xff] %vm2531_vm2, %v4950_v60  ;;  %v7683_v60 = vld [vmem:[%s11378_s21] ss:$0 sm:$0xff]  ;;  %s11384_s21 = sld [smem:[#allocation84_spill]] }
0x1e0d   : > { %v8178_v11 = vpop.f32.mrf.mxu1 }
0x1e0f   : > { %v4953_v62 = vpop.f32.mrf.mxu1 }
0x1e11   : > { %v8179_v40 = vpop.f32.mrf.mxu1 }
0x1e13   : > { %v5062_v63 = vpop.f32.mrf.mxu1 }
0x1e14   : > { %5069 = vrot.lane.b32.xlu1 %v5062_v63, %s11347_s10 }
0x1e15   : > { %v8190_v1 = vpop.f32.mrf.mxu1 }
0x1e17   : > { %v5065_v2 = vpop.f32.mrf.mxu1 }
0x1e19   : > { %v8191_v3 = vpop.f32.mrf.mxu1 }
0x1e34   : > { %v5177_v6 = vpop.f32.mrf.mxu1 }
0x1e35   : > { %5184 = vrot.lane.b32.xlu0 %v5177_v6, %s11349_s4 }
0x1e36   : > { %v8202_v9 = vpop.f32.mrf.mxu1 }
0x1e38   : > { %v5180_v10 = vpop.f32.mrf.mxu1 }
0x1e3a   : > { %v8203_v12 = vpop.f32.mrf.mxu1 }
0x1e3b   : > { %v8800_v12 = vld [vmem:[%s11379_s19 + $0x8] sm:$0xff]  }
0x1e3e   : > { %v5292_v13 = vpop.f32.mrf.mxu1 }
0x1e3f   : > { %5299 = vrot.lane.b32.xlu1 %v5292_v13, %s11350_s5  ;;  %v8801_v13 = vld [vmem:[%s11379_s19] sm:$0xff]  }
0x1e40   : > { %v8214_v15 = vpop.f32.mrf.mxu1 }
0x1e42   : > { %v5295_v54 = vpop.f32.mrf.mxu1 }
0x1e44   : > { %v8215_v58 = vpop.f32.mrf.mxu1 }
0x1e86   : > { %v5070_v50 = vpop.permute.xlu1 %5069 }
0x1e87   : > { %5072 = vst.msk [vmem:[#allocation2] sm:$0xff] %vm2755_vm4, %v5070_v50 }
0x1ea7   : > { %v5185_v17 = vpop.permute.xlu0 %5184 }
0x1ea8   : > { %5187 = vst.msk [vmem:[#allocation2] sm:$0xff] %vm2871_vm5, %v5185_v17  ;;  %v7689_v17 = vld [vmem:[#allocation16] ss:$0 sm:$0xff] }
0x1eb1   : > { %v5300_v18 = vpop.permute.xlu1 %5299 }
0x1eb2   : > { %5302 = vst.msk [vmem:[#allocation2] sm:$0xff] %vm2987_vm6, %v5300_v18 }
0x1eb9   : > { %v5303_v19 = vld [vmem:[#allocation2] sm:$0xff] }
0x1eba   : > { %v5304_v14 = vpack.c.bf16 %v5303_v19, %v5303_v19  ;;  %v7690_v19 = vld [vmem:[#allocation14] ss:$0 sm:$0xff] }
0x1ebc   : > { %8221 = vmatmul.mubr.msk.bf16.vlgmr.msra.gmra.mxu0 %vm2423_vm0, %v5304_v14 }
0x1ebd   : > { %8240 = vmatprep.mubr.msk.bf16.mxu0 %vm9773_vm1, %v9772_v8 }
0x1f7c   : > { %v5365_v22 = vpop.f32.mrf.mxu0 }
0x1f7d   : > { %v5366_v23 = vadd.f32 %v7673_v21, %v5365_v22 }
0x1f7e   : > { %v8222_v0 = vpop.f32.mrf.mxu0 }
0x1f7f   : > { %v5371_v24 = vadd.f32 %v5366_v23, %v10783_v4  ;;  %v8796_v4 = vld [vmem:[%s11374_s18 + $0x18] sm:$0xff]   ;;  %v7691_v23 = vld [vmem:[#allocation13] ss:$0 sm:$0xff] }
0x1f80   : > { %v5368_v26 = vpop.f32.mrf.mxu0  ;;  %8233 = vmatpush3.bf16.msra.mxu0 %v8796_v4 }
0x1f81   : > { %v5374_v27 = vsel %vm2423_vm0, %v5371_v24, 0.0  ;;  %8234 = vmatprep.subr.bf16.mxu0 %v9772_v8 }
0x1f82   : > { %5375 = vadd.xlane.f32.xlu0 %v5374_v27  ;;  %v8223_v28 = vpop.f32.mrf.mxu0 }
0x1f84   : > { %8235 = vmatpush3.bf16.msra.mxu0 %v8797_v35 }
0x1f85   : > { %8236 = vmatprep.subr.bf16.mxu0 %v9772_v8 }
0x1f88   : > { %8237 = vmatpush3.bf16.msra.mxu0 %v8798_v46 }
0x1f89   : > { %8238 = vmatprep.subr.bf16.mxu0 %v9772_v8 }
0x1f8c   : > { %8239 = vmatpush3.bf16.msra.mxu0 %v8799_v47 }
0x1f8d   : > { %8258 = vmatprep.subr.bf16.mxu0 %v9772_v8 }
0x200b   : > { %v5376_v29 = vpop.xlane.xlu0 %5375 }
0x200c   : > { %v5377_v30 = vmul.f32 0.03125, %v5376_v29 }
0x200e   : > { %v5378_v25 = vsub.f32 %v5371_v24, %v5377_v30 }
0x2010   : > { %v5379_v31 = vmul.f32 %v5378_v25, %v5378_v25 }
0x2012   : > { %v5380_v32 = vsel %vm2423_vm0, %v5379_v31, 0.0 }
0x2013   : > { %5381 = vadd.xlane.f32.xlu1 %v5380_v32 }
0x209c   : > { %v5382_v36 = vpop.xlane.xlu1 %5381 }
0x209d   : > { %v5383_v37 = vmul.f32 0.03125, %v5382_v36 }
0x209f   : > { %v5384_v38 = vadd.f32 1e-05, %v5383_v37 }
0x20a1   : > { %8894 = vrsqrt.f32 %v5384_v38 }
0x20ae   : > { %v8895_v39 = vpop.eup %8894 }
0x20af   : > { %v5386_v42 = vmul.f32 %v8895_v39, %v5378_v25 }
0x20b1   : > { %v5393_v16 = vmul.f32 %v7677_v41, %v5386_v42 }
0x20b3   : > { %v5400_v44 = vadd.f32 %v7678_v43, %v5393_v16 }
0x20b5   : > { %v5401_v45 = vpack.c.bf16 %v5400_v44, %v5400_v44 }
0x20b7   : > { %8229 = vmatmul.mubr.msk.bf16.vlgmr.msra.gmra.mxu1 %vm2423_vm0, %v5401_v45 }
0x20b8   : > { %8248 = vmatprep.mubr.msk.bf16.mxu1 %vm9773_vm1, %v9772_v8  ;;  %8245 = vmatpush3.bf16.msra.mxu1 %v8800_v12 }
0x20b9   : > { %8246 = vmatprep.subr.bf16.mxu1 %v9772_v8 }
0x20bc   : > { %8247 = vmatpush3.bf16.msra.mxu1 %v8801_v13 }
0x20bd   : > { %8252 = vmatprep.subr.bf16.mxu1 %v9772_v8 }
0x2177   : > { %v5462_v51 = vpop.f32.mrf.mxu1 }
0x2178   : > { %v5463_v52 = vadd.f32 %v7679_v49, %v5462_v51 }
0x2179   : > { %v8230_v53 = vpop.f32.mrf.mxu1 }
0x217a   : > { %v5468_v55 = vmax.f32 %v5463_v52, 0.0 }
0x217b   : > { %v5465_v56 = vpop.f32.mrf.mxu1 }
0x217c   : > { %v5469_v57 = vpack.c.bf16 %v5468_v55, %v5468_v55 }
0x217d   : > { %v8231_v59 = vpop.f32.mrf.mxu1 }
0x217e   : > { %8241 = vmatmul.mubr.msk.bf16.vlgmr.msra.gmra.mxu0 %vm3195_vm7, %v5469_v57 }
0x217f   : > { %8260 = vmatprep.mubr.msk.bf16.mxu0 %vm9773_vm1, %v9772_v8 }
0x223e   : > { %v5546_v11 = vpop.f32.mrf.mxu0 }
0x223f   : > { %v5547_v62 = vadd.f32 %v7683_v60, %v5546_v11 }
0x2240   : > { %v8242_v40 = vpop.f32.mrf.mxu0 }
0x2241   : > { %v10915_v63 = vadd.f32 %v5547_v62, %v5371_v24 }
0x2242   : > { %v5549_v1 = vpop.f32.mrf.mxu0 }
0x2243   : > { %v5555_v2 = vsel %vm2423_vm0, %v10915_v63, 0.0 }
0x2244   : > { %5556 = vadd.xlane.f32.xlu0 %v5555_v2  ;;  %v8243_v3 = vpop.f32.mrf.mxu0 }
0x22cd   : > { %v5557_v5 = vpop.xlane.xlu0 %5556 }
0x22ce   : > { %v5558_v6 = vmul.f32 0.03125, %v5557_v5 }
0x22d0   : > { %v5559_v7 = vsub.f32 %v10915_v63, %v5558_v6 }
0x22d2   : > { %v5560_v9 = vmul.f32 %v5559_v7, %v5559_v7 }
0x22d4   : > { %v5561_v10 = vsel %vm2423_vm0, %v5560_v9, 0.0 }
0x22d5   : > { %5562 = vadd.xlane.f32.xlu0 %v5561_v10 }
0x235e   : > { %v5563_v15 = vpop.xlane.xlu0 %5562 }
0x235f   : > { %v5564_v54 = vmul.f32 0.03125, %v5563_v15 }
0x2361   : > { %v5565_v58 = vadd.f32 1e-05, %v5564_v54 }
0x2363   : > { %8896 = vrsqrt.f32 %v5565_v58 }
0x2370   : > { %v8897_v50 = vpop.eup %8896 }
0x2371   : > { %v5567_v18 = vmul.f32 %v8897_v50, %v5559_v7 }
0x2373   : > { %v5574_v14 = vmul.f32 %v7689_v17, %v5567_v18 }
0x2375   : > { %v5581_v21 = vadd.f32 %v7690_v19, %v5574_v14 }
0x2377   : > { %v5582_v22 = vpack.c.bf16 %v5581_v21, %v5581_v21 }
0x2379   : > { %8249 = vmatmul.mubr.msk.bf16.vlgmr.msra.gmra.mxu1 %vm2423_vm0, %v5582_v22 }
0x237a   : > { %8254 = vmatprep.mubr.msk.bf16.mxu1 %vm9773_vm1, %v9772_v8 }
0x2439   : > { %v5643_v0 = vpop.f32.mrf.mxu1 }
0x243a   : > { %v5644_v24 = vadd.f32 %v7691_v23, %v5643_v0 }
0x243b   : > { %v8250_v26 = vpop.f32.mrf.mxu1 }
0x243c   : > { %v5649_v27 = vmul.f32 0.35355338, %v5644_v24  ;;  %v10928_v28 = vpack.c.bf16 %v5644_v24, %v5644_v24 }
0x243d   : > { %v5646_v29 = vpop.f32.mrf.mxu1 }
0x243e   : > { %5765 = vrot.lane.b32.xlu0 %v10928_v28, %s11356_s3  ;;  %5653 = vrot.lane.b32.xlu1 %v10928_v28, %s11357_s0  ;;  %v5650_v25 = vpack.c.bf16 %v5649_v27, %v5649_v27 }
0x243f   : > { %v8251_v30 = vpop.f32.mrf.mxu1 }
0x2442   : > { %5878 = vrot.lane.b32.xlu0 %v5650_v25, %s11361_s13  ;;  %5763 = vrot.lane.b32.xlu1 %v5650_v25, %s11359_s9 }
0x2446   : > { %5993 = vrot.lane.b32.xlu0 %v5650_v25, %s11341_s2  ;;  %5880 = vrot.lane.b32.xlu1 %v10928_v28, %s11358_s8 }
0x244a   : > { %5995 = vrot.lane.b32.xlu1 %v10928_v28, %s11360_s12 }
0x24b0   : > { %v5654_v31 = vpop.permute.xlu1 %5653  ;;  %v5766_v33 = vpop.permute.xlu0 %5765 }
0x24b1   : > { %v5659_v32 = vsel %vm2531_vm2, %v5654_v31, 0  ;;  %v5771_v4 = vsel %vm2531_vm2, %v5766_v33, 0 }
0x24b2   : > { %8253 = vmatpush3.bf16.xpose.msra.mxu1 %v5659_v32 }
0x24b3   : > { %8264 = vmatprep.subr.bf16.mxu1 %v9772_v8 }
0x24b4   : > { %v5764_v34 = vpop.permute.xlu1 %5763  ;;  %v5879_v38 = vpop.permute.xlu0 %5878 }
0x24b8   : > { %v5881_v35 = vpop.permute.xlu1 %5880  ;;  %v5994_v41 = vpop.permute.xlu0 %5993 }
0x24b9   : > { %8255 = vmatmul.mubr.msk.bf16.vlgmr.msra.gmra.mxu1 %vm2531_vm2, %v5650_v25  ;;  %v5886_v36 = vsel %vm2531_vm2, %v5881_v35, 0 }
0x24ba   : > { %8265 = vmatpush3.bf16.xpose.msra.mxu1 %v5771_v4  ;;  %8266 = vmatprep.mubr.msk.bf16.mxu1 %vm9773_vm1, %v9772_v8 }
0x24bb   : > { %8276 = vmatprep.subr.bf16.mxu1 %v9772_v8 }
0x24bc   : > { %v5996_v37 = vpop.permute.xlu1 %5995 }
0x24bd   : > { %v6001_v39 = vsel %vm2531_vm2, %v5996_v37, 0 }
0x24c1   : > { %8267 = vmatmul.mubr.msk.bf16.vlgmr.msra.gmra.mxu1 %vm2531_vm2, %v5764_v34 }
0x24c2   : > { %8277 = vmatpush3.bf16.xpose.msra.mxu1 %v5886_v36  ;;  %8278 = vmatprep.mubr.msk.bf16.mxu1 %vm9773_vm1, %v9772_v8 }
0x24c3   : > { %8288 = vmatprep.subr.bf16.mxu1 %v9772_v8 }
0x24c9   : > { %8279 = vmatmul.mubr.msk.bf16.vlgmr.msra.gmra.mxu1 %vm2531_vm2, %v5879_v38 }
0x24ca   : > { %8289 = vmatpush3.bf16.xpose.msra.mxu1 %v6001_v39  ;;  %8290 = vmatprep.mubr.msk.bf16.mxu1 %vm9773_vm1, %v9772_v8 }
0x24cb   : > { %8300 = vmatprep.subr.bf16.mxu1 %v9772_v8 }
0x24d1   : > { %8291 = vmatmul.mubr.msk.bf16.vlgmr.msra.gmra.mxu1 %vm2531_vm2, %v5994_v41 }
0x24d2   : > { %8304 = vmatprep.mubr.msk.bf16.mxu1 %vm9773_vm1, %v9772_v8 }
0x2579   : > { %v5695_v42 = vpop.f32.mrf.mxu1 }
0x257a   : > { %v5696_v43 = vadd.f32 %v5695_v42, %v10713_v20 }
0x257b   : > { %v8256_v16 = vpop.f32.mrf.mxu1 }
0x257c   : > { %v5701_v44 = vsel %vm2531_vm2, %v5696_v43, -inf }
0x257d   : > { %5702 = vmax.xlane.f32.xlu1 %v5701_v44  ;;  %v5698_v45 = vpop.f32.mrf.mxu1 }
0x257f   : > { %v8257_v46 = vpop.f32.mrf.mxu1 }
0x2581   : > { %v5807_v47 = vpop.f32.mrf.mxu1 }
0x2582   : > { %v5808_v49 = vadd.f32 %v5807_v47, %v10713_v20 }
0x2583   : > { %v8268_v51 = vpop.f32.mrf.mxu1 }
0x2584   : > { %v5813_v52 = vsel %vm2531_vm2, %v5808_v49, -inf }
0x2585   : > { %5814 = vmax.xlane.f32.xlu0 %v5813_v52  ;;  %v5810_v53 = vpop.f32.mrf.mxu1 }
0x2587   : > { %v8269_v55 = vpop.f32.mrf.mxu1 }
0x2589   : > { %v5922_v56 = vpop.f32.mrf.mxu1 }
0x258a   : > { %v5923_v57 = vadd.f32 %v5922_v56, %v10713_v20 }
0x258b   : > { %v8280_v59 = vpop.f32.mrf.mxu1 }
0x258c   : > { %v5928_v60 = vsel %vm2531_vm2, %v5923_v57, -inf }
0x258d   : > { %5929 = vmax.xlane.f32.xlu0 %v5928_v60  ;;  %v5925_v11 = vpop.f32.mrf.mxu1 }
0x258f   : > { %v8281_v62 = vpop.f32.mrf.mxu1 }
0x2591   : > { %v6037_v40 = vpop.f32.mrf.mxu1 }
0x2592   : > { %v6038_v1 = vadd.f32 %v6037_v40, %v10713_v20 }
0x2593   : > { %v8292_v2 = vpop.f32.mrf.mxu1 }
0x2594   : > { %v6043_v3 = vsel %vm2531_vm2, %v6038_v1, -inf }
0x2595   : > { %6044 = vmax.xlane.f32.xlu1 %v6043_v3  ;;  %v6040_v5 = vpop.f32.mrf.mxu1 }
0x2597   : > { %v8293_v6 = vpop.f32.mrf.mxu1 }
0x2606   : > { %v5703_v7 = vpop.xlane.xlu1 %5702 }
0x2607   : > { %v5704_v9 = vsub.f32 %v5696_v43, %v5703_v7 }
0x2609   : > { %v5705_v10 = vmul.f32 1.442695, %v5704_v9 }
0x260b   : > { %8898 = vpow2.f32 %v5705_v10 }
0x260e   : > { %v5815_v12 = vpop.xlane.xlu0 %5814 }
0x260f   : > { %v5816_v13 = vsub.f32 %v5808_v49, %v5815_v12 }
0x2611   : > { %v5817_v15 = vmul.f32 1.442695, %v5816_v13 }
0x2613   : > { %8900 = vpow2.f32 %v5817_v15 }
0x2616   : > { %v5930_v54 = vpop.xlane.xlu0 %5929 }
0x2617   : > { %v5931_v58 = vsub.f32 %v5923_v57, %v5930_v54 }
0x2618   : > { %v8899_v50 = vpop.eup %8898 }
0x2619   : > { %v5932_v17 = vmul.f32 1.442695, %v5931_v58  ;;  %v5707_v20 = vsel %vm2531_vm2, %v8899_v50, 0.0 }
0x261a   : > { %5708 = vadd.xlane.f32.xlu0 %v5707_v20 }
0x261b   : > { %8902 = vpow2.f32 %v5932_v17  ;;  %v7703_v17 = vld [vmem:[#allocation11] ss:$0 sm:$0xff] }
0x261e   : > { %v6045_v22 = vpop.xlane.xlu1 %6044 }
0x261f   : > { %v6046_v23 = vsub.f32 %v6038_v1, %v6045_v22 }
0x2620   : > { %v8901_v18 = vpop.eup %8900 }
0x2621   : > { %v5819_v19 = vsel %vm2531_vm2, %v8901_v18, 0.0  ;;  %v6047_v0 = vmul.f32 1.442695, %v6046_v23 }
0x2622   : > { %5820 = vadd.xlane.f32.xlu1 %v5819_v19 }
0x2623   : > { %8904 = vpow2.f32 %v6047_v0 }
0x2628   : > { %v8903_v14 = vpop.eup %8902 }
0x2629   : > { %v5934_v21 = vsel %vm2531_vm2, %v8903_v14, 0.0 }
0x262a   : > { %5935 = vadd.xlane.f32.xlu0 %v5934_v21 }
0x2630   : > { %v8905_v24 = vpop.eup %8904 }
0x2631   : > { %v6049_v26 = vsel %vm2531_vm2, %v8905_v24, 0.0 }
0x2633   : > { %5825 = vrot.lane.b32.xlu1 %v10928_v28, %s11343_s16  ;;  %s11383_s16 = sld [smem:[#allocation87_spill]] }
0x2640   : > { %5713 = vrot.lane.b32.xlu0 %v10928_v28, %s11342_s26  ;;  %s11382_s26 = sld [smem:[#allocation81_spill]] }
0x2644   : > { %6055 = vrot.lane.b32.xlu0 %v10928_v28, %s11345_s6  ;;  %s11381_s6 = sld [smem:[#allocation85_spill]] }
0x264a   : > { %v8804_v54 = vld [vmem:[%s11381_s6 + $0x8] sm:$0xff]  }
0x2657   : > { %6050 = vadd.xlane.f32.xlu1 %v6049_v26 }
0x2668   : > { %5940 = vrot.lane.b32.xlu1 %v10928_v28, %s11344_s1  ;;  %s11380_s1 = sld [smem:[#allocation96_spill]] }
0x266e   : > { %v8802_v11 = vld [vmem:[%s11380_s1 + $0x8] sm:$0xff]   ;;  %v8803_v40 = vld [vmem:[%s11380_s1] sm:$0xff]  }
0x266f   : > { %8301 = vmatpush3.bf16.msra.mxu1 %v8802_v11 }
0x2670   : > { %8302 = vmatprep.subr.bf16.mxu1 %v9772_v8 }
0x2673   : > { %8303 = vmatpush3.bf16.msra.mxu1 %v8803_v40 }
0x2674   : > { %8316 = vmatprep.subr.bf16.mxu1 %v9772_v8 }
0x26a3   : > { %v5709_v27 = vpop.xlane.xlu0 %5708 }
0x26a4   : > { %8906 = vrcp.f32 %v5709_v27  ;;  %v7713_v27 = vld [vmem:[%s11382_s26] ss:$0 sm:$0xff] }
0x26ab   : > { %v5821_v29 = vpop.xlane.xlu1 %5820 }
0x26ac   : > { %8908 = vrcp.f32 %v5821_v29 }
0x26af   : > { %v5826_v34 = vpop.permute.xlu1 %5825 }
0x26b0   : > { %v5831_v36 = vsel %vm2595_vm3, %v5826_v34, 0  ;;  %v8806_v34 = vld [vmem:[%s11383_s16 + $0x8] sm:$0xff]  }
0x26b1   : > { %v8907_v30 = vpop.eup %8906 }
0x26b2   : > { %v5711_v31 = vmul.f32 %v8907_v30, %v8899_v50  ;;  %v8805_v50 = vld [vmem:[%s11381_s6] sm:$0xff]  }
0x26b3   : > { %v5936_v25 = vpop.xlane.xlu0 %5935 }
0x26b4   : > { %v5712_v4 = vpack.c.bf16 %v5711_v31, %v5711_v31  ;;  %8910 = vrcp.f32 %v5936_v25 }
0x26b7   : > { %v5714_v32 = vpop.permute.xlu0 %5713 }
0x26b8   : > { %v5719_v33 = vsel %vm2595_vm3, %v5714_v32, 0 }
0x26b9   : > { %8259 = vmatpush3.bf16.msra.mxu0 %v5719_v33  ;;  %v8909_v35 = vpop.eup %8908 }
0x26ba   : > { %8270 = vmatprep.subr.bf16.mxu0 %v9772_v8  ;;  %v5823_v28 = vmul.f32 %v8909_v35, %v8901_v18 }
0x26bb   : > { %v6056_v16 = vpop.permute.xlu0 %6055 }
0x26bc   : > { %8261 = vmatmul.mubr.msk.bf16.vlgmr.msra.gmra.mxu0 %vm2531_vm2, %v5712_v4  ;;  %v5824_v37 = vpack.c.bf16 %v5823_v28, %v5823_v28  ;;  %v6061_v45 = vsel %vm2595_vm3, %v6056_v16, 0  ;;  %v8807_v4 = vld [vmem:[%s11383_s16] sm:$0xff]  }
0x26bd   : > { %8271 = vmatpush3.bf16.msra.mxu0 %v5831_v36  ;;  %8272 = vmatprep.mubr.msk.bf16.mxu0 %vm9773_vm1, %v9772_v8 }
0x26be   : > { %8282 = vmatprep.subr.bf16.mxu0 %v9772_v8 }
0x26c1   : > { %v8911_v38 = vpop.eup %8910 }
0x26c2   : > { %v5938_v41 = vmul.f32 %v8911_v38, %v8903_v14  ;;  %v7707_v38 = vld [vmem:[#allocation3] ss:$0 sm:$0xff] }
0x26c4   : > { %8273 = vmatmul.mubr.msk.bf16.vlgmr.msra.gmra.mxu0 %vm2531_vm2, %v5824_v37  ;;  %v5939_v44 = vpack.c.bf16 %v5938_v41, %v5938_v41  ;;  %v7708_v41 = vld [vmem:[%s11384_s21] ss:$0 sm:$0xff] }
0x26c5   : > { %8284 = vmatprep.mubr.msk.bf16.mxu0 %vm9773_vm1, %v9772_v8 }
0x26e0   : > { %v6051_v39 = vpop.xlane.xlu1 %6050 }
0x26e1   : > { %8912 = vrcp.f32 %v6051_v39 }
0x26e4   : > { %v5941_v42 = vpop.permute.xlu1 %5940 }
0x26e5   : > { %v5946_v43 = vsel %vm2595_vm3, %v5941_v42, 0 }
0x26e6   : > { %8283 = vmatpush3.bf16.msra.mxu0 %v5946_v43 }
0x26e7   : > { %8294 = vmatprep.subr.bf16.mxu0 %v9772_v8 }
0x26e9   : > { %8285 = vmatmul.mubr.msk.bf16.vlgmr.msra.gmra.mxu0 %vm2531_vm2, %v5939_v44 }
0x26ea   : > { %8295 = vmatpush3.bf16.msra.mxu0 %v6061_v45  ;;  %8296 = vmatprep.mubr.msk.bf16.mxu0 %vm9773_vm1, %v9772_v8  ;;  %v7709_v45 = vld [vmem:[%s11385_s17] ss:$0 sm:$0xff] }
0x26eb   : > { %8308 = vmatprep.subr.bf16.mxu0 %v9772_v8 }
0x26ee   : > { %v8913_v46 = vpop.eup %8912 }
0x26ef   : > { %v6053_v47 = vmul.f32 %v8913_v46, %v8905_v24 }
0x26f1   : > { %v6054_v49 = vpack.c.bf16 %v6053_v47, %v6053_v47 }
0x26f3   : > { %8297 = vmatmul.mubr.msk.bf16.vlgmr.msra.gmra.mxu0 %vm2531_vm2, %v6054_v49 }
0x26f4   : > { %8312 = vmatprep.mubr.msk.bf16.mxu0 %vm9773_vm1, %v9772_v8  ;;  %8309 = vmatpush3.bf16.msra.mxu0 %v8806_v34 }
0x26f5   : > { %8310 = vmatprep.subr.bf16.mxu0 %v9772_v8 }
0x26f8   : > { %8311 = vmatpush3.bf16.msra.mxu0 %v8807_v4 }
0x26f9   : > { %8324 = vmatprep.subr.bf16.mxu0 %v9772_v8 }
0x277c   : > { %v5755_v51 = vpop.f32.mrf.mxu0 }
0x277d   : > { %5761 = vst.msk [vmem:[#allocation2] sm:$0xff] %vm2531_vm2, %v5755_v51 }
0x277e   : > { %v8262_v52 = vpop.f32.mrf.mxu0 }
0x2780   : > { %v5758_v53 = vpop.f32.mrf.mxu0 }
0x2782   : > { %v8263_v55 = vpop.f32.mrf.mxu0 }
0x2784   : > { %v5867_v56 = vpop.f32.mrf.mxu0 }
0x2785   : > { %5874 = vrot.lane.b32.xlu1 %v5867_v56, %s11347_s10 }
0x2786   : > { %v8274_v57 = vpop.f32.mrf.mxu0 }
0x2788   : > { %v5870_v59 = vpop.f32.mrf.mxu0 }
0x278a   : > { %v8275_v60 = vpop.f32.mrf.mxu0 }
0x27a9   : > { %v5982_v62 = vpop.f32.mrf.mxu0 }
0x27aa   : > { %5989 = vrot.lane.b32.xlu0 %v5982_v62, %s11349_s4 }
0x27ab   : > { %v8286_v1 = vpop.f32.mrf.mxu0 }
0x27ad   : > { %v5985_v2 = vpop.f32.mrf.mxu0 }
0x27af   : > { %v8287_v3 = vpop.f32.mrf.mxu0 }
0x27b3   : > { %v6097_v5 = vpop.f32.mrf.mxu0 }
0x27b4   : > { %6104 = vrot.lane.b32.xlu1 %v6097_v5, %s11350_s5 }
0x27b5   : > { %v8298_v6 = vpop.f32.mrf.mxu0 }
0x27b7   : > { %v6100_v7 = vpop.f32.mrf.mxu0 }
0x27b9   : > { %v8299_v9 = vpop.f32.mrf.mxu0 }
0x27f7   : > { %v5875_v10 = vpop.permute.xlu1 %5874 }
0x27f8   : > { %5877 = vst.msk [vmem:[#allocation2] sm:$0xff] %vm2755_vm4, %v5875_v10 }
0x281c   : > { %v5990_v12 = vpop.permute.xlu0 %5989 }
0x281d   : > { %5992 = vst.msk [vmem:[#allocation2] sm:$0xff] %vm2871_vm5, %v5990_v12 }
0x2826   : > { %v6105_v13 = vpop.permute.xlu1 %6104 }
0x2827   : > { %6107 = vst.msk [vmem:[#allocation2] sm:$0xff] %vm2987_vm6, %v6105_v13 }
0x282e   : > { %v6108_v15 = vld [vmem:[#allocation2] sm:$0xff] }
0x282f   : > { %v6109_v58 = vpack.c.bf16 %v6108_v15, %v6108_v15 }
0x2831   : > { %8305 = vmatmul.mubr.msk.bf16.vlgmr.msra.gmra.mxu1 %vm2423_vm0, %v6109_v58 }
0x2832   : > { %8317 = vmatpush3.bf16.msra.mxu1 %v8804_v54  ;;  %8320 = vmatprep.mubr.msk.bf16.mxu1 %vm9773_vm1, %v9772_v8 }
0x2833   : > { %8318 = vmatprep.subr.bf16.mxu1 %v9772_v8 }
0x2836   : > { %8319 = vmatpush3.bf16.msra.mxu1 %v8805_v50 }
0x2837   : > { %8330 = vmatprep.subr.bf16.mxu1 %v9772_v8 }
0x2839   : > { %8321 = vmatmul.mubr.msk.bf16.vlgmr.msra.gmra.mxu1 %vm2423_vm0, %v10774_v61 }
0x283a   : > { %8332 = vmatprep.mubr.msk.bf16.mxu1 %vm9773_vm1, %v9772_v8 }
0x28f1   : > { %v6170_v20 = vpop.f32.mrf.mxu1 }
0x28f2   : > { %v6171_v18 = vadd.f32 %v7703_v17, %v6170_v20  ;;  %v8935_v20 = vld [vmem:[%s10453_s7] ss:$0 sm:$0xff] }
0x28f3   : > { %v8306_v19 = vpop.f32.mrf.mxu1 }
0x28f4   : > { %v11024_v14 = vadd.f32 %v6171_v18, %v10915_v63 }
0x28f5   : > { %v6173_v21 = vpop.f32.mrf.mxu1 }
0x28f6   : > { %v6179_v22 = vsel %vm2423_vm0, %v11024_v14, 0.0 }
0x28f7   : > { %6180 = vadd.xlane.f32.xlu0 %v6179_v22  ;;  %v8307_v23 = vpop.f32.mrf.mxu1 }
0x28f9   : > { %v6330_v0 = vpop.f32.mrf.mxu1 }
0x28fa   : > { %v6331_v29 = vadd.f32 %v7713_v27, %v6330_v0 }
0x28fb   : > { %v8322_v24 = vpop.f32.mrf.mxu1 }
0x28fc   : > { %v11029_v30 = vpack.c.bf16 %v6331_v29, %v6331_v29 }
0x28fd   : > { %v6333_v61 = vpop.f32.mrf.mxu1 }
0x28fe   : > { %v6343_v44 = vsel %vm2531_vm2, %v11029_v30, 0 }
0x28ff   : > { %v8323_v26 = vpop.f32.mrf.mxu1 }
0x290d   : > { %6450 = vrot.lane.b32.xlu0 %v11029_v30, %s11359_s9 }
0x2911   : > { %6565 = vrot.lane.b32.xlu0 %v11029_v30, %s11361_s13 }
0x2915   : > { %6680 = vrot.lane.b32.xlu0 %v11029_v30, %s11341_s2 }
0x2980   : > { %v6181_v63 = vpop.xlane.xlu0 %6180 }
0x2981   : > { %v6182_v25 = vmul.f32 0.03125, %v6181_v63 }
0x2983   : > { %v6183_v31 = vsub.f32 %v11024_v14, %v6182_v25 }
0x2984   : > { %v6451_v52 = vpop.permute.xlu0 %6450 }
0x2985   : > { %v6184_v32 = vmul.f32 %v6183_v31, %v6183_v31  ;;  %v6456_v57 = vsel %vm2531_vm2, %v6451_v52, 0 }
0x2987   : > { %v6185_v33 = vsel %vm2423_vm0, %v6184_v32, 0.0 }
0x2988   : > { %6186 = vadd.xlane.f32.xlu1 %v6185_v33  ;;  %v6566_v59 = vpop.permute.xlu0 %6565 }
0x2989   : > { %v6571_v11 = vsel %vm2531_vm2, %v6566_v59, 0 }
0x298c   : > { %v6681_v62 = vpop.permute.xlu0 %6680 }
0x298d   : > { %v6686_v1 = vsel %vm2531_vm2, %v6681_v62, 0 }
0x2a11   : > { %v6187_v35 = vpop.xlane.xlu1 %6186 }
0x2a12   : > { %v6188_v36 = vmul.f32 0.03125, %v6187_v35 }
0x2a14   : > { %v6189_v28 = vadd.f32 1e-05, %v6188_v36 }
0x2a16   : > { %8914 = vrsqrt.f32 %v6189_v28 }
0x2a23   : > { %v8915_v37 = vpop.eup %8914 }
0x2a24   : > { %v6191_v39 = vmul.f32 %v8915_v37, %v6183_v31 }
0x2a26   : > { %v6198_v42 = vmul.f32 %v7707_v38, %v6191_v39 }
0x2a28   : > { %v6205_v43 = vadd.f32 %v7708_v41, %v6198_v42 }
0x2a2a   : > { %v6206_v16 = vpack.c.bf16 %v6205_v43, %v6205_v43 }
0x2a2c   : > { %8313 = vmatmul.mubr.msk.bf16.vlgmr.msra.gmra.mxu0 %vm2423_vm0, %v6206_v16 }
0x2a2d   : > { %8325 = vmatpush3.bf16.xpose.msra.mxu0 %v6343_v44  ;;  %8326 = vmatprep.mubr.msk.bf16.mxu0 %vm9773_vm1, %v9772_v8 }
0x2a2e   : > { %8336 = vmatprep.subr.bf16.mxu0 %v9772_v8 }
0x2aec   : > { %v6267_v46 = vpop.f32.mrf.mxu0 }
0x2aed   : > { %v6268_v47 = vadd.f32 %v7709_v45, %v6267_v46 }
0x2aee   : > { %v8314_v49 = vpop.f32.mrf.mxu0 }
0x2aef   : > { %v6336_v51 = vmul.f32 0.35355338, %v6268_v47 }
0x2af0   : > { %v6270_v53 = vpop.f32.mrf.mxu0 }
0x2af1   : > { %v6337_v55 = vpack.c.bf16 %v6336_v51, %v6336_v51 }
0x2af2   : > { %v8315_v56 = vpop.f32.mrf.mxu0 }
0x2af3   : > { %6448 = vrot.lane.b32.xlu1 %v6337_v55, %s11359_s9  ;;  %8327 = vmatmul.mubr.msk.bf16.vlgmr.msra.gmra.mxu0 %vm2531_vm2, %v6337_v55  ;;  %s11386_s9 = sld [smem:[#allocation86_spill]] }
0x2af4   : > { %8337 = vmatpush3.bf16.xpose.msra.mxu0 %v6456_v57  ;;  %8338 = vmatprep.mubr.msk.bf16.mxu0 %vm9773_vm1, %v9772_v8 }
0x2af5   : > { %8348 = vmatprep.subr.bf16.mxu0 %v9772_v8 }
0x2af7   : > { %6563 = vrot.lane.b32.xlu1 %v6337_v55, %s11361_s13  ;;  %s11387_s13 = sld [smem:[#allocation82_spill]] }
0x2afb   : > { %6678 = vrot.lane.b32.xlu1 %v6337_v55, %s11341_s2  ;;  %s2416_s2 = scalar_lea.vmem %s10147_s14, %s10395_s11 }
0x2b65   : > { %v6449_v60 = vpop.permute.xlu1 %6448 }
0x2b66   : > { %8339 = vmatmul.mubr.msk.bf16.vlgmr.msra.gmra.mxu0 %vm2531_vm2, %v6449_v60 }
0x2b67   : > { %8349 = vmatpush3.bf16.xpose.msra.mxu0 %v6571_v11  ;;  %8350 = vmatprep.mubr.msk.bf16.mxu0 %vm9773_vm1, %v9772_v8 }
0x2b68   : > { %8360 = vmatprep.subr.bf16.mxu0 %v9772_v8 }
0x2b69   : > { %v6564_v40 = vpop.permute.xlu1 %6563 }
0x2b6d   : > { %v6679_v2 = vpop.permute.xlu1 %6678 }
0x2b6e   : > { %8351 = vmatmul.mubr.msk.bf16.vlgmr.msra.gmra.mxu0 %vm2531_vm2, %v6564_v40 }
0x2b6f   : > { %8361 = vmatpush3.bf16.xpose.msra.mxu0 %v6686_v1  ;;  %8362 = vmatprep.mubr.msk.bf16.mxu0 %vm9773_vm1, %v9772_v8 }
0x2b70   : > { %8372 = vmatprep.subr.bf16.mxu0 %v9772_v8 }
0x2b76   : > { %8363 = vmatmul.mubr.msk.bf16.vlgmr.msra.gmra.mxu0 %vm2531_vm2, %v6679_v2 }
0x2b77   : > { %8376 = vmatprep.mubr.msk.bf16.mxu0 %vm9773_vm1, %v9772_v8 }
0x2bb3   : > { %v6379_v3 = vpop.f32.mrf.mxu0 }
0x2bb4   : > { %v6380_v5 = vadd.f32 %v10833_v48, %v6379_v3 }
0x2bb5   : > { %v8328_v6 = vpop.f32.mrf.mxu0 }
0x2bb6   : > { %v6385_v7 = vsel %vm2531_vm2, %v6380_v5, -inf }
0x2bb7   : > { %6386 = vmax.xlane.f32.xlu0 %v6385_v7  ;;  %v6382_v9 = vpop.f32.mrf.mxu0 }
0x2bb9   : > { %v8329_v10 = vpop.f32.mrf.mxu0 }
0x2c26   : > { %v6492_v12 = vpop.f32.mrf.mxu0 }
0x2c27   : > { %v6493_v13 = vadd.f32 %v10833_v48, %v6492_v12 }
0x2c28   : > { %v8340_v15 = vpop.f32.mrf.mxu0 }
0x2c29   : > { %v6498_v54 = vsel %vm2531_vm2, %v6493_v13, -inf }
0x2c2a   : > { %6499 = vmax.xlane.f32.xlu1 %v6498_v54  ;;  %v6495_v58 = vpop.f32.mrf.mxu0 }
0x2c2c   : > { %v8341_v50 = vpop.f32.mrf.mxu0 }
0x2c2e   : > { %v6607_v17 = vpop.f32.mrf.mxu0 }
0x2c2f   : > { %v6608_v18 = vadd.f32 %v8935_v20, %v6607_v17 }
0x2c30   : > { %v8352_v19 = vpop.f32.mrf.mxu0 }
0x2c31   : > { %v6613_v21 = vsel %vm2531_vm2, %v6608_v18, -inf }
0x2c32   : > { %6614 = vmax.xlane.f32.xlu0 %v6613_v21  ;;  %v6610_v22 = vpop.f32.mrf.mxu0  ;;  %v8809_v21 = vld [vmem:[%s11386_s9] sm:$0xff]  }
0x2c34   : > { %v8353_v23 = vpop.f32.mrf.mxu0 }
0x2c36   : > { %v6722_v0 = vpop.f32.mrf.mxu0 }
0x2c37   : > { %v6723_v24 = vadd.f32 %v8935_v20, %v6722_v0 }
0x2c38   : > { %v8364_v61 = vpop.f32.mrf.mxu0 }
0x2c39   : > { %v6728_v48 = vsel %vm2531_vm2, %v6723_v24, -inf }
0x2c3a   : > { %6729 = vmax.xlane.f32.xlu0 %v6728_v48  ;;  %v6725_v26 = vpop.f32.mrf.mxu0 }
0x2c3c   : > { %v8365_v27 = vpop.f32.mrf.mxu0 }
0x2c40   : > { %v6387_v29 = vpop.xlane.xlu0 %6386 }
0x2c41   : > { %v6388_v63 = vsub.f32 %v6380_v5, %v6387_v29 }
0x2c43   : > { %v6389_v25 = vmul.f32 1.442695, %v6388_v63 }
0x2c45   : > { %8916 = vpow2.f32 %v6389_v25 }
0x2c52   : > { %v8917_v31 = vpop.eup %8916 }
0x2c53   : > { %v6391_v32 = vsel %vm2531_vm2, %v8917_v31, 0.0 }
0x2c54   : > { %6392 = vadd.xlane.f32.xlu1 %v6391_v32 }
0x2c65   : > { %6398 = vrot.lane.b32.xlu1 %v11029_v30, %s11357_s0 }
0x2cb3   : > { %v6500_v33 = vpop.xlane.xlu1 %6499 }
0x2cb4   : > { %v6501_v34 = vsub.f32 %v6493_v13, %v6500_v33  ;;  %v7725_v33 = vld [vmem:[%s11387_s13] ss:$0 sm:$0xff] }
0x2cb6   : > { %v6502_v4 = vmul.f32 1.442695, %v6501_v34 }
0x2cb8   : > { %8918 = vpow2.f32 %v6502_v4 }
0x2cbb   : > { %v6615_v35 = vpop.xlane.xlu0 %6614 }
0x2cbc   : > { %v6616_v36 = vsub.f32 %v6608_v18, %v6615_v35  ;;  %v8808_v18 = vld [vmem:[%s11386_s9 + $0x8] sm:$0xff]  }
0x2cbd   : > { %8373 = vmatpush3.bf16.msra.mxu0 %v8808_v18  ;;  %v7741_v18 = vld [vmem:[#allocation41] ss:$0 sm:$0xff] }
0x2cbe   : > { %v6617_v28 = vmul.f32 1.442695, %v6616_v36  ;;  %8374 = vmatprep.subr.bf16.mxu0 %v9772_v8 }
0x2cc0   : > { %8920 = vpow2.f32 %v6617_v28 }
0x2cc1   : > { %8375 = vmatpush3.bf16.msra.mxu0 %v8809_v21 }
0x2cc2   : > { %8388 = vmatprep.subr.bf16.mxu0 %v9772_v8 }
0x2cc3   : > { %v6730_v37 = vpop.xlane.xlu0 %6729 }
0x2cc4   : > { %v6731_v38 = vsub.f32 %v6723_v24, %v6730_v37 }
0x2cc5   : > { %v8919_v39 = vpop.eup %8918 }
0x2cc6   : > { %v6732_v41 = vmul.f32 1.442695, %v6731_v38  ;;  %v6504_v42 = vsel %vm2531_vm2, %v8919_v39, 0.0 }
0x2cc7   : > { %6505 = vadd.xlane.f32.xlu0 %v6504_v42 }
0x2cc8   : > { %8922 = vpow2.f32 %v6732_v41 }
0x2ccd   : > { %v8921_v43 = vpop.eup %8920 }
0x2cce   : > { %v6619_v16 = vsel %vm2531_vm2, %v8921_v43, 0.0 }
0x2ccf   : > { %6620 = vadd.xlane.f32.xlu1 %v6619_v16 }
0x2cd5   : > { %v8923_v44 = vpop.eup %8922 }
0x2cd6   : > { %v6734_v45 = vsel %vm2531_vm2, %v8923_v44, 0.0 }
0x2cd7   : > { %6735 = vadd.xlane.f32.xlu0 %v6734_v45 }
0x2cdd   : > { %v6393_v46 = vpop.xlane.xlu1 %6392 }
0x2cde   : > { %8924 = vrcp.f32 %v6393_v46 }
0x2ce0   : > { %6625 = vrot.lane.b32.xlu1 %v11029_v30, %s11358_s8 }
0x2ce1   : > { %v6399_v47 = vpop.permute.xlu1 %6398 }
0x2ce2   : > { %v6404_v49 = vsel %vm2595_vm3, %v6399_v47, 0 }
0x2ce3   : > { %8331 = vmatpush3.bf16.msra.mxu1 %v6404_v49 }
0x2ce4   : > { %6740 = vrot.lane.b32.xlu1 %v11029_v30, %s11360_s12  ;;  %8342 = vmatprep.subr.bf16.mxu1 %v9772_v8  ;;  %s11389_s12 = sld [smem:[#allocation92_spill]] }
0x2cea   : > { %v8813_v46 = vld [vmem:[%s11389_s12 + $0x10] sm:$0xff]  }
0x2ceb   : > { %v8925_v51 = vpop.eup %8924 }
0x2cec   : > { %v6395_v52 = vmul.f32 %v8925_v51, %v8917_v31 }
0x2ced   : > { %6510 = vrot.lane.b32.xlu0 %v11029_v30, %s11356_s3 }
0x2cee   : > { %v6396_v53 = vpack.c.bf16 %v6395_v52, %v6395_v52 }
0x2cf0   : > { %8333 = vmatmul.mubr.msk.bf16.vlgmr.msra.gmra.mxu1 %vm2531_vm2, %v6396_v53  ;;  %v7729_v53 = vld [vmem:[#allocation10] ss:$0 sm:$0xff] }
0x2cf1   : > { %8344 = vmatprep.mubr.msk.bf16.mxu1 %vm9773_vm1, %v9772_v8 }
0x2d50   : > { %v6506_v55 = vpop.xlane.xlu0 %6505 }
0x2d51   : > { %8926 = vrcp.f32 %v6506_v55 }
0x2d58   : > { %v6621_v56 = vpop.xlane.xlu1 %6620 }
0x2d59   : > { %8928 = vrcp.f32 %v6621_v56  ;;  %v7730_v56 = vld [vmem:[#allocation8] ss:$0 sm:$0xff] }
0x2d5c   : > { %v6626_v40 = vpop.permute.xlu1 %6625 }
0x2d5d   : > { %v6631_v2 = vsel %vm2595_vm3, %v6626_v40, 0  ;;  %v7731_v40 = vld [vmem:[#allocation5] ss:$0 sm:$0xff] }
0x2d5e   : > { %v8927_v57 = vpop.eup %8926 }
0x2d5f   : > { %v6508_v60 = vmul.f32 %v8927_v57, %v8919_v39 }
0x2d60   : > { %v6736_v59 = vpop.xlane.xlu0 %6735  ;;  %v6741_v5 = vpop.permute.xlu1 %6740 }
0x2d61   : > { %8930 = vrcp.f32 %v6736_v59  ;;  %v6509_v30 = vpack.c.bf16 %v6508_v60, %v6508_v60  ;;  %v6746_v9 = vsel %vm2595_vm3, %v6741_v5, 0 }
0x2d64   : > { %v6511_v11 = vpop.permute.xlu0 %6510 }
0x2d65   : > { %v6516_v62 = vsel %vm2595_vm3, %v6511_v11, 0  ;;  %v8814_v11 = vld [vmem:[%s11389_s12 + $0x8] sm:$0xff]  }
0x2d66   : > { %8343 = vmatpush3.bf16.msra.mxu1 %v6516_v62  ;;  %v8929_v1 = vpop.eup %8928  ;;  %v8815_v62 = vld [vmem:[%s11389_s12] sm:$0xff]  }
0x2d67   : > { %8354 = vmatprep.subr.bf16.mxu1 %v9772_v8  ;;  %v6623_v3 = vmul.f32 %v8929_v1, %v8921_v43 }
0x2d69   : > { %8345 = vmatmul.mubr.msk.bf16.vlgmr.msra.gmra.mxu1 %vm2531_vm2, %v6509_v30  ;;  %v6624_v6 = vpack.c.bf16 %v6623_v3, %v6623_v3 }
0x2d6a   : > { %8355 = vmatpush3.bf16.msra.mxu1 %v6631_v2  ;;  %8356 = vmatprep.mubr.msk.bf16.mxu1 %vm9773_vm1, %v9772_v8 }
0x2d6b   : > { %8366 = vmatprep.subr.bf16.mxu1 %v9772_v8 }
0x2d6e   : > { %v8931_v7 = vpop.eup %8930 }
0x2d6f   : > { %v6738_v10 = vmul.f32 %v8931_v7, %v8923_v44 }
0x2d71   : > { %8357 = vmatmul.mubr.msk.bf16.vlgmr.msra.gmra.mxu1 %vm2531_vm2, %v6624_v6  ;;  %v6739_v12 = vpack.c.bf16 %v6738_v10, %v6738_v10  ;;  %v8817_v10 = vld [vmem:[%s10142_s20] sm:$0xff]  }
0x2d72   : > { %8367 = vmatpush3.bf16.msra.mxu1 %v6746_v9  ;;  %8368 = vmatprep.mubr.msk.bf16.mxu1 %vm9773_vm1, %v9772_v8  ;;  %v8816_v9 = vld [vmem:[%s10142_s20 + $0x8] sm:$0xff]  }
0x2d73   : > { %8380 = vmatprep.subr.bf16.mxu1 %v9772_v8 }
0x2d79   : > { %8369 = vmatmul.mubr.msk.bf16.vlgmr.msra.gmra.mxu1 %vm2531_vm2, %v6739_v12  ;;  %v7735_v12 = vld [vmem:[#allocation7] ss:$0 sm:$0xff] }
0x2d7a   : > { %8384 = vmatprep.mubr.msk.bf16.mxu1 %vm9773_vm1, %v9772_v8 }
0x2db0   : > { %v6440_v13 = vpop.f32.mrf.mxu1 }
0x2db1   : > { %6446 = vst.msk [vmem:[#allocation2] sm:$0xff] %vm2531_vm2, %v6440_v13 }
0x2db2   : > { %v8334_v15 = vpop.f32.mrf.mxu1 }
0x2db4   : > { %v6443_v54 = vpop.f32.mrf.mxu1 }
0x2db6   : > { %v8335_v58 = vpop.f32.mrf.mxu1 }
0x2e29   : > { %v6552_v50 = vpop.f32.mrf.mxu1 }
0x2e2a   : > { %6559 = vrot.lane.b32.xlu0 %v6552_v50, %s11347_s10 }
0x2e2b   : > { %v8346_v17 = vpop.f32.mrf.mxu1 }
0x2e2d   : > { %v6555_v20 = vpop.f32.mrf.mxu1 }
0x2e2f   : > { %v8347_v19 = vpop.f32.mrf.mxu1 }
0x2e31   : > { %v6667_v22 = vpop.f32.mrf.mxu1 }
0x2e32   : > { %6674 = vrot.lane.b32.xlu1 %v6667_v22, %s11349_s4 }
0x2e33   : > { %v8358_v23 = vpop.f32.mrf.mxu1 }
0x2e35   : > { %v6670_v0 = vpop.f32.mrf.mxu1 }
0x2e37   : > { %v8359_v24 = vpop.f32.mrf.mxu1 }
0x2e39   : > { %v6782_v61 = vpop.f32.mrf.mxu1 }
0x2e3a   : > { %6789 = vrot.lane.b32.xlu0 %v6782_v61, %s11350_s5  ;;  %s11388_s5 = sld [smem:[#allocation91_spill]] }
0x2e3b   : > { %v8370_v48 = vpop.f32.mrf.mxu1 }
0x2e3d   : > { %v6785_v26 = vpop.f32.mrf.mxu1 }
0x2e3f   : > { %v8371_v27 = vpop.f32.mrf.mxu1 }
0x2e40   : > { %v8810_v44 = vld [vmem:[%s11388_s5 + $0x8] sm:$0xff]   ;;  %v8811_v45 = vld [vmem:[%s11388_s5] sm:$0xff]  }
0x2e41   : > { %8381 = vmatpush3.bf16.msra.mxu1 %v8810_v44 }
0x2e42   : > { %8382 = vmatprep.subr.bf16.mxu1 %v9772_v8 }
0x2e45   : > { %8383 = vmatpush3.bf16.msra.mxu1 %v8811_v45 }
0x2e46   : > { %8400 = vmatprep.subr.bf16.mxu1 %v9772_v8 }
0x2e9c   : > { %v6560_v29 = vpop.permute.xlu0 %6559 }
0x2e9d   : > { %6562 = vst.msk [vmem:[#allocation2] sm:$0xff] %vm2755_vm4, %v6560_v29 }
0x2ea4   : > { %v6675_v63 = vpop.permute.xlu1 %6674 }
0x2ea5   : > { %6677 = vst.msk [vmem:[#allocation2] sm:$0xff] %vm2871_vm5, %v6675_v63 }
0x2eac   : > { %v6790_v25 = vpop.permute.xlu0 %6789 }
0x2ead   : > { %6792 = vst.msk [vmem:[#allocation2] sm:$0xff] %vm2987_vm6, %v6790_v25 }
0x2eb4   : > { %v6793_v31 = vld [vmem:[#allocation2] sm:$0xff] }
0x2eb5   : > { %v6794_v32 = vpack.c.bf16 %v6793_v31, %v6793_v31 }
0x2eb7   : > { %8377 = vmatmul.mubr.msk.bf16.vlgmr.msra.gmra.mxu0 %vm2423_vm0, %v6794_v32 }
0x2eb8   : > { %8396 = vmatprep.mubr.msk.bf16.mxu0 %vm9773_vm1, %v9772_v8 }
0x2f77   : > { %v6855_v34 = vpop.f32.mrf.mxu0 }
0x2f78   : > { %v6856_v4 = vadd.f32 %v7725_v33, %v6855_v34 }
0x2f79   : > { %v8378_v35 = vpop.f32.mrf.mxu0 }
0x2f7a   : > { %v6861_v36 = vadd.f32 %v6856_v4, %v11024_v14  ;;  %v8812_v14 = vld [vmem:[%s11389_s12 + $0x18] sm:$0xff]  }
0x2f7b   : > { %v6858_v28 = vpop.f32.mrf.mxu0  ;;  %8389 = vmatpush3.bf16.msra.mxu0 %v8812_v14 }
0x2f7c   : > { %v6864_v37 = vsel %vm2423_vm0, %v6861_v36, 0.0  ;;  %8390 = vmatprep.subr.bf16.mxu0 %v9772_v8 }
0x2f7d   : > { %6865 = vadd.xlane.f32.xlu1 %v6864_v37  ;;  %v8379_v38 = vpop.f32.mrf.mxu0 }
0x2f7f   : > { %8391 = vmatpush3.bf16.msra.mxu0 %v8813_v46 }
0x2f80   : > { %8392 = vmatprep.subr.bf16.mxu0 %v9772_v8 }
0x2f83   : > { %8393 = vmatpush3.bf16.msra.mxu0 %v8814_v11 }
0x2f84   : > { %8394 = vmatprep.subr.bf16.mxu0 %v9772_v8 }
0x2f87   : > { %8395 = vmatpush3.bf16.msra.mxu0 %v8815_v62 }
0x3006   : > { %v6866_v39 = vpop.xlane.xlu1 %6865 }
0x3007   : > { %v6867_v41 = vmul.f32 0.03125, %v6866_v39 }
0x3009   : > { %v6868_v42 = vsub.f32 %v6861_v36, %v6867_v41 }
0x300b   : > { %v6869_v43 = vmul.f32 %v6868_v42, %v6868_v42 }
0x300d   : > { %v6870_v16 = vsel %vm2423_vm0, %v6869_v43, 0.0 }
0x300e   : > { %6871 = vadd.xlane.f32.xlu0 %v6870_v16 }
0x3097   : > { %v6872_v47 = vpop.xlane.xlu0 %6871 }
0x3098   : > { %v6873_v49 = vmul.f32 0.03125, %v6872_v47 }
0x309a   : > { %v6874_v51 = vadd.f32 1e-05, %v6873_v49 }
0x309c   : > { %8932 = vrsqrt.f32 %v6874_v51 }
0x30a9   : > { %v8933_v52 = vpop.eup %8932 }
0x30aa   : > { %v6876_v55 = vmul.f32 %v8933_v52, %v6868_v42 }
0x30ac   : > { %v6883_v57 = vmul.f32 %v7729_v53, %v6876_v55 }
0x30ae   : > { %v6890_v59 = vadd.f32 %v7730_v56, %v6883_v57 }
0x30b0   : > { %v6891_v60 = vpack.c.bf16 %v6890_v59, %v6890_v59 }
0x30b2   : > { %8385 = vmatmul.mubr.msk.bf16.vlgmr.msra.gmra.mxu1 %vm2423_vm0, %v6891_v60 }
0x30b3   : > { %8404 = vmatprep.mubr.msk.bf16.mxu1 %vm9773_vm1, %v9772_v8  ;;  %8401 = vmatpush3.bf16.msra.mxu1 %v8816_v9 }
0x30b4   : > { %8402 = vmatprep.subr.bf16.mxu1 %v9772_v8 }
0x30b7   : > { %8403 = vmatpush3.bf16.msra.mxu1 %v8817_v10 }
0x3172   : > { %v6952_v30 = vpop.f32.mrf.mxu1 }
0x3173   : > { %v6953_v1 = vadd.f32 %v7731_v40, %v6952_v30 }
0x3174   : > { %v8386_v2 = vpop.f32.mrf.mxu1 }
0x3175   : > { %v6958_v3 = vmax.f32 %v6953_v1, 0.0 }
0x3176   : > { %v6955_v5 = vpop.f32.mrf.mxu1 }
0x3177   : > { %v6959_v6 = vpack.c.bf16 %v6958_v3, %v6958_v3 }
0x3178   : > { %v8387_v7 = vpop.f32.mrf.mxu1 }
0x3179   : > { %8397 = vmatmul.mubr.msk.bf16.vlgmr.msra.gmra.mxu0 %vm3195_vm7, %v6959_v6 }
0x3239   : > { %v7036_v13 = vpop.f32.mrf.mxu0 }
0x323a   : > { %v7037_v15 = vadd.f32 %v7735_v12, %v7036_v13 }
0x323b   : > { %v8398_v54 = vpop.f32.mrf.mxu0 }
0x323c   : > { %v7042_v58 = vadd.f32 %v7037_v15, %v6861_v36 }
0x323d   : > { %v7039_v50 = vpop.f32.mrf.mxu0 }
0x323e   : > { %v7043_v17 = vpack.c.bf16 %v7042_v58, %v7042_v58 }
0x323f   : > { %v8399_v20 = vpop.f32.mrf.mxu0 }
0x3240   : > { %8405 = vmatmul.mubr.msk.bf16.vlgmr.msra.gmra.mxu1 %vm2423_vm0, %v7043_v17 }
0x3300   : > { %v7104_v19 = vpop.f32.mrf.mxu1 }
0x3301   : > { %v7105_v21 = vadd.f32 %v7741_v18, %v7104_v19 }
0x3302   : > { %v8406_v22 = vpop.f32.mrf.mxu1 }
0x3303   : > { %7111 = vst.msk [vmem:[%s2416_s2] sm:$0xff] %vm7110_vm9, %v7105_v21 }
0x3304   : > { %v7107_v8 = vpop.f32.mrf.mxu1 }
0x3306   : > { %v8407_v23 = vpop.f32.mrf.mxu1 }
0x3307 PF: > { %s165_s15 = sadd.s32 1, %s9674_s15  }
0x3308   : > { %p162_p1 = scmp.ge.s32.totalorder %s165_s15, 4  }
0x330a   :  { %164 = sbr.rel (!%p162_p1) target bundleno = 153 (0x99), region = 514 }
0x330f   :  { %7131 = vsyncpa [#allocation4], 1 }
0x3310   :  { %7133 = vsyncpa [#allocation4 + $0x1], 1 }
0x3311   :  { %7134 = vsyncpa [#allocation6], 1 }
0x3312   :  { %7135 = vsyncpa [#allocation9], 1 }
0x3313   :  { %7136 = vsyncpa [#allocation12], 1 }
0x3314   :  { %7137 = vsyncpa [#allocation15], 1 }
0x3315   :  { %7138 = vsyncpa [#allocation18], 1 }
0x3316   :  { %7139 = vsyncpa [#allocation21], 1 }
0x3317   :  { %7140 = vsyncpa [#allocation24], 1 }
0x3318   :  { %7141 = vsyncpa [#allocation27], 1 }
0x3319   :  { %7142 = vsyncpa [#allocation30], 1 }
0x331a   :  { %7143 = vsyncpa [#allocation33], 1 }
0x331b   :  { %7144 = vsyncpa [#allocation36], 1 }
0x331c   :  { %7145 = vsyncpa [#allocation39], 1 }
0x331d   :  { %7146 = vsyncpa [#allocation42], 1 }

</bundles_post_ra>
